<compile_context>
chip_gen: v7x
topology: tpu7x:2x2x1
jax: 0.10.0
libtpu: 0.0.40
codegen_flags: <defaults>
</compile_context>

<pallas_src>
import functools

import jax
import jax.numpy as jnp
from jax.experimental import pallas as pl
from jax.experimental.pallas import tpu as pltpu

_SQRT_2_OVER_PI = 0.7978845608028654
_GELU_C2 = _SQRT_2_OVER_PI * 0.044715


def _round_up(x, m):
    return (x + m - 1) // m * m


def _bspec(shape, index_map, *, buffers=None):
    """BlockSpec, optionally single/multi-buffered. Falls back cleanly if this
    JAX build's BlockSpec has no pipeline_mode kwarg."""
    if buffers is not None and hasattr(pl, "Buffered"):
        try:
            return pl.BlockSpec(shape, index_map, pipeline_mode=pl.Buffered(buffers))
        except TypeError:
            pass
    return pl.BlockSpec(shape, index_map)


def _gelu_tanh(h_f32, gelu_dtype):
    # 0.5*h*(1+tanh(c*(h+0.044715*h^3))) == h*(0.5+0.5*tanh(h*(c1+c2*h*h)))
    h = h_f32.astype(gelu_dtype)
    c1 = jnp.asarray(_SQRT_2_OVER_PI, gelu_dtype)
    c2 = jnp.asarray(_GELU_C2, gelu_dtype)
    t = jnp.tanh(h * (c1 + c2 * (h * h)))           # tanh goes to the EUP slot
    return h * (0.5 + 0.5 * t)


# ----------------------------- kernel bodies ------------------------------ #

def _ffn_kernel_resident(x_ref, w1_ref, b1_ref, w2_ref, b2_ref, o_ref, *,
                         compute_dtype, gelu_dtype):
    """Weights fully resident in VMEM; 1-D grid over row tiles."""
    x = x_ref[...].astype(compute_dtype)
    h = jnp.dot(x, w1_ref[...], preferred_element_type=jnp.float32)
    h = h + b1_ref[...].astype(jnp.float32)
    g = _gelu_tanh(h, gelu_dtype)
    out = jnp.dot(g.astype(compute_dtype), w2_ref[...],
                  preferred_element_type=jnp.float32)
    o_ref[...] = (out + b2_ref[...].astype(jnp.float32)).astype(o_ref.dtype)


def _ffn_kernel_streamed(x_ref, w1_ref, b1_ref, w2_ref, b2_ref, o_ref, acc_ref,
                         *, compute_dtype, gelu_dtype):
    """H-tiled fallback: grid = (row tiles, hidden tiles); f32 VMEM accumulator."""
    k = pl.program_id(1)

    @pl.when(k == 0)
    def _init():
        acc_ref[...] = jnp.zeros_like(acc_ref)

    x = x_ref[...].astype(compute_dtype)
    h = jnp.dot(x, w1_ref[...], preferred_element_type=jnp.float32)
    h = h + b1_ref[...].astype(jnp.float32)
    g = _gelu_tanh(h, gelu_dtype)
    acc_ref[...] += jnp.dot(g.astype(compute_dtype), w2_ref[...],
                            preferred_element_type=jnp.float32)

    @pl.when(k == pl.num_programs(1) - 1)
    def _finalize():
        o_ref[...] = (acc_ref[...]
                      + b2_ref[...].astype(jnp.float32)).astype(o_ref.dtype)


# ------------------------------ host helpers ------------------------------ #

def _tpu_info():
    """(generation string, VMEM capacity bytes) — trace-time query w/ fallbacks."""
    kind = ""
    try:
        kind = jax.devices()[0].device_kind.lower()
    except Exception:
        pass
    if "v7" in kind or "tpu7" in kind:
        gen = "v7x"
    elif "v6" in kind:
        gen = "v6e"
    elif "v5 lite" in kind or "v5e" in kind or "v5lite" in kind:
        gen = "v5e"
    else:
        gen = "unknown"
    vmem = None
    try:
        vmem = int(pltpu.get_tpu_info().vmem_capacity_bytes)
    except Exception:
        vmem = None
    if vmem is None:
        # conservative fallback: assume the smaller (v7x-like) VMEM if unknown
        vmem = (128 << 20) if gen in ("v5e", "v6e") else (64 << 20)
    return gen, vmem


def _pick_row_tile(M, tm_max, prefer_two_tiles):
    """Row tile from a small candidate set, minimizing zero-padding waste.
    On v7x (prefer_two_tiles) we first insist on >=2 tiles so both TCs work."""
    m8 = _round_up(max(M, 1), 8)
    if m8 <= 64:
        return m8
    cap = min(tm_max, m8)
    cands = sorted({c for c in (cap, 512, 384, 256, 128, 64) if 8 <= c <= cap},
                   reverse=True)

    def key(c):
        mp = _round_up(M, c)
        gm = mp // c
        single = 0 if gm >= 2 else 1
        if prefer_two_tiles:
            return (single, mp - M, -c)
        return (mp - M, single, -c)

    return min(cands, key=key)


@functools.partial(jax.jit, static_argnames=("compute_dtype", "force_streamed"))
def feed_forward(x, w1, b1, w2, b2, *, compute_dtype=None, force_streamed=False):
    """x: (B, S, E) -> (B, S, E).  Linear(E,4E) -> tanh-GELU -> Linear(4E,E), fused.

    compute_dtype: MXU operand dtype (None => bfloat16).  Accumulation, bias adds
    stay f32.  force_streamed: force the H-tiled fallback path (for testing).
    """
    B, S, E = x.shape
    E_in, H = w1.shape
    assert E_in == E and w2.shape == (H, E)
    M = B * S
    out_dtype = x.dtype

    gen, vmem_cap = _tpu_info()
    vmem_budget = max(vmem_cap - (24 << 20), 32 << 20)

    if compute_dtype is None:
        compute_dtype = jnp.bfloat16                    # MXU-native on all gens
    compute_dtype = jnp.dtype(compute_dtype)
    # bf16 VPU/EUP exist only on v6e/v7x; keep the GELU chain f32 elsewhere.
    gelu_dtype = (jnp.dtype(jnp.bfloat16)
                  if compute_dtype == jnp.bfloat16 and gen in ("v6e", "v7x")
                  else jnp.dtype(jnp.float32))

    in_b = jnp.dtype(x.dtype).itemsize
    out_b = jnp.dtype(out_dtype).itemsize
    w_b = compute_dtype.itemsize

    w1c = w1.astype(compute_dtype)
    w2c = w2.astype(compute_dtype)
    b1_2 = b1.reshape(1, H)
    b2_2 = b2.reshape(1, E)

    def resident_vmem(tm):
        # conservative: count 2 buffers even for the Buffered(1) resident operands
        return (2 * tm * E * (in_b + out_b)             # x / out tiles
                + 2 * (E * H + H * E) * w_b             # resident weights
                + 2 * (H + E) * 4                       # biases
                + 2 * tm * H * 4                        # h / g temporaries
                + tm * E * 4)                           # f32 output temporary

    def streamed_vmem(tm, th):
        return (2 * tm * E * (in_b + out_b)
                + 2 * (E * th + th * E) * w_b           # double-buffered slabs
                + 2 * (th + E) * 4
                + tm * E * 4                            # f32 accumulator scratch
                + 2 * tm * th * 4)                      # h / g temporaries

    # ---- resident-weights fast path decision -------------------------------
    resident = not force_streamed
    tm_eff = None
    if resident:
        tm_eff = _pick_row_tile(M, 512, prefer_two_tiles=(gen == "v7x"))
        for cand in (tm_eff, 256, 128, 64):
            cand = min(cand, tm_eff)
            if resident_vmem(cand) + (2 << 20) <= vmem_budget:
                tm_eff = cand
                break
        else:
            resident = False

    if resident:
        th_eff = H
        grid_k = 1
        vmem_est = resident_vmem(tm_eff)
    else:
        # streamed path: arithmetic intensity ~ tm flops/byte -> gen-aware tm
        tm_target = {"v6e": 768, "v7x": 384, "v5e": 256}.get(gen, 512)
        tm_eff = min(tm_target, _round_up(M, 8))
        th_eff = H
        cand = (min(512, H) // 128) * 128
        while cand >= 128:
            if H % cand == 0:
                th_eff = cand
                break
            cand -= 128
        while (streamed_vmem(tm_eff, th_eff) + (2 << 20) > vmem_budget
               and tm_eff > 64):
            tm_eff = max(64, _round_up(tm_eff // 2, 8))
        grid_k = H // th_eff
        vmem_est = streamed_vmem(tm_eff, th_eff)

    Mp = _round_up(M, tm_eff)
    grid_m = Mp // tm_eff

    x2 = x.reshape(M, E)
    if Mp != M:
        x2 = jnp.pad(x2, ((0, Mp - M), (0, 0)))

    if resident:
        grid = (grid_m,)
        in_specs = [
            pl.BlockSpec((tm_eff, E), lambda i: (i, 0)),         # x row tile
            _bspec((E, H), lambda i: (0, 0), buffers=1),         # W1 (resident)
            _bspec((1, H), lambda i: (0, 0), buffers=1),         # b1 (resident)
            _bspec((H, E), lambda i: (0, 0), buffers=1),         # W2 (resident)
            _bspec((1, E), lambda i: (0, 0), buffers=1),         # b2 (resident)
        ]
        out_specs = pl.BlockSpec((tm_eff, E), lambda i: (i, 0))
        scratch_shapes = []
        kernel = functools.partial(_ffn_kernel_resident,
                                   compute_dtype=compute_dtype,
                                   gelu_dtype=gelu_dtype)
        dim_sem = ("parallel",)
        weight_bytes = (E * H + H * E) * w_b                     # streamed once
    else:
        grid = (grid_m, grid_k)
        in_specs = [
            pl.BlockSpec((tm_eff, E), lambda i, k: (i, 0)),      # x row tile
            pl.BlockSpec((E, th_eff), lambda i, k: (0, k)),      # W1 slab
            pl.BlockSpec((1, th_eff), lambda i, k: (0, k)),      # b1 slab
            pl.BlockSpec((th_eff, E), lambda i, k: (k, 0)),      # W2 slab
            _bspec((1, E), lambda i, k: (0, 0), buffers=1),      # b2 (constant)
        ]
        out_specs = pl.BlockSpec((tm_eff, E), lambda i, k: (i, 0))
        scratch_shapes = [pltpu.VMEM((tm_eff, E), jnp.float32)]
        kernel = functools.partial(_ffn_kernel_streamed,
                                   compute_dtype=compute_dtype,
                                   gelu_dtype=gelu_dtype)
        dim_sem = ("parallel", "arbitrary")
        weight_bytes = grid_m * (E * H + H * E) * w_b            # re-streamed

    vmem_limit = int(min(vmem_cap,
                         min(vmem_est + (16 << 20),
                             max(vmem_budget, vmem_est + (4 << 20)))))

    out2 = pl.pallas_call(
        kernel,
        out_shape=jax.ShapeDtypeStruct((Mp, E), out_dtype),
        grid_spec=pltpu.PrefetchScalarGridSpec(
            num_scalar_prefetch=0,
            grid=grid,
            in_specs=in_specs,
            out_specs=out_specs,
            scratch_shapes=scratch_shapes,
        ),
        compiler_params=pltpu.CompilerParams(
            dimension_semantics=dim_sem,
            vmem_limit_bytes=vmem_limit,
        ),
        cost_estimate=pl.CostEstimate(
            flops=4 * Mp * E * H,                 # two matmuls, 2*M*E*H each
            transcendentals=Mp * H,               # one tanh per hidden element
            bytes_accessed=int(Mp * E * (in_b + out_b) + weight_bytes
                               + (H + E) * 4),
        ),
    )(x2, w1c, b1_2, w2c, b2_2)

    if Mp != M:
        out2 = out2[:M]
    return out2.reshape(B, S, E)


def _reference(x, w1, b1, w2, b2):
    h = x @ w1 + b1
    g = 0.5 * h * (1.0 + jnp.tanh(jnp.sqrt(2.0 / jnp.pi)
                                  * (h + 0.044715 * h ** 3)))
    return g @ w2 + b2


if __name__ == "__main__":
    # Matches the spec: cfg = {'emb_dim': 768}, x = torch.rand(2, 4, 768)
    B, S, E = 2, 4, 768
    H = 4 * E

    key = jax.random.PRNGKey(0)
    kx, kw1, kb1, kw2, kb2, kx2 = jax.random.split(key, 6)

    x = jax.random.uniform(kx, (B, S, E), dtype=jnp.float32)

    # nn.Linear-style init: U(-1/sqrt(fan_in), 1/sqrt(fan_in))
    lim1 = 1.0 / jnp.sqrt(E)
    lim2 = 1.0 / jnp.sqrt(H)
    w1 = jax.random.uniform(kw1, (E, H), minval=-lim1, maxval=lim1, dtype=jnp.float32)
    b1 = jax.random.uniform(kb1, (H,), minval=-lim1, maxval=lim1, dtype=jnp.float32)
    w2 = jax.random.uniform(kw2, (H, E), minval=-lim2, maxval=lim2, dtype=jnp.float32)
    b2 = jax.random.uniform(kb2, (E,), minval=-lim2, maxval=lim2, dtype=jnp.float32)

    ref = _reference(x, w1, b1, w2, b2)

    # 1) Default path (bf16 MXU operands, resident weights) — loose tolerance.
    out = jax.block_until_ready(feed_forward(x, w1, b1, w2, b2))
    assert out.shape == (B, S, E)
    assert jnp.allclose(out, ref, atol=2.5e-2, rtol=2.5e-2), "default (bf16) path mismatch"

    # 2) Explicit f32 MXU-operand path — tight tolerance.
    out_f32 = jax.block_until_ready(
        feed_forward(x, w1, b1, w2, b2, compute_dtype=jnp.float32))
    assert jnp.allclose(out_f32, ref, atol=1e-4, rtol=1e-4), "f32 path mismatch"

    # 3) Forced streamed (H-tiled) fallback — the path used when weights don't
    #    fit VMEM for very large models; exercised here at small size.
    out_st = jax.block_until_ready(
        feed_forward(x, w1, b1, w2, b2, compute_dtype=jnp.float32,
                     force_streamed=True))
    assert jnp.allclose(out_st, ref, atol=1e-4, rtol=1e-4), "streamed path mismatch"

    # 4) Larger ragged shape: exercises row-tile selection, zero padding and a
    #    multi-tile parallel row grid.
    xb = jax.random.uniform(kx2, (3, 100, E), dtype=jnp.float32)
    refb = _reference(xb, w1, b1, w2, b2)
    outb = jax.block_until_ready(
        feed_forward(xb, w1, b1, w2, b2, compute_dtype=jnp.float32))
    assert outb.shape == (3, 100, E)
    assert jnp.allclose(outb, refb, atol=1e-4, rtol=1e-4), "padded path mismatch"

    print("KERNEL_OK")
</pallas_src>

<mosaic_0001>
module attributes {stable_mosaic.version = 11 : i64} {
  func.func @_ffn_kernel_resident(%arg0: i32, %arg1: memref<8x768xf32, #tpu.memory_space<vmem>>, %arg2: memref<768x3072xbf16, #tpu.memory_space<vmem>>, %arg3: memref<1x3072xf32, #tpu.memory_space<vmem>>, %arg4: memref<3072x768xbf16, #tpu.memory_space<vmem>>, %arg5: memref<1x768xf32, #tpu.memory_space<vmem>>, %arg6: memref<8x768xf32, #tpu.memory_space<vmem>>) attributes {dimension_semantics = [#tpu.dimension_semantics<parallel>], iteration_bounds = array<i64: 1>, scalar_prefetch = 0 : i64, scratch_operands = 0 : i64, tpu.core_type = #tpu.core_type<tc>, window_params = [{transform_indices = @transform_0, window_bounds = array<i64: 8, 768>}, {pipeline_mode = #tpu.pipeline_mode<synchronous>, transform_indices = @transform_1, window_bounds = array<i64: 768, 3072>}, {pipeline_mode = #tpu.pipeline_mode<synchronous>, transform_indices = @transform_2, window_bounds = array<i64: 1, 3072>}, {pipeline_mode = #tpu.pipeline_mode<synchronous>, transform_indices = @transform_3, window_bounds = array<i64: 3072, 768>}, {pipeline_mode = #tpu.pipeline_mode<synchronous>, transform_indices = @transform_4, window_bounds = array<i64: 1, 768>}, {transform_indices = @transform_5, window_bounds = array<i64: 8, 768>}]} {
    %c0 = arith.constant 0 : index
    %c0_0 = arith.constant 0 : index
    %0 = vector.load %arg1[%c0, %c0_0] : memref<8x768xf32, #tpu.memory_space<vmem>>, vector<8x768xf32>
    %1 = arith.truncf %0 : vector<8x768xf32> to vector<8x768xbf16>
    %c0_1 = arith.constant 0 : index
    %c0_2 = arith.constant 0 : index
    %2 = vector.load %arg2[%c0_1, %c0_2] : memref<768x3072xbf16, #tpu.memory_space<vmem>>, vector<768x3072xbf16>
    %cst = arith.constant dense<0.000000e+00> : vector<8x3072xf32>
    %3 = tpu.matmul %1, %2, %cst {dimension_numbers = #tpu.dot_dimension_numbers<[1], [0], [0], [1], [0, 0, 1, 1], [], []>} : vector<8x768xbf16>, vector<768x3072xbf16>, vector<8x3072xf32> -> vector<8x3072xf32>
    %c0_3 = arith.constant 0 : index
    %c0_4 = arith.constant 0 : index
    %4 = vector.load %arg3[%c0_3, %c0_4] : memref<1x3072xf32, #tpu.memory_space<vmem>>, vector<1x3072xf32>
    %5 = vector.broadcast %4 : vector<1x3072xf32> to vector<8x3072xf32>
    %6 = arith.addf %3, %5 : vector<8x3072xf32>
    %7 = arith.mulf %6, %6 : vector<8x3072xf32>
    %cst_5 = arith.constant 0.0356774069 : f32
    %8 = vector.broadcast %cst_5 : f32 to vector<8x3072xf32>
    %9 = arith.mulf %8, %7 : vector<8x3072xf32>
    %cst_6 = arith.constant 0.797884583 : f32
    %10 = vector.broadcast %cst_6 : f32 to vector<8x3072xf32>
    %11 = arith.addf %10, %9 : vector<8x3072xf32>
    %12 = arith.mulf %6, %11 : vector<8x3072xf32>
    %13 = math.tanh %12 : vector<8x3072xf32>
    %cst_7 = arith.constant 5.000000e-01 : f32
    %14 = vector.broadcast %cst_7 : f32 to vector<8x3072xf32>
    %15 = arith.mulf %14, %13 : vector<8x3072xf32>
    %cst_8 = arith.constant 5.000000e-01 : f32
    %16 = vector.broadcast %cst_8 : f32 to vector<8x3072xf32>
    %17 = arith.addf %16, %15 : vector<8x3072xf32>
    %18 = arith.mulf %6, %17 : vector<8x3072xf32>
    %19 = arith.truncf %18 : vector<8x3072xf32> to vector<8x3072xbf16>
    %c0_9 = arith.constant 0 : index
    %c0_10 = arith.constant 0 : index
    %20 = vector.load %arg4[%c0_9, %c0_10] : memref<3072x768xbf16, #tpu.memory_space<vmem>>, vector<3072x768xbf16>
    %cst_11 = arith.constant dense<0.000000e+00> : vector<8x768xf32>
    %21 = tpu.matmul %19, %20, %cst_11 {dimension_numbers = #tpu.dot_dimension_numbers<[1], [0], [0], [1], [0, 0, 1, 1], [], []>} : vector<8x3072xbf16>, vector<3072x768xbf16>, vector<8x768xf32> -> vector<8x768xf32>
    %c0_12 = arith.constant 0 : index
    %c0_13 = arith.constant 0 : index
    %22 = vector.load %arg5[%c0_12, %c0_13] : memref<1x768xf32, #tpu.memory_space<vmem>>, vector<1x768xf32>
    %23 = vector.broadcast %22 : vector<1x768xf32> to vector<8x768xf32>
    %24 = arith.addf %21, %23 : vector<8x768xf32>
    %c0_14 = arith.constant 0 : index
    %c0_15 = arith.constant 0 : index
    %25 = vector.load %arg6[%c0_14, %c0_15] : memref<8x768xf32, #tpu.memory_space<vmem>>, vector<8x768xf32>
    tpu.vector_store %arg6[%c0_14, %c0_15], %24 {strides = array<i32>} : memref<8x768xf32, #tpu.memory_space<vmem>>, vector<8x768xf32>,
    return
  }
  func.func @transform_0(%arg0: i32) -> (i32, i32) {
    %c0_i32 = arith.constant 0 : i32
    %c0_i32_0 = arith.constant 0 : i32
    return %arg0, %c0_i32 : i32, i32
  }
  func.func @transform_1(%arg0: i32) -> (i32, i32) {
    %c0_i32 = arith.constant 0 : i32
    %c0_i32_0 = arith.constant 0 : i32
    %c0_i32_1 = arith.constant 0 : i32
    return %c0_i32, %c0_i32_0 : i32, i32
  }
  func.func @transform_2(%arg0: i32) -> (i32, i32) {
    %c0_i32 = arith.constant 0 : i32
    %c0_i32_0 = arith.constant 0 : i32
    %c0_i32_1 = arith.constant 0 : i32
    return %c0_i32, %c0_i32_0 : i32, i32
  }
  func.func @transform_3(%arg0: i32) -> (i32, i32) {
    %c0_i32 = arith.constant 0 : i32
    %c0_i32_0 = arith.constant 0 : i32
    %c0_i32_1 = arith.constant 0 : i32
    return %c0_i32, %c0_i32_0 : i32, i32
  }
  func.func @transform_4(%arg0: i32) -> (i32, i32) {
    %c0_i32 = arith.constant 0 : i32
    %c0_i32_0 = arith.constant 0 : i32
    %c0_i32_1 = arith.constant 0 : i32
    return %c0_i32, %c0_i32_0 : i32, i32
  }
  func.func @transform_5(%arg0: i32) -> (i32, i32) {
    %c0_i32 = arith.constant 0 : i32
    %c0_i32_0 = arith.constant 0 : i32
    return %arg0, %c0_i32 : i32, i32
  }
}

</mosaic_0001>

<bundles_post_ra>
// kernel: feed_forward.1
= control target key start
LH: loop header
LB: loop body
LE: loop exit
PB: predicated region body
PF: predicated region fallthrough
CT: control target
= control target key end

     0   :  { %s28986_s1 = inlined_call_operand.vmem [shape: bf16[768,3072], index: 1, kind: input, shape index: {}]   ;;  %s28987_s0 = inlined_call_operand.vmem [shape: f32[8,768], index: 0, kind: input, shape index: {}]   ;;  %s28988_s3 = inlined_call_operand.vmem [shape: bf16[3072,768], index: 3, kind: input, shape index: {}]   ;;  %s28989_s2 = inlined_call_operand.vmem [shape: f32[1,3072], index: 2, kind: input, shape index: {}]   ;;  %s28990_s4 = inlined_call_operand.vmem [shape: f32[1,768], index: 4, kind: input, shape index: {}]   ;;  %s28991_s5 = inlined_call_operand.vmem [shape: f32[8,768], index: 5, kind: output, shape index: {}]  }
   0x1   :  { %v32_v0 = vld [vmem:[%s28986_s1] sm:$0xff]  ;;  %v21_v53 = vld [vmem:[%s28987_s0 + $0x8] sm:$0xff] }
   0x2   :  { %v44_v1 = vld [vmem:[%s28986_s1 + $0x60] sm:$0xff]  ;;  %v21659_v57 = vpack.c.bf16 %v21_v53, %v21_v53 }
   0x3   :  { %v36_v2 = vld [vmem:[%s28986_s1 + $0x20] sm:$0xff]  ;;  %v17193_v3 = vcombine.high %v32_v0, %v44_v1  ;;  %v17192_v5 = vcombine.low %v32_v0, %v44_v1 }
   0x4   :  { %v48_v4 = vld [vmem:[%s28986_s1 + $0x80] sm:$0xff]  ;;  %7102 = vmatprep.mubr.bf16.mxu1 %v21659_v57  ;;  %7594 = vmatprep.mubr.bf16.mxu0 %v21659_v57 }
   0x5   :  { %v56_v6 = vld [vmem:[%s28986_s1 + $0xc0] sm:$0xff]  ;;  %v17201_v8 = vcombine.high %v36_v2, %v48_v4  ;;  %v17200_v9 = vcombine.low %v36_v2, %v48_v4  ;;  %7070 = vmatprep.subr.bf16.mxu1 %v17193_v3 }
   0x6   :  { %v68_v7 = vld [vmem:[%s28986_s1 + $0x120] sm:$0xff]  ;;  %7071 = vmatpush1.bf16.msra.mxu1 %v17192_v5 }
   0x7   :  { %v17217_v10 = vcombine.high %v56_v6, %v68_v7  ;;  %v60_v11 = vld [vmem:[%s28986_s1 + $0xe0] sm:$0xff]  ;;  %7562 = vmatprep.subr.bf16.mxu0 %v17201_v8  ;;  %v17216_v18 = vcombine.low %v56_v6, %v68_v7 }
   0x8   :  { %v72_v12 = vld [vmem:[%s28986_s1 + $0x140] sm:$0xff]  ;;  %7563 = vmatpush1.bf16.msra.mxu0 %v17200_v9 }
   0x9   :  { %v80_v13 = vld [vmem:[%s28986_s1 + $0x180] sm:$0xff]  ;;  %v17225_v14 = vcombine.high %v60_v11, %v72_v12  ;;  %7072 = vmatprep.subr.bf16.mxu1 %v17217_v10  ;;  %v17224_v19 = vcombine.low %v60_v11, %v72_v12 }
   0xa   :  { %v92_v15 = vld [vmem:[%s28986_s1 + $0x1e0] sm:$0xff]  ;;  %7073 = vmatpush1.bf16.msra.mxu1 %v17216_v18 }
   0xb   :  { %v84_v16 = vld [vmem:[%s28986_s1 + $0x1a0] sm:$0xff]  ;;  %v17241_v20 = vcombine.high %v80_v13, %v92_v15  ;;  %7564 = vmatprep.subr.bf16.mxu0 %v17225_v14  ;;  %v17240_v26 = vcombine.low %v80_v13, %v92_v15 }
   0xc   :  { %v96_v17 = vld [vmem:[%s28986_s1 + $0x200] sm:$0xff]  ;;  %7565 = vmatpush1.bf16.msra.mxu0 %v17224_v19 }
   0xd   :  { %v17249_v21 = vcombine.high %v84_v16, %v96_v17  ;;  %v104_v22 = vld [vmem:[%s28986_s1 + $0x240] sm:$0xff]  ;;  %7074 = vmatprep.subr.bf16.mxu1 %v17241_v20  ;;  %v17248_v27 = vcombine.low %v84_v16, %v96_v17 }
   0xe   :  { %v116_v23 = vld [vmem:[%s28986_s1 + $0x2a0] sm:$0xff]  ;;  %7075 = vmatpush1.bf16.msra.mxu1 %v17240_v26 }
   0xf   :  { %v108_v24 = vld [vmem:[%s28986_s1 + $0x260] sm:$0xff]  ;;  %v17265_v28 = vcombine.high %v104_v22, %v116_v23  ;;  %7566 = vmatprep.subr.bf16.mxu0 %v17249_v21  ;;  %v17264_v34 = vcombine.low %v104_v22, %v116_v23 }
  0x10   :  { %v120_v25 = vld [vmem:[%s28986_s1 + $0x2c0] sm:$0xff]  ;;  %7567 = vmatpush1.bf16.msra.mxu0 %v17248_v27 }
  0x11   :  { %v17273_v29 = vcombine.high %v108_v24, %v120_v25  ;;  %v128_v30 = vld [vmem:[%s28986_s1 + $0x300] sm:$0xff]  ;;  %7076 = vmatprep.subr.bf16.mxu1 %v17265_v28  ;;  %v17272_v35 = vcombine.low %v108_v24, %v120_v25 }
  0x12   :  { %v140_v31 = vld [vmem:[%s28986_s1 + $0x360] sm:$0xff]  ;;  %7077 = vmatpush1.bf16.msra.mxu1 %v17264_v34 }
  0x13   :  { %v132_v32 = vld [vmem:[%s28986_s1 + $0x320] sm:$0xff]  ;;  %v17289_v36 = vcombine.high %v128_v30, %v140_v31  ;;  %7568 = vmatprep.subr.bf16.mxu0 %v17273_v29  ;;  %v17288_v42 = vcombine.low %v128_v30, %v140_v31 }
  0x14   :  { %v144_v33 = vld [vmem:[%s28986_s1 + $0x380] sm:$0xff]  ;;  %7569 = vmatpush1.bf16.msra.mxu0 %v17272_v35 }
  0x15   :  { %v17297_v37 = vcombine.high %v132_v32, %v144_v33  ;;  %v152_v38 = vld [vmem:[%s28986_s1 + $0x3c0] sm:$0xff]  ;;  %7078 = vmatprep.subr.bf16.mxu1 %v17289_v36  ;;  %v17296_v43 = vcombine.low %v132_v32, %v144_v33 }
  0x16   :  { %v164_v39 = vld [vmem:[%s28986_s1 + $0x420] sm:$0xff]  ;;  %7079 = vmatpush1.bf16.msra.mxu1 %v17288_v42 }
  0x17   :  { %v156_v40 = vld [vmem:[%s28986_s1 + $0x3e0] sm:$0xff]  ;;  %v17313_v44 = vcombine.high %v152_v38, %v164_v39  ;;  %7570 = vmatprep.subr.bf16.mxu0 %v17297_v37  ;;  %v17312_v50 = vcombine.low %v152_v38, %v164_v39 }
  0x18   :  { %v168_v41 = vld [vmem:[%s28986_s1 + $0x440] sm:$0xff]  ;;  %7571 = vmatpush1.bf16.msra.mxu0 %v17296_v43 }
  0x19   :  { %v17321_v45 = vcombine.high %v156_v40, %v168_v41  ;;  %v176_v46 = vld [vmem:[%s28986_s1 + $0x480] sm:$0xff]  ;;  %7080 = vmatprep.subr.bf16.mxu1 %v17313_v44  ;;  %v17320_v51 = vcombine.low %v156_v40, %v168_v41 }
  0x1a   :  { %v188_v47 = vld [vmem:[%s28986_s1 + $0x4e0] sm:$0xff]  ;;  %7081 = vmatpush1.bf16.msra.mxu1 %v17312_v50 }
  0x1b   :  { %v180_v48 = vld [vmem:[%s28986_s1 + $0x4a0] sm:$0xff]  ;;  %v17337_v52 = vcombine.high %v176_v46, %v188_v47  ;;  %7572 = vmatprep.subr.bf16.mxu0 %v17321_v45  ;;  %v17336_v60 = vcombine.low %v176_v46, %v188_v47 }
  0x1c   :  { %v192_v49 = vld [vmem:[%s28986_s1 + $0x500] sm:$0xff]  ;;  %7573 = vmatpush1.bf16.msra.mxu0 %v17320_v51 }
  0x1d   :  { %v17345_v54 = vcombine.high %v180_v48, %v192_v49  ;;  %v200_v55 = vld [vmem:[%s28986_s1 + $0x540] sm:$0xff]  ;;  %7082 = vmatprep.subr.bf16.mxu1 %v17337_v52  ;;  %v17344_v61 = vcombine.low %v180_v48, %v192_v49 }
  0x1e   :  { %v212_v56 = vld [vmem:[%s28986_s1 + $0x5a0] sm:$0xff]  ;;  %7083 = vmatpush1.bf16.msra.mxu1 %v17336_v60 }
  0x1f   :  { %v204_v58 = vld [vmem:[%s28986_s1 + $0x560] sm:$0xff]  ;;  %v17361_v62 = vcombine.high %v200_v55, %v212_v56  ;;  %7574 = vmatprep.subr.bf16.mxu0 %v17345_v54  ;;  %v17360_v4 = vcombine.low %v200_v55, %v212_v56 }
  0x20   :  { %v216_v59 = vld [vmem:[%s28986_s1 + $0x5c0] sm:$0xff]  ;;  %7575 = vmatpush1.bf16.msra.mxu0 %v17344_v61 }
  0x21   :  { %v17369_v63 = vcombine.high %v204_v58, %v216_v59  ;;  %v224_v0 = vld [vmem:[%s28986_s1 + $0x600] sm:$0xff]  ;;  %7084 = vmatprep.subr.bf16.mxu1 %v17361_v62  ;;  %v17368_v5 = vcombine.low %v204_v58, %v216_v59 }
  0x22   :  { %v236_v1 = vld [vmem:[%s28986_s1 + $0x660] sm:$0xff]  ;;  %7085 = vmatpush1.bf16.msra.mxu1 %v17360_v4 }
  0x23   :  { %v228_v2 = vld [vmem:[%s28986_s1 + $0x620] sm:$0xff]  ;;  %v17385_v6 = vcombine.high %v224_v0, %v236_v1  ;;  %7576 = vmatprep.subr.bf16.mxu0 %v17369_v63  ;;  %v17384_v12 = vcombine.low %v224_v0, %v236_v1 }
  0x24   :  { %v240_v3 = vld [vmem:[%s28986_s1 + $0x680] sm:$0xff]  ;;  %7577 = vmatpush1.bf16.msra.mxu0 %v17368_v5 }
  0x25   :  { %v17393_v7 = vcombine.high %v228_v2, %v240_v3  ;;  %v248_v8 = vld [vmem:[%s28986_s1 + $0x6c0] sm:$0xff]  ;;  %7086 = vmatprep.subr.bf16.mxu1 %v17385_v6  ;;  %v17392_v13 = vcombine.low %v228_v2, %v240_v3 }
  0x26   :  { %v260_v9 = vld [vmem:[%s28986_s1 + $0x720] sm:$0xff]  ;;  %7087 = vmatpush1.bf16.msra.mxu1 %v17384_v12 }
  0x27   :  { %v252_v10 = vld [vmem:[%s28986_s1 + $0x6e0] sm:$0xff]  ;;  %v17409_v14 = vcombine.high %v248_v8, %v260_v9  ;;  %7578 = vmatprep.subr.bf16.mxu0 %v17393_v7  ;;  %v17408_v20 = vcombine.low %v248_v8, %v260_v9 }
  0x28   :  { %v264_v11 = vld [vmem:[%s28986_s1 + $0x740] sm:$0xff]  ;;  %7579 = vmatpush1.bf16.msra.mxu0 %v17392_v13 }
  0x29   :  { %v17417_v15 = vcombine.high %v252_v10, %v264_v11  ;;  %v272_v16 = vld [vmem:[%s28986_s1 + $0x780] sm:$0xff]  ;;  %7088 = vmatprep.subr.bf16.mxu1 %v17409_v14  ;;  %v17416_v21 = vcombine.low %v252_v10, %v264_v11 }
  0x2a   :  { %v284_v17 = vld [vmem:[%s28986_s1 + $0x7e0] sm:$0xff]  ;;  %7089 = vmatpush1.bf16.msra.mxu1 %v17408_v20 }
  0x2b   :  { %v276_v18 = vld [vmem:[%s28986_s1 + $0x7a0] sm:$0xff]  ;;  %v17433_v22 = vcombine.high %v272_v16, %v284_v17  ;;  %7580 = vmatprep.subr.bf16.mxu0 %v17417_v15  ;;  %v17432_v28 = vcombine.low %v272_v16, %v284_v17  ;;  %v23_v15 = vld [vmem:[%s28987_s0 + $0x18] sm:$0xff] }
  0x2c   :  { %v288_v19 = vld [vmem:[%s28986_s1 + $0x800] sm:$0xff]  ;;  %7581 = vmatpush1.bf16.msra.mxu0 %v17416_v21 }
  0x2d   :  { %v17441_v23 = vcombine.high %v276_v18, %v288_v19  ;;  %v296_v24 = vld [vmem:[%s28986_s1 + $0x840] sm:$0xff]  ;;  %7090 = vmatprep.subr.bf16.mxu1 %v17433_v22  ;;  %v17440_v29 = vcombine.low %v276_v18, %v288_v19  ;;  %v21803_v22 = vpack.c.bf16 %v23_v15, %v23_v15 }
  0x2e   :  { %v308_v25 = vld [vmem:[%s28986_s1 + $0x8a0] sm:$0xff]  ;;  %7091 = vmatpush1.bf16.msra.mxu1 %v17432_v28 }
  0x2f   :  { %v300_v26 = vld [vmem:[%s28986_s1 + $0x860] sm:$0xff]  ;;  %v17457_v30 = vcombine.high %v296_v24, %v308_v25  ;;  %7582 = vmatprep.subr.bf16.mxu0 %v17441_v23  ;;  %v17456_v36 = vcombine.low %v296_v24, %v308_v25 }
  0x30   :  { %v312_v27 = vld [vmem:[%s28986_s1 + $0x8c0] sm:$0xff]  ;;  %7583 = vmatpush1.bf16.msra.mxu0 %v17440_v29 }
  0x31   :  { %v17465_v31 = vcombine.high %v300_v26, %v312_v27  ;;  %v320_v32 = vld [vmem:[%s28986_s1 + $0x900] sm:$0xff]  ;;  %7092 = vmatprep.subr.bf16.mxu1 %v17457_v30  ;;  %v17464_v37 = vcombine.low %v300_v26, %v312_v27 }
  0x32   :  { %v332_v33 = vld [vmem:[%s28986_s1 + $0x960] sm:$0xff]  ;;  %7093 = vmatpush1.bf16.msra.mxu1 %v17456_v36 }
  0x33   :  { %v324_v34 = vld [vmem:[%s28986_s1 + $0x920] sm:$0xff]  ;;  %v17481_v38 = vcombine.high %v320_v32, %v332_v33  ;;  %7584 = vmatprep.subr.bf16.mxu0 %v17465_v31  ;;  %v17480_v44 = vcombine.low %v320_v32, %v332_v33 }
  0x34   :  { %v336_v35 = vld [vmem:[%s28986_s1 + $0x980] sm:$0xff]  ;;  %7585 = vmatpush1.bf16.msra.mxu0 %v17464_v37 }
  0x35   :  { %v17489_v39 = vcombine.high %v324_v34, %v336_v35  ;;  %v344_v40 = vld [vmem:[%s28986_s1 + $0x9c0] sm:$0xff]  ;;  %7094 = vmatprep.subr.bf16.mxu1 %v17481_v38  ;;  %v17488_v45 = vcombine.low %v324_v34, %v336_v35 }
  0x36   :  { %v356_v41 = vld [vmem:[%s28986_s1 + $0xa20] sm:$0xff]  ;;  %7095 = vmatpush1.bf16.msra.mxu1 %v17480_v44 }
  0x37   :  { %v348_v42 = vld [vmem:[%s28986_s1 + $0x9e0] sm:$0xff]  ;;  %v17505_v46 = vcombine.high %v344_v40, %v356_v41  ;;  %7586 = vmatprep.subr.bf16.mxu0 %v17489_v39  ;;  %v17504_v52 = vcombine.low %v344_v40, %v356_v41 }
  0x38   :  { %v360_v43 = vld [vmem:[%s28986_s1 + $0xa40] sm:$0xff]  ;;  %7587 = vmatpush1.bf16.msra.mxu0 %v17488_v45 }
  0x39   :  { %v17513_v47 = vcombine.high %v348_v42, %v360_v43  ;;  %v368_v48 = vld [vmem:[%s28986_s1 + $0xa80] sm:$0xff]  ;;  %7096 = vmatprep.subr.bf16.mxu1 %v17505_v46  ;;  %v17512_v53 = vcombine.low %v348_v42, %v360_v43 }
  0x3a   :  { %v380_v49 = vld [vmem:[%s28986_s1 + $0xae0] sm:$0xff]  ;;  %7097 = vmatpush1.bf16.msra.mxu1 %v17504_v52 }
  0x3b   :  { %v372_v50 = vld [vmem:[%s28986_s1 + $0xaa0] sm:$0xff]  ;;  %v17529_v54 = vcombine.high %v368_v48, %v380_v49  ;;  %7588 = vmatprep.subr.bf16.mxu0 %v17513_v47  ;;  %v17528_v61 = vcombine.low %v368_v48, %v380_v49 }
  0x3c   :  { %v384_v51 = vld [vmem:[%s28986_s1 + $0xb00] sm:$0xff]  ;;  %7589 = vmatpush1.bf16.msra.mxu0 %v17512_v53 }
  0x3d   :  { %v17537_v55 = vcombine.high %v372_v50, %v384_v51  ;;  %v392_v56 = vld [vmem:[%s28986_s1 + $0xb40] sm:$0xff]  ;;  %7098 = vmatprep.subr.bf16.mxu1 %v17529_v54  ;;  %v17536_v62 = vcombine.low %v372_v50, %v384_v51 }
  0x3e   :  { %v404_v58 = vld [vmem:[%s28986_s1 + $0xba0] sm:$0xff]  ;;  %7099 = vmatpush1.bf16.msra.mxu1 %v17528_v61 }
  0x3f   :  { %v396_v59 = vld [vmem:[%s28986_s1 + $0xb60] sm:$0xff]  ;;  %v17553_v63 = vcombine.high %v392_v56, %v404_v58  ;;  %7590 = vmatprep.subr.bf16.mxu0 %v17537_v55  ;;  %v17552_v5 = vcombine.low %v392_v56, %v404_v58 }
  0x40   :  { %v408_v60 = vld [vmem:[%s28986_s1 + $0xbc0] sm:$0xff]  ;;  %7591 = vmatpush1.bf16.msra.mxu0 %v17536_v62 }
  0x41   :  { %v17561_v0 = vcombine.high %v396_v59, %v408_v60  ;;  %v416_v1 = vld [vmem:[%s28986_s1 + $0xc00] sm:$0xff]  ;;  %7100 = vmatprep.subr.bf16.mxu1 %v17553_v63  ;;  %v17560_v7 = vcombine.low %v396_v59, %v408_v60 }
  0x42   :  { %v428_v2 = vld [vmem:[%s28986_s1 + $0xc60] sm:$0xff]  ;;  %7101 = vmatpush1.bf16.msra.mxu1 %v17552_v5 }
  0x43   :  { %v420_v3 = vld [vmem:[%s28986_s1 + $0xc20] sm:$0xff]  ;;  %v17577_v8 = vcombine.high %v416_v1, %v428_v2  ;;  %7592 = vmatprep.subr.bf16.mxu0 %v17561_v0  ;;  %v17576_v16 = vcombine.low %v416_v1, %v428_v2 }
  0x44   :  { %v432_v4 = vld [vmem:[%s28986_s1 + $0xc80] sm:$0xff]  ;;  %7593 = vmatpush1.bf16.msra.mxu0 %v17560_v7 }
  0x45   :  { %v20_v6 = vld [vmem:[%s28987_s0] sm:$0xff]  ;;  %v17585_v9 = vcombine.high %v420_v3, %v432_v4  ;;  %7111 = vmatprep.subr.bf16.mxu1 %v17577_v8  ;;  %v17584_v17 = vcombine.low %v420_v3, %v432_v4 }
  0x46   :  { %v440_v10 = vld [vmem:[%s28986_s1 + $0xcc0] sm:$0xff]  ;;  %v21786_v12 = vpack.c.bf16 %v20_v6, %v20_v6 }
  0x47   :  { %v452_v11 = vld [vmem:[%s28986_s1 + $0xd20] sm:$0xff]  ;;  %7603 = vmatprep.subr.bf16.mxu0 %v17585_v9 }
  0x48   :  { %v444_v13 = vld [vmem:[%s28986_s1 + $0xce0] sm:$0xff]  ;;  %v17601_v18 = vcombine.high %v440_v10, %v452_v11  ;;  %7103 = vmatmul.mubr.bf16.vlgmr.msra.gmra.mrb[0].mxu1 %v21786_v12  ;;  %7595 = vmatmul.mubr.bf16.vlgmr.msra.gmra.mrb[0].mxu0 %v21786_v12  ;;  %v17600_v25 = vcombine.low %v440_v10, %v452_v11 }
  0x49   :  { %v456_v14 = vld [vmem:[%s28986_s1 + $0xd40] sm:$0xff]  ;;  %7112 = vmatpush1.bf16.msra.mxu1 %v17576_v16  ;;  %7604 = vmatpush1.bf16.msra.mxu0 %v17584_v17 }
  0x4a   :  { %v17609_v19 = vcombine.high %v444_v13, %v456_v14  ;;  %v464_v20 = vld [vmem:[%s28986_s1 + $0xd80] sm:$0xff]  ;;  %7113 = vmatprep.subr.bf16.mxu1 %v17601_v18  ;;  %v17608_v26 = vcombine.low %v444_v13, %v456_v14  ;;  %7143 = vmatprep.mubr.bf16.mxu1 %v21803_v22 }
  0x4b   :  { %v476_v21 = vld [vmem:[%s28986_s1 + $0xde0] sm:$0xff]  ;;  %7635 = vmatprep.mubr.bf16.mxu0 %v21803_v22 }
  0x4c   :  { %v468_v23 = vld [vmem:[%s28986_s1 + $0xda0] sm:$0xff]  ;;  %v17625_v27 = vcombine.high %v464_v20, %v476_v21  ;;  %7605 = vmatprep.subr.bf16.mxu0 %v17609_v19  ;;  %v17624_v33 = vcombine.low %v464_v20, %v476_v21 }
  0x4d   :  { %v480_v24 = vld [vmem:[%s28986_s1 + $0xe00] sm:$0xff]  ;;  %7114 = vmatpush1.bf16.msra.mxu1 %v17600_v25  ;;  %7606 = vmatpush1.bf16.msra.mxu0 %v17608_v26 }
  0x4e   :  { %v17633_v28 = vcombine.high %v468_v23, %v480_v24  ;;  %v488_v29 = vld [vmem:[%s28986_s1 + $0xe40] sm:$0xff]  ;;  %7115 = vmatprep.subr.bf16.mxu1 %v17625_v27  ;;  %v17632_v34 = vcombine.low %v468_v23, %v480_v24 }
  0x4f   :  { %v500_v30 = vld [vmem:[%s28986_s1 + $0xea0] sm:$0xff] }
  0x50   :  { %v492_v31 = vld [vmem:[%s28986_s1 + $0xe60] sm:$0xff]  ;;  %v17649_v35 = vcombine.high %v488_v29, %v500_v30  ;;  %7607 = vmatprep.subr.bf16.mxu0 %v17633_v28  ;;  %v17648_v41 = vcombine.low %v488_v29, %v500_v30 }
  0x51   :  { %v504_v32 = vld [vmem:[%s28986_s1 + $0xec0] sm:$0xff]  ;;  %7116 = vmatpush1.bf16.msra.mxu1 %v17624_v33  ;;  %7608 = vmatpush1.bf16.msra.mxu0 %v17632_v34 }
  0x52   :  { %v17657_v36 = vcombine.high %v492_v31, %v504_v32  ;;  %v512_v37 = vld [vmem:[%s28986_s1 + $0xf00] sm:$0xff]  ;;  %7117 = vmatprep.subr.bf16.mxu1 %v17649_v35  ;;  %v17656_v42 = vcombine.low %v492_v31, %v504_v32 }
  0x53   :  { %v524_v38 = vld [vmem:[%s28986_s1 + $0xf60] sm:$0xff] }
  0x54   :  { %v516_v39 = vld [vmem:[%s28986_s1 + $0xf20] sm:$0xff]  ;;  %v17673_v43 = vcombine.high %v512_v37, %v524_v38  ;;  %7609 = vmatprep.subr.bf16.mxu0 %v17657_v36  ;;  %v17672_v49 = vcombine.low %v512_v37, %v524_v38 }
  0x55   :  { %v528_v40 = vld [vmem:[%s28986_s1 + $0xf80] sm:$0xff]  ;;  %7118 = vmatpush1.bf16.msra.mxu1 %v17648_v41  ;;  %7610 = vmatpush1.bf16.msra.mxu0 %v17656_v42 }
  0x56   :  { %v17681_v44 = vcombine.high %v516_v39, %v528_v40  ;;  %v536_v45 = vld [vmem:[%s28986_s1 + $0xfc0] sm:$0xff]  ;;  %7119 = vmatprep.subr.bf16.mxu1 %v17673_v43  ;;  %v17680_v50 = vcombine.low %v516_v39, %v528_v40 }
  0x57   :  { %v548_v46 = vld [vmem:[%s28986_s1 + $0x1020] sm:$0xff] }
  0x58   :  { %v540_v47 = vld [vmem:[%s28986_s1 + $0xfe0] sm:$0xff]  ;;  %v17697_v51 = vcombine.high %v536_v45, %v548_v46  ;;  %7611 = vmatprep.subr.bf16.mxu0 %v17681_v44  ;;  %v17696_v58 = vcombine.low %v536_v45, %v548_v46 }
  0x59   :  { %v552_v48 = vld [vmem:[%s28986_s1 + $0x1040] sm:$0xff]  ;;  %7120 = vmatpush1.bf16.msra.mxu1 %v17672_v49  ;;  %7612 = vmatpush1.bf16.msra.mxu0 %v17680_v50 }
  0x5a   :  { %v17705_v52 = vcombine.high %v540_v47, %v552_v48  ;;  %v560_v53 = vld [vmem:[%s28986_s1 + $0x1080] sm:$0xff]  ;;  %7121 = vmatprep.subr.bf16.mxu1 %v17697_v51  ;;  %v17704_v59 = vcombine.low %v540_v47, %v552_v48 }
  0x5b   :  { %v572_v54 = vld [vmem:[%s28986_s1 + $0x10e0] sm:$0xff] }
  0x5c   :  { %v564_v55 = vld [vmem:[%s28986_s1 + $0x10a0] sm:$0xff]  ;;  %v17721_v60 = vcombine.high %v560_v53, %v572_v54  ;;  %7613 = vmatprep.subr.bf16.mxu0 %v17705_v52  ;;  %v17720_v2 = vcombine.low %v560_v53, %v572_v54 }
  0x5d   :  { %v576_v56 = vld [vmem:[%s28986_s1 + $0x1100] sm:$0xff]  ;;  %7122 = vmatpush1.bf16.msra.mxu1 %v17696_v58  ;;  %7614 = vmatpush1.bf16.msra.mxu0 %v17704_v59 }
  0x5e   :  { %v17729_v61 = vcombine.high %v564_v55, %v576_v56  ;;  %v584_v62 = vld [vmem:[%s28986_s1 + $0x1140] sm:$0xff]  ;;  %7123 = vmatprep.subr.bf16.mxu1 %v17721_v60  ;;  %v17728_v3 = vcombine.low %v564_v55, %v576_v56 }
  0x5f   :  { %v596_v63 = vld [vmem:[%s28986_s1 + $0x11a0] sm:$0xff] }
  0x60   :  { %v588_v0 = vld [vmem:[%s28986_s1 + $0x1160] sm:$0xff]  ;;  %v17745_v4 = vcombine.high %v584_v62, %v596_v63  ;;  %7615 = vmatprep.subr.bf16.mxu0 %v17729_v61  ;;  %v17744_v10 = vcombine.low %v584_v62, %v596_v63 }
  0x61   :  { %v600_v1 = vld [vmem:[%s28986_s1 + $0x11c0] sm:$0xff]  ;;  %7124 = vmatpush1.bf16.msra.mxu1 %v17720_v2  ;;  %7616 = vmatpush1.bf16.msra.mxu0 %v17728_v3 }
  0x62   :  { %v17753_v5 = vcombine.high %v588_v0, %v600_v1  ;;  %v608_v6 = vld [vmem:[%s28986_s1 + $0x1200] sm:$0xff]  ;;  %7125 = vmatprep.subr.bf16.mxu1 %v17745_v4  ;;  %v17752_v11 = vcombine.low %v588_v0, %v600_v1 }
  0x63   :  { %v620_v7 = vld [vmem:[%s28986_s1 + $0x1260] sm:$0xff] }
  0x64   :  { %v612_v8 = vld [vmem:[%s28986_s1 + $0x1220] sm:$0xff]  ;;  %v17769_v13 = vcombine.high %v608_v6, %v620_v7  ;;  %7617 = vmatprep.subr.bf16.mxu0 %v17753_v5  ;;  %v17768_v19 = vcombine.low %v608_v6, %v620_v7 }
  0x65   :  { %v624_v9 = vld [vmem:[%s28986_s1 + $0x1280] sm:$0xff]  ;;  %7126 = vmatpush1.bf16.msra.mxu1 %v17744_v10  ;;  %7618 = vmatpush1.bf16.msra.mxu0 %v17752_v11 }
  0x66   :  { %v17777_v14 = vcombine.high %v612_v8, %v624_v9  ;;  %v632_v15 = vld [vmem:[%s28986_s1 + $0x12c0] sm:$0xff]  ;;  %7127 = vmatprep.subr.bf16.mxu1 %v17769_v13  ;;  %v17776_v20 = vcombine.low %v612_v8, %v624_v9 }
  0x67   :  { %v644_v16 = vld [vmem:[%s28986_s1 + $0x1320] sm:$0xff] }
  0x68   :  { %v636_v17 = vld [vmem:[%s28986_s1 + $0x12e0] sm:$0xff]  ;;  %v17793_v21 = vcombine.high %v632_v15, %v644_v16  ;;  %7619 = vmatprep.subr.bf16.mxu0 %v17777_v14  ;;  %v17792_v28 = vcombine.low %v632_v15, %v644_v16  ;;  %v22_v15 = vld [vmem:[%s28987_s0 + $0x10] sm:$0xff] }
  0x69   :  { %v648_v18 = vld [vmem:[%s28986_s1 + $0x1340] sm:$0xff]  ;;  %7128 = vmatpush1.bf16.msra.mxu1 %v17768_v19  ;;  %7620 = vmatpush1.bf16.msra.mxu0 %v17776_v20 }
  0x6a   :  { %v17801_v23 = vcombine.high %v636_v17, %v648_v18  ;;  %v656_v24 = vld [vmem:[%s28986_s1 + $0x1380] sm:$0xff]  ;;  %7129 = vmatprep.subr.bf16.mxu1 %v17793_v21  ;;  %v17800_v29 = vcombine.low %v636_v17, %v648_v18  ;;  %v21992_v21 = vpack.c.bf16 %v22_v15, %v22_v15 }
  0x6b   :  { %v668_v25 = vld [vmem:[%s28986_s1 + $0x13e0] sm:$0xff] }
  0x6c   :  { %v660_v26 = vld [vmem:[%s28986_s1 + $0x13a0] sm:$0xff]  ;;  %v17817_v30 = vcombine.high %v656_v24, %v668_v25  ;;  %7621 = vmatprep.subr.bf16.mxu0 %v17801_v23  ;;  %v17816_v36 = vcombine.low %v656_v24, %v668_v25  ;;  %v25_v25 = vld [vmem:[%s28987_s0 + $0x28] sm:$0xff] }
  0x6d   :  { %v672_v27 = vld [vmem:[%s28986_s1 + $0x1400] sm:$0xff]  ;;  %7130 = vmatpush1.bf16.msra.mxu1 %v17792_v28  ;;  %7622 = vmatpush1.bf16.msra.mxu0 %v17800_v29 }
  0x6e   :  { %v17825_v31 = vcombine.high %v660_v26, %v672_v27  ;;  %v680_v32 = vld [vmem:[%s28986_s1 + $0x1440] sm:$0xff]  ;;  %7131 = vmatprep.subr.bf16.mxu1 %v17817_v30  ;;  %v17824_v37 = vcombine.low %v660_v26, %v672_v27 }
  0x6f   :  { %v692_v33 = vld [vmem:[%s28986_s1 + $0x14a0] sm:$0xff] }
  0x70   :  { %v684_v34 = vld [vmem:[%s28986_s1 + $0x1460] sm:$0xff]  ;;  %v17841_v38 = vcombine.high %v680_v32, %v692_v33  ;;  %7623 = vmatprep.subr.bf16.mxu0 %v17825_v31  ;;  %v17840_v44 = vcombine.low %v680_v32, %v692_v33  ;;  %v22009_v32 = vpack.c.bf16 %v25_v25, %v25_v25 }
  0x71   :  { %v696_v35 = vld [vmem:[%s28986_s1 + $0x14c0] sm:$0xff]  ;;  %7132 = vmatpush1.bf16.msra.mxu1 %v17816_v36  ;;  %7624 = vmatpush1.bf16.msra.mxu0 %v17824_v37 }
  0x72   :  { %v17849_v39 = vcombine.high %v684_v34, %v696_v35  ;;  %v704_v40 = vld [vmem:[%s28986_s1 + $0x1500] sm:$0xff]  ;;  %7133 = vmatprep.subr.bf16.mxu1 %v17841_v38  ;;  %v17848_v45 = vcombine.low %v684_v34, %v696_v35 }
  0x73   :  { %v716_v41 = vld [vmem:[%s28986_s1 + $0x1560] sm:$0xff] }
  0x74   :  { %v708_v42 = vld [vmem:[%s28986_s1 + $0x1520] sm:$0xff]  ;;  %v17865_v46 = vcombine.high %v704_v40, %v716_v41  ;;  %7625 = vmatprep.subr.bf16.mxu0 %v17849_v39  ;;  %v17864_v52 = vcombine.low %v704_v40, %v716_v41 }
  0x75   :  { %v720_v43 = vld [vmem:[%s28986_s1 + $0x1580] sm:$0xff]  ;;  %7134 = vmatpush1.bf16.msra.mxu1 %v17840_v44  ;;  %7626 = vmatpush1.bf16.msra.mxu0 %v17848_v45 }
  0x76   :  { %v17873_v47 = vcombine.high %v708_v42, %v720_v43  ;;  %v728_v48 = vld [vmem:[%s28986_s1 + $0x15c0] sm:$0xff]  ;;  %7135 = vmatprep.subr.bf16.mxu1 %v17865_v46  ;;  %v17872_v53 = vcombine.low %v708_v42, %v720_v43 }
  0x77   :  { %v740_v49 = vld [vmem:[%s28986_s1 + $0x1620] sm:$0xff] }
  0x78   :  { %v732_v50 = vld [vmem:[%s28986_s1 + $0x15e0] sm:$0xff]  ;;  %v17889_v54 = vcombine.high %v728_v48, %v740_v49  ;;  %7627 = vmatprep.subr.bf16.mxu0 %v17873_v47  ;;  %v17888_v61 = vcombine.low %v728_v48, %v740_v49 }
  0x79   :  { %v744_v51 = vld [vmem:[%s28986_s1 + $0x1640] sm:$0xff]  ;;  %7136 = vmatpush1.bf16.msra.mxu1 %v17864_v52  ;;  %7628 = vmatpush1.bf16.msra.mxu0 %v17872_v53 }
  0x7a   :  { %v17897_v55 = vcombine.high %v732_v50, %v744_v51  ;;  %v752_v56 = vld [vmem:[%s28986_s1 + $0x1680] sm:$0xff]  ;;  %7137 = vmatprep.subr.bf16.mxu1 %v17889_v54  ;;  %v17896_v62 = vcombine.low %v732_v50, %v744_v51 }
  0x7b   :  { %v764_v58 = vld [vmem:[%s28986_s1 + $0x16e0] sm:$0xff] }
  0x7c   :  { %v756_v59 = vld [vmem:[%s28986_s1 + $0x16a0] sm:$0xff]  ;;  %v17913_v63 = vcombine.high %v752_v56, %v764_v58  ;;  %7629 = vmatprep.subr.bf16.mxu0 %v17897_v55  ;;  %v17912_v5 = vcombine.low %v752_v56, %v764_v58 }
  0x7d   :  { %v768_v60 = vld [vmem:[%s28986_s1 + $0x1700] sm:$0xff]  ;;  %7138 = vmatpush1.bf16.msra.mxu1 %v17888_v61  ;;  %7630 = vmatpush1.bf16.msra.mxu0 %v17896_v62 }
  0x7e   :  { %v17921_v0 = vcombine.high %v756_v59, %v768_v60  ;;  %v776_v1 = vld [vmem:[%s28986_s1 + $0x1740] sm:$0xff]  ;;  %7139 = vmatprep.subr.bf16.mxu1 %v17913_v63  ;;  %v17920_v6 = vcombine.low %v756_v59, %v768_v60 }
  0x7f   :  { %v788_v2 = vld [vmem:[%s28986_s1 + $0x17a0] sm:$0xff] }
  0x80   :  { %v780_v3 = vld [vmem:[%s28986_s1 + $0x1760] sm:$0xff]  ;;  %v17937_v7 = vcombine.high %v776_v1, %v788_v2  ;;  %7631 = vmatprep.subr.bf16.mxu0 %v17921_v0  ;;  %v17936_v14 = vcombine.low %v776_v1, %v788_v2 }
  0x81   :  { %v792_v4 = vld [vmem:[%s28986_s1 + $0x17c0] sm:$0xff]  ;;  %7140 = vmatpush1.bf16.msra.mxu1 %v17912_v5  ;;  %7632 = vmatpush1.bf16.msra.mxu0 %v17920_v6 }
  0x82   :  { %v17945_v8 = vcombine.high %v780_v3, %v792_v4  ;;  %v800_v9 = vld [vmem:[%s28986_s1 + $0x1800] sm:$0xff]  ;;  %7141 = vmatprep.subr.bf16.mxu1 %v17937_v7  ;;  %v17944_v16 = vcombine.low %v780_v3, %v792_v4 }
  0x83   :  { %v812_v10 = vld [vmem:[%s28986_s1 + $0x1860] sm:$0xff] }
  0x84   :  { %v804_v11 = vld [vmem:[%s28986_s1 + $0x1820] sm:$0xff]  ;;  %v17961_v17 = vcombine.high %v800_v9, %v812_v10  ;;  %7633 = vmatprep.subr.bf16.mxu0 %v17945_v8  ;;  %v17960_v26 = vcombine.low %v800_v9, %v812_v10 }
  0x85   :  { %v816_v13 = vld [vmem:[%s28986_s1 + $0x1880] sm:$0xff]  ;;  %7142 = vmatpush1.bf16.msra.mxu1 %v17936_v14  ;;  %7634 = vmatpush1.bf16.msra.mxu0 %v17944_v16 }
  0x86   :  { %v17969_v18 = vcombine.high %v804_v11, %v816_v13  ;;  %v824_v19 = vld [vmem:[%s28986_s1 + $0x18c0] sm:$0xff]  ;;  %7152 = vmatprep.subr.bf16.mxu1 %v17961_v17  ;;  %v17968_v27 = vcombine.low %v804_v11, %v816_v13 }
  0x87   :  { %v836_v20 = vld [vmem:[%s28986_s1 + $0x1920] sm:$0xff] }
  0x88   :  { %v828_v23 = vld [vmem:[%s28986_s1 + $0x18e0] sm:$0xff]  ;;  %v17985_v28 = vcombine.high %v824_v19, %v836_v20  ;;  %7644 = vmatprep.subr.bf16.mxu0 %v17969_v18  ;;  %7144 = vmatmul.mubr.bf16.vlgmr.msra.gmra.mrb[0].mxu1 %v21992_v21  ;;  %v17984_v35 = vcombine.low %v824_v19, %v836_v20 }
  0x89   :  { %v840_v24 = vld [vmem:[%s28986_s1 + $0x1940] sm:$0xff]  ;;  %7153 = vmatpush1.bf16.msra.mxu1 %v17960_v26  ;;  %7636 = vmatmul.mubr.bf16.vlgmr.msra.gmra.mrb[0].mxu0 %v21992_v21 }
  0x8a   :  { %v17993_v29 = vcombine.high %v828_v23, %v840_v24  ;;  %v848_v30 = vld [vmem:[%s28986_s1 + $0x1980] sm:$0xff]  ;;  %7645 = vmatpush1.bf16.msra.mxu0 %v17968_v27  ;;  %7154 = vmatprep.subr.bf16.mxu1 %v17985_v28  ;;  %v17992_v36 = vcombine.low %v828_v23, %v840_v24 }
  0x8b   :  { %v860_v31 = vld [vmem:[%s28986_s1 + $0x19e0] sm:$0xff]  ;;  %7184 = vmatprep.mubr.bf16.mxu1 %v22009_v32  ;;  %7676 = vmatprep.mubr.bf16.mxu0 %v22009_v32 }
  0x8c   :  { %v852_v33 = vld [vmem:[%s28986_s1 + $0x19a0] sm:$0xff]  ;;  %v18009_v37 = vcombine.high %v848_v30, %v860_v31  ;;  %7646 = vmatprep.subr.bf16.mxu0 %v17993_v29  ;;  %v18008_v43 = vcombine.low %v848_v30, %v860_v31 }
  0x8d   :  { %v864_v34 = vld [vmem:[%s28986_s1 + $0x1a00] sm:$0xff]  ;;  %7155 = vmatpush1.bf16.msra.mxu1 %v17984_v35 }
  0x8e   :  { %v18017_v38 = vcombine.high %v852_v33, %v864_v34  ;;  %v872_v39 = vld [vmem:[%s28986_s1 + $0x1a40] sm:$0xff]  ;;  %7647 = vmatpush1.bf16.msra.mxu0 %v17992_v36  ;;  %7156 = vmatprep.subr.bf16.mxu1 %v18009_v37  ;;  %v18016_v44 = vcombine.low %v852_v33, %v864_v34 }
  0x8f   :  { %v884_v40 = vld [vmem:[%s28986_s1 + $0x1aa0] sm:$0xff] }
  0x90   :  { %v876_v41 = vld [vmem:[%s28986_s1 + $0x1a60] sm:$0xff]  ;;  %v18033_v45 = vcombine.high %v872_v39, %v884_v40  ;;  %7648 = vmatprep.subr.bf16.mxu0 %v18017_v38  ;;  %v18032_v51 = vcombine.low %v872_v39, %v884_v40 }
  0x91   :  { %v888_v42 = vld [vmem:[%s28986_s1 + $0x1ac0] sm:$0xff]  ;;  %7157 = vmatpush1.bf16.msra.mxu1 %v18008_v43 }
  0x92   :  { %v18041_v46 = vcombine.high %v876_v41, %v888_v42  ;;  %v896_v47 = vld [vmem:[%s28986_s1 + $0x1b00] sm:$0xff]  ;;  %7649 = vmatpush1.bf16.msra.mxu0 %v18016_v44  ;;  %7158 = vmatprep.subr.bf16.mxu1 %v18033_v45  ;;  %v18040_v52 = vcombine.low %v876_v41, %v888_v42 }
  0x93   :  { %v908_v48 = vld [vmem:[%s28986_s1 + $0x1b60] sm:$0xff] }
  0x94   :  { %v900_v49 = vld [vmem:[%s28986_s1 + $0x1b20] sm:$0xff]  ;;  %v18057_v53 = vcombine.high %v896_v47, %v908_v48  ;;  %7650 = vmatprep.subr.bf16.mxu0 %v18041_v46  ;;  %v18056_v60 = vcombine.low %v896_v47, %v908_v48 }
  0x95   :  { %v912_v50 = vld [vmem:[%s28986_s1 + $0x1b80] sm:$0xff]  ;;  %7159 = vmatpush1.bf16.msra.mxu1 %v18032_v51 }
  0x96   :  { %v18065_v54 = vcombine.high %v900_v49, %v912_v50  ;;  %v920_v55 = vld [vmem:[%s28986_s1 + $0x1bc0] sm:$0xff]  ;;  %7651 = vmatpush1.bf16.msra.mxu0 %v18040_v52  ;;  %7160 = vmatprep.subr.bf16.mxu1 %v18057_v53  ;;  %v18064_v61 = vcombine.low %v900_v49, %v912_v50 }
  0x97   :  { %v932_v56 = vld [vmem:[%s28986_s1 + $0x1c20] sm:$0xff] }
  0x98   :  { %v924_v58 = vld [vmem:[%s28986_s1 + $0x1be0] sm:$0xff]  ;;  %v18081_v62 = vcombine.high %v920_v55, %v932_v56  ;;  %7652 = vmatprep.subr.bf16.mxu0 %v18065_v54  ;;  %v18080_v4 = vcombine.low %v920_v55, %v932_v56 }
  0x99   :  { %v936_v59 = vld [vmem:[%s28986_s1 + $0x1c40] sm:$0xff]  ;;  %7161 = vmatpush1.bf16.msra.mxu1 %v18056_v60 }
  0x9a   :  { %v18089_v63 = vcombine.high %v924_v58, %v936_v59  ;;  %v944_v0 = vld [vmem:[%s28986_s1 + $0x1c80] sm:$0xff]  ;;  %7653 = vmatpush1.bf16.msra.mxu0 %v18064_v61  ;;  %7162 = vmatprep.subr.bf16.mxu1 %v18081_v62  ;;  %v18088_v5 = vcombine.low %v924_v58, %v936_v59 }
  0x9b   :  { %v956_v1 = vld [vmem:[%s28986_s1 + $0x1ce0] sm:$0xff] }
  0x9c   :  { %v948_v2 = vld [vmem:[%s28986_s1 + $0x1ca0] sm:$0xff]  ;;  %v18105_v6 = vcombine.high %v944_v0, %v956_v1  ;;  %7654 = vmatprep.subr.bf16.mxu0 %v18089_v63  ;;  %v18104_v13 = vcombine.low %v944_v0, %v956_v1 }
  0x9d   :  { %v960_v3 = vld [vmem:[%s28986_s1 + $0x1d00] sm:$0xff]  ;;  %7163 = vmatpush1.bf16.msra.mxu1 %v18080_v4 }
  0x9e   :  { %v18113_v7 = vcombine.high %v948_v2, %v960_v3  ;;  %v968_v8 = vld [vmem:[%s28986_s1 + $0x1d40] sm:$0xff]  ;;  %7655 = vmatpush1.bf16.msra.mxu0 %v18088_v5  ;;  %7164 = vmatprep.subr.bf16.mxu1 %v18105_v6  ;;  %v18112_v14 = vcombine.low %v948_v2, %v960_v3 }
  0x9f   :  { %v980_v9 = vld [vmem:[%s28986_s1 + $0x1da0] sm:$0xff] }
  0xa0   :  { %v972_v10 = vld [vmem:[%s28986_s1 + $0x1d60] sm:$0xff]  ;;  %v18129_v15 = vcombine.high %v968_v8, %v980_v9  ;;  %7656 = vmatprep.subr.bf16.mxu0 %v18113_v7  ;;  %v18128_v23 = vcombine.low %v968_v8, %v980_v9 }
  0xa1   :  { %v984_v11 = vld [vmem:[%s28986_s1 + $0x1dc0] sm:$0xff]  ;;  %7165 = vmatpush1.bf16.msra.mxu1 %v18104_v13 }
  0xa2   :  { %v18137_v16 = vcombine.high %v972_v10, %v984_v11  ;;  %v992_v17 = vld [vmem:[%s28986_s1 + $0x1e00] sm:$0xff]  ;;  %7657 = vmatpush1.bf16.msra.mxu0 %v18112_v14  ;;  %7166 = vmatprep.subr.bf16.mxu1 %v18129_v15  ;;  %v18136_v24 = vcombine.low %v972_v10, %v984_v11 }
  0xa3   :  { %v1004_v18 = vld [vmem:[%s28986_s1 + $0x1e60] sm:$0xff] }
  0xa4   :  { %v996_v19 = vld [vmem:[%s28986_s1 + $0x1e20] sm:$0xff]  ;;  %v18153_v25 = vcombine.high %v992_v17, %v1004_v18  ;;  %7658 = vmatprep.subr.bf16.mxu0 %v18137_v16  ;;  %v18152_v31 = vcombine.low %v992_v17, %v1004_v18 }
  0xa5   :  { %v1008_v20 = vld [vmem:[%s28986_s1 + $0x1e80] sm:$0xff]  ;;  %7167 = vmatpush1.bf16.msra.mxu1 %v18128_v23 }
  0xa6   :  { %v18161_v26 = vcombine.high %v996_v19, %v1008_v20  ;;  %v1016_v27 = vld [vmem:[%s28986_s1 + $0x1ec0] sm:$0xff]  ;;  %7659 = vmatpush1.bf16.msra.mxu0 %v18136_v24  ;;  %7168 = vmatprep.subr.bf16.mxu1 %v18153_v25  ;;  %v18160_v33 = vcombine.low %v996_v19, %v1008_v20  ;;  %v33_v24 = vld [vmem:[%s28986_s1 + $0x8] sm:$0xff] }
  0xa7   :  { %v1028_v28 = vld [vmem:[%s28986_s1 + $0x1f20] sm:$0xff]  ;;  %v45_v25 = vld [vmem:[%s28986_s1 + $0x68] sm:$0xff] }
  0xa8   :  { %v1020_v29 = vld [vmem:[%s28986_s1 + $0x1ee0] sm:$0xff]  ;;  %v18177_v34 = vcombine.high %v1016_v27, %v1028_v28  ;;  %7660 = vmatprep.subr.bf16.mxu0 %v18161_v26  ;;  %v18176_v40 = vcombine.low %v1016_v27, %v1028_v28  ;;  %v38_v26 = vld [vmem:[%s28986_s1 + $0x30] sm:$0xff] }
  0xa9   :  { %v1032_v30 = vld [vmem:[%s28986_s1 + $0x1f40] sm:$0xff]  ;;  %7169 = vmatpush1.bf16.msra.mxu1 %v18152_v31  ;;  %v50_v27 = vld [vmem:[%s28986_s1 + $0x90] sm:$0xff]  ;;  %v17195_v31 = vcombine.high %v33_v24, %v45_v25 }
  0xaa   :  { %v18185_v35 = vcombine.high %v1020_v29, %v1032_v30  ;;  %v1040_v36 = vld [vmem:[%s28986_s1 + $0x1f80] sm:$0xff]  ;;  %7661 = vmatpush1.bf16.msra.mxu0 %v18160_v33  ;;  %7170 = vmatprep.subr.bf16.mxu1 %v18177_v34  ;;  %v18184_v41 = vcombine.low %v1020_v29, %v1032_v30  ;;  %v17205_v33 = vcombine.high %v38_v26, %v50_v27  ;;  %v57_v34 = vld [vmem:[%s28986_s1 + $0xc8] sm:$0xff] }
  0xab   :  { %v1052_v37 = vld [vmem:[%s28986_s1 + $0x1fe0] sm:$0xff] }
  0xac   :  { %v1044_v38 = vld [vmem:[%s28986_s1 + $0x1fa0] sm:$0xff]  ;;  %v18201_v42 = vcombine.high %v1040_v36, %v1052_v37  ;;  %7662 = vmatprep.subr.bf16.mxu0 %v18185_v35  ;;  %v18200_v48 = vcombine.low %v1040_v36, %v1052_v37  ;;  %v69_v35 = vld [vmem:[%s28986_s1 + $0x128] sm:$0xff]  ;;  %v62_v37 = vld [vmem:[%s28986_s1 + $0xf0] sm:$0xff] }
  0xad   :  { %v1056_v39 = vld [vmem:[%s28986_s1 + $0x2000] sm:$0xff]  ;;  %7171 = vmatpush1.bf16.msra.mxu1 %v18176_v40  ;;  %v17204_v40 = vcombine.low %v38_v26, %v50_v27  ;;  %v218_v26 = vld [vmem:[%s28986_s1 + $0x5d0] sm:$0xff] }
  0xae   :  { %v18209_v43 = vcombine.high %v1044_v38, %v1056_v39  ;;  %v1064_v44 = vld [vmem:[%s28986_s1 + $0x2040] sm:$0xff]  ;;  %7663 = vmatpush1.bf16.msra.mxu0 %v18184_v41  ;;  %7172 = vmatprep.subr.bf16.mxu1 %v18201_v42  ;;  %v18208_v49 = vcombine.low %v1044_v38, %v1056_v39  ;;  %v74_v38 = vld [vmem:[%s28986_s1 + $0x150] sm:$0xff]  ;;  %v17194_v39 = vcombine.low %v33_v24, %v45_v25  ;;  %v213_v24 = vld [vmem:[%s28986_s1 + $0x5a8] sm:$0xff] }
  0xaf   :  { %v1076_v45 = vld [vmem:[%s28986_s1 + $0x20a0] sm:$0xff]  ;;  %v17219_v41 = vcombine.high %v57_v34, %v69_v35  ;;  %v17229_v42 = vcombine.high %v62_v37, %v74_v38  ;;  %v206_v25 = vld [vmem:[%s28986_s1 + $0x570] sm:$0xff] }
  0xb0   :  { %v1068_v46 = vld [vmem:[%s28986_s1 + $0x2060] sm:$0xff]  ;;  %v18225_v50 = vcombine.high %v1064_v44, %v1076_v45  ;;  %7664 = vmatprep.subr.bf16.mxu0 %v18209_v43  ;;  %v18224_v56 = vcombine.low %v1064_v44, %v1076_v45  ;;  %v81_v43 = vld [vmem:[%s28986_s1 + $0x188] sm:$0xff]  ;;  %v86_v45 = vld [vmem:[%s28986_s1 + $0x1b0] sm:$0xff] }
  0xb1   :  { %v1080_v47 = vld [vmem:[%s28986_s1 + $0x20c0] sm:$0xff]  ;;  %7173 = vmatpush1.bf16.msra.mxu1 %v18200_v48  ;;  %v93_v44 = vld [vmem:[%s28986_s1 + $0x1e8] sm:$0xff]  ;;  %v17228_v48 = vcombine.low %v62_v37, %v74_v38  ;;  %v17372_v38 = vcombine.low %v206_v25, %v218_v26 }
  0xb2   :  { %v18233_v51 = vcombine.high %v1068_v46, %v1080_v47  ;;  %v1088_v52 = vld [vmem:[%s28986_s1 + $0x2100] sm:$0xff]  ;;  %7665 = vmatpush1.bf16.msra.mxu0 %v18208_v49  ;;  %7174 = vmatprep.subr.bf16.mxu1 %v18225_v50  ;;  %v18232_v58 = vcombine.low %v1068_v46, %v1080_v47  ;;  %v98_v46 = vld [vmem:[%s28986_s1 + $0x210] sm:$0xff]  ;;  %v17218_v47 = vcombine.low %v57_v34, %v69_v35 }
  0xb3   :  { %v1100_v53 = vld [vmem:[%s28986_s1 + $0x2160] sm:$0xff]  ;;  %v17243_v49 = vcombine.high %v81_v43, %v93_v44  ;;  %v17253_v50 = vcombine.high %v86_v45, %v98_v46  ;;  %v230_v34 = vld [vmem:[%s28986_s1 + $0x630] sm:$0xff] }
  0xb4   :  { %v1092_v54 = vld [vmem:[%s28986_s1 + $0x2120] sm:$0xff]  ;;  %v18249_v59 = vcombine.high %v1088_v52, %v1100_v53  ;;  %7666 = vmatprep.subr.bf16.mxu0 %v18233_v51  ;;  %v18248_v1 = vcombine.low %v1088_v52, %v1100_v53  ;;  %v105_v51 = vld [vmem:[%s28986_s1 + $0x248] sm:$0xff]  ;;  %v110_v53 = vld [vmem:[%s28986_s1 + $0x270] sm:$0xff] }
  0xb5   :  { %v1104_v55 = vld [vmem:[%s28986_s1 + $0x2180] sm:$0xff]  ;;  %7175 = vmatpush1.bf16.msra.mxu1 %v18224_v56  ;;  %v117_v52 = vld [vmem:[%s28986_s1 + $0x2a8] sm:$0xff]  ;;  %v17252_v56 = vcombine.low %v86_v45, %v98_v46  ;;  %v242_v35 = vld [vmem:[%s28986_s1 + $0x690] sm:$0xff] }
  0xb6   :  { %v18257_v60 = vcombine.high %v1092_v54, %v1104_v55  ;;  %v1112_v61 = vld [vmem:[%s28986_s1 + $0x21c0] sm:$0xff]  ;;  %7667 = vmatpush1.bf16.msra.mxu0 %v18232_v58  ;;  %7176 = vmatprep.subr.bf16.mxu1 %v18249_v59  ;;  %v18256_v2 = vcombine.low %v1092_v54, %v1104_v55  ;;  %v122_v54 = vld [vmem:[%s28986_s1 + $0x2d0] sm:$0xff]  ;;  %v17242_v55 = vcombine.low %v81_v43, %v93_v44 }
  0xb7   :  { %v1124_v62 = vld [vmem:[%s28986_s1 + $0x2220] sm:$0xff]  ;;  %v17267_v58 = vcombine.high %v105_v51, %v117_v52  ;;  %v17277_v59 = vcombine.high %v110_v53, %v122_v54  ;;  %v254_v43 = vld [vmem:[%s28986_s1 + $0x6f0] sm:$0xff]  ;;  %v17396_v46 = vcombine.low %v230_v34, %v242_v35 }
  0xb8   :  { %v1116_v63 = vld [vmem:[%s28986_s1 + $0x21e0] sm:$0xff]  ;;  %v18273_v3 = vcombine.high %v1112_v61, %v1124_v62  ;;  %7668 = vmatprep.subr.bf16.mxu0 %v18257_v60  ;;  %v18272_v9 = vcombine.low %v1112_v61, %v1124_v62  ;;  %v129_v60 = vld [vmem:[%s28986_s1 + $0x308] sm:$0xff]  ;;  %v134_v62 = vld [vmem:[%s28986_s1 + $0x330] sm:$0xff] }
  0xb9   :  { %v1128_v0 = vld [vmem:[%s28986_s1 + $0x2240] sm:$0xff]  ;;  %7177 = vmatpush1.bf16.msra.mxu1 %v18248_v1  ;;  %v141_v61 = vld [vmem:[%s28986_s1 + $0x368] sm:$0xff]  ;;  %v17276_v1 = vcombine.low %v110_v53, %v122_v54  ;;  %v266_v44 = vld [vmem:[%s28986_s1 + $0x750] sm:$0xff] }
  0xba   :  { %v18281_v4 = vcombine.high %v1116_v63, %v1128_v0  ;;  %v1136_v5 = vld [vmem:[%s28986_s1 + $0x2280] sm:$0xff]  ;;  %7669 = vmatpush1.bf16.msra.mxu0 %v18256_v2  ;;  %7178 = vmatprep.subr.bf16.mxu1 %v18273_v3  ;;  %v18280_v10 = vcombine.low %v1116_v63, %v1128_v0  ;;  %v146_v63 = vld [vmem:[%s28986_s1 + $0x390] sm:$0xff]  ;;  %v17266_v0 = vcombine.low %v105_v51, %v117_v52 }
  0xbb   :  { %v1148_v6 = vld [vmem:[%s28986_s1 + $0x22e0] sm:$0xff]  ;;  %v17291_v2 = vcombine.high %v129_v60, %v141_v61  ;;  %v17301_v3 = vcombine.high %v134_v62, %v146_v63  ;;  %v278_v51 = vld [vmem:[%s28986_s1 + $0x7b0] sm:$0xff]  ;;  %v17420_v54 = vcombine.low %v254_v43, %v266_v44 }
  0xbc   :  { %v1140_v7 = vld [vmem:[%s28986_s1 + $0x22a0] sm:$0xff]  ;;  %v18297_v11 = vcombine.high %v1136_v5, %v1148_v6  ;;  %7670 = vmatprep.subr.bf16.mxu0 %v18281_v4  ;;  %v18296_v18 = vcombine.low %v1136_v5, %v1148_v6  ;;  %v153_v4 = vld [vmem:[%s28986_s1 + $0x3c8] sm:$0xff]  ;;  %v158_v6 = vld [vmem:[%s28986_s1 + $0x3f0] sm:$0xff] }
  0xbd   :  { %v1152_v8 = vld [vmem:[%s28986_s1 + $0x2300] sm:$0xff]  ;;  %7179 = vmatpush1.bf16.msra.mxu1 %v18272_v9  ;;  %v165_v5 = vld [vmem:[%s28986_s1 + $0x428] sm:$0xff]  ;;  %v17300_v9 = vcombine.low %v134_v62, %v146_v63  ;;  %v290_v52 = vld [vmem:[%s28986_s1 + $0x810] sm:$0xff] }
  0xbe   :  { %v18305_v13 = vcombine.high %v1140_v7, %v1152_v8  ;;  %v1160_v14 = vld [vmem:[%s28986_s1 + $0x2340] sm:$0xff]  ;;  %7671 = vmatpush1.bf16.msra.mxu0 %v18280_v10  ;;  %7180 = vmatprep.subr.bf16.mxu1 %v18297_v11  ;;  %v18304_v19 = vcombine.low %v1140_v7, %v1152_v8  ;;  %v170_v7 = vld [vmem:[%s28986_s1 + $0x450] sm:$0xff]  ;;  %v17290_v8 = vcombine.low %v129_v60, %v141_v61 }
  0xbf   :  { %v1172_v15 = vld [vmem:[%s28986_s1 + $0x23a0] sm:$0xff]  ;;  %v17315_v10 = vcombine.high %v153_v4, %v165_v5  ;;  %v17325_v11 = vcombine.high %v158_v6, %v170_v7  ;;  %v302_v60 = vld [vmem:[%s28986_s1 + $0x870] sm:$0xff]  ;;  %v17444_v63 = vcombine.low %v278_v51, %v290_v52 }
  0xc0   :  { %v1164_v16 = vld [vmem:[%s28986_s1 + $0x2360] sm:$0xff]  ;;  %v18321_v20 = vcombine.high %v1160_v14, %v1172_v15  ;;  %7672 = vmatprep.subr.bf16.mxu0 %v18305_v13  ;;  %v18320_v28 = vcombine.low %v1160_v14, %v1172_v15  ;;  %v177_v13 = vld [vmem:[%s28986_s1 + $0x488] sm:$0xff]  ;;  %v182_v15 = vld [vmem:[%s28986_s1 + $0x4b0] sm:$0xff] }
  0xc1   :  { %v1176_v17 = vld [vmem:[%s28986_s1 + $0x23c0] sm:$0xff]  ;;  %7181 = vmatpush1.bf16.msra.mxu1 %v18296_v18  ;;  %v189_v14 = vld [vmem:[%s28986_s1 + $0x4e8] sm:$0xff]  ;;  %v17324_v18 = vcombine.low %v158_v6, %v170_v7  ;;  %v314_v61 = vld [vmem:[%s28986_s1 + $0x8d0] sm:$0xff] }
  0xc2   :  { %v18329_v23 = vcombine.high %v1164_v16, %v1176_v17  ;;  %v24_v29 = vld [vmem:[%s28987_s0 + $0x20] sm:$0xff]  ;;  %7673 = vmatpush1.bf16.msra.mxu0 %v18304_v19  ;;  %7182 = vmatprep.subr.bf16.mxu1 %v18321_v20  ;;  %v18328_v30 = vcombine.low %v1164_v16, %v1176_v17  ;;  %v194_v16 = vld [vmem:[%s28986_s1 + $0x510] sm:$0xff]  ;;  %v17314_v17 = vcombine.low %v153_v4, %v165_v5 }
  0xc3   :  { %v22198_v36 = vpack.c.bf16 %v24_v29, %v24_v29  ;;  %v17339_v19 = vcombine.high %v177_v13, %v189_v14  ;;  %v17349_v20 = vcombine.high %v182_v15, %v194_v16  ;;  %v17338_v27 = vcombine.low %v177_v13, %v189_v14  ;;  %v326_v4 = vld [vmem:[%s28986_s1 + $0x930] sm:$0xff] }
  0xc4   :  { %7674 = vmatprep.subr.bf16.mxu0 %v18329_v23  ;;  %v201_v23 = vld [vmem:[%s28986_s1 + $0x548] sm:$0xff]  ;;  %v338_v5 = vld [vmem:[%s28986_s1 + $0x990] sm:$0xff]  ;;  %v17468_v7 = vcombine.low %v302_v60, %v314_v61 }
  0xc5   :  { %7183 = vmatpush1.bf16.msra.mxu1 %v18320_v28  ;;  %v17348_v28 = vcombine.low %v182_v15, %v194_v16  ;;  %v17363_v29 = vcombine.high %v201_v23, %v213_v24  ;;  %v17362_v37 = vcombine.low %v201_v23, %v213_v24  ;;  %v350_v13 = vld [vmem:[%s28986_s1 + $0x9f0] sm:$0xff]  ;;  %v17492_v16 = vcombine.low %v326_v4, %v338_v5 }
  0xc6   :  { %7675 = vmatpush1.bf16.msra.mxu0 %v18328_v30  ;;  %7193 = vmatprep.subr.bf16.mxu1 %v17195_v31  ;;  %v17373_v30 = vcombine.high %v206_v25, %v218_v26  ;;  %v225_v31 = vld [vmem:[%s28986_s1 + $0x608] sm:$0xff]  ;;  %v362_v14 = vld [vmem:[%s28986_s1 + $0xa50] sm:$0xff] }
  0xc7   :  { %7808 = vmatprep.subr.bf16.mxu0 %v17205_v33  ;;  %v237_v33 = vld [vmem:[%s28986_s1 + $0x668] sm:$0xff]  ;;  %v374_v23 = vld [vmem:[%s28986_s1 + $0xab0] sm:$0xff]  ;;  %v17516_v26 = vcombine.low %v350_v13, %v362_v14 }
  0xc8   :  { %7185 = vmatmul.mubr.bf16.vlgmr.msra.gmra.mrb[0].mxu1 %v22198_v36  ;;  %v17386_v45 = vcombine.low %v225_v31, %v237_v33  ;;  %v386_v24 = vld [vmem:[%s28986_s1 + $0xb10] sm:$0xff] }
  0xc9   :  { %7194 = vmatpush1.bf16.msra.mxu1 %v17194_v39  ;;  %7677 = vmatmul.mubr.bf16.vlgmr.msra.gmra.mrb[0].mxu0 %v22198_v36  ;;  %v17387_v39 = vcombine.high %v225_v31, %v237_v33  ;;  %v398_v31 = vld [vmem:[%s28986_s1 + $0xb70] sm:$0xff] }
  0xca   :  { %7809 = vmatpush1.bf16.msra.mxu0 %v17204_v40  ;;  %7195 = vmatprep.subr.bf16.mxu1 %v17219_v41  ;;  %v17397_v40 = vcombine.high %v230_v34, %v242_v35  ;;  %v249_v41 = vld [vmem:[%s28986_s1 + $0x6c8] sm:$0xff]  ;;  %v410_v33 = vld [vmem:[%s28986_s1 + $0xbd0] sm:$0xff]  ;;  %v17540_v35 = vcombine.low %v374_v23, %v386_v24 }
  0xcb   :  { %7810 = vmatprep.subr.bf16.mxu0 %v17229_v42  ;;  %7225 = vmatprep.mubr.bf16.mxu1 %v21659_v57  ;;  %v261_v42 = vld [vmem:[%s28986_s1 + $0x728] sm:$0xff] }
  0xcc   :  { %7840 = vmatprep.mubr.bf16.mxu0 %v21659_v57  ;;  %v17410_v53 = vcombine.low %v249_v41, %v261_v42 }
  0xcd   :  { %7196 = vmatpush1.bf16.msra.mxu1 %v17218_v47  ;;  %v17411_v47 = vcombine.high %v249_v41, %v261_v42  ;;  %v422_v41 = vld [vmem:[%s28986_s1 + $0xc30] sm:$0xff] }
  0xce   :  { %7811 = vmatpush1.bf16.msra.mxu0 %v17228_v48  ;;  %7197 = vmatprep.subr.bf16.mxu1 %v17243_v49  ;;  %v17421_v48 = vcombine.high %v254_v43, %v266_v44  ;;  %v273_v49 = vld [vmem:[%s28986_s1 + $0x788] sm:$0xff]  ;;  %v434_v42 = vld [vmem:[%s28986_s1 + $0xc90] sm:$0xff]  ;;  %v17564_v44 = vcombine.low %v398_v31, %v410_v33 }
  0xcf   :  { %7812 = vmatprep.subr.bf16.mxu0 %v17253_v50  ;;  %v285_v50 = vld [vmem:[%s28986_s1 + $0x7e8] sm:$0xff] }
  0xd0   :  { %v17434_v62 = vcombine.low %v273_v49, %v285_v50 }
  0xd1   :  { %7198 = vmatpush1.bf16.msra.mxu1 %v17242_v55  ;;  %v17435_v55 = vcombine.high %v273_v49, %v285_v50  ;;  %v446_v49 = vld [vmem:[%s28986_s1 + $0xcf0] sm:$0xff] }
  0xd2   :  { %7813 = vmatpush1.bf16.msra.mxu0 %v17252_v56  ;;  %7199 = vmatprep.subr.bf16.mxu1 %v17267_v58  ;;  %v17445_v56 = vcombine.high %v278_v51, %v290_v52  ;;  %v297_v58 = vld [vmem:[%s28986_s1 + $0x848] sm:$0xff]  ;;  %v458_v50 = vld [vmem:[%s28986_s1 + $0xd50] sm:$0xff]  ;;  %v17588_v52 = vcombine.low %v422_v41, %v434_v42 }
  0xd3   :  { %7814 = vmatprep.subr.bf16.mxu0 %v17277_v59  ;;  %v309_v59 = vld [vmem:[%s28986_s1 + $0x8a8] sm:$0xff] }
  0xd4   :  { %v17458_v6 = vcombine.low %v297_v58, %v309_v59 }
  0xd5   :  { %7200 = vmatpush1.bf16.msra.mxu1 %v17266_v0  ;;  %v17459_v0 = vcombine.high %v297_v58, %v309_v59  ;;  %v470_v58 = vld [vmem:[%s28986_s1 + $0xdb0] sm:$0xff] }
  0xd6   :  { %7815 = vmatpush1.bf16.msra.mxu0 %v17276_v1  ;;  %7201 = vmatprep.subr.bf16.mxu1 %v17291_v2  ;;  %v17469_v1 = vcombine.high %v302_v60, %v314_v61  ;;  %v321_v2 = vld [vmem:[%s28986_s1 + $0x908] sm:$0xff]  ;;  %v482_v59 = vld [vmem:[%s28986_s1 + $0xe10] sm:$0xff]  ;;  %v17612_v61 = vcombine.low %v446_v49, %v458_v50 }
  0xd7   :  { %7816 = vmatprep.subr.bf16.mxu0 %v17301_v3  ;;  %v333_v3 = vld [vmem:[%s28986_s1 + $0x968] sm:$0xff] }
  0xd8   :  { %v17482_v15 = vcombine.low %v321_v2, %v333_v3 }
  0xd9   :  { %7202 = vmatpush1.bf16.msra.mxu1 %v17290_v8  ;;  %v17483_v8 = vcombine.high %v321_v2, %v333_v3  ;;  %v494_v2 = vld [vmem:[%s28986_s1 + $0xe70] sm:$0xff] }
  0xda   :  { %7817 = vmatpush1.bf16.msra.mxu0 %v17300_v9  ;;  %7203 = vmatprep.subr.bf16.mxu1 %v17315_v10  ;;  %v17493_v9 = vcombine.high %v326_v4, %v338_v5  ;;  %v345_v10 = vld [vmem:[%s28986_s1 + $0x9c8] sm:$0xff]  ;;  %v506_v3 = vld [vmem:[%s28986_s1 + $0xed0] sm:$0xff]  ;;  %v17636_v5 = vcombine.low %v470_v58, %v482_v59 }
  0xdb   :  { %7818 = vmatprep.subr.bf16.mxu0 %v17325_v11  ;;  %v357_v11 = vld [vmem:[%s28986_s1 + $0xa28] sm:$0xff] }
  0xdc   :  { %v17506_v25 = vcombine.low %v345_v10, %v357_v11 }
  0xdd   :  { %7204 = vmatpush1.bf16.msra.mxu1 %v17314_v17  ;;  %v17507_v17 = vcombine.high %v345_v10, %v357_v11  ;;  %v518_v10 = vld [vmem:[%s28986_s1 + $0xf30] sm:$0xff] }
  0xde   :  { %7819 = vmatpush1.bf16.msra.mxu0 %v17324_v18  ;;  %7205 = vmatprep.subr.bf16.mxu1 %v17339_v19  ;;  %v17517_v18 = vcombine.high %v350_v13, %v362_v14  ;;  %v369_v19 = vld [vmem:[%s28986_s1 + $0xa88] sm:$0xff]  ;;  %v530_v11 = vld [vmem:[%s28986_s1 + $0xf90] sm:$0xff]  ;;  %v17660_v14 = vcombine.low %v494_v2, %v506_v3 }
  0xdf   :  { %7820 = vmatprep.subr.bf16.mxu0 %v17349_v20  ;;  %v381_v20 = vld [vmem:[%s28986_s1 + $0xae8] sm:$0xff] }
  0xe0   :  { %v17530_v34 = vcombine.low %v369_v19, %v381_v20 }
  0xe1   :  { %7206 = vmatpush1.bf16.msra.mxu1 %v17338_v27  ;;  %v17531_v27 = vcombine.high %v369_v19, %v381_v20  ;;  %v542_v19 = vld [vmem:[%s28986_s1 + $0xff0] sm:$0xff] }
  0xe2   :  { %7821 = vmatpush1.bf16.msra.mxu0 %v17348_v28  ;;  %7207 = vmatprep.subr.bf16.mxu1 %v17363_v29  ;;  %v17541_v28 = vcombine.high %v374_v23, %v386_v24  ;;  %v393_v29 = vld [vmem:[%s28986_s1 + $0xb48] sm:$0xff]  ;;  %v554_v20 = vld [vmem:[%s28986_s1 + $0x1050] sm:$0xff]  ;;  %v17684_v24 = vcombine.low %v518_v10, %v530_v11 }
  0xe3   :  { %7822 = vmatprep.subr.bf16.mxu0 %v17373_v30  ;;  %v405_v30 = vld [vmem:[%s28986_s1 + $0xba8] sm:$0xff] }
  0xe4   :  { %v17554_v43 = vcombine.low %v393_v29, %v405_v30 }
  0xe5   :  { %7208 = vmatpush1.bf16.msra.mxu1 %v17362_v37  ;;  %v17555_v37 = vcombine.high %v393_v29, %v405_v30  ;;  %v566_v29 = vld [vmem:[%s28986_s1 + $0x10b0] sm:$0xff] }
  0xe6   :  { %7823 = vmatpush1.bf16.msra.mxu0 %v17372_v38  ;;  %7209 = vmatprep.subr.bf16.mxu1 %v17387_v39  ;;  %v17565_v38 = vcombine.high %v398_v31, %v410_v33  ;;  %v417_v39 = vld [vmem:[%s28986_s1 + $0xc08] sm:$0xff]  ;;  %v578_v30 = vld [vmem:[%s28986_s1 + $0x1110] sm:$0xff]  ;;  %v17708_v33 = vcombine.low %v542_v19, %v554_v20 }
  0xe7   :  { %7824 = vmatprep.subr.bf16.mxu0 %v17397_v40  ;;  %v429_v40 = vld [vmem:[%s28986_s1 + $0xc68] sm:$0xff] }
  0xe8   :  { %v17578_v51 = vcombine.low %v417_v39, %v429_v40 }
  0xe9   :  { %7210 = vmatpush1.bf16.msra.mxu1 %v17386_v45  ;;  %v17579_v45 = vcombine.high %v417_v39, %v429_v40  ;;  %v590_v39 = vld [vmem:[%s28986_s1 + $0x1170] sm:$0xff] }
  0xea   :  { %7825 = vmatpush1.bf16.msra.mxu0 %v17396_v46  ;;  %7211 = vmatprep.subr.bf16.mxu1 %v17411_v47  ;;  %v17589_v46 = vcombine.high %v422_v41, %v434_v42  ;;  %v441_v47 = vld [vmem:[%s28986_s1 + $0xcc8] sm:$0xff]  ;;  %v602_v40 = vld [vmem:[%s28986_s1 + $0x11d0] sm:$0xff]  ;;  %v17732_v42 = vcombine.low %v566_v29, %v578_v30 }
  0xeb   :  { %7826 = vmatprep.subr.bf16.mxu0 %v17421_v48  ;;  %v453_v48 = vld [vmem:[%s28986_s1 + $0xd28] sm:$0xff] }
  0xec   :  { %v17602_v60 = vcombine.low %v441_v47, %v453_v48 }
  0xed   :  { %7212 = vmatpush1.bf16.msra.mxu1 %v17410_v53  ;;  %v17603_v53 = vcombine.high %v441_v47, %v453_v48  ;;  %v614_v47 = vld [vmem:[%s28986_s1 + $0x1230] sm:$0xff] }
  0xee   :  { %7827 = vmatpush1.bf16.msra.mxu0 %v17420_v54  ;;  %7213 = vmatprep.subr.bf16.mxu1 %v17435_v55  ;;  %v17613_v54 = vcombine.high %v446_v49, %v458_v50  ;;  %v465_v55 = vld [vmem:[%s28986_s1 + $0xd88] sm:$0xff]  ;;  %v626_v48 = vld [vmem:[%s28986_s1 + $0x1290] sm:$0xff]  ;;  %v17756_v50 = vcombine.low %v590_v39, %v602_v40 }
  0xef   :  { %7828 = vmatprep.subr.bf16.mxu0 %v17445_v56  ;;  %v477_v56 = vld [vmem:[%s28986_s1 + $0xde8] sm:$0xff] }
  0xf0   :  { %v17626_v4 = vcombine.low %v465_v55, %v477_v56 }
  0xf1   :  { %7214 = vmatpush1.bf16.msra.mxu1 %v17434_v62  ;;  %v17627_v62 = vcombine.high %v465_v55, %v477_v56  ;;  %v638_v55 = vld [vmem:[%s28986_s1 + $0x12f0] sm:$0xff] }
  0xf2   :  { %7829 = vmatpush1.bf16.msra.mxu0 %v17444_v63  ;;  %7215 = vmatprep.subr.bf16.mxu1 %v17459_v0  ;;  %v17637_v63 = vcombine.high %v470_v58, %v482_v59  ;;  %v489_v0 = vld [vmem:[%s28986_s1 + $0xe48] sm:$0xff]  ;;  %v650_v56 = vld [vmem:[%s28986_s1 + $0x1350] sm:$0xff]  ;;  %v17780_v59 = vcombine.low %v614_v47, %v626_v48 }
  0xf3   :  { %7830 = vmatprep.subr.bf16.mxu0 %v17469_v1  ;;  %v501_v1 = vld [vmem:[%s28986_s1 + $0xea8] sm:$0xff] }
  0xf4   :  { %v17650_v13 = vcombine.low %v489_v0, %v501_v1 }
  0xf5   :  { %7216 = vmatpush1.bf16.msra.mxu1 %v17458_v6  ;;  %v17651_v6 = vcombine.high %v489_v0, %v501_v1  ;;  %v662_v0 = vld [vmem:[%s28986_s1 + $0x13b0] sm:$0xff] }
  0xf6   :  { %7831 = vmatpush1.bf16.msra.mxu0 %v17468_v7  ;;  %7217 = vmatprep.subr.bf16.mxu1 %v17483_v8  ;;  %v17661_v7 = vcombine.high %v494_v2, %v506_v3  ;;  %v513_v8 = vld [vmem:[%s28986_s1 + $0xf08] sm:$0xff]  ;;  %v674_v1 = vld [vmem:[%s28986_s1 + $0x1410] sm:$0xff]  ;;  %v17804_v3 = vcombine.low %v638_v55, %v650_v56 }
  0xf7   :  { %7832 = vmatprep.subr.bf16.mxu0 %v17493_v9  ;;  %v525_v9 = vld [vmem:[%s28986_s1 + $0xf68] sm:$0xff] }
  0xf8   :  { %v17674_v23 = vcombine.low %v513_v8, %v525_v9 }
  0xf9   :  { %7218 = vmatpush1.bf16.msra.mxu1 %v17482_v15  ;;  %v17675_v15 = vcombine.high %v513_v8, %v525_v9  ;;  %v686_v8 = vld [vmem:[%s28986_s1 + $0x1470] sm:$0xff] }
  0xfa   :  { %7833 = vmatpush1.bf16.msra.mxu0 %v17492_v16  ;;  %7219 = vmatprep.subr.bf16.mxu1 %v17507_v17  ;;  %v17685_v16 = vcombine.high %v518_v10, %v530_v11  ;;  %v537_v17 = vld [vmem:[%s28986_s1 + $0xfc8] sm:$0xff]  ;;  %v698_v9 = vld [vmem:[%s28986_s1 + $0x14d0] sm:$0xff]  ;;  %v17828_v11 = vcombine.low %v662_v0, %v674_v1 }
  0xfb   :  { %7834 = vmatprep.subr.bf16.mxu0 %v17517_v18  ;;  %v549_v18 = vld [vmem:[%s28986_s1 + $0x1028] sm:$0xff] }
  0xfc   :  { %v17698_v31 = vcombine.low %v537_v17, %v549_v18 }
  0xfd   :  { %7220 = vmatpush1.bf16.msra.mxu1 %v17506_v25  ;;  %v17699_v25 = vcombine.high %v537_v17, %v549_v18  ;;  %v710_v17 = vld [vmem:[%s28986_s1 + $0x1530] sm:$0xff] }
  0xfe   :  { %7835 = vmatpush1.bf16.msra.mxu0 %v17516_v26  ;;  %7221 = vmatprep.subr.bf16.mxu1 %v17531_v27  ;;  %v17709_v26 = vcombine.high %v542_v19, %v554_v20  ;;  %v561_v27 = vld [vmem:[%s28986_s1 + $0x1088] sm:$0xff]  ;;  %v722_v18 = vld [vmem:[%s28986_s1 + $0x1590] sm:$0xff]  ;;  %v17852_v20 = vcombine.low %v686_v8, %v698_v9 }
  0xff   :  { %7836 = vmatprep.subr.bf16.mxu0 %v17541_v28  ;;  %v573_v28 = vld [vmem:[%s28986_s1 + $0x10e8] sm:$0xff] }
 0x100   :  { %v17722_v41 = vcombine.low %v561_v27, %v573_v28 }
 0x101   :  { %7222 = vmatpush1.bf16.msra.mxu1 %v17530_v34  ;;  %v17723_v34 = vcombine.high %v561_v27, %v573_v28  ;;  %v734_v27 = vld [vmem:[%s28986_s1 + $0x15f0] sm:$0xff] }
 0x102   :  { %7837 = vmatpush1.bf16.msra.mxu0 %v17540_v35  ;;  %7223 = vmatprep.subr.bf16.mxu1 %v17555_v37  ;;  %v17733_v35 = vcombine.high %v566_v29, %v578_v30  ;;  %v585_v37 = vld [vmem:[%s28986_s1 + $0x1148] sm:$0xff]  ;;  %v746_v28 = vld [vmem:[%s28986_s1 + $0x1650] sm:$0xff]  ;;  %v17876_v30 = vcombine.low %v710_v17, %v722_v18 }
 0x103   :  { %7838 = vmatprep.subr.bf16.mxu0 %v17565_v38  ;;  %v597_v38 = vld [vmem:[%s28986_s1 + $0x11a8] sm:$0xff] }
 0x104   :  { %v17746_v49 = vcombine.low %v585_v37, %v597_v38 }
 0x105   :  { %7224 = vmatpush1.bf16.msra.mxu1 %v17554_v43  ;;  %v17747_v43 = vcombine.high %v585_v37, %v597_v38  ;;  %v758_v37 = vld [vmem:[%s28986_s1 + $0x16b0] sm:$0xff] }
 0x106   :  { %7839 = vmatpush1.bf16.msra.mxu0 %v17564_v44  ;;  %7234 = vmatprep.subr.bf16.mxu1 %v17579_v45  ;;  %v17757_v44 = vcombine.high %v590_v39, %v602_v40  ;;  %v609_v45 = vld [vmem:[%s28986_s1 + $0x1208] sm:$0xff]  ;;  %v770_v38 = vld [vmem:[%s28986_s1 + $0x1710] sm:$0xff]  ;;  %v17900_v40 = vcombine.low %v734_v27, %v746_v28 }
 0x107   :  { %7849 = vmatprep.subr.bf16.mxu0 %v17589_v46  ;;  %v621_v46 = vld [vmem:[%s28986_s1 + $0x1268] sm:$0xff] }
 0x108   :  { %7226 = vmatmul.mubr.bf16.vlgmr.msra.gmra.mrb[4].mxu1 %v21786_v12  ;;  %v17770_v58 = vcombine.low %v609_v45, %v621_v46 }
 0x109   :  { %7235 = vmatpush1.bf16.msra.mxu1 %v17578_v51  ;;  %7841 = vmatmul.mubr.bf16.vlgmr.msra.gmra.mrb[4].mxu0 %v21786_v12  ;;  %v17771_v51 = vcombine.high %v609_v45, %v621_v46  ;;  %v782_v45 = vld [vmem:[%s28986_s1 + $0x1770] sm:$0xff] }
 0x10a   :  { %7850 = vmatpush1.bf16.msra.mxu0 %v17588_v52  ;;  %7236 = vmatprep.subr.bf16.mxu1 %v17603_v53  ;;  %v17781_v52 = vcombine.high %v614_v47, %v626_v48  ;;  %v633_v53 = vld [vmem:[%s28986_s1 + $0x12c8] sm:$0xff]  ;;  %v794_v46 = vld [vmem:[%s28986_s1 + $0x17d0] sm:$0xff]  ;;  %v17924_v48 = vcombine.low %v758_v37, %v770_v38 }
 0x10b   :  { %7851 = vmatprep.subr.bf16.mxu0 %v17613_v54  ;;  %7266 = vmatprep.mubr.bf16.mxu1 %v21803_v22  ;;  %v645_v54 = vld [vmem:[%s28986_s1 + $0x1328] sm:$0xff] }
 0x10c   :  { %7881 = vmatprep.mubr.bf16.mxu0 %v21803_v22  ;;  %v17794_v2 = vcombine.low %v633_v53, %v645_v54 }
 0x10d   :  { %7237 = vmatpush1.bf16.msra.mxu1 %v17602_v60  ;;  %v17795_v60 = vcombine.high %v633_v53, %v645_v54  ;;  %v806_v53 = vld [vmem:[%s28986_s1 + $0x1830] sm:$0xff] }
 0x10e   :  { %7852 = vmatpush1.bf16.msra.mxu0 %v17612_v61  ;;  %7238 = vmatprep.subr.bf16.mxu1 %v17627_v62  ;;  %v17805_v61 = vcombine.high %v638_v55, %v650_v56  ;;  %v657_v62 = vld [vmem:[%s28986_s1 + $0x1388] sm:$0xff]  ;;  %v818_v54 = vld [vmem:[%s28986_s1 + $0x1890] sm:$0xff]  ;;  %v17948_v56 = vcombine.low %v782_v45, %v794_v46 }
 0x10f   :  { %7853 = vmatprep.subr.bf16.mxu0 %v17637_v63  ;;  %v669_v63 = vld [vmem:[%s28986_s1 + $0x13e8] sm:$0xff] }
 0x110   :  { %v17818_v10 = vcombine.low %v657_v62, %v669_v63 }
 0x111   :  { %7239 = vmatpush1.bf16.msra.mxu1 %v17626_v4  ;;  %v17819_v4 = vcombine.high %v657_v62, %v669_v63  ;;  %v830_v62 = vld [vmem:[%s28986_s1 + $0x18f0] sm:$0xff] }
 0x112   :  { %7854 = vmatpush1.bf16.msra.mxu0 %v17636_v5  ;;  %7240 = vmatprep.subr.bf16.mxu1 %v17651_v6  ;;  %v17829_v5 = vcombine.high %v662_v0, %v674_v1  ;;  %v681_v6 = vld [vmem:[%s28986_s1 + $0x1448] sm:$0xff]  ;;  %v842_v63 = vld [vmem:[%s28986_s1 + $0x1950] sm:$0xff]  ;;  %v17972_v1 = vcombine.low %v806_v53, %v818_v54 }
 0x113   :  { %7855 = vmatprep.subr.bf16.mxu0 %v17661_v7  ;;  %v693_v7 = vld [vmem:[%s28986_s1 + $0x14a8] sm:$0xff] }
 0x114   :  { %v17842_v19 = vcombine.low %v681_v6, %v693_v7 }
 0x115   :  { %7241 = vmatpush1.bf16.msra.mxu1 %v17650_v13  ;;  %v17843_v13 = vcombine.high %v681_v6, %v693_v7  ;;  %v854_v6 = vld [vmem:[%s28986_s1 + $0x19b0] sm:$0xff] }
 0x116   :  { %7856 = vmatpush1.bf16.msra.mxu0 %v17660_v14  ;;  %7242 = vmatprep.subr.bf16.mxu1 %v17675_v15  ;;  %v17853_v14 = vcombine.high %v686_v8, %v698_v9  ;;  %v705_v15 = vld [vmem:[%s28986_s1 + $0x1508] sm:$0xff]  ;;  %v866_v7 = vld [vmem:[%s28986_s1 + $0x1a10] sm:$0xff]  ;;  %v17996_v9 = vcombine.low %v830_v62, %v842_v63 }
 0x117   :  { %7857 = vmatprep.subr.bf16.mxu0 %v17685_v16  ;;  %v717_v16 = vld [vmem:[%s28986_s1 + $0x1568] sm:$0xff] }
 0x118   :  { %v17866_v29 = vcombine.low %v705_v15, %v717_v16 }
 0x119   :  { %7243 = vmatpush1.bf16.msra.mxu1 %v17674_v23  ;;  %v17867_v23 = vcombine.high %v705_v15, %v717_v16  ;;  %v878_v15 = vld [vmem:[%s28986_s1 + $0x1a70] sm:$0xff] }
 0x11a   :  { %7858 = vmatpush1.bf16.msra.mxu0 %v17684_v24  ;;  %7244 = vmatprep.subr.bf16.mxu1 %v17699_v25  ;;  %v17877_v24 = vcombine.high %v710_v17, %v722_v18  ;;  %v729_v25 = vld [vmem:[%s28986_s1 + $0x15c8] sm:$0xff]  ;;  %v890_v16 = vld [vmem:[%s28986_s1 + $0x1ad0] sm:$0xff]  ;;  %v18020_v18 = vcombine.low %v854_v6, %v866_v7 }
 0x11b   :  { %7859 = vmatprep.subr.bf16.mxu0 %v17709_v26  ;;  %v741_v26 = vld [vmem:[%s28986_s1 + $0x1628] sm:$0xff] }
 0x11c   :  { %v17890_v39 = vcombine.low %v729_v25, %v741_v26 }
 0x11d   :  { %7245 = vmatpush1.bf16.msra.mxu1 %v17698_v31  ;;  %v17891_v31 = vcombine.high %v729_v25, %v741_v26  ;;  %v902_v25 = vld [vmem:[%s28986_s1 + $0x1b30] sm:$0xff] }
 0x11e   :  { %7860 = vmatpush1.bf16.msra.mxu0 %v17708_v33  ;;  %7246 = vmatprep.subr.bf16.mxu1 %v17723_v34  ;;  %v17901_v33 = vcombine.high %v734_v27, %v746_v28  ;;  %v753_v34 = vld [vmem:[%s28986_s1 + $0x1688] sm:$0xff]  ;;  %v914_v26 = vld [vmem:[%s28986_s1 + $0x1b90] sm:$0xff]  ;;  %v18044_v28 = vcombine.low %v878_v15, %v890_v16 }
 0x11f   :  { %7861 = vmatprep.subr.bf16.mxu0 %v17733_v35  ;;  %v765_v35 = vld [vmem:[%s28986_s1 + $0x16e8] sm:$0xff] }
 0x120   :  { %v17914_v47 = vcombine.low %v753_v34, %v765_v35 }
 0x121   :  { %7247 = vmatpush1.bf16.msra.mxu1 %v17722_v41  ;;  %v17915_v41 = vcombine.high %v753_v34, %v765_v35  ;;  %v926_v34 = vld [vmem:[%s28986_s1 + $0x1bf0] sm:$0xff] }
 0x122   :  { %7862 = vmatpush1.bf16.msra.mxu0 %v17732_v42  ;;  %7248 = vmatprep.subr.bf16.mxu1 %v17747_v43  ;;  %v17925_v42 = vcombine.high %v758_v37, %v770_v38  ;;  %v777_v43 = vld [vmem:[%s28986_s1 + $0x1748] sm:$0xff]  ;;  %v938_v35 = vld [vmem:[%s28986_s1 + $0x1c50] sm:$0xff]  ;;  %v18068_v38 = vcombine.low %v902_v25, %v914_v26 }
 0x123   :  { %7863 = vmatprep.subr.bf16.mxu0 %v17757_v44  ;;  %v789_v44 = vld [vmem:[%s28986_s1 + $0x17a8] sm:$0xff] }
 0x124   :  { %v17938_v55 = vcombine.low %v777_v43, %v789_v44 }
 0x125   :  { %7249 = vmatpush1.bf16.msra.mxu1 %v17746_v49  ;;  %v17939_v49 = vcombine.high %v777_v43, %v789_v44  ;;  %v950_v43 = vld [vmem:[%s28986_s1 + $0x1cb0] sm:$0xff] }
 0x126   :  { %7864 = vmatpush1.bf16.msra.mxu0 %v17756_v50  ;;  %7250 = vmatprep.subr.bf16.mxu1 %v17771_v51  ;;  %v17949_v50 = vcombine.high %v782_v45, %v794_v46  ;;  %v801_v51 = vld [vmem:[%s28986_s1 + $0x1808] sm:$0xff]  ;;  %v962_v44 = vld [vmem:[%s28986_s1 + $0x1d10] sm:$0xff]  ;;  %v18092_v46 = vcombine.low %v926_v34, %v938_v35 }
 0x127   :  { %7865 = vmatprep.subr.bf16.mxu0 %v17781_v52  ;;  %v813_v52 = vld [vmem:[%s28986_s1 + $0x1868] sm:$0xff] }
 0x128   :  { %v17962_v0 = vcombine.low %v801_v51, %v813_v52 }
 0x129   :  { %7251 = vmatpush1.bf16.msra.mxu1 %v17770_v58  ;;  %v17963_v58 = vcombine.high %v801_v51, %v813_v52  ;;  %v974_v51 = vld [vmem:[%s28986_s1 + $0x1d70] sm:$0xff] }
 0x12a   :  { %7866 = vmatpush1.bf16.msra.mxu0 %v17780_v59  ;;  %7252 = vmatprep.subr.bf16.mxu1 %v17795_v60  ;;  %v17973_v59 = vcombine.high %v806_v53, %v818_v54  ;;  %v825_v60 = vld [vmem:[%s28986_s1 + $0x18c8] sm:$0xff]  ;;  %v986_v52 = vld [vmem:[%s28986_s1 + $0x1dd0] sm:$0xff]  ;;  %v18116_v54 = vcombine.low %v950_v43, %v962_v44 }
 0x12b   :  { %7867 = vmatprep.subr.bf16.mxu0 %v17805_v61  ;;  %v837_v61 = vld [vmem:[%s28986_s1 + $0x1928] sm:$0xff] }
 0x12c   :  { %v17986_v8 = vcombine.low %v825_v60, %v837_v61 }
 0x12d   :  { %7253 = vmatpush1.bf16.msra.mxu1 %v17794_v2  ;;  %v17987_v2 = vcombine.high %v825_v60, %v837_v61  ;;  %v998_v60 = vld [vmem:[%s28986_s1 + $0x1e30] sm:$0xff] }
 0x12e   :  { %7868 = vmatpush1.bf16.msra.mxu0 %v17804_v3  ;;  %7254 = vmatprep.subr.bf16.mxu1 %v17819_v4  ;;  %v17997_v3 = vcombine.high %v830_v62, %v842_v63  ;;  %v849_v4 = vld [vmem:[%s28986_s1 + $0x1988] sm:$0xff]  ;;  %v1010_v61 = vld [vmem:[%s28986_s1 + $0x1e90] sm:$0xff]  ;;  %v18140_v63 = vcombine.low %v974_v51, %v986_v52 }
 0x12f   :  { %7869 = vmatprep.subr.bf16.mxu0 %v17829_v5  ;;  %v861_v5 = vld [vmem:[%s28986_s1 + $0x19e8] sm:$0xff] }
 0x130   :  { %v18010_v17 = vcombine.low %v849_v4, %v861_v5 }
 0x131   :  { %7255 = vmatpush1.bf16.msra.mxu1 %v17818_v10  ;;  %v18011_v10 = vcombine.high %v849_v4, %v861_v5  ;;  %v1022_v4 = vld [vmem:[%s28986_s1 + $0x1ef0] sm:$0xff] }
 0x132   :  { %7870 = vmatpush1.bf16.msra.mxu0 %v17828_v11  ;;  %7256 = vmatprep.subr.bf16.mxu1 %v17843_v13  ;;  %v18021_v11 = vcombine.high %v854_v6, %v866_v7  ;;  %v873_v13 = vld [vmem:[%s28986_s1 + $0x1a48] sm:$0xff]  ;;  %v1034_v5 = vld [vmem:[%s28986_s1 + $0x1f50] sm:$0xff]  ;;  %v18164_v7 = vcombine.low %v998_v60, %v1010_v61 }
 0x133   :  { %7871 = vmatprep.subr.bf16.mxu0 %v17853_v14  ;;  %v885_v14 = vld [vmem:[%s28986_s1 + $0x1aa8] sm:$0xff] }
 0x134   :  { %v18034_v27 = vcombine.low %v873_v13, %v885_v14 }
 0x135   :  { %7257 = vmatpush1.bf16.msra.mxu1 %v17842_v19  ;;  %v18035_v19 = vcombine.high %v873_v13, %v885_v14  ;;  %v1046_v13 = vld [vmem:[%s28986_s1 + $0x1fb0] sm:$0xff] }
 0x136   :  { %7872 = vmatpush1.bf16.msra.mxu0 %v17852_v20  ;;  %7258 = vmatprep.subr.bf16.mxu1 %v17867_v23  ;;  %v18045_v20 = vcombine.high %v878_v15, %v890_v16  ;;  %v897_v23 = vld [vmem:[%s28986_s1 + $0x1b08] sm:$0xff]  ;;  %v1058_v14 = vld [vmem:[%s28986_s1 + $0x2010] sm:$0xff]  ;;  %v18188_v16 = vcombine.low %v1022_v4, %v1034_v5 }
 0x137   :  { %7873 = vmatprep.subr.bf16.mxu0 %v17877_v24  ;;  %v909_v24 = vld [vmem:[%s28986_s1 + $0x1b68] sm:$0xff] }
 0x138   :  { %v18058_v37 = vcombine.low %v897_v23, %v909_v24 }
 0x139   :  { %7259 = vmatpush1.bf16.msra.mxu1 %v17866_v29  ;;  %v18059_v29 = vcombine.high %v897_v23, %v909_v24  ;;  %v1070_v23 = vld [vmem:[%s28986_s1 + $0x2070] sm:$0xff] }
 0x13a   :  { %7874 = vmatpush1.bf16.msra.mxu0 %v17876_v30  ;;  %7260 = vmatprep.subr.bf16.mxu1 %v17891_v31  ;;  %v18069_v30 = vcombine.high %v902_v25, %v914_v26  ;;  %v921_v31 = vld [vmem:[%s28986_s1 + $0x1bc8] sm:$0xff]  ;;  %v1082_v24 = vld [vmem:[%s28986_s1 + $0x20d0] sm:$0xff]  ;;  %v18212_v26 = vcombine.low %v1046_v13, %v1058_v14 }
 0x13b   :  { %7875 = vmatprep.subr.bf16.mxu0 %v17901_v33  ;;  %v933_v33 = vld [vmem:[%s28986_s1 + $0x1c28] sm:$0xff] }
 0x13c   :  { %v18082_v45 = vcombine.low %v921_v31, %v933_v33 }
 0x13d   :  { %7261 = vmatpush1.bf16.msra.mxu1 %v17890_v39  ;;  %v18083_v39 = vcombine.high %v921_v31, %v933_v33  ;;  %v1094_v31 = vld [vmem:[%s28986_s1 + $0x2130] sm:$0xff] }
 0x13e   :  { %7876 = vmatpush1.bf16.msra.mxu0 %v17900_v40  ;;  %7262 = vmatprep.subr.bf16.mxu1 %v17915_v41  ;;  %v18093_v40 = vcombine.high %v926_v34, %v938_v35  ;;  %v945_v41 = vld [vmem:[%s28986_s1 + $0x1c88] sm:$0xff]  ;;  %v1106_v33 = vld [vmem:[%s28986_s1 + $0x2190] sm:$0xff]  ;;  %v18236_v35 = vcombine.low %v1070_v23, %v1082_v24 }
 0x13f   :  { %7877 = vmatprep.subr.bf16.mxu0 %v17925_v42  ;;  %v957_v42 = vld [vmem:[%s28986_s1 + $0x1ce8] sm:$0xff] }
 0x140   :  { %v18106_v53 = vcombine.low %v945_v41, %v957_v42 }
 0x141   :  { %7263 = vmatpush1.bf16.msra.mxu1 %v17914_v47  ;;  %v18107_v47 = vcombine.high %v945_v41, %v957_v42  ;;  %v1118_v41 = vld [vmem:[%s28986_s1 + $0x21f0] sm:$0xff] }
 0x142   :  { %7878 = vmatpush1.bf16.msra.mxu0 %v17924_v48  ;;  %7264 = vmatprep.subr.bf16.mxu1 %v17939_v49  ;;  %v18117_v48 = vcombine.high %v950_v43, %v962_v44  ;;  %v969_v49 = vld [vmem:[%s28986_s1 + $0x1d48] sm:$0xff]  ;;  %v1130_v42 = vld [vmem:[%s28986_s1 + $0x2250] sm:$0xff]  ;;  %v18260_v44 = vcombine.low %v1094_v31, %v1106_v33 }
 0x143   :  { %7879 = vmatprep.subr.bf16.mxu0 %v17949_v50  ;;  %v981_v50 = vld [vmem:[%s28986_s1 + $0x1da8] sm:$0xff] }
 0x144   :  { %v18130_v62 = vcombine.low %v969_v49, %v981_v50 }
 0x145   :  { %7265 = vmatpush1.bf16.msra.mxu1 %v17938_v55  ;;  %v18131_v55 = vcombine.high %v969_v49, %v981_v50  ;;  %v1142_v49 = vld [vmem:[%s28986_s1 + $0x22b0] sm:$0xff] }
 0x146   :  { %7880 = vmatpush1.bf16.msra.mxu0 %v17948_v56  ;;  %7275 = vmatprep.subr.bf16.mxu1 %v17963_v58  ;;  %v18141_v56 = vcombine.high %v974_v51, %v986_v52  ;;  %v993_v58 = vld [vmem:[%s28986_s1 + $0x1e08] sm:$0xff]  ;;  %v1154_v50 = vld [vmem:[%s28986_s1 + $0x2310] sm:$0xff]  ;;  %v18284_v52 = vcombine.low %v1118_v41, %v1130_v42 }
 0x147   :  { %7890 = vmatprep.subr.bf16.mxu0 %v17973_v59  ;;  %v1005_v59 = vld [vmem:[%s28986_s1 + $0x1e68] sm:$0xff] }
 0x148   :  { %7267 = vmatmul.mubr.bf16.vlgmr.msra.gmra.mrb[4].mxu1 %v21992_v21  ;;  %v18154_v6 = vcombine.low %v993_v58, %v1005_v59 }
 0x149   :  { %7276 = vmatpush1.bf16.msra.mxu1 %v17962_v0  ;;  %7882 = vmatmul.mubr.bf16.vlgmr.msra.gmra.mrb[4].mxu0 %v21992_v21  ;;  %v18155_v0 = vcombine.high %v993_v58, %v1005_v59  ;;  %v1166_v58 = vld [vmem:[%s28986_s1 + $0x2370] sm:$0xff] }
 0x14a   :  { %7891 = vmatpush1.bf16.msra.mxu0 %v17972_v1  ;;  %7277 = vmatprep.subr.bf16.mxu1 %v17987_v2  ;;  %v18165_v1 = vcombine.high %v998_v60, %v1010_v61  ;;  %v1017_v2 = vld [vmem:[%s28986_s1 + $0x1ec8] sm:$0xff]  ;;  %v1178_v59 = vld [vmem:[%s28986_s1 + $0x23d0] sm:$0xff]  ;;  %v18308_v61 = vcombine.low %v1142_v49, %v1154_v50 }
 0x14b   :  { %7892 = vmatprep.subr.bf16.mxu0 %v17997_v3  ;;  %7307 = vmatprep.mubr.bf16.mxu1 %v22009_v32  ;;  %v1029_v3 = vld [vmem:[%s28986_s1 + $0x1f28] sm:$0xff] }
 0x14c   :  { %7922 = vmatprep.mubr.bf16.mxu0 %v22009_v32  ;;  %v18178_v15 = vcombine.low %v1017_v2, %v1029_v3 }
 0x14d   :  { %7278 = vmatpush1.bf16.msra.mxu1 %v17986_v8  ;;  %v18179_v8 = vcombine.high %v1017_v2, %v1029_v3  ;;  %v40_v2 = vld [vmem:[%s28986_s1 + $0x40] sm:$0xff] }
 0x14e   :  { %7893 = vmatpush1.bf16.msra.mxu0 %v17996_v9  ;;  %7279 = vmatprep.subr.bf16.mxu1 %v18011_v10  ;;  %v18189_v9 = vcombine.high %v1022_v4, %v1034_v5  ;;  %v1041_v10 = vld [vmem:[%s28986_s1 + $0x1f88] sm:$0xff]  ;;  %v52_v3 = vld [vmem:[%s28986_s1 + $0xa0] sm:$0xff]  ;;  %v18332_v5 = vcombine.low %v1166_v58, %v1178_v59 }
 0x14f   :  { %7894 = vmatprep.subr.bf16.mxu0 %v18021_v11  ;;  %v1053_v11 = vld [vmem:[%s28986_s1 + $0x1fe8] sm:$0xff] }
 0x150   :  { %v18202_v25 = vcombine.low %v1041_v10, %v1053_v11 }
 0x151   :  { %7280 = vmatpush1.bf16.msra.mxu1 %v18010_v17  ;;  %v18203_v17 = vcombine.high %v1041_v10, %v1053_v11  ;;  %v64_v10 = vld [vmem:[%s28986_s1 + $0x100] sm:$0xff] }
 0x152   :  { %7895 = vmatpush1.bf16.msra.mxu0 %v18020_v18  ;;  %7281 = vmatprep.subr.bf16.mxu1 %v18035_v19  ;;  %v18213_v18 = vcombine.high %v1046_v13, %v1058_v14  ;;  %v1065_v19 = vld [vmem:[%s28986_s1 + $0x2048] sm:$0xff]  ;;  %v76_v11 = vld [vmem:[%s28986_s1 + $0x160] sm:$0xff]  ;;  %v17208_v14 = vcombine.low %v40_v2, %v52_v3 }
 0x153   :  { %7896 = vmatprep.subr.bf16.mxu0 %v18045_v20  ;;  %v1077_v20 = vld [vmem:[%s28986_s1 + $0x20a8] sm:$0xff] }
 0x154   :  { %v18226_v34 = vcombine.low %v1065_v19, %v1077_v20 }
 0x155   :  { %7282 = vmatpush1.bf16.msra.mxu1 %v18034_v27  ;;  %v18227_v27 = vcombine.high %v1065_v19, %v1077_v20  ;;  %v88_v19 = vld [vmem:[%s28986_s1 + $0x1c0] sm:$0xff] }
 0x156   :  { %7897 = vmatpush1.bf16.msra.mxu0 %v18044_v28  ;;  %7283 = vmatprep.subr.bf16.mxu1 %v18059_v29  ;;  %v18237_v28 = vcombine.high %v1070_v23, %v1082_v24  ;;  %v1089_v29 = vld [vmem:[%s28986_s1 + $0x2108] sm:$0xff]  ;;  %v100_v20 = vld [vmem:[%s28986_s1 + $0x220] sm:$0xff]  ;;  %v17232_v24 = vcombine.low %v64_v10, %v76_v11 }
 0x157   :  { %7898 = vmatprep.subr.bf16.mxu0 %v18069_v30  ;;  %v1101_v30 = vld [vmem:[%s28986_s1 + $0x2168] sm:$0xff] }
 0x158   :  { %v18250_v43 = vcombine.low %v1089_v29, %v1101_v30 }
 0x159   :  { %7284 = vmatpush1.bf16.msra.mxu1 %v18058_v37  ;;  %v18251_v37 = vcombine.high %v1089_v29, %v1101_v30  ;;  %v112_v29 = vld [vmem:[%s28986_s1 + $0x280] sm:$0xff] }
 0x15a   :  { %7899 = vmatpush1.bf16.msra.mxu0 %v18068_v38  ;;  %7285 = vmatprep.subr.bf16.mxu1 %v18083_v39  ;;  %v18261_v38 = vcombine.high %v1094_v31, %v1106_v33  ;;  %v1113_v39 = vld [vmem:[%s28986_s1 + $0x21c8] sm:$0xff]  ;;  %v124_v30 = vld [vmem:[%s28986_s1 + $0x2e0] sm:$0xff]  ;;  %v17256_v33 = vcombine.low %v88_v19, %v100_v20 }
 0x15b   :  { %7900 = vmatprep.subr.bf16.mxu0 %v18093_v40  ;;  %v1125_v40 = vld [vmem:[%s28986_s1 + $0x2228] sm:$0xff] }
 0x15c   :  { %v18274_v51 = vcombine.low %v1113_v39, %v1125_v40 }
 0x15d   :  { %7286 = vmatpush1.bf16.msra.mxu1 %v18082_v45  ;;  %v18275_v45 = vcombine.high %v1113_v39, %v1125_v40  ;;  %v136_v39 = vld [vmem:[%s28986_s1 + $0x340] sm:$0xff] }
 0x15e   :  { %7901 = vmatpush1.bf16.msra.mxu0 %v18092_v46  ;;  %7287 = vmatprep.subr.bf16.mxu1 %v18107_v47  ;;  %v18285_v46 = vcombine.high %v1118_v41, %v1130_v42  ;;  %v1137_v47 = vld [vmem:[%s28986_s1 + $0x2288] sm:$0xff]  ;;  %v148_v40 = vld [vmem:[%s28986_s1 + $0x3a0] sm:$0xff]  ;;  %v17280_v42 = vcombine.low %v112_v29, %v124_v30 }
 0x15f   :  { %7902 = vmatprep.subr.bf16.mxu0 %v18117_v48  ;;  %v1149_v48 = vld [vmem:[%s28986_s1 + $0x22e8] sm:$0xff] }
 0x160   :  { %v18298_v60 = vcombine.low %v1137_v47, %v1149_v48 }
 0x161   :  { %7288 = vmatpush1.bf16.msra.mxu1 %v18106_v53  ;;  %v18299_v53 = vcombine.high %v1137_v47, %v1149_v48  ;;  %v160_v47 = vld [vmem:[%s28986_s1 + $0x400] sm:$0xff] }
 0x162   :  { %7903 = vmatpush1.bf16.msra.mxu0 %v18116_v54  ;;  %7289 = vmatprep.subr.bf16.mxu1 %v18131_v55  ;;  %v18309_v54 = vcombine.high %v1142_v49, %v1154_v50  ;;  %v1161_v55 = vld [vmem:[%s28986_s1 + $0x2348] sm:$0xff]  ;;  %v172_v48 = vld [vmem:[%s28986_s1 + $0x460] sm:$0xff]  ;;  %v17304_v50 = vcombine.low %v136_v39, %v148_v40 }
 0x163   :  { %7904 = vmatprep.subr.bf16.mxu0 %v18141_v56  ;;  %v1173_v56 = vld [vmem:[%s28986_s1 + $0x23a8] sm:$0xff] }
 0x164   :  { %v18322_v4 = vcombine.low %v1161_v55, %v1173_v56 }
 0x165   :  { %7290 = vmatpush1.bf16.msra.mxu1 %v18130_v62  ;;  %v18323_v62 = vcombine.high %v1161_v55, %v1173_v56  ;;  %v184_v55 = vld [vmem:[%s28986_s1 + $0x4c0] sm:$0xff] }
 0x166   :  { %7905 = vmatpush1.bf16.msra.mxu0 %v18140_v63  ;;  %7291 = vmatprep.subr.bf16.mxu1 %v18155_v0  ;;  %v18333_v63 = vcombine.high %v1166_v58, %v1178_v59  ;;  %v34_v0 = vld [vmem:[%s28986_s1 + $0x10] sm:$0xff]  ;;  %v196_v56 = vld [vmem:[%s28986_s1 + $0x520] sm:$0xff]  ;;  %v17328_v59 = vcombine.low %v160_v47, %v172_v48 }
 0x167   :  { %7906 = vmatprep.subr.bf16.mxu0 %v18165_v1  ;;  %v46_v1 = vld [vmem:[%s28986_s1 + $0x70] sm:$0xff] }
 0x168   :  { %v17196_v13 = vcombine.low %v34_v0, %v46_v1 }
 0x169   :  { %7292 = vmatpush1.bf16.msra.mxu1 %v18154_v6  ;;  %v17197_v6 = vcombine.high %v34_v0, %v46_v1  ;;  %v214_v0 = vld [vmem:[%s28986_s1 + $0x5b0] sm:$0xff] }
 0x16a   :  { %7907 = vmatpush1.bf16.msra.mxu0 %v18164_v7  ;;  %7293 = vmatprep.subr.bf16.mxu1 %v18179_v8  ;;  %v17209_v7 = vcombine.high %v40_v2, %v52_v3  ;;  %v58_v8 = vld [vmem:[%s28986_s1 + $0xd0] sm:$0xff]  ;;  %v208_v2 = vld [vmem:[%s28986_s1 + $0x580] sm:$0xff] }
 0x16b   :  { %7908 = vmatprep.subr.bf16.mxu0 %v18189_v9  ;;  %v70_v9 = vld [vmem:[%s28986_s1 + $0x130] sm:$0xff]  ;;  %v220_v3 = vld [vmem:[%s28986_s1 + $0x5e0] sm:$0xff] }
 0x16c   :  { %v17220_v23 = vcombine.low %v58_v8, %v70_v9 }
 0x16d   :  { %7294 = vmatpush1.bf16.msra.mxu1 %v18178_v15  ;;  %v17221_v15 = vcombine.high %v58_v8, %v70_v9  ;;  %v17352_v9 = vcombine.low %v184_v55, %v196_v56 }
 0x16e   :  { %7909 = vmatpush1.bf16.msra.mxu0 %v18188_v16  ;;  %7295 = vmatprep.subr.bf16.mxu1 %v18203_v17  ;;  %v17233_v16 = vcombine.high %v64_v10, %v76_v11  ;;  %v82_v17 = vld [vmem:[%s28986_s1 + $0x190] sm:$0xff] }
 0x16f   :  { %7910 = vmatprep.subr.bf16.mxu0 %v18213_v18  ;;  %v94_v18 = vld [vmem:[%s28986_s1 + $0x1f0] sm:$0xff] }
 0x170   :  { %v17244_v31 = vcombine.low %v82_v17, %v94_v18 }
 0x171   :  { %7296 = vmatpush1.bf16.msra.mxu1 %v18202_v25  ;;  %v17245_v25 = vcombine.high %v82_v17, %v94_v18  ;;  %v232_v17 = vld [vmem:[%s28986_s1 + $0x640] sm:$0xff] }
 0x172   :  { %7911 = vmatpush1.bf16.msra.mxu0 %v18212_v26  ;;  %7297 = vmatprep.subr.bf16.mxu1 %v18227_v27  ;;  %v17257_v26 = vcombine.high %v88_v19, %v100_v20  ;;  %v106_v27 = vld [vmem:[%s28986_s1 + $0x250] sm:$0xff]  ;;  %v244_v18 = vld [vmem:[%s28986_s1 + $0x6a0] sm:$0xff]  ;;  %v17376_v20 = vcombine.low %v208_v2, %v220_v3 }
 0x173   :  { %7912 = vmatprep.subr.bf16.mxu0 %v18237_v28  ;;  %v118_v28 = vld [vmem:[%s28986_s1 + $0x2b0] sm:$0xff] }
 0x174   :  { %v17268_v41 = vcombine.low %v106_v27, %v118_v28 }
 0x175   :  { %7298 = vmatpush1.bf16.msra.mxu1 %v18226_v34  ;;  %v17269_v34 = vcombine.high %v106_v27, %v118_v28  ;;  %v256_v27 = vld [vmem:[%s28986_s1 + $0x700] sm:$0xff] }
 0x176   :  { %7913 = vmatpush1.bf16.msra.mxu0 %v18236_v35  ;;  %7299 = vmatprep.subr.bf16.mxu1 %v18251_v37  ;;  %v17281_v35 = vcombine.high %v112_v29, %v124_v30  ;;  %v130_v37 = vld [vmem:[%s28986_s1 + $0x310] sm:$0xff]  ;;  %v268_v28 = vld [vmem:[%s28986_s1 + $0x760] sm:$0xff]  ;;  %v17400_v30 = vcombine.low %v232_v17, %v244_v18 }
 0x177   :  { %7914 = vmatprep.subr.bf16.mxu0 %v18261_v38  ;;  %v142_v38 = vld [vmem:[%s28986_s1 + $0x370] sm:$0xff] }
 0x178   :  { %v17292_v49 = vcombine.low %v130_v37, %v142_v38 }
 0x179   :  { %7300 = vmatpush1.bf16.msra.mxu1 %v18250_v43  ;;  %v17293_v43 = vcombine.high %v130_v37, %v142_v38  ;;  %v280_v37 = vld [vmem:[%s28986_s1 + $0x7c0] sm:$0xff] }
 0x17a   :  { %7915 = vmatpush1.bf16.msra.mxu0 %v18260_v44  ;;  %7301 = vmatprep.subr.bf16.mxu1 %v18275_v45  ;;  %v17305_v44 = vcombine.high %v136_v39, %v148_v40  ;;  %v154_v45 = vld [vmem:[%s28986_s1 + $0x3d0] sm:$0xff]  ;;  %v292_v38 = vld [vmem:[%s28986_s1 + $0x820] sm:$0xff]  ;;  %v17424_v40 = vcombine.low %v256_v27, %v268_v28 }
 0x17b   :  { %7916 = vmatprep.subr.bf16.mxu0 %v18285_v46  ;;  %v166_v46 = vld [vmem:[%s28986_s1 + $0x430] sm:$0xff] }
 0x17c   :  { %v17316_v58 = vcombine.low %v154_v45, %v166_v46 }
 0x17d   :  { %7302 = vmatpush1.bf16.msra.mxu1 %v18274_v51  ;;  %v17317_v51 = vcombine.high %v154_v45, %v166_v46  ;;  %v304_v45 = vld [vmem:[%s28986_s1 + $0x880] sm:$0xff] }
 0x17e   :  { %7917 = vmatpush1.bf16.msra.mxu0 %v18284_v52  ;;  %7303 = vmatprep.subr.bf16.mxu1 %v18299_v53  ;;  %v17329_v52 = vcombine.high %v160_v47, %v172_v48  ;;  %v178_v53 = vld [vmem:[%s28986_s1 + $0x490] sm:$0xff]  ;;  %v316_v46 = vld [vmem:[%s28986_s1 + $0x8e0] sm:$0xff]  ;;  %v17448_v48 = vcombine.low %v280_v37, %v292_v38 }
 0x17f   :  { %7918 = vmatprep.subr.bf16.mxu0 %v18309_v54  ;;  %v190_v54 = vld [vmem:[%s28986_s1 + $0x4f0] sm:$0xff] }
 0x181   :  { %7304 = vmatpush1.bf16.msra.mxu1 %v18298_v60  ;;  %v17341_v60 = vcombine.high %v178_v53, %v190_v54 }
 0x182   :  { %7919 = vmatpush1.bf16.msra.mxu0 %v18308_v61  ;;  %7305 = vmatprep.subr.bf16.mxu1 %v18323_v62  ;;  %v17353_v62 = vcombine.high %v184_v55, %v196_v56  ;;  %v17472_v56 = vcombine.low %v304_v45, %v316_v46 }
 0x183   :  { %7920 = vmatprep.subr.bf16.mxu0 %v18333_v63  ;;  %v202_v63 = vld [vmem:[%s28986_s1 + $0x550] sm:$0xff] }
 0x184   :  { %v17365_v10 = vcombine.high %v202_v63, %v214_v0  ;;  %v17364_v19 = vcombine.low %v202_v63, %v214_v0  ;;  %v352_v63 = vld [vmem:[%s28986_s1 + $0xa00] sm:$0xff] }
 0x185   :  { %7306 = vmatpush1.bf16.msra.mxu1 %v18322_v4  ;;  %v364_v0 = vld [vmem:[%s28986_s1 + $0xa60] sm:$0xff] }
 0x186   :  { %7921 = vmatpush1.bf16.msra.mxu0 %v18332_v5  ;;  %7316 = vmatprep.subr.bf16.mxu1 %v17197_v6  ;;  %v17340_v6 = vcombine.low %v178_v53, %v190_v54  ;;  %v328_v53 = vld [vmem:[%s28986_s1 + $0x940] sm:$0xff] }
 0x187   :  { %8054 = vmatprep.subr.bf16.mxu0 %v17209_v7  ;;  %v340_v54 = vld [vmem:[%s28986_s1 + $0x9a0] sm:$0xff] }
 0x188   :  { %7308 = vmatmul.mubr.bf16.vlgmr.msra.gmra.mrb[4].mxu1 %v22198_v36 }
 0x189   :  { %7317 = vmatpush1.bf16.msra.mxu1 %v17196_v13  ;;  %7923 = vmatmul.mubr.bf16.vlgmr.msra.gmra.mrb[4].mxu0 %v22198_v36  ;;  %v17377_v13 = vcombine.high %v208_v2, %v220_v3  ;;  %v17496_v3 = vcombine.low %v328_v53, %v340_v54 }
 0x18a   :  { %8055 = vmatpush1.bf16.msra.mxu0 %v17208_v14  ;;  %7318 = vmatprep.subr.bf16.mxu1 %v17221_v15  ;;  %v226_v14 = vld [vmem:[%s28986_s1 + $0x610] sm:$0xff] }
 0x18b   :  { %8056 = vmatprep.subr.bf16.mxu0 %v17233_v16  ;;  %7348 = vmatprep.mubr.bf16.mxu1 %v21659_v57  ;;  %v238_v15 = vld [vmem:[%s28986_s1 + $0x670] sm:$0xff] }
 0x18c   :  { %8086 = vmatprep.mubr.bf16.mxu0 %v21659_v57  ;;  %v17388_v29 = vcombine.low %v226_v14, %v238_v15 }
 0x18d   :  { %7319 = vmatpush1.bf16.msra.mxu1 %v17220_v23  ;;  %v17389_v23 = vcombine.high %v226_v14, %v238_v15  ;;  %v17520_v14 = vcombine.low %v352_v63, %v364_v0 }
 0x18e   :  { %8057 = vmatpush1.bf16.msra.mxu0 %v17232_v24  ;;  %7320 = vmatprep.subr.bf16.mxu1 %v17245_v25  ;;  %v17401_v24 = vcombine.high %v232_v17, %v244_v18  ;;  %v250_v25 = vld [vmem:[%s28986_s1 + $0x6d0] sm:$0xff] }
 0x18f   :  { %8058 = vmatprep.subr.bf16.mxu0 %v17257_v26  ;;  %v262_v26 = vld [vmem:[%s28986_s1 + $0x730] sm:$0xff] }
 0x190   :  { %v17412_v39 = vcombine.low %v250_v25, %v262_v26  ;;  %v394_v17 = vld [vmem:[%s28986_s1 + $0xb50] sm:$0xff] }
 0x191   :  { %7321 = vmatpush1.bf16.msra.mxu1 %v17244_v31  ;;  %v17413_v31 = vcombine.high %v250_v25, %v262_v26  ;;  %v406_v18 = vld [vmem:[%s28986_s1 + $0xbb0] sm:$0xff] }
 0x192   :  { %8059 = vmatpush1.bf16.msra.mxu0 %v17256_v33  ;;  %7322 = vmatprep.subr.bf16.mxu1 %v17269_v34  ;;  %v17425_v33 = vcombine.high %v256_v27, %v268_v28  ;;  %v274_v34 = vld [vmem:[%s28986_s1 + $0x790] sm:$0xff]  ;;  %v17557_v25 = vcombine.high %v394_v17, %v406_v18 }
 0x193   :  { %8060 = vmatprep.subr.bf16.mxu0 %v17281_v35  ;;  %v286_v35 = vld [vmem:[%s28986_s1 + $0x7f0] sm:$0xff] }
 0x194   :  { %v17436_v47 = vcombine.low %v274_v34, %v286_v35  ;;  %v418_v27 = vld [vmem:[%s28986_s1 + $0xc10] sm:$0xff] }
 0x195   :  { %7323 = vmatpush1.bf16.msra.mxu1 %v17268_v41  ;;  %v17437_v41 = vcombine.high %v274_v34, %v286_v35  ;;  %v430_v28 = vld [vmem:[%s28986_s1 + $0xc70] sm:$0xff] }
 0x196   :  { %8061 = vmatpush1.bf16.msra.mxu0 %v17280_v42  ;;  %7324 = vmatprep.subr.bf16.mxu1 %v17293_v43  ;;  %v17449_v42 = vcombine.high %v280_v37, %v292_v38  ;;  %v298_v43 = vld [vmem:[%s28986_s1 + $0x850] sm:$0xff]  ;;  %v17581_v34 = vcombine.high %v418_v27, %v430_v28 }
 0x197   :  { %8062 = vmatprep.subr.bf16.mxu0 %v17305_v44  ;;  %v310_v44 = vld [vmem:[%s28986_s1 + $0x8b0] sm:$0xff] }
 0x198   :  { %v17460_v55 = vcombine.low %v298_v43, %v310_v44  ;;  %v442_v37 = vld [vmem:[%s28986_s1 + $0xcd0] sm:$0xff] }
 0x199   :  { %7325 = vmatpush1.bf16.msra.mxu1 %v17292_v49  ;;  %v17461_v49 = vcombine.high %v298_v43, %v310_v44  ;;  %v454_v38 = vld [vmem:[%s28986_s1 + $0xd30] sm:$0xff] }
 0x19a   :  { %8063 = vmatpush1.bf16.msra.mxu0 %v17304_v50  ;;  %7326 = vmatprep.subr.bf16.mxu1 %v17317_v51  ;;  %v17473_v50 = vcombine.high %v304_v45, %v316_v46  ;;  %v322_v51 = vld [vmem:[%s28986_s1 + $0x910] sm:$0xff]  ;;  %v17605_v43 = vcombine.high %v442_v37, %v454_v38 }
 0x19b   :  { %v22858_v61 = vpop.f32.mrb[0].mxu1  ;;  %8064 = vmatprep.subr.bf16.mxu0 %v17329_v52  ;;  %v334_v52 = vld [vmem:[%s28986_s1 + $0x970] sm:$0xff] }
 0x19c   :  { %v22866_v1 = vpop.f32.mrb[1].mxu1  ;;  %v22874_v4 = vpop.f32.mrb[0].mxu0  ;;  %v17484_v2 = vcombine.low %v322_v51, %v334_v52  ;;  %v466_v45 = vld [vmem:[%s28986_s1 + $0xd90] sm:$0xff] }
 0x19d   :  { %v7190_v5 = vpop.f32.mrb[2].mxu1  ;;  %7327 = vmatpush1.bf16.msra.mxu1 %v17316_v58  ;;  %v22876_v7 = vpop.f32.mrb[1].mxu0  ;;  %v17485_v58 = vcombine.high %v322_v51, %v334_v52  ;;  %v478_v46 = vld [vmem:[%s28986_s1 + $0xdf0] sm:$0xff] }
 0x19e   :  { %8065 = vmatpush1.bf16.msra.mxu0 %v17328_v59  ;;  %v7191_v8 = vpop.f32.mrb[3].mxu1  ;;  %7328 = vmatprep.subr.bf16.mxu1 %v17341_v60  ;;  %v7682_v11 = vpop.f32.mrb[2].mxu0  ;;  %v17497_v59 = vcombine.high %v328_v53, %v340_v54  ;;  %v346_v60 = vld [vmem:[%s28986_s1 + $0x9d0] sm:$0xff]  ;;  %v17629_v51 = vcombine.high %v466_v45, %v478_v46 }
 0x19f   :  { %8066 = vmatprep.subr.bf16.mxu0 %v17353_v62  ;;  %v7683_v16 = vpop.f32.mrb[3].mxu0  ;;  %v358_v62 = vld [vmem:[%s28986_s1 + $0xa30] sm:$0xff]  ;;  %v388_v11 = vld [vmem:[%s28986_s1 + $0xb20] sm:$0xff] }
 0x1a0   :  { %v17509_v5 = vcombine.high %v346_v60, %v358_v62  ;;  %v370_v8 = vld [vmem:[%s28986_s1 + $0xa90] sm:$0xff] }
 0x1a1   :  { %7329 = vmatpush1.bf16.msra.mxu1 %v17340_v6  ;;  %v17521_v6 = vcombine.high %v352_v63, %v364_v0  ;;  %v490_v53 = vld [vmem:[%s28986_s1 + $0xe50] sm:$0xff] }
 0x1a2   :  { %8067 = vmatpush1.bf16.msra.mxu0 %v17352_v9  ;;  %7330 = vmatprep.subr.bf16.mxu1 %v17365_v10  ;;  %v382_v9 = vld [vmem:[%s28986_s1 + $0xaf0] sm:$0xff]  ;;  %v376_v10 = vld [vmem:[%s28986_s1 + $0xac0] sm:$0xff] }
 0x1a3   :  { %8068 = vmatprep.subr.bf16.mxu0 %v17377_v13  ;;  %v17508_v13 = vcombine.low %v346_v60, %v358_v62  ;;  %v17533_v15 = vcombine.high %v370_v8, %v382_v9  ;;  %v17545_v16 = vcombine.high %v376_v10, %v388_v11  ;;  %v502_v54 = vld [vmem:[%s28986_s1 + $0xeb0] sm:$0xff] }
 0x1a4   :  { %v17653_v60 = vcombine.high %v490_v53, %v502_v54  ;;  %v514_v63 = vld [vmem:[%s28986_s1 + $0xf10] sm:$0xff] }
 0x1a5   :  { %7331 = vmatpush1.bf16.msra.mxu1 %v17364_v19  ;;  %v400_v19 = vld [vmem:[%s28986_s1 + $0xb80] sm:$0xff]  ;;  %v526_v0 = vld [vmem:[%s28986_s1 + $0xf70] sm:$0xff] }
 0x1a6   :  { %8069 = vmatpush1.bf16.msra.mxu0 %v17376_v20  ;;  %7332 = vmatprep.subr.bf16.mxu1 %v17389_v23  ;;  %v412_v20 = vld [vmem:[%s28986_s1 + $0xbe0] sm:$0xff]  ;;  %v17532_v23 = vcombine.low %v370_v8, %v382_v9  ;;  %v17677_v8 = vcombine.high %v514_v63, %v526_v0 }
 0x1a7   :  { %8070 = vmatprep.subr.bf16.mxu0 %v17401_v24  ;;  %v17544_v24 = vcombine.low %v376_v10, %v388_v11  ;;  %v17569_v26 = vcombine.high %v400_v19, %v412_v20  ;;  %v538_v10 = vld [vmem:[%s28986_s1 + $0xfd0] sm:$0xff] }
 0x1a8   :  { %v550_v11 = vld [vmem:[%s28986_s1 + $0x1030] sm:$0xff] }
 0x1a9   :  { %7333 = vmatpush1.bf16.msra.mxu1 %v17388_v29  ;;  %v424_v29 = vld [vmem:[%s28986_s1 + $0xc40] sm:$0xff] }
 0x1aa   :  { %8071 = vmatpush1.bf16.msra.mxu0 %v17400_v30  ;;  %7334 = vmatprep.subr.bf16.mxu1 %v17413_v31  ;;  %v436_v30 = vld [vmem:[%s28986_s1 + $0xca0] sm:$0xff]  ;;  %v17556_v31 = vcombine.low %v394_v17, %v406_v18  ;;  %v17701_v17 = vcombine.high %v538_v10, %v550_v11 }
 0x1ab   :  { %8072 = vmatprep.subr.bf16.mxu0 %v17425_v33  ;;  %v17568_v33 = vcombine.low %v400_v19, %v412_v20  ;;  %v17593_v35 = vcombine.high %v424_v29, %v436_v30  ;;  %v562_v19 = vld [vmem:[%s28986_s1 + $0x1090] sm:$0xff] }
 0x1ac   :  { %v574_v20 = vld [vmem:[%s28986_s1 + $0x10f0] sm:$0xff] }
 0x1ad   :  { %7335 = vmatpush1.bf16.msra.mxu1 %v17412_v39  ;;  %v448_v39 = vld [vmem:[%s28986_s1 + $0xd00] sm:$0xff] }
 0x1ae   :  { %8073 = vmatpush1.bf16.msra.mxu0 %v17424_v40  ;;  %7336 = vmatprep.subr.bf16.mxu1 %v17437_v41  ;;  %v460_v40 = vld [vmem:[%s28986_s1 + $0xd60] sm:$0xff]  ;;  %v17580_v41 = vcombine.low %v418_v27, %v430_v28  ;;  %v17725_v27 = vcombine.high %v562_v19, %v574_v20 }
 0x1af   :  { %8074 = vmatprep.subr.bf16.mxu0 %v17449_v42  ;;  %v17592_v42 = vcombine.low %v424_v29, %v436_v30  ;;  %v17617_v44 = vcombine.high %v448_v39, %v460_v40  ;;  %v586_v29 = vld [vmem:[%s28986_s1 + $0x1150] sm:$0xff] }
 0x1b0   :  { %v598_v30 = vld [vmem:[%s28986_s1 + $0x11b0] sm:$0xff] }
 0x1b1   :  { %7337 = vmatpush1.bf16.msra.mxu1 %v17436_v47  ;;  %v472_v47 = vld [vmem:[%s28986_s1 + $0xdc0] sm:$0xff] }
 0x1b2   :  { %8075 = vmatpush1.bf16.msra.mxu0 %v17448_v48  ;;  %7338 = vmatprep.subr.bf16.mxu1 %v17461_v49  ;;  %v484_v48 = vld [vmem:[%s28986_s1 + $0xe20] sm:$0xff]  ;;  %v17604_v49 = vcombine.low %v442_v37, %v454_v38  ;;  %v17749_v37 = vcombine.high %v586_v29, %v598_v30 }
 0x1b3   :  { %8076 = vmatprep.subr.bf16.mxu0 %v17473_v50  ;;  %v17616_v50 = vcombine.low %v448_v39, %v460_v40  ;;  %v17641_v52 = vcombine.high %v472_v47, %v484_v48  ;;  %v610_v39 = vld [vmem:[%s28986_s1 + $0x1210] sm:$0xff] }
 0x1b4   :  { %v622_v40 = vld [vmem:[%s28986_s1 + $0x1270] sm:$0xff] }
 0x1b5   :  { %7339 = vmatpush1.bf16.msra.mxu1 %v17460_v55  ;;  %v496_v55 = vld [vmem:[%s28986_s1 + $0xe80] sm:$0xff] }
 0x1b6   :  { %8077 = vmatpush1.bf16.msra.mxu0 %v17472_v56  ;;  %7340 = vmatprep.subr.bf16.mxu1 %v17485_v58  ;;  %v508_v56 = vld [vmem:[%s28986_s1 + $0xee0] sm:$0xff]  ;;  %v17628_v58 = vcombine.low %v466_v45, %v478_v46  ;;  %v17773_v45 = vcombine.high %v610_v39, %v622_v40 }
 0x1b7   :  { %8078 = vmatprep.subr.bf16.mxu0 %v17497_v59  ;;  %v17640_v59 = vcombine.low %v472_v47, %v484_v48  ;;  %v17665_v62 = vcombine.high %v496_v55, %v508_v56  ;;  %v634_v47 = vld [vmem:[%s28986_s1 + $0x12d0] sm:$0xff] }
 0x1b8   :  { %v646_v48 = vld [vmem:[%s28986_s1 + $0x1330] sm:$0xff] }
 0x1b9   :  { %7341 = vmatpush1.bf16.msra.mxu1 %v17484_v2  ;;  %v520_v2 = vld [vmem:[%s28986_s1 + $0xf40] sm:$0xff] }
 0x1ba   :  { %8079 = vmatpush1.bf16.msra.mxu0 %v17496_v3  ;;  %7342 = vmatprep.subr.bf16.mxu1 %v17509_v5  ;;  %v532_v3 = vld [vmem:[%s28986_s1 + $0xfa0] sm:$0xff]  ;;  %v17652_v5 = vcombine.low %v490_v53, %v502_v54  ;;  %v17797_v53 = vcombine.high %v634_v47, %v646_v48 }
 0x1bb   :  { %8080 = vmatprep.subr.bf16.mxu0 %v17521_v6  ;;  %v17664_v6 = vcombine.low %v496_v55, %v508_v56  ;;  %v17689_v9 = vcombine.high %v520_v2, %v532_v3  ;;  %v658_v55 = vld [vmem:[%s28986_s1 + $0x1390] sm:$0xff] }
 0x1bc   :  { %v670_v56 = vld [vmem:[%s28986_s1 + $0x13f0] sm:$0xff] }
 0x1bd   :  { %7343 = vmatpush1.bf16.msra.mxu1 %v17508_v13  ;;  %v544_v13 = vld [vmem:[%s28986_s1 + $0x1000] sm:$0xff] }
 0x1be   :  { %8081 = vmatpush1.bf16.msra.mxu0 %v17520_v14  ;;  %7344 = vmatprep.subr.bf16.mxu1 %v17533_v15  ;;  %v556_v14 = vld [vmem:[%s28986_s1 + $0x1060] sm:$0xff]  ;;  %v17676_v15 = vcombine.low %v514_v63, %v526_v0  ;;  %v17821_v63 = vcombine.high %v658_v55, %v670_v56 }
 0x1bf   :  { %8082 = vmatprep.subr.bf16.mxu0 %v17545_v16  ;;  %v17688_v16 = vcombine.low %v520_v2, %v532_v3  ;;  %v17713_v18 = vcombine.high %v544_v13, %v556_v14  ;;  %v682_v2 = vld [vmem:[%s28986_s1 + $0x1450] sm:$0xff] }
 0x1c0   :  { %v694_v3 = vld [vmem:[%s28986_s1 + $0x14b0] sm:$0xff] }
 0x1c1   :  { %7345 = vmatpush1.bf16.msra.mxu1 %v17532_v23  ;;  %v568_v23 = vld [vmem:[%s28986_s1 + $0x10c0] sm:$0xff] }
 0x1c2   :  { %8083 = vmatpush1.bf16.msra.mxu0 %v17544_v24  ;;  %7346 = vmatprep.subr.bf16.mxu1 %v17557_v25  ;;  %v580_v24 = vld [vmem:[%s28986_s1 + $0x1120] sm:$0xff]  ;;  %v17700_v25 = vcombine.low %v538_v10, %v550_v11  ;;  %v17845_v10 = vcombine.high %v682_v2, %v694_v3 }
 0x1c3   :  { %8084 = vmatprep.subr.bf16.mxu0 %v17569_v26  ;;  %v17712_v26 = vcombine.low %v544_v13, %v556_v14  ;;  %v17737_v28 = vcombine.high %v568_v23, %v580_v24  ;;  %v706_v13 = vld [vmem:[%s28986_s1 + $0x1510] sm:$0xff] }
 0x1c4   :  { %v718_v14 = vld [vmem:[%s28986_s1 + $0x1570] sm:$0xff] }
 0x1c5   :  { %7347 = vmatpush1.bf16.msra.mxu1 %v17556_v31  ;;  %v592_v31 = vld [vmem:[%s28986_s1 + $0x1180] sm:$0xff] }
 0x1c6   :  { %8085 = vmatpush1.bf16.msra.mxu0 %v17568_v33  ;;  %7357 = vmatprep.subr.bf16.mxu1 %v17581_v34  ;;  %v604_v33 = vld [vmem:[%s28986_s1 + $0x11e0] sm:$0xff]  ;;  %v17724_v34 = vcombine.low %v562_v19, %v574_v20  ;;  %v17869_v19 = vcombine.high %v706_v13, %v718_v14 }
 0x1c7   :  { %8095 = vmatprep.subr.bf16.mxu0 %v17593_v35  ;;  %v17736_v35 = vcombine.low %v568_v23, %v580_v24  ;;  %v17761_v38 = vcombine.high %v592_v31, %v604_v33  ;;  %v730_v23 = vld [vmem:[%s28986_s1 + $0x15d0] sm:$0xff] }
 0x1c8   :  { %7349 = vmatmul.mubr.bf16.vlgmr.msra.gmra.mrb[8].mxu1 %v21786_v12  ;;  %v742_v24 = vld [vmem:[%s28986_s1 + $0x1630] sm:$0xff] }
 0x1c9   :  { %7358 = vmatpush1.bf16.msra.mxu1 %v17580_v41  ;;  %8087 = vmatmul.mubr.bf16.vlgmr.msra.gmra.mrb[8].mxu0 %v21786_v12  ;;  %v616_v41 = vld [vmem:[%s28986_s1 + $0x1240] sm:$0xff] }
 0x1ca   :  { %8096 = vmatpush1.bf16.msra.mxu0 %v17592_v42  ;;  %7359 = vmatprep.subr.bf16.mxu1 %v17605_v43  ;;  %v628_v42 = vld [vmem:[%s28986_s1 + $0x12a0] sm:$0xff]  ;;  %v17748_v43 = vcombine.low %v586_v29, %v598_v30  ;;  %v17893_v29 = vcombine.high %v730_v23, %v742_v24 }
 0x1cb   :  { %8097 = vmatprep.subr.bf16.mxu0 %v17617_v44  ;;  %7389 = vmatprep.mubr.bf16.mxu1 %v21803_v22  ;;  %v17760_v44 = vcombine.low %v592_v31, %v604_v33  ;;  %v17785_v46 = vcombine.high %v616_v41, %v628_v42  ;;  %v754_v31 = vld [vmem:[%s28986_s1 + $0x1690] sm:$0xff] }
 0x1cc   :  { %8127 = vmatprep.mubr.bf16.mxu0 %v21803_v22  ;;  %v766_v33 = vld [vmem:[%s28986_s1 + $0x16f0] sm:$0xff] }
 0x1cd   :  { %7360 = vmatpush1.bf16.msra.mxu1 %v17604_v49  ;;  %v640_v49 = vld [vmem:[%s28986_s1 + $0x1300] sm:$0xff] }
 0x1ce   :  { %8098 = vmatpush1.bf16.msra.mxu0 %v17616_v50  ;;  %7361 = vmatprep.subr.bf16.mxu1 %v17629_v51  ;;  %v652_v50 = vld [vmem:[%s28986_s1 + $0x1360] sm:$0xff]  ;;  %v17772_v51 = vcombine.low %v610_v39, %v622_v40  ;;  %v17917_v39 = vcombine.high %v754_v31, %v766_v33 }
 0x1cf   :  { %8099 = vmatprep.subr.bf16.mxu0 %v17641_v52  ;;  %v17784_v52 = vcombine.low %v616_v41, %v628_v42  ;;  %v17809_v54 = vcombine.high %v640_v49, %v652_v50  ;;  %v778_v41 = vld [vmem:[%s28986_s1 + $0x1750] sm:$0xff] }
 0x1d0   :  { %v790_v42 = vld [vmem:[%s28986_s1 + $0x17b0] sm:$0xff] }
 0x1d1   :  { %7362 = vmatpush1.bf16.msra.mxu1 %v17628_v58  ;;  %v664_v58 = vld [vmem:[%s28986_s1 + $0x13c0] sm:$0xff] }
 0x1d2   :  { %8100 = vmatpush1.bf16.msra.mxu0 %v17640_v59  ;;  %7363 = vmatprep.subr.bf16.mxu1 %v17653_v60  ;;  %v676_v59 = vld [vmem:[%s28986_s1 + $0x1420] sm:$0xff]  ;;  %v17796_v60 = vcombine.low %v634_v47, %v646_v48  ;;  %v17941_v47 = vcombine.high %v778_v41, %v790_v42 }
 0x1d3   :  { %8101 = vmatprep.subr.bf16.mxu0 %v17665_v62  ;;  %v17808_v62 = vcombine.low %v640_v49, %v652_v50  ;;  %v17833_v0 = vcombine.high %v664_v58, %v676_v59  ;;  %v802_v49 = vld [vmem:[%s28986_s1 + $0x1810] sm:$0xff] }
 0x1d4   :  { %v814_v50 = vld [vmem:[%s28986_s1 + $0x1870] sm:$0xff] }
 0x1d5   :  { %7364 = vmatpush1.bf16.msra.mxu1 %v17652_v5  ;;  %v688_v5 = vld [vmem:[%s28986_s1 + $0x1480] sm:$0xff] }
 0x1d6   :  { %8102 = vmatpush1.bf16.msra.mxu0 %v17664_v6  ;;  %7365 = vmatprep.subr.bf16.mxu1 %v17677_v8  ;;  %v700_v6 = vld [vmem:[%s28986_s1 + $0x14e0] sm:$0xff]  ;;  %v17820_v8 = vcombine.low %v658_v55, %v670_v56  ;;  %v17965_v55 = vcombine.high %v802_v49, %v814_v50 }
 0x1d7   :  { %8103 = vmatprep.subr.bf16.mxu0 %v17689_v9  ;;  %v17832_v9 = vcombine.low %v664_v58, %v676_v59  ;;  %v17857_v11 = vcombine.high %v688_v5, %v700_v6  ;;  %v826_v58 = vld [vmem:[%s28986_s1 + $0x18d0] sm:$0xff] }
 0x1d8   :  { %v838_v59 = vld [vmem:[%s28986_s1 + $0x1930] sm:$0xff] }
 0x1d9   :  { %7366 = vmatpush1.bf16.msra.mxu1 %v17676_v15  ;;  %v712_v15 = vld [vmem:[%s28986_s1 + $0x1540] sm:$0xff] }
 0x1da   :  { %8104 = vmatpush1.bf16.msra.mxu0 %v17688_v16  ;;  %7367 = vmatprep.subr.bf16.mxu1 %v17701_v17  ;;  %v724_v16 = vld [vmem:[%s28986_s1 + $0x15a0] sm:$0xff]  ;;  %v17844_v17 = vcombine.low %v682_v2, %v694_v3  ;;  %v17989_v2 = vcombine.high %v826_v58, %v838_v59 }
 0x1db   :  { %8105 = vmatprep.subr.bf16.mxu0 %v17713_v18  ;;  %v17856_v18 = vcombine.low %v688_v5, %v700_v6  ;;  %v17881_v20 = vcombine.high %v712_v15, %v724_v16  ;;  %v850_v5 = vld [vmem:[%s28986_s1 + $0x1990] sm:$0xff] }
 0x1dc   :  { %v862_v6 = vld [vmem:[%s28986_s1 + $0x19f0] sm:$0xff] }
 0x1dd   :  { %7368 = vmatpush1.bf16.msra.mxu1 %v17700_v25  ;;  %v736_v25 = vld [vmem:[%s28986_s1 + $0x1600] sm:$0xff] }
 0x1de   :  { %8106 = vmatpush1.bf16.msra.mxu0 %v17712_v26  ;;  %7369 = vmatprep.subr.bf16.mxu1 %v17725_v27  ;;  %v748_v26 = vld [vmem:[%s28986_s1 + $0x1660] sm:$0xff]  ;;  %v17868_v27 = vcombine.low %v706_v13, %v718_v14  ;;  %v18013_v13 = vcombine.high %v850_v5, %v862_v6 }
 0x1df   :  { %8107 = vmatprep.subr.bf16.mxu0 %v17737_v28  ;;  %v17880_v28 = vcombine.low %v712_v15, %v724_v16  ;;  %v17905_v30 = vcombine.high %v736_v25, %v748_v26  ;;  %v874_v15 = vld [vmem:[%s28986_s1 + $0x1a50] sm:$0xff] }
 0x1e0   :  { %v886_v16 = vld [vmem:[%s28986_s1 + $0x1ab0] sm:$0xff] }
 0x1e1   :  { %7370 = vmatpush1.bf16.msra.mxu1 %v17724_v34  ;;  %v760_v34 = vld [vmem:[%s28986_s1 + $0x16c0] sm:$0xff] }
 0x1e2   :  { %8108 = vmatpush1.bf16.msra.mxu0 %v17736_v35  ;;  %7371 = vmatprep.subr.bf16.mxu1 %v17749_v37  ;;  %v772_v35 = vld [vmem:[%s28986_s1 + $0x1720] sm:$0xff]  ;;  %v17892_v37 = vcombine.low %v730_v23, %v742_v24  ;;  %v18037_v23 = vcombine.high %v874_v15, %v886_v16 }
 0x1e3   :  { %8109 = vmatprep.subr.bf16.mxu0 %v17761_v38  ;;  %v17904_v38 = vcombine.low %v736_v25, %v748_v26  ;;  %v17929_v40 = vcombine.high %v760_v34, %v772_v35  ;;  %v898_v25 = vld [vmem:[%s28986_s1 + $0x1b10] sm:$0xff] }
 0x1e4   :  { %v910_v26 = vld [vmem:[%s28986_s1 + $0x1b70] sm:$0xff] }
 0x1e5   :  { %7372 = vmatpush1.bf16.msra.mxu1 %v17748_v43  ;;  %v784_v43 = vld [vmem:[%s28986_s1 + $0x1780] sm:$0xff] }
 0x1e6   :  { %8110 = vmatpush1.bf16.msra.mxu0 %v17760_v44  ;;  %7373 = vmatprep.subr.bf16.mxu1 %v17773_v45  ;;  %v796_v44 = vld [vmem:[%s28986_s1 + $0x17e0] sm:$0xff]  ;;  %v17916_v45 = vcombine.low %v754_v31, %v766_v33  ;;  %v18061_v31 = vcombine.high %v898_v25, %v910_v26 }
 0x1e7   :  { %8111 = vmatprep.subr.bf16.mxu0 %v17785_v46  ;;  %v17928_v46 = vcombine.low %v760_v34, %v772_v35  ;;  %v17953_v48 = vcombine.high %v784_v43, %v796_v44  ;;  %v922_v34 = vld [vmem:[%s28986_s1 + $0x1bd0] sm:$0xff] }
 0x1e8   :  { %v934_v35 = vld [vmem:[%s28986_s1 + $0x1c30] sm:$0xff] }
 0x1e9   :  { %7374 = vmatpush1.bf16.msra.mxu1 %v17772_v51  ;;  %v808_v51 = vld [vmem:[%s28986_s1 + $0x1840] sm:$0xff] }
 0x1ea   :  { %8112 = vmatpush1.bf16.msra.mxu0 %v17784_v52  ;;  %7375 = vmatprep.subr.bf16.mxu1 %v17797_v53  ;;  %v820_v52 = vld [vmem:[%s28986_s1 + $0x18a0] sm:$0xff]  ;;  %v17940_v53 = vcombine.low %v778_v41, %v790_v42  ;;  %v18085_v41 = vcombine.high %v922_v34, %v934_v35 }
 0x1eb   :  { %8113 = vmatprep.subr.bf16.mxu0 %v17809_v54  ;;  %v17952_v54 = vcombine.low %v784_v43, %v796_v44  ;;  %v17977_v56 = vcombine.high %v808_v51, %v820_v52  ;;  %v946_v43 = vld [vmem:[%s28986_s1 + $0x1c90] sm:$0xff] }
 0x1ec   :  { %v958_v44 = vld [vmem:[%s28986_s1 + $0x1cf0] sm:$0xff] }
 0x1ed   :  { %7376 = vmatpush1.bf16.msra.mxu1 %v17796_v60  ;;  %v832_v60 = vld [vmem:[%s28986_s1 + $0x1900] sm:$0xff] }
 0x1ee   :  { %8114 = vmatpush1.bf16.msra.mxu0 %v17808_v62  ;;  %7377 = vmatprep.subr.bf16.mxu1 %v17821_v63  ;;  %v844_v62 = vld [vmem:[%s28986_s1 + $0x1960] sm:$0xff]  ;;  %v17964_v63 = vcombine.low %v802_v49, %v814_v50  ;;  %v18109_v49 = vcombine.high %v946_v43, %v958_v44 }
 0x1ef   :  { %8115 = vmatprep.subr.bf16.mxu0 %v17833_v0  ;;  %v17976_v0 = vcombine.low %v808_v51, %v820_v52  ;;  %v18001_v3 = vcombine.high %v832_v60, %v844_v62  ;;  %v970_v51 = vld [vmem:[%s28986_s1 + $0x1d50] sm:$0xff] }
 0x1f0   :  { %v982_v52 = vld [vmem:[%s28986_s1 + $0x1db0] sm:$0xff] }
 0x1f1   :  { %7378 = vmatpush1.bf16.msra.mxu1 %v17820_v8  ;;  %v856_v8 = vld [vmem:[%s28986_s1 + $0x19c0] sm:$0xff] }
 0x1f2   :  { %8116 = vmatpush1.bf16.msra.mxu0 %v17832_v9  ;;  %7379 = vmatprep.subr.bf16.mxu1 %v17845_v10  ;;  %v868_v9 = vld [vmem:[%s28986_s1 + $0x1a20] sm:$0xff]  ;;  %v17988_v10 = vcombine.low %v826_v58, %v838_v59  ;;  %v18133_v58 = vcombine.high %v970_v51, %v982_v52 }
 0x1f3   :  { %8117 = vmatprep.subr.bf16.mxu0 %v17857_v11  ;;  %v18000_v11 = vcombine.low %v832_v60, %v844_v62  ;;  %v18025_v14 = vcombine.high %v856_v8, %v868_v9  ;;  %v994_v60 = vld [vmem:[%s28986_s1 + $0x1e10] sm:$0xff] }
 0x1f4   :  { %v1006_v62 = vld [vmem:[%s28986_s1 + $0x1e70] sm:$0xff] }
 0x1f5   :  { %7380 = vmatpush1.bf16.msra.mxu1 %v17844_v17  ;;  %v880_v17 = vld [vmem:[%s28986_s1 + $0x1a80] sm:$0xff] }
 0x1f6   :  { %8118 = vmatpush1.bf16.msra.mxu0 %v17856_v18  ;;  %7381 = vmatprep.subr.bf16.mxu1 %v17869_v19  ;;  %v892_v18 = vld [vmem:[%s28986_s1 + $0x1ae0] sm:$0xff]  ;;  %v18012_v19 = vcombine.low %v850_v5, %v862_v6  ;;  %v18157_v5 = vcombine.high %v994_v60, %v1006_v62 }
 0x1f7   :  { %8119 = vmatprep.subr.bf16.mxu0 %v17881_v20  ;;  %v18024_v20 = vcombine.low %v856_v8, %v868_v9  ;;  %v18049_v24 = vcombine.high %v880_v17, %v892_v18  ;;  %v1018_v8 = vld [vmem:[%s28986_s1 + $0x1ed0] sm:$0xff] }
 0x1f8   :  { %v1030_v9 = vld [vmem:[%s28986_s1 + $0x1f30] sm:$0xff] }
 0x1f9   :  { %7382 = vmatpush1.bf16.msra.mxu1 %v17868_v27  ;;  %v904_v27 = vld [vmem:[%s28986_s1 + $0x1b40] sm:$0xff] }
 0x1fa   :  { %8120 = vmatpush1.bf16.msra.mxu0 %v17880_v28  ;;  %7383 = vmatprep.subr.bf16.mxu1 %v17893_v29  ;;  %v916_v28 = vld [vmem:[%s28986_s1 + $0x1ba0] sm:$0xff]  ;;  %v18036_v29 = vcombine.low %v874_v15, %v886_v16  ;;  %v18181_v15 = vcombine.high %v1018_v8, %v1030_v9 }
 0x1fb   :  { %8121 = vmatprep.subr.bf16.mxu0 %v17905_v30  ;;  %v18048_v30 = vcombine.low %v880_v17, %v892_v18  ;;  %v18073_v33 = vcombine.high %v904_v27, %v916_v28  ;;  %v1042_v17 = vld [vmem:[%s28986_s1 + $0x1f90] sm:$0xff] }
 0x1fc   :  { %v1054_v18 = vld [vmem:[%s28986_s1 + $0x1ff0] sm:$0xff] }
 0x1fd   :  { %7384 = vmatpush1.bf16.msra.mxu1 %v17892_v37  ;;  %v928_v37 = vld [vmem:[%s28986_s1 + $0x1c00] sm:$0xff] }
 0x1fe   :  { %8122 = vmatpush1.bf16.msra.mxu0 %v17904_v38  ;;  %7385 = vmatprep.subr.bf16.mxu1 %v17917_v39  ;;  %v940_v38 = vld [vmem:[%s28986_s1 + $0x1c60] sm:$0xff]  ;;  %v18060_v39 = vcombine.low %v898_v25, %v910_v26  ;;  %v18205_v25 = vcombine.high %v1042_v17, %v1054_v18 }
 0x1ff   :  { %8123 = vmatprep.subr.bf16.mxu0 %v17929_v40  ;;  %v18072_v40 = vcombine.low %v904_v27, %v916_v28  ;;  %v18097_v42 = vcombine.high %v928_v37, %v940_v38  ;;  %v1066_v27 = vld [vmem:[%s28986_s1 + $0x2050] sm:$0xff] }
 0x200   :  { %v1078_v28 = vld [vmem:[%s28986_s1 + $0x20b0] sm:$0xff] }
 0x201   :  { %7386 = vmatpush1.bf16.msra.mxu1 %v17916_v45  ;;  %v952_v45 = vld [vmem:[%s28986_s1 + $0x1cc0] sm:$0xff] }
 0x202   :  { %8124 = vmatpush1.bf16.msra.mxu0 %v17928_v46  ;;  %7387 = vmatprep.subr.bf16.mxu1 %v17941_v47  ;;  %v964_v46 = vld [vmem:[%s28986_s1 + $0x1d20] sm:$0xff]  ;;  %v18084_v47 = vcombine.low %v922_v34, %v934_v35  ;;  %v18229_v34 = vcombine.high %v1066_v27, %v1078_v28 }
 0x203   :  { %8125 = vmatprep.subr.bf16.mxu0 %v17953_v48  ;;  %v18096_v48 = vcombine.low %v928_v37, %v940_v38  ;;  %v18121_v50 = vcombine.high %v952_v45, %v964_v46  ;;  %v1090_v37 = vld [vmem:[%s28986_s1 + $0x2110] sm:$0xff] }
 0x204   :  { %v1102_v38 = vld [vmem:[%s28986_s1 + $0x2170] sm:$0xff] }
 0x205   :  { %7388 = vmatpush1.bf16.msra.mxu1 %v17940_v53  ;;  %v976_v53 = vld [vmem:[%s28986_s1 + $0x1d80] sm:$0xff] }
 0x206   :  { %8126 = vmatpush1.bf16.msra.mxu0 %v17952_v54  ;;  %7398 = vmatprep.subr.bf16.mxu1 %v17965_v55  ;;  %v988_v54 = vld [vmem:[%s28986_s1 + $0x1de0] sm:$0xff]  ;;  %v18108_v55 = vcombine.low %v946_v43, %v958_v44  ;;  %v18253_v43 = vcombine.high %v1090_v37, %v1102_v38 }
 0x207   :  { %8136 = vmatprep.subr.bf16.mxu0 %v17977_v56  ;;  %v18120_v56 = vcombine.low %v952_v45, %v964_v46  ;;  %v18145_v59 = vcombine.high %v976_v53, %v988_v54  ;;  %v1114_v45 = vld [vmem:[%s28986_s1 + $0x21d0] sm:$0xff] }
 0x208   :  { %7390 = vmatmul.mubr.bf16.vlgmr.msra.gmra.mrb[8].mxu1 %v21992_v21  ;;  %v1126_v46 = vld [vmem:[%s28986_s1 + $0x2230] sm:$0xff] }
 0x209   :  { %7399 = vmatpush1.bf16.msra.mxu1 %v17964_v63  ;;  %8128 = vmatmul.mubr.bf16.vlgmr.msra.gmra.mrb[8].mxu0 %v21992_v21  ;;  %v1000_v63 = vld [vmem:[%s28986_s1 + $0x1e40] sm:$0xff] }
 0x20a   :  { %8137 = vmatpush1.bf16.msra.mxu0 %v17976_v0  ;;  %7400 = vmatprep.subr.bf16.mxu1 %v17989_v2  ;;  %v1012_v0 = vld [vmem:[%s28986_s1 + $0x1ea0] sm:$0xff]  ;;  %v18132_v2 = vcombine.low %v970_v51, %v982_v52  ;;  %v18277_v51 = vcombine.high %v1114_v45, %v1126_v46 }
 0x20b   :  { %8138 = vmatprep.subr.bf16.mxu0 %v18001_v3  ;;  %7430 = vmatprep.mubr.bf16.mxu1 %v22009_v32  ;;  %v18144_v3 = vcombine.low %v976_v53, %v988_v54  ;;  %v18169_v6 = vcombine.high %v1000_v63, %v1012_v0  ;;  %v1138_v53 = vld [vmem:[%s28986_s1 + $0x2290] sm:$0xff] }
 0x20c   :  { %8168 = vmatprep.mubr.bf16.mxu0 %v22009_v32  ;;  %v1150_v54 = vld [vmem:[%s28986_s1 + $0x22f0] sm:$0xff] }
 0x20d   :  { %7401 = vmatpush1.bf16.msra.mxu1 %v17988_v10  ;;  %v1024_v10 = vld [vmem:[%s28986_s1 + $0x1f00] sm:$0xff] }
 0x20e   :  { %8139 = vmatpush1.bf16.msra.mxu0 %v18000_v11  ;;  %7402 = vmatprep.subr.bf16.mxu1 %v18013_v13  ;;  %v1036_v11 = vld [vmem:[%s28986_s1 + $0x1f60] sm:$0xff]  ;;  %v18156_v13 = vcombine.low %v994_v60, %v1006_v62  ;;  %v18301_v60 = vcombine.high %v1138_v53, %v1150_v54 }
 0x20f   :  { %8140 = vmatprep.subr.bf16.mxu0 %v18025_v14  ;;  %v18168_v14 = vcombine.low %v1000_v63, %v1012_v0  ;;  %v18193_v16 = vcombine.high %v1024_v10, %v1036_v11  ;;  %v1162_v63 = vld [vmem:[%s28986_s1 + $0x2350] sm:$0xff] }
 0x210   :  { %v1174_v0 = vld [vmem:[%s28986_s1 + $0x23b0] sm:$0xff] }
 0x211   :  { %7403 = vmatpush1.bf16.msra.mxu1 %v18012_v19  ;;  %v1048_v19 = vld [vmem:[%s28986_s1 + $0x1fc0] sm:$0xff] }
 0x212   :  { %8141 = vmatpush1.bf16.msra.mxu0 %v18024_v20  ;;  %7404 = vmatprep.subr.bf16.mxu1 %v18037_v23  ;;  %v1060_v20 = vld [vmem:[%s28986_s1 + $0x2020] sm:$0xff]  ;;  %v18180_v23 = vcombine.low %v1018_v8, %v1030_v9  ;;  %v18325_v8 = vcombine.high %v1162_v63, %v1174_v0 }
 0x213   :  { %8142 = vmatprep.subr.bf16.mxu0 %v18049_v24  ;;  %v18192_v24 = vcombine.low %v1024_v10, %v1036_v11  ;;  %v18217_v26 = vcombine.high %v1048_v19, %v1060_v20  ;;  %v35_v10 = vld [vmem:[%s28986_s1 + $0x18] sm:$0xff] }
 0x214   :  { %v47_v11 = vld [vmem:[%s28986_s1 + $0x78] sm:$0xff] }
 0x215   :  { %7405 = vmatpush1.bf16.msra.mxu1 %v18036_v29  ;;  %v1072_v29 = vld [vmem:[%s28986_s1 + $0x2080] sm:$0xff] }
 0x216   :  { %8143 = vmatpush1.bf16.msra.mxu0 %v18048_v30  ;;  %7406 = vmatprep.subr.bf16.mxu1 %v18061_v31  ;;  %v1084_v30 = vld [vmem:[%s28986_s1 + $0x20e0] sm:$0xff]  ;;  %v18204_v31 = vcombine.low %v1042_v17, %v1054_v18  ;;  %v17199_v17 = vcombine.high %v35_v10, %v47_v11 }
 0x217   :  { %8144 = vmatprep.subr.bf16.mxu0 %v18073_v33  ;;  %v18216_v33 = vcombine.low %v1048_v19, %v1060_v20  ;;  %v18241_v35 = vcombine.high %v1072_v29, %v1084_v30  ;;  %v59_v19 = vld [vmem:[%s28986_s1 + $0xd8] sm:$0xff] }
 0x218   :  { %v71_v20 = vld [vmem:[%s28986_s1 + $0x138] sm:$0xff] }
 0x219   :  { %7407 = vmatpush1.bf16.msra.mxu1 %v18060_v39  ;;  %v1096_v39 = vld [vmem:[%s28986_s1 + $0x2140] sm:$0xff] }
 0x21a   :  { %8145 = vmatpush1.bf16.msra.mxu0 %v18072_v40  ;;  %7408 = vmatprep.subr.bf16.mxu1 %v18085_v41  ;;  %v1108_v40 = vld [vmem:[%s28986_s1 + $0x21a0] sm:$0xff]  ;;  %v18228_v41 = vcombine.low %v1066_v27, %v1078_v28  ;;  %v17223_v27 = vcombine.high %v59_v19, %v71_v20 }
 0x21b   :  { %8146 = vmatprep.subr.bf16.mxu0 %v18097_v42  ;;  %v18240_v42 = vcombine.low %v1072_v29, %v1084_v30  ;;  %v18265_v44 = vcombine.high %v1096_v39, %v1108_v40  ;;  %v83_v29 = vld [vmem:[%s28986_s1 + $0x198] sm:$0xff] }
 0x21c   :  { %v95_v30 = vld [vmem:[%s28986_s1 + $0x1f8] sm:$0xff] }
 0x21d   :  { %7409 = vmatpush1.bf16.msra.mxu1 %v18084_v47  ;;  %v1120_v47 = vld [vmem:[%s28986_s1 + $0x2200] sm:$0xff] }
 0x21e   :  { %8147 = vmatpush1.bf16.msra.mxu0 %v18096_v48  ;;  %7410 = vmatprep.subr.bf16.mxu1 %v18109_v49  ;;  %v1132_v48 = vld [vmem:[%s28986_s1 + $0x2260] sm:$0xff]  ;;  %v18252_v49 = vcombine.low %v1090_v37, %v1102_v38  ;;  %v17247_v37 = vcombine.high %v83_v29, %v95_v30 }
 0x21f   :  { %8148 = vmatprep.subr.bf16.mxu0 %v18121_v50  ;;  %v18264_v50 = vcombine.low %v1096_v39, %v1108_v40  ;;  %v18289_v52 = vcombine.high %v1120_v47, %v1132_v48  ;;  %v107_v39 = vld [vmem:[%s28986_s1 + $0x258] sm:$0xff] }
 0x220   :  { %v119_v40 = vld [vmem:[%s28986_s1 + $0x2b8] sm:$0xff] }
 0x221   :  { %7411 = vmatpush1.bf16.msra.mxu1 %v18108_v55  ;;  %v1144_v55 = vld [vmem:[%s28986_s1 + $0x22c0] sm:$0xff] }
 0x222   :  { %8149 = vmatpush1.bf16.msra.mxu0 %v18120_v56  ;;  %7412 = vmatprep.subr.bf16.mxu1 %v18133_v58  ;;  %v1156_v56 = vld [vmem:[%s28986_s1 + $0x2320] sm:$0xff]  ;;  %v18276_v58 = vcombine.low %v1114_v45, %v1126_v46  ;;  %v17271_v45 = vcombine.high %v107_v39, %v119_v40 }
 0x223   :  { %8150 = vmatprep.subr.bf16.mxu0 %v18145_v59  ;;  %v18288_v59 = vcombine.low %v1120_v47, %v1132_v48  ;;  %v18313_v62 = vcombine.high %v1144_v55, %v1156_v56  ;;  %v131_v47 = vld [vmem:[%s28986_s1 + $0x318] sm:$0xff] }
 0x224   :  { %v143_v48 = vld [vmem:[%s28986_s1 + $0x378] sm:$0xff] }
 0x225   :  { %7413 = vmatpush1.bf16.msra.mxu1 %v18132_v2  ;;  %v1168_v2 = vld [vmem:[%s28986_s1 + $0x2380] sm:$0xff] }
 0x226   :  { %8151 = vmatpush1.bf16.msra.mxu0 %v18144_v3  ;;  %7414 = vmatprep.subr.bf16.mxu1 %v18157_v5  ;;  %v1180_v3 = vld [vmem:[%s28986_s1 + $0x23e0] sm:$0xff]  ;;  %v18300_v5 = vcombine.low %v1138_v53, %v1150_v54  ;;  %v17295_v53 = vcombine.high %v131_v47, %v143_v48 }
 0x227   :  { %8152 = vmatprep.subr.bf16.mxu0 %v18169_v6  ;;  %v18312_v6 = vcombine.low %v1144_v55, %v1156_v56  ;;  %v18337_v9 = vcombine.high %v1168_v2, %v1180_v3  ;;  %v155_v55 = vld [vmem:[%s28986_s1 + $0x3d8] sm:$0xff] }
 0x228   :  { %v167_v56 = vld [vmem:[%s28986_s1 + $0x438] sm:$0xff] }
 0x229   :  { %7415 = vmatpush1.bf16.msra.mxu1 %v18156_v13  ;;  %v42_v13 = vld [vmem:[%s28986_s1 + $0x50] sm:$0xff] }
 0x22a   :  { %8153 = vmatpush1.bf16.msra.mxu0 %v18168_v14  ;;  %7416 = vmatprep.subr.bf16.mxu1 %v18181_v15  ;;  %v54_v14 = vld [vmem:[%s28986_s1 + $0xb0] sm:$0xff]  ;;  %v18324_v15 = vcombine.low %v1162_v63, %v1174_v0  ;;  %v17319_v63 = vcombine.high %v155_v55, %v167_v56 }
 0x22b   :  { %8154 = vmatprep.subr.bf16.mxu0 %v18193_v16  ;;  %v18336_v16 = vcombine.low %v1168_v2, %v1180_v3  ;;  %v17213_v18 = vcombine.high %v42_v13, %v54_v14  ;;  %v179_v2 = vld [vmem:[%s28986_s1 + $0x498] sm:$0xff] }
 0x22c   :  { %v191_v3 = vld [vmem:[%s28986_s1 + $0x4f8] sm:$0xff] }
 0x22d   :  { %7417 = vmatpush1.bf16.msra.mxu1 %v18180_v23  ;;  %v66_v23 = vld [vmem:[%s28986_s1 + $0x110] sm:$0xff] }
 0x22e   :  { %8155 = vmatpush1.bf16.msra.mxu0 %v18192_v24  ;;  %7418 = vmatprep.subr.bf16.mxu1 %v18205_v25  ;;  %v78_v24 = vld [vmem:[%s28986_s1 + $0x170] sm:$0xff]  ;;  %v17198_v25 = vcombine.low %v35_v10, %v47_v11  ;;  %v17343_v10 = vcombine.high %v179_v2, %v191_v3 }
 0x22f   :  { %8156 = vmatprep.subr.bf16.mxu0 %v18217_v26  ;;  %v17212_v26 = vcombine.low %v42_v13, %v54_v14  ;;  %v17237_v28 = vcombine.high %v66_v23, %v78_v24  ;;  %v203_v14 = vld [vmem:[%s28986_s1 + $0x558] sm:$0xff] }
 0x231   :  { %7419 = vmatpush1.bf16.msra.mxu1 %v18204_v31  ;;  %v90_v31 = vld [vmem:[%s28986_s1 + $0x1d0] sm:$0xff] }
 0x232   :  { %8157 = vmatpush1.bf16.msra.mxu0 %v18216_v33  ;;  %7420 = vmatprep.subr.bf16.mxu1 %v18229_v34  ;;  %v102_v33 = vld [vmem:[%s28986_s1 + $0x230] sm:$0xff]  ;;  %v17222_v34 = vcombine.low %v59_v19, %v71_v20 }
 0x233   :  { %8158 = vmatprep.subr.bf16.mxu0 %v18241_v35  ;;  %v17236_v35 = vcombine.low %v66_v23, %v78_v24  ;;  %v17261_v38 = vcombine.high %v90_v31, %v102_v33  ;;  %v17342_v23 = vcombine.low %v179_v2, %v191_v3 }
 0x235   :  { %7421 = vmatpush1.bf16.msra.mxu1 %v18228_v41  ;;  %v114_v41 = vld [vmem:[%s28986_s1 + $0x290] sm:$0xff] }
 0x236   :  { %8159 = vmatpush1.bf16.msra.mxu0 %v18240_v42  ;;  %7422 = vmatprep.subr.bf16.mxu1 %v18253_v43  ;;  %v126_v42 = vld [vmem:[%s28986_s1 + $0x2f0] sm:$0xff]  ;;  %v17246_v43 = vcombine.low %v83_v29, %v95_v30  ;;  %v227_v30 = vld [vmem:[%s28986_s1 + $0x618] sm:$0xff] }
 0x237   :  { %8160 = vmatprep.subr.bf16.mxu0 %v18265_v44  ;;  %v17260_v44 = vcombine.low %v90_v31, %v102_v33  ;;  %v17285_v46 = vcombine.high %v114_v41, %v126_v42  ;;  %v239_v31 = vld [vmem:[%s28986_s1 + $0x678] sm:$0xff] }
 0x239   :  { %7423 = vmatpush1.bf16.msra.mxu1 %v18252_v49  ;;  %v138_v49 = vld [vmem:[%s28986_s1 + $0x350] sm:$0xff] }
 0x23a   :  { %8161 = vmatpush1.bf16.msra.mxu0 %v18264_v50  ;;  %7424 = vmatprep.subr.bf16.mxu1 %v18277_v51  ;;  %v150_v50 = vld [vmem:[%s28986_s1 + $0x3b0] sm:$0xff]  ;;  %v17270_v51 = vcombine.low %v107_v39, %v119_v40  ;;  %v17391_v39 = vcombine.high %v227_v30, %v239_v31 }
 0x23b   :  { %8162 = vmatprep.subr.bf16.mxu0 %v18289_v52  ;;  %v17284_v52 = vcombine.low %v114_v41, %v126_v42  ;;  %v17309_v54 = vcombine.high %v138_v49, %v150_v50  ;;  %v251_v41 = vld [vmem:[%s28986_s1 + $0x6d8] sm:$0xff] }
 0x23c   :  { %v263_v42 = vld [vmem:[%s28986_s1 + $0x738] sm:$0xff] }
 0x23d   :  { %7425 = vmatpush1.bf16.msra.mxu1 %v18276_v58  ;;  %v162_v58 = vld [vmem:[%s28986_s1 + $0x410] sm:$0xff] }
 0x23e   :  { %8163 = vmatpush1.bf16.msra.mxu0 %v18288_v59  ;;  %7426 = vmatprep.subr.bf16.mxu1 %v18301_v60  ;;  %v174_v59 = vld [vmem:[%s28986_s1 + $0x470] sm:$0xff]  ;;  %v17294_v60 = vcombine.low %v131_v47, %v143_v48  ;;  %v17415_v47 = vcombine.high %v251_v41, %v263_v42 }
 0x23f   :  { %8164 = vmatprep.subr.bf16.mxu0 %v18313_v62  ;;  %v17308_v62 = vcombine.low %v138_v49, %v150_v50  ;;  %v17333_v0 = vcombine.high %v162_v58, %v174_v59  ;;  %v275_v49 = vld [vmem:[%s28986_s1 + $0x798] sm:$0xff] }
 0x240   :  { %v287_v50 = vld [vmem:[%s28986_s1 + $0x7f8] sm:$0xff] }
 0x241   :  { %7427 = vmatpush1.bf16.msra.mxu1 %v18300_v5  ;;  %v186_v5 = vld [vmem:[%s28986_s1 + $0x4d0] sm:$0xff] }
 0x242   :  { %8165 = vmatpush1.bf16.msra.mxu0 %v18312_v6  ;;  %7428 = vmatprep.subr.bf16.mxu1 %v18325_v8  ;;  %v198_v6 = vld [vmem:[%s28986_s1 + $0x530] sm:$0xff]  ;;  %v17318_v8 = vcombine.low %v155_v55, %v167_v56  ;;  %v17439_v55 = vcombine.high %v275_v49, %v287_v50 }
 0x243   :  { %8166 = vmatprep.subr.bf16.mxu0 %v18337_v9  ;;  %v17332_v9 = vcombine.low %v162_v58, %v174_v59  ;;  %v17357_v13 = vcombine.high %v186_v5, %v198_v6  ;;  %v299_v58 = vld [vmem:[%s28986_s1 + $0x858] sm:$0xff] }
 0x244   :  { %v311_v59 = vld [vmem:[%s28986_s1 + $0x8b8] sm:$0xff] }
 0x245   :  { %7429 = vmatpush1.bf16.msra.mxu1 %v18324_v15  ;;  %v215_v15 = vld [vmem:[%s28986_s1 + $0x5b8] sm:$0xff]  ;;  %v17463_v2 = vcombine.high %v299_v58, %v311_v59 }
 0x246   :  { %8167 = vmatpush1.bf16.msra.mxu0 %v18336_v16  ;;  %7439 = vmatprep.subr.bf16.mxu1 %v17199_v17  ;;  %v210_v17 = vld [vmem:[%s28986_s1 + $0x590] sm:$0xff] }
 0x247   :  { %8300 = vmatprep.subr.bf16.mxu0 %v17213_v18  ;;  %v222_v18 = vld [vmem:[%s28986_s1 + $0x5f0] sm:$0xff] }
 0x248   :  { %7431 = vmatmul.mubr.bf16.vlgmr.msra.gmra.mrb[8].mxu1 %v22198_v36  ;;  %v17381_v29 = vcombine.high %v210_v17, %v222_v18 }
 0x249   :  { %7440 = vmatpush1.bf16.msra.mxu1 %v17198_v25  ;;  %8169 = vmatmul.mubr.bf16.vlgmr.msra.gmra.mrb[8].mxu0 %v22198_v36 }
 0x24a   :  { %8301 = vmatpush1.bf16.msra.mxu0 %v17212_v26  ;;  %7441 = vmatprep.subr.bf16.mxu1 %v17223_v27  ;;  %v17356_v26 = vcombine.low %v186_v5, %v198_v6  ;;  %v17367_v27 = vcombine.high %v203_v14, %v215_v15  ;;  %v323_v5 = vld [vmem:[%s28986_s1 + $0x918] sm:$0xff] }
 0x24b   :  { %8302 = vmatprep.subr.bf16.mxu0 %v17237_v28  ;;  %7471 = vmatprep.mubr.bf16.mxu1 %v21659_v57  ;;  %v335_v6 = vld [vmem:[%s28986_s1 + $0x978] sm:$0xff] }
 0x24c   :  { %8332 = vmatprep.mubr.bf16.mxu0 %v21659_v57 }
 0x24d   :  { %7442 = vmatpush1.bf16.msra.mxu1 %v17222_v34  ;;  %v234_v34 = vld [vmem:[%s28986_s1 + $0x650] sm:$0xff] }
 0x24e   :  { %8303 = vmatpush1.bf16.msra.mxu0 %v17236_v35  ;;  %7443 = vmatprep.subr.bf16.mxu1 %v17247_v37  ;;  %v246_v35 = vld [vmem:[%s28986_s1 + $0x6b0] sm:$0xff]  ;;  %v17366_v37 = vcombine.low %v203_v14, %v215_v15  ;;  %v17487_v14 = vcombine.high %v323_v5, %v335_v6 }
 0x24f   :  { %8304 = vmatprep.subr.bf16.mxu0 %v17261_v38  ;;  %v17380_v38 = vcombine.low %v210_v17, %v222_v18  ;;  %v17405_v40 = vcombine.high %v234_v34, %v246_v35  ;;  %v347_v17 = vld [vmem:[%s28986_s1 + $0x9d8] sm:$0xff] }
 0x250   :  { %v359_v18 = vld [vmem:[%s28986_s1 + $0xa38] sm:$0xff] }
 0x251   :  { %7444 = vmatpush1.bf16.msra.mxu1 %v17246_v43  ;;  %v258_v43 = vld [vmem:[%s28986_s1 + $0x710] sm:$0xff] }
 0x252   :  { %8305 = vmatpush1.bf16.msra.mxu0 %v17260_v44  ;;  %7445 = vmatprep.subr.bf16.mxu1 %v17271_v45  ;;  %v270_v44 = vld [vmem:[%s28986_s1 + $0x770] sm:$0xff]  ;;  %v17390_v45 = vcombine.low %v227_v30, %v239_v31  ;;  %v383_v30 = vld [vmem:[%s28986_s1 + $0xaf8] sm:$0xff] }
 0x253   :  { %8306 = vmatprep.subr.bf16.mxu0 %v17285_v46  ;;  %v17404_v46 = vcombine.low %v234_v34, %v246_v35  ;;  %v17429_v48 = vcombine.high %v258_v43, %v270_v44  ;;  %v378_v31 = vld [vmem:[%s28986_s1 + $0xad0] sm:$0xff]  ;;  %v17510_v34 = vcombine.low %v347_v17, %v359_v18 }
 0x255   :  { %7446 = vmatpush1.bf16.msra.mxu1 %v17270_v51  ;;  %v282_v51 = vld [vmem:[%s28986_s1 + $0x7d0] sm:$0xff] }
 0x256   :  { %8307 = vmatpush1.bf16.msra.mxu0 %v17284_v52  ;;  %7447 = vmatprep.subr.bf16.mxu1 %v17295_v53  ;;  %v294_v52 = vld [vmem:[%s28986_s1 + $0x830] sm:$0xff]  ;;  %v17414_v53 = vcombine.low %v251_v41, %v263_v42 }
 0x257   :  { %8308 = vmatprep.subr.bf16.mxu0 %v17309_v54  ;;  %v17428_v54 = vcombine.low %v258_v43, %v270_v44  ;;  %v17453_v56 = vcombine.high %v282_v51, %v294_v52  ;;  %v402_v41 = vld [vmem:[%s28986_s1 + $0xb90] sm:$0xff] }
 0x258   :  { %v414_v42 = vld [vmem:[%s28986_s1 + $0xbf0] sm:$0xff] }
 0x259   :  { %7448 = vmatpush1.bf16.msra.mxu1 %v17294_v60  ;;  %v306_v60 = vld [vmem:[%s28986_s1 + $0x890] sm:$0xff] }
 0x25a   :  { %8309 = vmatpush1.bf16.msra.mxu0 %v17308_v62  ;;  %7449 = vmatprep.subr.bf16.mxu1 %v17319_v63  ;;  %v318_v62 = vld [vmem:[%s28986_s1 + $0x8f0] sm:$0xff]  ;;  %v17438_v63 = vcombine.low %v275_v49, %v287_v50 }
 0x25b   :  { %v23454_v11 = vpop.f32.mrb[4].mxu1  ;;  %8310 = vmatprep.subr.bf16.mxu0 %v17333_v0  ;;  %v17452_v0 = vcombine.low %v282_v51, %v294_v52  ;;  %v17477_v3 = vcombine.high %v306_v60, %v318_v62  ;;  %v426_v49 = vld [vmem:[%s28986_s1 + $0xc50] sm:$0xff]  ;;  %v17572_v52 = vcombine.low %v402_v41, %v414_v42 }
 0x25c   :  { %v23462_v16 = vpop.f32.mrb[5].mxu1  ;;  %v23470_v19 = vpop.f32.mrb[4].mxu0  ;;  %v438_v50 = vld [vmem:[%s28986_s1 + $0xcb0] sm:$0xff] }
 0x25d   :  { %v7313_v20 = vpop.f32.mrb[6].mxu1  ;;  %7450 = vmatpush1.bf16.msra.mxu1 %v17318_v8  ;;  %v23472_v24 = vpop.f32.mrb[5].mxu0  ;;  %v330_v8 = vld [vmem:[%s28986_s1 + $0x950] sm:$0xff] }
 0x25e   :  { %8311 = vmatpush1.bf16.msra.mxu0 %v17332_v9  ;;  %v7314_v25 = vpop.f32.mrb[7].mxu1  ;;  %7451 = vmatprep.subr.bf16.mxu1 %v17343_v10  ;;  %v7928_v28 = vpop.f32.mrb[6].mxu0  ;;  %v342_v9 = vld [vmem:[%s28986_s1 + $0x9b0] sm:$0xff]  ;;  %v17462_v10 = vcombine.low %v299_v58, %v311_v59 }
 0x25f   :  { %8312 = vmatprep.subr.bf16.mxu0 %v17357_v13  ;;  %v7929_v33 = vpop.f32.mrb[7].mxu0  ;;  %v17476_v13 = vcombine.low %v306_v60, %v318_v62  ;;  %v17501_v15 = vcombine.high %v330_v8, %v342_v9  ;;  %v354_v20 = vld [vmem:[%s28986_s1 + $0xa10] sm:$0xff]  ;;  %v17486_v25 = vcombine.low %v323_v5, %v335_v6  ;;  %v17596_v62 = vcombine.low %v426_v49, %v438_v50 }
 0x260   :  { %v390_v33 = vld [vmem:[%s28986_s1 + $0xb30] sm:$0xff] }
 0x261   :  { %7452 = vmatpush1.bf16.msra.mxu1 %v17342_v23  ;;  %v366_v23 = vld [vmem:[%s28986_s1 + $0xa70] sm:$0xff]  ;;  %v17548_v44 = vcombine.low %v378_v31, %v390_v33 }
 0x262   :  { %8313 = vmatpush1.bf16.msra.mxu0 %v17356_v26  ;;  %7453 = vmatprep.subr.bf16.mxu1 %v17367_v27  ;;  %v17500_v26 = vcombine.low %v330_v8, %v342_v9  ;;  %v17511_v27 = vcombine.high %v347_v17, %v359_v18  ;;  %v17525_v28 = vcombine.high %v354_v20, %v366_v23  ;;  %v450_v58 = vld [vmem:[%s28986_s1 + $0xd10] sm:$0xff] }
 0x263   :  { %8314 = vmatprep.subr.bf16.mxu0 %v17381_v29  ;;  %v371_v29 = vld [vmem:[%s28986_s1 + $0xa98] sm:$0xff]  ;;  %v17524_v35 = vcombine.low %v354_v20, %v366_v23  ;;  %v462_v59 = vld [vmem:[%s28986_s1 + $0xd70] sm:$0xff] }
 0x264   :  { %v17534_v43 = vcombine.low %v371_v29, %v383_v30  ;;  %v474_v5 = vld [vmem:[%s28986_s1 + $0xdd0] sm:$0xff]  ;;  %v17620_v9 = vcombine.low %v450_v58, %v462_v59 }
 0x265   :  { %7454 = vmatpush1.bf16.msra.mxu1 %v17366_v37  ;;  %v17535_v37 = vcombine.high %v371_v29, %v383_v30  ;;  %v486_v6 = vld [vmem:[%s28986_s1 + $0xe30] sm:$0xff] }
 0x266   :  { %8315 = vmatpush1.bf16.msra.mxu0 %v17380_v38  ;;  %7455 = vmatprep.subr.bf16.mxu1 %v17391_v39  ;;  %v17549_v38 = vcombine.high %v378_v31, %v390_v33  ;;  %v395_v39 = vld [vmem:[%s28986_s1 + $0xb58] sm:$0xff]  ;;  %v498_v17 = vld [vmem:[%s28986_s1 + $0xe90] sm:$0xff]  ;;  %v17644_v23 = vcombine.low %v474_v5, %v486_v6 }
 0x267   :  { %8316 = vmatprep.subr.bf16.mxu0 %v17405_v40  ;;  %v407_v40 = vld [vmem:[%s28986_s1 + $0xbb8] sm:$0xff]  ;;  %v510_v18 = vld [vmem:[%s28986_s1 + $0xef0] sm:$0xff] }
 0x268   :  { %v17558_v51 = vcombine.low %v395_v39, %v407_v40  ;;  %v17669_v29 = vcombine.high %v498_v17, %v510_v18  ;;  %v534_v30 = vld [vmem:[%s28986_s1 + $0xfb0] sm:$0xff]  ;;  %v17668_v33 = vcombine.low %v498_v17, %v510_v18 }
 0x269   :  { %7456 = vmatpush1.bf16.msra.mxu1 %v17390_v45  ;;  %v17559_v45 = vcombine.high %v395_v39, %v407_v40  ;;  %v558_v40 = vld [vmem:[%s28986_s1 + $0x1070] sm:$0xff] }
 0x26a   :  { %8317 = vmatpush1.bf16.msra.mxu0 %v17404_v46  ;;  %7457 = vmatprep.subr.bf16.mxu1 %v17415_v47  ;;  %v17573_v46 = vcombine.high %v402_v41, %v414_v42  ;;  %v419_v47 = vld [vmem:[%s28986_s1 + $0xc18] sm:$0xff] }
 0x26b   :  { %8318 = vmatprep.subr.bf16.mxu0 %v17429_v48  ;;  %v431_v48 = vld [vmem:[%s28986_s1 + $0xc78] sm:$0xff] }
 0x26c   :  { %v17582_v60 = vcombine.low %v419_v47, %v431_v48 }
 0x26d   :  { %7458 = vmatpush1.bf16.msra.mxu1 %v17414_v53  ;;  %v17583_v53 = vcombine.high %v419_v47, %v431_v48  ;;  %v582_v48 = vld [vmem:[%s28986_s1 + $0x1130] sm:$0xff] }
 0x26e   :  { %8319 = vmatpush1.bf16.msra.mxu0 %v17428_v54  ;;  %7459 = vmatprep.subr.bf16.mxu1 %v17439_v55  ;;  %v17597_v54 = vcombine.high %v426_v49, %v438_v50  ;;  %v443_v55 = vld [vmem:[%s28986_s1 + $0xcd8] sm:$0xff] }
 0x26f   :  { %8320 = vmatprep.subr.bf16.mxu0 %v17453_v56  ;;  %v455_v56 = vld [vmem:[%s28986_s1 + $0xd38] sm:$0xff] }
 0x270   :  { %v17606_v8 = vcombine.low %v443_v55, %v455_v56 }
 0x271   :  { %7460 = vmatpush1.bf16.msra.mxu1 %v17438_v63  ;;  %v17607_v63 = vcombine.high %v443_v55, %v455_v56  ;;  %v594_v55 = vld [vmem:[%s28986_s1 + $0x1190] sm:$0xff] }
 0x272   :  { %8321 = vmatpush1.bf16.msra.mxu0 %v17452_v0  ;;  %7461 = vmatprep.subr.bf16.mxu1 %v17463_v2  ;;  %v467_v0 = vld [vmem:[%s28986_s1 + $0xd98] sm:$0xff]  ;;  %v606_v56 = vld [vmem:[%s28986_s1 + $0x11f0] sm:$0xff] }
 0x273   :  { %8322 = vmatprep.subr.bf16.mxu0 %v17477_v3  ;;  %v479_v2 = vld [vmem:[%s28986_s1 + $0xdf8] sm:$0xff]  ;;  %v17621_v3 = vcombine.high %v450_v58, %v462_v59 }
 0x274   :  { %v17630_v20 = vcombine.low %v467_v0, %v479_v2 }
 0x275   :  { %7462 = vmatpush1.bf16.msra.mxu1 %v17462_v10  ;;  %v17631_v10 = vcombine.high %v467_v0, %v479_v2  ;;  %v17765_v0 = vcombine.high %v594_v55, %v606_v56  ;;  %v618_v2 = vld [vmem:[%s28986_s1 + $0x1250] sm:$0xff] }
 0x276   :  { %8323 = vmatpush1.bf16.msra.mxu0 %v17476_v13  ;;  %7463 = vmatprep.subr.bf16.mxu1 %v17487_v14  ;;  %v491_v13 = vld [vmem:[%s28986_s1 + $0xe58] sm:$0xff] }
 0x277   :  { %8324 = vmatprep.subr.bf16.mxu0 %v17501_v15  ;;  %v503_v14 = vld [vmem:[%s28986_s1 + $0xeb8] sm:$0xff]  ;;  %v17645_v15 = vcombine.high %v474_v5, %v486_v6  ;;  %v17764_v6 = vcombine.low %v594_v55, %v606_v56 }
 0x278   :  { %v17654_v31 = vcombine.low %v491_v13, %v503_v14 }
 0x279   :  { %7464 = vmatpush1.bf16.msra.mxu1 %v17486_v25  ;;  %v17655_v25 = vcombine.high %v491_v13, %v503_v14  ;;  %v642_v14 = vld [vmem:[%s28986_s1 + $0x1310] sm:$0xff] }
 0x27a   :  { %8325 = vmatpush1.bf16.msra.mxu0 %v17500_v26  ;;  %7465 = vmatprep.subr.bf16.mxu1 %v17511_v27  ;;  %v515_v26 = vld [vmem:[%s28986_s1 + $0xf18] sm:$0xff] }
 0x27b   :  { %8326 = vmatprep.subr.bf16.mxu0 %v17525_v28  ;;  %v527_v27 = vld [vmem:[%s28986_s1 + $0xf78] sm:$0xff]  ;;  %v522_v28 = vld [vmem:[%s28986_s1 + $0xf50] sm:$0xff] }
 0x27c   :  { %v17693_v39 = vcombine.high %v522_v28, %v534_v30  ;;  %v17678_v41 = vcombine.low %v515_v26, %v527_v27  ;;  %v17692_v42 = vcombine.low %v522_v28, %v534_v30  ;;  %v678_v28 = vld [vmem:[%s28986_s1 + $0x1430] sm:$0xff] }
 0x27d   :  { %7466 = vmatpush1.bf16.msra.mxu1 %v17510_v34  ;;  %v17679_v34 = vcombine.high %v515_v26, %v527_v27  ;;  %v666_v27 = vld [vmem:[%s28986_s1 + $0x13d0] sm:$0xff] }
 0x27e   :  { %8327 = vmatpush1.bf16.msra.mxu0 %v17524_v35  ;;  %7467 = vmatprep.subr.bf16.mxu1 %v17535_v37  ;;  %v539_v35 = vld [vmem:[%s28986_s1 + $0xfd8] sm:$0xff] }
 0x27f   :  { %8328 = vmatprep.subr.bf16.mxu0 %v17549_v38  ;;  %v551_v37 = vld [vmem:[%s28986_s1 + $0x1038] sm:$0xff]  ;;  %v546_v38 = vld [vmem:[%s28986_s1 + $0x1010] sm:$0xff] }
 0x280   :  { %v17717_v47 = vcombine.high %v546_v38, %v558_v40  ;;  %v17702_v49 = vcombine.low %v539_v35, %v551_v37  ;;  %v17716_v50 = vcombine.low %v546_v38, %v558_v40  ;;  %v702_v38 = vld [vmem:[%s28986_s1 + $0x14f0] sm:$0xff]  ;;  %v17836_v40 = vcombine.low %v666_v27, %v678_v28 }
 0x281   :  { %7468 = vmatpush1.bf16.msra.mxu1 %v17534_v43  ;;  %v17703_v43 = vcombine.high %v539_v35, %v551_v37  ;;  %v17837_v35 = vcombine.high %v666_v27, %v678_v28  ;;  %v690_v37 = vld [vmem:[%s28986_s1 + $0x1490] sm:$0xff] }
 0x282   :  { %8329 = vmatpush1.bf16.msra.mxu0 %v17548_v44  ;;  %7469 = vmatprep.subr.bf16.mxu1 %v17559_v45  ;;  %v563_v44 = vld [vmem:[%s28986_s1 + $0x1098] sm:$0xff] }
 0x283   :  { %8330 = vmatprep.subr.bf16.mxu0 %v17573_v46  ;;  %v575_v45 = vld [vmem:[%s28986_s1 + $0x10f8] sm:$0xff]  ;;  %v570_v46 = vld [vmem:[%s28986_s1 + $0x10d0] sm:$0xff] }
 0x284   :  { %v17726_v58 = vcombine.low %v563_v44, %v575_v45  ;;  %v17740_v59 = vcombine.low %v570_v46, %v582_v48 }
 0x285   :  { %7470 = vmatpush1.bf16.msra.mxu1 %v17558_v51  ;;  %v17727_v51 = vcombine.high %v563_v44, %v575_v45  ;;  %v17861_v44 = vcombine.high %v690_v37, %v702_v38  ;;  %v714_v45 = vld [vmem:[%s28986_s1 + $0x1550] sm:$0xff] }
 0x286   :  { %8331 = vmatpush1.bf16.msra.mxu0 %v17572_v52  ;;  %7480 = vmatprep.subr.bf16.mxu1 %v17583_v53  ;;  %v587_v52 = vld [vmem:[%s28986_s1 + $0x1158] sm:$0xff] }
 0x287   :  { %8341 = vmatprep.subr.bf16.mxu0 %v17597_v54  ;;  %v599_v53 = vld [vmem:[%s28986_s1 + $0x11b8] sm:$0xff]  ;;  %v17741_v54 = vcombine.high %v570_v46, %v582_v48  ;;  %v726_v46 = vld [vmem:[%s28986_s1 + $0x15b0] sm:$0xff]  ;;  %v17860_v48 = vcombine.low %v690_v37, %v702_v38 }
 0x288   :  { %7472 = vmatmul.mubr.bf16.vlgmr.msra.gmra.mrb[12].mxu1 %v21786_v12  ;;  %v17750_v5 = vcombine.low %v587_v52, %v599_v53  ;;  %v17884_v56 = vcombine.low %v714_v45, %v726_v46 }
 0x289   :  { %7481 = vmatpush1.bf16.msra.mxu1 %v17582_v60  ;;  %8333 = vmatmul.mubr.bf16.vlgmr.msra.gmra.mrb[12].mxu0 %v21786_v12  ;;  %v17751_v60 = vcombine.high %v587_v52, %v599_v53  ;;  %v17885_v52 = vcombine.high %v714_v45, %v726_v46  ;;  %v738_v53 = vld [vmem:[%s28986_s1 + $0x1610] sm:$0xff] }
 0x28a   :  { %8342 = vmatpush1.bf16.msra.mxu0 %v17596_v62  ;;  %7482 = vmatprep.subr.bf16.mxu1 %v17607_v63  ;;  %v611_v62 = vld [vmem:[%s28986_s1 + $0x1218] sm:$0xff] }
 0x28b   :  { %8343 = vmatprep.subr.bf16.mxu0 %v17621_v3  ;;  %7512 = vmatprep.mubr.bf16.mxu1 %v21803_v22  ;;  %v623_v63 = vld [vmem:[%s28986_s1 + $0x1278] sm:$0xff]  ;;  %v630_v3 = vld [vmem:[%s28986_s1 + $0x12b0] sm:$0xff] }
 0x28c   :  { %8373 = vmatprep.mubr.bf16.mxu0 %v21803_v22  ;;  %v17789_v13 = vcombine.high %v618_v2, %v630_v3  ;;  %v17774_v17 = vcombine.low %v611_v62, %v623_v63  ;;  %v17788_v18 = vcombine.low %v618_v2, %v630_v3 }
 0x28d   :  { %7483 = vmatpush1.bf16.msra.mxu1 %v17606_v8  ;;  %v17775_v8 = vcombine.high %v611_v62, %v623_v63  ;;  %v762_v63 = vld [vmem:[%s28986_s1 + $0x16d0] sm:$0xff] }
 0x28e   :  { %8344 = vmatpush1.bf16.msra.mxu0 %v17620_v9  ;;  %7484 = vmatprep.subr.bf16.mxu1 %v17631_v10  ;;  %v635_v9 = vld [vmem:[%s28986_s1 + $0x12d8] sm:$0xff] }
 0x28f   :  { %8345 = vmatprep.subr.bf16.mxu0 %v17645_v15  ;;  %v647_v10 = vld [vmem:[%s28986_s1 + $0x1338] sm:$0xff]  ;;  %v654_v15 = vld [vmem:[%s28986_s1 + $0x1370] sm:$0xff] }
 0x290   :  { %v17813_v26 = vcombine.high %v642_v14, %v654_v15  ;;  %v17812_v30 = vcombine.low %v642_v14, %v654_v15 }
 0x291   :  { %7485 = vmatpush1.bf16.msra.mxu1 %v17630_v20  ;;  %v17799_v20 = vcombine.high %v635_v9, %v647_v10 }
 0x292   :  { %8346 = vmatpush1.bf16.msra.mxu0 %v17644_v23  ;;  %7486 = vmatprep.subr.bf16.mxu1 %v17655_v25  ;;  %v659_v23 = vld [vmem:[%s28986_s1 + $0x1398] sm:$0xff] }
 0x293   :  { %8347 = vmatprep.subr.bf16.mxu0 %v17669_v29  ;;  %v671_v25 = vld [vmem:[%s28986_s1 + $0x13f8] sm:$0xff]  ;;  %v17798_v29 = vcombine.low %v635_v9, %v647_v10  ;;  %v786_v9 = vld [vmem:[%s28986_s1 + $0x1790] sm:$0xff] }
 0x295   :  { %7487 = vmatpush1.bf16.msra.mxu1 %v17654_v31  ;;  %v17823_v31 = vcombine.high %v659_v23, %v671_v25 }
 0x296   :  { %8348 = vmatpush1.bf16.msra.mxu0 %v17668_v33  ;;  %7488 = vmatprep.subr.bf16.mxu1 %v17679_v34  ;;  %v683_v33 = vld [vmem:[%s28986_s1 + $0x1458] sm:$0xff] }
 0x297   :  { %8349 = vmatprep.subr.bf16.mxu0 %v17693_v39  ;;  %v695_v34 = vld [vmem:[%s28986_s1 + $0x14b8] sm:$0xff]  ;;  %v17822_v39 = vcombine.low %v659_v23, %v671_v25  ;;  %v810_v23 = vld [vmem:[%s28986_s1 + $0x1850] sm:$0xff] }
 0x299   :  { %7489 = vmatpush1.bf16.msra.mxu1 %v17678_v41  ;;  %v17847_v41 = vcombine.high %v683_v33, %v695_v34 }
 0x29a   :  { %8350 = vmatpush1.bf16.msra.mxu0 %v17692_v42  ;;  %7490 = vmatprep.subr.bf16.mxu1 %v17703_v43  ;;  %v707_v42 = vld [vmem:[%s28986_s1 + $0x1518] sm:$0xff] }
 0x29b   :  { %8351 = vmatprep.subr.bf16.mxu0 %v17717_v47  ;;  %v719_v43 = vld [vmem:[%s28986_s1 + $0x1578] sm:$0xff]  ;;  %v17846_v47 = vcombine.low %v683_v33, %v695_v34  ;;  %v834_v33 = vld [vmem:[%s28986_s1 + $0x1910] sm:$0xff] }
 0x29c   :  { %v17870_v55 = vcombine.low %v707_v42, %v719_v43 }
 0x29d   :  { %7491 = vmatpush1.bf16.msra.mxu1 %v17702_v49  ;;  %v17871_v49 = vcombine.high %v707_v42, %v719_v43  ;;  %v858_v43 = vld [vmem:[%s28986_s1 + $0x19d0] sm:$0xff] }
 0x29e   :  { %8352 = vmatpush1.bf16.msra.mxu0 %v17716_v50  ;;  %7492 = vmatprep.subr.bf16.mxu1 %v17727_v51  ;;  %v731_v50 = vld [vmem:[%s28986_s1 + $0x15d8] sm:$0xff] }
 0x29f   :  { %8353 = vmatprep.subr.bf16.mxu0 %v17741_v54  ;;  %v743_v51 = vld [vmem:[%s28986_s1 + $0x1638] sm:$0xff]  ;;  %v750_v54 = vld [vmem:[%s28986_s1 + $0x1670] sm:$0xff] }
 0x2a0   :  { %v17909_v62 = vcombine.high %v738_v53, %v750_v54  ;;  %v17894_v2 = vcombine.low %v731_v50, %v743_v51  ;;  %v17908_v3 = vcombine.low %v738_v53, %v750_v54  ;;  %v894_v53 = vld [vmem:[%s28986_s1 + $0x1af0] sm:$0xff] }
 0x2a1   :  { %7493 = vmatpush1.bf16.msra.mxu1 %v17726_v58  ;;  %v17895_v58 = vcombine.high %v731_v50, %v743_v51  ;;  %v1190_v50 = vlaneseq }
 0x2a2   :  { %8354 = vmatpush1.bf16.msra.mxu0 %v17740_v59  ;;  %7494 = vmatprep.subr.bf16.mxu1 %v17751_v60  ;;  %v755_v59 = vld [vmem:[%s28986_s1 + $0x1698] sm:$0xff] }
 0x2a3   :  { %8355 = vmatprep.subr.bf16.mxu0 %v17765_v0  ;;  %v767_v60 = vld [vmem:[%s28986_s1 + $0x16f8] sm:$0xff]  ;;  %v774_v0 = vld [vmem:[%s28986_s1 + $0x1730] sm:$0xff] }
 0x2a4   :  { %v17933_v10 = vcombine.high %v762_v63, %v774_v0  ;;  %v17918_v14 = vcombine.low %v755_v59, %v767_v60  ;;  %v17932_v15 = vcombine.low %v762_v63, %v774_v0  ;;  %v918_v0 = vld [vmem:[%s28986_s1 + $0x1bb0] sm:$0xff] }
 0x2a5   :  { %7495 = vmatpush1.bf16.msra.mxu1 %v17750_v5  ;;  %v17919_v5 = vcombine.high %v755_v59, %v767_v60  ;;  %v911_v59 = vld [vmem:[%s28986_s1 + $0x1b78] sm:$0xff]  ;;  %v906_v60 = vld [vmem:[%s28986_s1 + $0x1b50] sm:$0xff] }
 0x2a6   :  { %8356 = vmatpush1.bf16.msra.mxu0 %v17764_v6  ;;  %7496 = vmatprep.subr.bf16.mxu1 %v17775_v8  ;;  %v779_v6 = vld [vmem:[%s28986_s1 + $0x1758] sm:$0xff] }
 0x2a7   :  { %8357 = vmatprep.subr.bf16.mxu0 %v17789_v13  ;;  %v791_v8 = vld [vmem:[%s28986_s1 + $0x17b8] sm:$0xff]  ;;  %v798_v13 = vld [vmem:[%s28986_s1 + $0x17f0] sm:$0xff] }
 0x2a8   :  { %v17957_v25 = vcombine.high %v786_v9, %v798_v13  ;;  %v17942_v27 = vcombine.low %v779_v6, %v791_v8  ;;  %v17956_v28 = vcombine.low %v786_v9, %v798_v13  ;;  %v935_v9 = vld [vmem:[%s28986_s1 + $0x1c38] sm:$0xff] }
 0x2a9   :  { %7497 = vmatpush1.bf16.msra.mxu1 %v17774_v17  ;;  %v17943_v17 = vcombine.high %v779_v6, %v791_v8  ;;  %v923_v8 = vld [vmem:[%s28986_s1 + $0x1bd8] sm:$0xff] }
 0x2aa   :  { %8358 = vmatpush1.bf16.msra.mxu0 %v17788_v18  ;;  %7498 = vmatprep.subr.bf16.mxu1 %v17799_v20  ;;  %v803_v18 = vld [vmem:[%s28986_s1 + $0x1818] sm:$0xff] }
 0x2ab   :  { %8359 = vmatprep.subr.bf16.mxu0 %v17813_v26  ;;  %v815_v20 = vld [vmem:[%s28986_s1 + $0x1878] sm:$0xff]  ;;  %v822_v26 = vld [vmem:[%s28986_s1 + $0x18b0] sm:$0xff] }
 0x2ac   :  { %v17981_v34 = vcombine.high %v810_v23, %v822_v26  ;;  %v17966_v37 = vcombine.low %v803_v18, %v815_v20  ;;  %v17980_v38 = vcombine.low %v810_v23, %v822_v26  ;;  %v947_v23 = vld [vmem:[%s28986_s1 + $0x1c98] sm:$0xff]  ;;  %v954_v26 = vld [vmem:[%s28986_s1 + $0x1cd0] sm:$0xff] }
 0x2ad   :  { %7499 = vmatpush1.bf16.msra.mxu1 %v17798_v29  ;;  %v17967_v29 = vcombine.high %v803_v18, %v815_v20  ;;  %v18076_v18 = vcombine.low %v906_v60, %v918_v0  ;;  %v18087_v20 = vcombine.high %v923_v8, %v935_v9 }
 0x2ae   :  { %8360 = vmatpush1.bf16.msra.mxu0 %v17812_v30  ;;  %7500 = vmatprep.subr.bf16.mxu1 %v17823_v31  ;;  %v827_v30 = vld [vmem:[%s28986_s1 + $0x18d8] sm:$0xff] }
 0x2af   :  { %8361 = vmatprep.subr.bf16.mxu0 %v17837_v35  ;;  %v839_v31 = vld [vmem:[%s28986_s1 + $0x1938] sm:$0xff]  ;;  %v846_v35 = vld [vmem:[%s28986_s1 + $0x1970] sm:$0xff] }
 0x2b0   :  { %v18005_v42 = vcombine.high %v834_v33, %v846_v35  ;;  %v17990_v45 = vcombine.low %v827_v30, %v839_v31  ;;  %v18004_v46 = vcombine.low %v834_v33, %v846_v35  ;;  %v983_v35 = vld [vmem:[%s28986_s1 + $0x1db8] sm:$0xff] }
 0x2b1   :  { %7501 = vmatpush1.bf16.msra.mxu1 %v17822_v39  ;;  %v17991_v39 = vcombine.high %v827_v30, %v839_v31  ;;  %v18086_v30 = vcombine.low %v923_v8, %v935_v9  ;;  %v1062_v9 = vld [vmem:[%s28986_s1 + $0x2030] sm:$0xff] }
 0x2b2   :  { %8362 = vmatpush1.bf16.msra.mxu0 %v17836_v40  ;;  %7502 = vmatprep.subr.bf16.mxu1 %v17847_v41  ;;  %v851_v40 = vld [vmem:[%s28986_s1 + $0x1998] sm:$0xff] }
 0x2b3   :  { %8363 = vmatprep.subr.bf16.mxu0 %v17861_v44  ;;  %v863_v41 = vld [vmem:[%s28986_s1 + $0x19f8] sm:$0xff]  ;;  %v870_v44 = vld [vmem:[%s28986_s1 + $0x1a30] sm:$0xff] }
 0x2b4   :  { %v18029_v51 = vcombine.high %v858_v43, %v870_v44  ;;  %v18014_v54 = vcombine.low %v851_v40, %v863_v41 }
 0x2b5   :  { %7503 = vmatpush1.bf16.msra.mxu1 %v17846_v47  ;;  %v18015_v47 = vcombine.high %v851_v40, %v863_v41  ;;  %v990_v40 = vld [vmem:[%s28986_s1 + $0x1df0] sm:$0xff] }
 0x2b6   :  { %8364 = vmatpush1.bf16.msra.mxu0 %v17860_v48  ;;  %7504 = vmatprep.subr.bf16.mxu1 %v17871_v49  ;;  %v875_v48 = vld [vmem:[%s28986_s1 + $0x1a58] sm:$0xff] }
 0x2b7   :  { %8365 = vmatprep.subr.bf16.mxu0 %v17885_v52  ;;  %v887_v49 = vld [vmem:[%s28986_s1 + $0x1ab8] sm:$0xff]  ;;  %v882_v52 = vld [vmem:[%s28986_s1 + $0x1a90] sm:$0xff] }
 0x2b8   :  { %v18053_v63 = vcombine.high %v882_v52, %v894_v53 }
 0x2b9   :  { %7505 = vmatpush1.bf16.msra.mxu1 %v17870_v55  ;;  %v18028_v55 = vcombine.low %v858_v43, %v870_v44  ;;  %v995_v44 = vld [vmem:[%s28986_s1 + $0x1e18] sm:$0xff] }
 0x2ba   :  { %8366 = vmatpush1.bf16.msra.mxu0 %v17884_v56  ;;  %7506 = vmatprep.subr.bf16.mxu1 %v17895_v58  ;;  %v18039_v56 = vcombine.high %v875_v48, %v887_v49  ;;  %v899_v58 = vld [vmem:[%s28986_s1 + $0x1b18] sm:$0xff] }
 0x2bb   :  { %8367 = vmatprep.subr.bf16.mxu0 %v17909_v62  ;;  %v23827_v62 = vshrl.u32 %v1190_v50, 7  ;;  %v18063_v6 = vcombine.high %v899_v58, %v911_v59 }
 0x2bd   :  { %7507 = vmatpush1.bf16.msra.mxu1 %v17894_v2  ;;  %v18038_v2 = vcombine.low %v875_v48, %v887_v49  ;;  %v23847_v13 = vsub.s32 1, %v23827_v62  ;;  %v1014_v48 = vld [vmem:[%s28986_s1 + $0x1eb0] sm:$0xff] }
 0x2be   :  { %8368 = vmatpush1.bf16.msra.mxu0 %v17908_v3  ;;  %7508 = vmatprep.subr.bf16.mxu1 %v17919_v5  ;;  %v23835_v3 = vld [vmem:[%s28989_s2] sm:$0xff]  ;;  %v18052_v5 = vcombine.low %v882_v52, %v894_v53  ;;  %v1019_v52 = vld [vmem:[%s28986_s1 + $0x1ed8] sm:$0xff] }
 0x2bf   :  { %8369 = vmatprep.subr.bf16.mxu0 %v17933_v10  ;;  %v930_v10 = vld [vmem:[%s28986_s1 + $0x1c10] sm:$0xff]  ;;  %v1031_v53 = vld [vmem:[%s28986_s1 + $0x1f38] sm:$0xff] }
 0x2c1   :  { %7509 = vmatpush1.bf16.msra.mxu1 %v17918_v14  ;;  %v18077_v14 = vcombine.high %v906_v60, %v918_v0  ;;  %v1043_v0 = vld [vmem:[%s28986_s1 + $0x1f98] sm:$0xff] }
 0x2c2   :  { %8370 = vmatpush1.bf16.msra.mxu0 %v17932_v15  ;;  %7510 = vmatprep.subr.bf16.mxu1 %v17943_v17  ;;  %v942_v15 = vld [vmem:[%s28986_s1 + $0x1c70] sm:$0xff]  ;;  %v18062_v17 = vcombine.low %v899_v58, %v911_v59 }
 0x2c3   :  { %8371 = vmatprep.subr.bf16.mxu0 %v17957_v25  ;;  %v959_v25 = vld [vmem:[%s28986_s1 + $0x1cf8] sm:$0xff]  ;;  %v18100_v31 = vcombine.low %v930_v10, %v942_v15  ;;  %v1038_v58 = vld [vmem:[%s28986_s1 + $0x1f70] sm:$0xff] }
 0x2c4   :  { %v18111_v33 = vcombine.high %v947_v23, %v959_v25  ;;  %v18110_v41 = vcombine.low %v947_v23, %v959_v25 }
 0x2c5   :  { %7511 = vmatpush1.bf16.msra.mxu1 %v17942_v27  ;;  %v1197_v27 = vrot.slane %v23835_v3, %v23847_v13 }
 0x2c6   :  { %8372 = vmatpush1.bf16.msra.mxu0 %v17956_v28  ;;  %7521 = vmatprep.subr.bf16.mxu1 %v17967_v29  ;;  %v18101_v28 = vcombine.high %v930_v10, %v942_v15  ;;  %v966_v29 = vld [vmem:[%s28986_s1 + $0x1d30] sm:$0xff]  ;;  %v18182_v10 = vcombine.low %v1019_v52, %v1031_v53 }
 0x2c7   :  { %8382 = vmatprep.subr.bf16.mxu0 %v17981_v34  ;;  %v971_v34 = vld [vmem:[%s28986_s1 + $0x1d58] sm:$0xff] }
 0x2c8   :  { %7513 = vmatmul.mubr.bf16.vlgmr.msra.gmra.mrb[12].mxu1 %v21992_v21  ;;  %v18135_v43 = vcombine.high %v971_v34, %v983_v35  ;;  %v18134_v49 = vcombine.low %v971_v34, %v983_v35  ;;  %v1110_v35 = vld [vmem:[%s28986_s1 + $0x21b0] sm:$0xff] }
 0x2c9   :  { %7522 = vmatpush1.bf16.msra.mxu1 %v17966_v37  ;;  %8374 = vmatmul.mubr.bf16.vlgmr.msra.gmra.mrb[12].mxu0 %v21992_v21  ;;  %v978_v37 = vld [vmem:[%s28986_s1 + $0x1d90] sm:$0xff] }
 0x2ca   :  { %8383 = vmatpush1.bf16.msra.mxu0 %v17980_v38  ;;  %7523 = vmatprep.subr.bf16.mxu1 %v17991_v39  ;;  %v23876_v38 = vadd.f32 %v22866_v1, %v1197_v27  ;;  %v18125_v39 = vcombine.high %v954_v26, %v966_v29  ;;  %v1007_v1 = vld [vmem:[%s28986_s1 + $0x1e78] sm:$0xff]  ;;  %v18148_v50 = vcombine.low %v978_v37, %v990_v40 }
 0x2cb   :  { %8384 = vmatprep.subr.bf16.mxu0 %v18005_v42  ;;  %7553 = vmatprep.mubr.bf16.mxu1 %v22009_v32  ;;  %v18124_v42 = vcombine.low %v954_v26, %v966_v29  ;;  %v18158_v59 = vcombine.low %v995_v44, %v1007_v1  ;;  %v1086_v26 = vld [vmem:[%s28986_s1 + $0x20f0] sm:$0xff] }
 0x2cc   :  { %8414 = vmatprep.mubr.bf16.mxu0 %v22009_v32 }
 0x2cd   :  { %7524 = vmatpush1.bf16.msra.mxu1 %v17990_v45  ;;  %v1002_v45 = vld [vmem:[%s28986_s1 + $0x1e50] sm:$0xff] }
 0x2ce   :  { %8385 = vmatpush1.bf16.msra.mxu0 %v18004_v46  ;;  %7525 = vmatprep.subr.bf16.mxu1 %v18015_v47  ;;  %v8547_v46 = vmul.f32 %v23876_v38, %v23876_v38  ;;  %v18149_v47 = vcombine.high %v978_v37, %v990_v40  ;;  %v18172_v60 = vcombine.low %v1002_v45, %v1014_v48 }
 0x2cf   :  { %8386 = vmatprep.subr.bf16.mxu0 %v18029_v51  ;;  %v18159_v51 = vcombine.high %v995_v44, %v1007_v1  ;;  %v1134_v1 = vld [vmem:[%s28986_s1 + $0x2270] sm:$0xff] }
 0x2d1   :  { %7526 = vmatpush1.bf16.msra.mxu1 %v18014_v54  ;;  %v1026_v54 = vld [vmem:[%s28986_s1 + $0x1f10] sm:$0xff] }
 0x2d2   :  { %8387 = vmatpush1.bf16.msra.mxu0 %v18028_v55  ;;  %7527 = vmatprep.subr.bf16.mxu1 %v18039_v56  ;;  %v8571_v55 = vmul.f32 0.035677407, %v8547_v46  ;;  %v18173_v56 = vcombine.high %v1002_v45, %v1014_v48  ;;  %v18197_v8 = vcombine.high %v1026_v54, %v1038_v58  ;;  %v1139_v48 = vld [vmem:[%s28986_s1 + $0x2298] sm:$0xff] }
 0x2d3   :  { %8388 = vmatprep.subr.bf16.mxu0 %v18053_v63  ;;  %v18183_v63 = vcombine.high %v1019_v52, %v1031_v53  ;;  %v1158_v52 = vld [vmem:[%s28986_s1 + $0x2330] sm:$0xff] }
 0x2d5   :  { %7528 = vmatpush1.bf16.msra.mxu1 %v18038_v2  ;;  %v1055_v2 = vld [vmem:[%s28986_s1 + $0x1ff8] sm:$0xff] }
 0x2d6   :  { %8389 = vmatpush1.bf16.msra.mxu0 %v18052_v5  ;;  %7529 = vmatprep.subr.bf16.mxu1 %v18063_v6  ;;  %v1050_v5 = vld [vmem:[%s28986_s1 + $0x1fd0] sm:$0xff]  ;;  %v8595_v6 = vadd.f32 0.7978846, %v8571_v55  ;;  %v18207_v15 = vcombine.high %v1043_v0, %v1055_v2  ;;  %v18206_v27 = vcombine.low %v1043_v0, %v1055_v2 }
 0x2d7   :  { %8390 = vmatprep.subr.bf16.mxu0 %v18077_v14  ;;  %v18196_v14 = vcombine.low %v1026_v54, %v1038_v58  ;;  %v18221_v25 = vcombine.high %v1050_v5, %v1062_v9  ;;  %v1163_v58 = vld [vmem:[%s28986_s1 + $0x2358] sm:$0xff]  ;;  %v1182_v0 = vld [vmem:[%s28986_s1 + $0x23f0] sm:$0xff] }
 0x2d8   :  { %v8619_v23 = vmul.f32 %v23876_v38, %v8595_v6 }
 0x2d9   :  { %7530 = vmatpush1.bf16.msra.mxu1 %v18062_v17  ;;  %v1067_v17 = vld [vmem:[%s28986_s1 + $0x2058] sm:$0xff] }
 0x2da   :  { %8391 = vmatpush1.bf16.msra.mxu0 %v18076_v18  ;;  %7531 = vmatprep.subr.bf16.mxu1 %v18087_v20  ;;  %v1079_v18 = vld [vmem:[%s28986_s1 + $0x20b8] sm:$0xff]  ;;  %v1074_v20 = vld [vmem:[%s28986_s1 + $0x2090] sm:$0xff]  ;;  %21482 = vtanh.f32 %v8619_v23 }
 0x2db   :  { %8392 = vmatprep.subr.bf16.mxu0 %v18101_v28  ;;  %v18220_v28 = vcombine.low %v1050_v5, %v1062_v9  ;;  %v18231_v29 = vcombine.high %v1067_v17, %v1079_v18  ;;  %v18245_v34 = vcombine.high %v1074_v20, %v1086_v26  ;;  %v18230_v37 = vcombine.low %v1067_v17, %v1079_v18  ;;  %v37_v9 = vld [vmem:[%s28986_s1 + $0x28] sm:$0xff]  ;;  %v19756_v23 = vld [vmem:[%s28988_s3 + $0x4] ss:$24 sps:$4 sm:$0xff]  }
 0x2dd   :  { %7532 = vmatpush1.bf16.msra.mxu1 %v18086_v30  ;;  %v1091_v30 = vld [vmem:[%s28986_s1 + $0x2118] sm:$0xff] }
 0x2de   :  { %8393 = vmatpush1.bf16.msra.mxu0 %v18100_v31  ;;  %7533 = vmatprep.subr.bf16.mxu1 %v18111_v33  ;;  %v1103_v31 = vld [vmem:[%s28986_s1 + $0x2178] sm:$0xff]  ;;  %v1098_v33 = vld [vmem:[%s28986_s1 + $0x2150] sm:$0xff] }
 0x2df   :  { %8394 = vmatprep.subr.bf16.mxu0 %v18125_v39  ;;  %v18244_v39 = vcombine.low %v1074_v20, %v1086_v26  ;;  %v18255_v40 = vcombine.high %v1091_v30, %v1103_v31  ;;  %v18269_v44 = vcombine.high %v1098_v33, %v1110_v35  ;;  %v18254_v45 = vcombine.low %v1091_v30, %v1103_v31  ;;  %v73_v26 = vld [vmem:[%s28986_s1 + $0x148] sm:$0xff] }
 0x2e0   :  { %v18268_v46 = vcombine.low %v1098_v33, %v1110_v35  ;;  %v19759_v30 = vld [vmem:[%s28988_s3 + $0x34] ss:$24 sps:$4 sm:$0xff]  }
 0x2e1   :  { %7534 = vmatpush1.bf16.msra.mxu1 %v18110_v41  ;;  %v1115_v41 = vld [vmem:[%s28986_s1 + $0x21d8] sm:$0xff]  ;;  %v85_v31 = vld [vmem:[%s28986_s1 + $0x1a8] sm:$0xff] }
 0x2e2   :  { %8395 = vmatpush1.bf16.msra.mxu0 %v18124_v42  ;;  %7535 = vmatprep.subr.bf16.mxu1 %v18135_v43  ;;  %v1127_v42 = vld [vmem:[%s28986_s1 + $0x2238] sm:$0xff]  ;;  %v1122_v43 = vld [vmem:[%s28986_s1 + $0x2210] sm:$0xff] }
 0x2e3   :  { %8396 = vmatprep.subr.bf16.mxu0 %v18149_v47  ;;  %v18279_v47 = vcombine.high %v1115_v41, %v1127_v42  ;;  %v18278_v54 = vcombine.low %v1115_v41, %v1127_v42  ;;  %v18292_v55 = vcombine.low %v1122_v43, %v1134_v1  ;;  %v109_v41 = vld [vmem:[%s28986_s1 + $0x268] sm:$0xff] }
 0x2e4   :  { %v21483_v53 = vpop.eup %21482  ;;  %v121_v42 = vld [vmem:[%s28986_s1 + $0x2c8] sm:$0xff] }
 0x2e5   :  { %7536 = vmatpush1.bf16.msra.mxu1 %v18134_v49  ;;  %v1151_v49 = vld [vmem:[%s28986_s1 + $0x22f8] sm:$0xff]  ;;  %v8667_v2 = vmul.f32 0.5, %v21483_v53  ;;  %v157_v53 = vld [vmem:[%s28986_s1 + $0x3e8] sm:$0xff] }
 0x2e6   :  { %8397 = vmatpush1.bf16.msra.mxu0 %v18148_v50  ;;  %7537 = vmatprep.subr.bf16.mxu1 %v18159_v51  ;;  %v18293_v50 = vcombine.high %v1122_v43, %v1134_v1  ;;  %v1146_v51 = vld [vmem:[%s28986_s1 + $0x22d0] sm:$0xff]  ;;  %v18302_v5 = vcombine.low %v1139_v48, %v1151_v49  ;;  %v17275_v1 = vcombine.high %v109_v41, %v121_v42 }
 0x2e7   :  { %8398 = vmatprep.subr.bf16.mxu0 %v18173_v56  ;;  %v18303_v56 = vcombine.high %v1139_v48, %v1151_v49  ;;  %v18316_v6 = vcombine.low %v1146_v51, %v1158_v52  ;;  %v24039_v48 = vsub.s32 0, %v23827_v62  ;;  %v17274_v49 = vcombine.low %v109_v41, %v121_v42  ;;  %v19775_v41 = vld [vmem:[%s28988_s3 + $0x150] ss:$24 sps:$4 sm:$0xff]  }
 0x2e9   :  { %7538 = vmatpush1.bf16.msra.mxu1 %v18158_v59  ;;  %v1175_v59 = vld [vmem:[%s28986_s1 + $0x23b8] sm:$0xff] }
 0x2ea   :  { %8399 = vmatpush1.bf16.msra.mxu0 %v18172_v60  ;;  %7539 = vmatprep.subr.bf16.mxu1 %v18183_v63  ;;  %v1170_v60 = vld [vmem:[%s28986_s1 + $0x2390] sm:$0xff]  ;;  %v18317_v63 = vcombine.high %v1146_v51, %v1158_v52  ;;  %v18326_v17 = vcombine.low %v1163_v58, %v1175_v59  ;;  %v19768_v52 = vld [vmem:[%s28988_s3 + $0xc4] ss:$24 sps:$4 sm:$0xff]  }
 0x2eb   :  { %8400 = vmatprep.subr.bf16.mxu0 %v18197_v8  ;;  %v18327_v8 = vcombine.high %v1163_v58, %v1175_v59  ;;  %v18340_v18 = vcombine.low %v1170_v60, %v1182_v0  ;;  %v19766_v59 = vld [vmem:[%s28988_s3 + $0xc0] ss:$24 sps:$4 sm:$0xff]  }
 0x2ed   :  { %7540 = vmatpush1.bf16.msra.mxu1 %v18182_v10  ;;  %v18341_v10 = vcombine.high %v1170_v60, %v1182_v0  ;;  %v181_v0 = vld [vmem:[%s28986_s1 + $0x4a8] sm:$0xff] }
 0x2ee   :  { %8401 = vmatpush1.bf16.msra.mxu0 %v18196_v14  ;;  %7541 = vmatprep.subr.bf16.mxu1 %v18207_v15  ;;  %v49_v14 = vld [vmem:[%s28986_s1 + $0x88] sm:$0xff]  ;;  %v8691_v15 = vadd.f32 0.5, %v8667_v2 }
 0x2ef   :  { %8402 = vmatprep.subr.bf16.mxu0 %v18221_v25  ;;  %v17203_v20 = vcombine.high %v37_v9, %v49_v14  ;;  %v61_v25 = vld [vmem:[%s28986_s1 + $0xe8] sm:$0xff] }
 0x2f0   :  { %v17227_v33 = vcombine.high %v61_v25, %v73_v26  ;;  %v17226_v35 = vcombine.low %v61_v25, %v73_v26 }
 0x2f1   :  { %7542 = vmatpush1.bf16.msra.mxu1 %v18206_v27  ;;  %v19754_v27 = vld [vmem:[%s28988_s3] ss:$24 sps:$4 sm:$0xff]  }
 0x2f2   :  { %8403 = vmatpush1.bf16.msra.mxu0 %v18220_v28  ;;  %7543 = vmatprep.subr.bf16.mxu1 %v18231_v29  ;;  %v8715_v28 = vmul.f32 %v23876_v38, %v8691_v15  ;;  %v17202_v29 = vcombine.low %v37_v9, %v49_v14  ;;  %v19769_v9 = vld [vmem:[%s28988_s3 + $0xf0] ss:$24 sps:$4 sm:$0xff]  }
 0x2f3   :  { %8404 = vmatprep.subr.bf16.mxu0 %v18245_v34  ;;  %v97_v34 = vld [vmem:[%s28986_s1 + $0x208] sm:$0xff] }
 0x2f4   :  { %v24009_v38 = vpack.c.bf16 %v8715_v28, %v8715_v28  ;;  %v17250_v43 = vcombine.low %v85_v31, %v97_v34  ;;  %v205_v14 = vld [vmem:[%s28986_s1 + $0x568] sm:$0xff] }
 0x2f5   :  { %7544 = vmatpush1.bf16.msra.mxu1 %v18230_v37  ;;  %v19757_v37 = vld [vmem:[%s28988_s3 + $0x30] ss:$24 sps:$4 sm:$0xff]  }
 0x2f6   :  { %8405 = vmatpush1.bf16.msra.mxu0 %v18244_v39  ;;  %7545 = vmatprep.subr.bf16.mxu1 %v18255_v40  ;;  %v17251_v39 = vcombine.high %v85_v31, %v97_v34  ;;  %v19762_v40 = vld [vmem:[%s28988_s3 + $0x64] ss:$24 sps:$4 sm:$0xff]   ;;  %v229_v31 = vld [vmem:[%s28986_s1 + $0x628] sm:$0xff] }
 0x2f7   :  { %8406 = vmatprep.subr.bf16.mxu0 %v18269_v44  ;;  %v19760_v44 = vld [vmem:[%s28988_s3 + $0x60] ss:$24 sps:$4 sm:$0xff]  }
 0x2f9   :  { %7546 = vmatpush1.bf16.msra.mxu1 %v18254_v45  ;;  %v19765_v45 = vld [vmem:[%s28988_s3 + $0x94] ss:$24 sps:$4 sm:$0xff]  }
 0x2fa   :  { %8407 = vmatpush1.bf16.msra.mxu0 %v18268_v46  ;;  %7547 = vmatprep.subr.bf16.mxu1 %v18279_v47  ;;  %v133_v46 = vld [vmem:[%s28986_s1 + $0x328] sm:$0xff] }
 0x2fb   :  { %8408 = vmatprep.subr.bf16.mxu0 %v18293_v50  ;;  %v145_v47 = vld [vmem:[%s28986_s1 + $0x388] sm:$0xff] }
 0x2fc   :  { %v19763_v50 = vld [vmem:[%s28988_s3 + $0x90] ss:$24 sps:$4 sm:$0xff]   ;;  %v17299_v51 = vcombine.high %v133_v46, %v145_v47  ;;  %v17298_v58 = vcombine.low %v133_v46, %v145_v47 }
 0x2fd   :  { %7548 = vmatpush1.bf16.msra.mxu1 %v18278_v54  ;;  %v24051_v54 = vsub.s32 3, %v23827_v62 }
 0x2fe   :  { %8409 = vmatpush1.bf16.msra.mxu0 %v18292_v55  ;;  %7549 = vmatprep.subr.bf16.mxu1 %v18303_v56  ;;  %v169_v55 = vld [vmem:[%s28986_s1 + $0x448] sm:$0xff]  ;;  %v1193_v56 = vrot.slane %v23835_v3, %v24039_v48 }
 0x2ff   :  { %8410 = vmatprep.subr.bf16.mxu0 %v18317_v63  ;;  %v17323_v60 = vcombine.high %v157_v53, %v169_v55  ;;  %v19771_v63 = vld [vmem:[%s28988_s3 + $0xf4] ss:$24 sps:$4 sm:$0xff]   ;;  %v1205_v2 = vrot.slane %v23835_v3, %v24051_v54  ;;  %v19774_v3 = vld [vmem:[%s28988_s3 + $0x124] ss:$24 sps:$4 sm:$0xff]  }
 0x301   :  { %7550 = vmatpush1.bf16.msra.mxu1 %v18302_v5  ;;  %v193_v5 = vld [vmem:[%s28986_s1 + $0x508] sm:$0xff] }
 0x302   :  { %8411 = vmatpush1.bf16.msra.mxu0 %v18316_v6  ;;  %7551 = vmatprep.subr.bf16.mxu1 %v18327_v8  ;;  %v24073_v6 = vadd.f32 %v22858_v61, %v1193_v56  ;;  %v17322_v8 = vcombine.low %v157_v53, %v169_v55  ;;  %v24085_v61 = vadd.f32 %v23462_v16, %v1205_v2  ;;  %v289_v55 = vld [vmem:[%s28986_s1 + $0x808] sm:$0xff] }
 0x303   :  { %8412 = vmatprep.subr.bf16.mxu0 %v18341_v10  ;;  %v17347_v10 = vcombine.high %v181_v0, %v193_v5  ;;  %v17346_v26 = vcombine.low %v181_v0, %v193_v5  ;;  %v301_v0 = vld [vmem:[%s28986_s1 + $0x868] sm:$0xff] }
 0x304   :  { %v8546_v25 = vmul.f32 %v24073_v6, %v24073_v6  ;;  %v8549_v34 = vmul.f32 %v24085_v61, %v24085_v61  ;;  %v313_v5 = vld [vmem:[%s28986_s1 + $0x8c8] sm:$0xff] }
 0x305   :  { %7552 = vmatpush1.bf16.msra.mxu1 %v18326_v17  ;;  %v217_v17 = vld [vmem:[%s28986_s1 + $0x5c8] sm:$0xff] }
 0x306   :  { %8413 = vmatpush1.bf16.msra.mxu0 %v18340_v18  ;;  %7685 = vmatprep.subr.bf16.mxu1 %v17203_v20  ;;  %v19772_v20 = vld [vmem:[%s28988_s3 + $0x120] ss:$24 sps:$4 sm:$0xff]  }
 0x307   :  { %15706 = vmatprep.subr.bf16.mxu0 %v19756_v23 }
 0x308   :  { %7554 = vmatmul.mubr.bf16.vlgmr.msra.gmra.mrb[12].mxu1 %v22198_v36 }
 0x309   :  { %8415 = vmatmul.mubr.bf16.vlgmr.msra.gmra.mrb[12].mxu0 %v22198_v36  ;;  %7686 = vmatpush1.bf16.msra.mxu1 %v17202_v29  ;;  %v17371_v29 = vcombine.high %v205_v14, %v217_v17 }
 0x30a   :  { %15707 = vmatpush1.bf16.msra.mxu0 %v19754_v27  ;;  %15738 = vmatprep.mubr.bf16.mxu0 %v24009_v38 }
 0x30b   :  { %7687 = vmatprep.subr.bf16.mxu1 %v17227_v33  ;;  %15708 = vmatprep.subr.bf16.mxu0 %v19759_v30  ;;  %v19777_v30 = vld [vmem:[%s28988_s3 + $0x154] ss:$24 sps:$4 sm:$0xff]  }
 0x30c   :  { %7717 = vmatprep.mubr.bf16.mxu1 %v21659_v57 }
 0x30d   :  { %7688 = vmatpush1.bf16.msra.mxu1 %v17226_v35  ;;  %v241_v35 = vld [vmem:[%s28986_s1 + $0x688] sm:$0xff] }
 0x30e   :  { %15709 = vmatpush1.bf16.msra.mxu0 %v19757_v37  ;;  %7689 = vmatprep.subr.bf16.mxu1 %v17251_v39  ;;  %v8570_v39 = vmul.f32 0.035677407, %v8546_v25  ;;  %v17395_v42 = vcombine.high %v229_v31, %v241_v35  ;;  %v17394_v47 = vcombine.low %v229_v31, %v241_v35  ;;  %v19787_v25 = vld [vmem:[%s28988_s3 + $0x210] ss:$24 sps:$4 sm:$0xff]   ;;  %v19790_v31 = vld [vmem:[%s28988_s3 + $0x240] ss:$24 sps:$4 sm:$0xff]  }
 0x30f   :  { %15710 = vmatprep.subr.bf16.mxu0 %v19762_v40  ;;  %v17370_v40 = vcombine.low %v205_v14, %v217_v17  ;;  %v325_v14 = vld [vmem:[%s28986_s1 + $0x928] sm:$0xff] }
 0x310   :  { %v8594_v46 = vadd.f32 0.7978846, %v8570_v39  ;;  %v337_v17 = vld [vmem:[%s28986_s1 + $0x988] sm:$0xff] }
 0x311   :  { %7690 = vmatpush1.bf16.msra.mxu1 %v17250_v43  ;;  %v8573_v43 = vmul.f32 0.035677407, %v8549_v34  ;;  %v19795_v34 = vld [vmem:[%s28988_s3 + $0x274] ss:$24 sps:$4 sm:$0xff]  }
 0x312   :  { %15711 = vmatpush1.bf16.msra.mxu0 %v19760_v44  ;;  %7691 = vmatprep.subr.bf16.mxu1 %v17275_v1  ;;  %v19780_v44 = vld [vmem:[%s28988_s3 + $0x184] ss:$24 sps:$4 sm:$0xff]   ;;  %v253_v1 = vld [vmem:[%s28986_s1 + $0x6e8] sm:$0xff] }
 0x313   :  { %15712 = vmatprep.subr.bf16.mxu0 %v19765_v45  ;;  %v265_v45 = vld [vmem:[%s28986_s1 + $0x748] sm:$0xff]  ;;  %v8597_v53 = vadd.f32 0.7978846, %v8573_v43 }
 0x314   :  { %v17418_v56 = vcombine.low %v253_v1, %v265_v45  ;;  %v373_v35 = vld [vmem:[%s28986_s1 + $0xaa8] sm:$0xff] }
 0x315   :  { %7692 = vmatpush1.bf16.msra.mxu1 %v17274_v49  ;;  %v19778_v49 = vld [vmem:[%s28988_s3 + $0x180] ss:$24 sps:$4 sm:$0xff]   ;;  %v8621_v2 = vmul.f32 %v24085_v61, %v8597_v53  ;;  %v421_v53 = vld [vmem:[%s28986_s1 + $0xc28] sm:$0xff] }
 0x316   :  { %15713 = vmatpush1.bf16.msra.mxu0 %v19763_v50  ;;  %7693 = vmatprep.subr.bf16.mxu1 %v17299_v51  ;;  %v17419_v50 = vcombine.high %v253_v1, %v265_v45  ;;  %v19783_v51 = vld [vmem:[%s28988_s3 + $0x1b4] ss:$24 sps:$4 sm:$0xff]  }
 0x317   :  { %15714 = vmatprep.subr.bf16.mxu0 %v19768_v52  ;;  %v277_v52 = vld [vmem:[%s28986_s1 + $0x7a8] sm:$0xff] }
 0x318   :  { %v397_v1 = vld [vmem:[%s28986_s1 + $0xb68] sm:$0xff] }
 0x319   :  { %7694 = vmatpush1.bf16.msra.mxu1 %v17298_v58  ;;  %v8618_v58 = vmul.f32 %v24073_v6, %v8594_v46  ;;  %v409_v46 = vld [vmem:[%s28986_s1 + $0xbc8] sm:$0xff] }
 0x31a   :  { %15715 = vmatpush1.bf16.msra.mxu0 %v19766_v59  ;;  %7695 = vmatprep.subr.bf16.mxu1 %v17323_v60  ;;  %v19781_v59 = vld [vmem:[%s28988_s3 + $0x1b0] ss:$24 sps:$4 sm:$0xff]   ;;  %v17443_v60 = vcombine.high %v277_v52, %v289_v55 }
 0x31b   :  { %v24087_v15 = vpop.f32.mrb[8].mxu1  ;;  %15716 = vmatprep.subr.bf16.mxu0 %v19771_v63  ;;  %v19786_v63 = vld [vmem:[%s28988_s3 + $0x1e4] ss:$24 sps:$4 sm:$0xff]   ;;  %21484 = vtanh.f32 %v8618_v58 }
 0x31c   :  { %v24092_v18 = vpop.f32.mrb[9].mxu1  ;;  %v24097_v23 = vpop.f32.mrb[8].mxu0  ;;  %21486 = vtanh.f32 %v8621_v2  ;;  %v445_v2 = vld [vmem:[%s28986_s1 + $0xce8] sm:$0xff] }
 0x31d   :  { %v7436_v16 = vpop.f32.mrb[10].mxu1  ;;  %7696 = vmatpush1.bf16.msra.mxu1 %v17322_v8  ;;  %v24101_v27 = vpop.f32.mrb[9].mxu0  ;;  %v17442_v8 = vcombine.low %v277_v52, %v289_v55  ;;  %v19801_v52 = vld [vmem:[%s28988_s3 + $0x2d4] ss:$24 sps:$4 sm:$0xff]  }
 0x31e   :  { %15717 = vmatpush1.bf16.msra.mxu0 %v19769_v9  ;;  %v7437_v28 = vpop.f32.mrb[11].mxu1  ;;  %7697 = vmatprep.subr.bf16.mxu1 %v17347_v10  ;;  %v8174_v33 = vpop.f32.mrb[10].mxu0  ;;  %v19784_v9 = vld [vmem:[%s28988_s3 + $0x1e0] ss:$24 sps:$4 sm:$0xff]   ;;  %v17467_v10 = vcombine.high %v301_v0, %v313_v5  ;;  %v17491_v16 = vcombine.high %v325_v14, %v337_v17 }
 0x31f   :  { %15718 = vmatprep.subr.bf16.mxu0 %v19774_v3  ;;  %v8175_v37 = vpop.f32.mrb[11].mxu0  ;;  %v19789_v3 = vld [vmem:[%s28988_s3 + $0x214] ss:$24 sps:$4 sm:$0xff]  }
 0x320   :  { %v349_v28 = vld [vmem:[%s28986_s1 + $0x9e8] sm:$0xff] }
 0x321   :  { %7698 = vmatpush1.bf16.msra.mxu1 %v17346_v26  ;;  %v19792_v26 = vld [vmem:[%s28988_s3 + $0x244] ss:$24 sps:$4 sm:$0xff]   ;;  %v385_v37 = vld [vmem:[%s28986_s1 + $0xb08] sm:$0xff] }
 0x322   :  { %15719 = vmatpush1.bf16.msra.mxu0 %v19772_v20  ;;  %7699 = vmatprep.subr.bf16.mxu1 %v17371_v29  ;;  %v17466_v20 = vcombine.low %v301_v0, %v313_v5  ;;  %v361_v29 = vld [vmem:[%s28986_s1 + $0xa48] sm:$0xff]  ;;  %v17539_v43 = vcombine.high %v373_v35, %v385_v37  ;;  %v19804_v0 = vld [vmem:[%s28988_s3 + $0x304] ss:$24 sps:$4 sm:$0xff]  }
 0x323   :  { %15720 = vmatprep.subr.bf16.mxu0 %v19777_v30  ;;  %v17490_v30 = vcombine.low %v325_v14, %v337_v17  ;;  %v17515_v33 = vcombine.high %v349_v28, %v361_v29  ;;  %v19807_v14 = vld [vmem:[%s28988_s3 + $0x334] ss:$24 sps:$4 sm:$0xff]  }
 0x325   :  { %7700 = vmatpush1.bf16.msra.mxu1 %v17370_v40  ;;  %v21485_v39 = vpop.eup %21484 }
 0x326   :  { %15721 = vmatpush1.bf16.msra.mxu0 %v19775_v41  ;;  %7701 = vmatprep.subr.bf16.mxu1 %v17395_v42  ;;  %v21487_v40 = vpop.eup %21486  ;;  %v17514_v41 = vcombine.low %v349_v28, %v361_v29  ;;  %v19793_v42 = vld [vmem:[%s28988_s3 + $0x270] ss:$24 sps:$4 sm:$0xff]   ;;  %v8666_v45 = vmul.f32 0.5, %v21485_v39  ;;  %v19810_v29 = vld [vmem:[%s28988_s3 + $0x364] ss:$24 sps:$4 sm:$0xff]  }
 0x327   :  { %15722 = vmatprep.subr.bf16.mxu0 %v19780_v44  ;;  %v19798_v44 = vld [vmem:[%s28988_s3 + $0x2a4] ss:$24 sps:$4 sm:$0xff]   ;;  %v517_v39 = vld [vmem:[%s28986_s1 + $0xf28] sm:$0xff] }
 0x328   :  { %v8690_v55 = vadd.f32 0.5, %v8666_v45  ;;  %v541_v45 = vld [vmem:[%s28986_s1 + $0xfe8] sm:$0xff] }
 0x329   :  { %7702 = vmatpush1.bf16.msra.mxu1 %v17394_v47  ;;  %v8669_v47 = vmul.f32 0.5, %v21487_v40  ;;  %v529_v40 = vld [vmem:[%s28986_s1 + $0xf88] sm:$0xff] }
 0x32a   :  { %15723 = vmatpush1.bf16.msra.mxu0 %v19778_v49  ;;  %7703 = vmatprep.subr.bf16.mxu1 %v17419_v50  ;;  %v17538_v49 = vcombine.low %v373_v35, %v385_v37  ;;  %v19796_v50 = vld [vmem:[%s28988_s3 + $0x2a0] ss:$24 sps:$4 sm:$0xff]   ;;  %v8714_v5 = vmul.f32 %v24073_v6, %v8690_v55  ;;  %v469_v6 = vld [vmem:[%s28986_s1 + $0xda8] sm:$0xff] }
 0x32b   :  { %15724 = vmatprep.subr.bf16.mxu0 %v19783_v51  ;;  %v17563_v51 = vcombine.high %v397_v1, %v409_v46  ;;  %v8693_v58 = vadd.f32 0.5, %v8669_v47  ;;  %v19813_v37 = vld [vmem:[%s28988_s3 + $0x394] ss:$24 sps:$4 sm:$0xff]   ;;  %v24286_v47 = vsub.s32 5, %v23827_v62 }
 0x32c   :  { %v24235_v17 = vpack.c.bf16 %v8714_v5, %v8714_v5  ;;  %v19819_v55 = vld [vmem:[%s28988_s3 + $0x3f4] ss:$24 sps:$4 sm:$0xff]   ;;  %v19822_v5 = vld [vmem:[%s28988_s3 + $0x424] ss:$24 sps:$4 sm:$0xff]  }
 0x32d   :  { %7704 = vmatpush1.bf16.msra.mxu1 %v17418_v56  ;;  %v433_v56 = vld [vmem:[%s28986_s1 + $0xc88] sm:$0xff] }
 0x32e   :  { %15725 = vmatpush1.bf16.msra.mxu0 %v19781_v59  ;;  %7705 = vmatprep.subr.bf16.mxu1 %v17443_v60  ;;  %v17562_v59 = vcombine.low %v397_v1, %v409_v46  ;;  %v19799_v60 = vld [vmem:[%s28988_s3 + $0x2d0] ss:$24 sps:$4 sm:$0xff]   ;;  %v19816_v1 = vld [vmem:[%s28988_s3 + $0x3c4] ss:$24 sps:$4 sm:$0xff]  }
 0x32f   :  { %15726 = vmatprep.subr.bf16.mxu0 %v19786_v63  ;;  %v17587_v63 = vcombine.high %v421_v53, %v433_v56  ;;  %v553_v46 = vld [vmem:[%s28986_s1 + $0x1048] sm:$0xff] }
 0x331   :  { %7706 = vmatpush1.bf16.msra.mxu1 %v17442_v8  ;;  %v457_v8 = vld [vmem:[%s28986_s1 + $0xd48] sm:$0xff] }
 0x332   :  { %15727 = vmatpush1.bf16.msra.mxu0 %v19784_v9  ;;  %7707 = vmatprep.subr.bf16.mxu1 %v17467_v10  ;;  %v19802_v9 = vld [vmem:[%s28988_s3 + $0x300] ss:$24 sps:$4 sm:$0xff]   ;;  %v8717_v10 = vmul.f32 %v24085_v61, %v8693_v58  ;;  %v481_v61 = vld [vmem:[%s28986_s1 + $0xe08] sm:$0xff] }
 0x333   :  { %15728 = vmatprep.subr.bf16.mxu0 %v19789_v3  ;;  %v17586_v3 = vcombine.low %v421_v53, %v433_v56  ;;  %v17635_v28 = vcombine.high %v469_v6, %v481_v61  ;;  %v17707_v53 = vcombine.high %v541_v45, %v553_v46  ;;  %v565_v56 = vld [vmem:[%s28986_s1 + $0x10a8] sm:$0xff] }
 0x335   :  { %7708 = vmatpush1.bf16.msra.mxu1 %v17466_v20  ;;  %v17611_v20 = vcombine.high %v445_v2, %v457_v8 }
 0x336   :  { %15729 = vmatpush1.bf16.msra.mxu0 %v19787_v25  ;;  %7709 = vmatprep.subr.bf16.mxu1 %v17491_v16  ;;  %v24241_v25 = vpack.c.bf16 %v8717_v10, %v8717_v10  ;;  %v17610_v16 = vcombine.low %v445_v2, %v457_v8  ;;  %v589_v8 = vld [vmem:[%s28986_s1 + $0x1168] sm:$0xff]  ;;  %v19820_v10 = vld [vmem:[%s28988_s3 + $0x420] ss:$24 sps:$4 sm:$0xff]  }
 0x337   :  { %15730 = vmatprep.subr.bf16.mxu0 %v19792_v26  ;;  %v19805_v26 = vld [vmem:[%s28988_s3 + $0x330] ss:$24 sps:$4 sm:$0xff]  }
 0x339   :  { %7710 = vmatpush1.bf16.msra.mxu1 %v17490_v30  ;;  %v493_v30 = vld [vmem:[%s28986_s1 + $0xe68] sm:$0xff] }
 0x33a   :  { %15731 = vmatpush1.bf16.msra.mxu0 %v19790_v31  ;;  %7711 = vmatprep.subr.bf16.mxu1 %v17515_v33  ;;  %v505_v31 = vld [vmem:[%s28986_s1 + $0xec8] sm:$0xff]  ;;  %v17634_v33 = vcombine.low %v469_v6, %v481_v61 }
 0x33b   :  { %15732 = vmatprep.subr.bf16.mxu0 %v19795_v34  ;;  %v19808_v34 = vld [vmem:[%s28988_s3 + $0x360] ss:$24 sps:$4 sm:$0xff]   ;;  %v17659_v35 = vcombine.high %v493_v30, %v505_v31 }
 0x33d   :  { %7712 = vmatpush1.bf16.msra.mxu1 %v17514_v41  ;;  %v17658_v41 = vcombine.low %v493_v30, %v505_v31  ;;  %v19828_v31 = vld [vmem:[%s28988_s3 + $0x484] ss:$24 sps:$4 sm:$0xff]  }
 0x33e   :  { %15733 = vmatpush1.bf16.msra.mxu0 %v19793_v42  ;;  %7713 = vmatprep.subr.bf16.mxu1 %v17539_v43  ;;  %v24271_v42 = vsub.s32 2, %v23827_v62  ;;  %v19811_v43 = vld [vmem:[%s28988_s3 + $0x390] ss:$24 sps:$4 sm:$0xff]  }
 0x33f   :  { %15734 = vmatprep.subr.bf16.mxu0 %v19798_v44  ;;  %v17683_v44 = vcombine.high %v517_v39, %v529_v40 }
 0x341   :  { %7714 = vmatpush1.bf16.msra.mxu1 %v17538_v49  ;;  %v17682_v49 = vcombine.low %v517_v39, %v529_v40 }
 0x342   :  { %15735 = vmatpush1.bf16.msra.mxu0 %v19796_v50  ;;  %7715 = vmatprep.subr.bf16.mxu1 %v17563_v51  ;;  %v24291_v50 = vld [vmem:[%s28989_s2] sm:$0xff] }
 0x343   :  { %15736 = vmatprep.subr.bf16.mxu0 %v19801_v52  ;;  %v1201_v51 = vrot.slane %v24291_v50, %v24271_v42  ;;  %v19814_v52 = vld [vmem:[%s28988_s3 + $0x3c0] ss:$24 sps:$4 sm:$0xff]   ;;  %v1213_v58 = vrot.slane %v24291_v50, %v24286_v47 }
 0x345   :  { %7716 = vmatpush1.bf16.msra.mxu1 %v17562_v59  ;;  %v577_v59 = vld [vmem:[%s28986_s1 + $0x1108] sm:$0xff] }
 0x346   :  { %15737 = vmatpush1.bf16.msra.mxu0 %v19799_v60  ;;  %7726 = vmatprep.subr.bf16.mxu1 %v17587_v63  ;;  %v19817_v60 = vld [vmem:[%s28988_s3 + $0x3f0] ss:$24 sps:$4 sm:$0xff]   ;;  %v17706_v63 = vcombine.low %v541_v45, %v553_v46  ;;  %v17731_v2 = vcombine.high %v565_v56, %v577_v59 }
 0x347   :  { %15747 = vmatprep.subr.bf16.mxu0 %v19804_v0  ;;  %v24313_v0 = vadd.f32 %v23454_v11, %v1201_v51  ;;  %v601_v11 = vld [vmem:[%s28986_s1 + $0x11c8] sm:$0xff] }
 0x348   :  { %7718 = vmatmul.mubr.bf16.vlgmr.msra.gmra.mrb[16].mxu1 %v21786_v12  ;;  %v17755_v6 = vcombine.high %v589_v8, %v601_v11  ;;  %v673_v45 = vld [vmem:[%s28986_s1 + $0x1408] sm:$0xff] }
 0x349   :  { %15739 = vmatmul.mubr.bf16.vlgmr.msra.gmra.mrb[16].mxu0 %v24235_v17  ;;  %7727 = vmatpush1.bf16.msra.mxu1 %v17586_v3  ;;  %v17730_v3 = vcombine.low %v565_v56, %v577_v59  ;;  %v19829_v46 = vld [vmem:[%s28988_s3 + $0x4b0] ss:$24 sps:$4 sm:$0xff]   ;;  %v19832_v59 = vld [vmem:[%s28988_s3 + $0x4e0] ss:$24 sps:$4 sm:$0xff]  }
 0x34a   :  { %15748 = vmatpush1.bf16.msra.mxu0 %v19802_v9  ;;  %15779 = vmatprep.mubr.bf16.mxu0 %v24241_v25  ;;  %v24322_v9 = vadd.f32 %v24092_v18, %v1213_v58  ;;  %v19825_v18 = vld [vmem:[%s28988_s3 + $0x454] ss:$24 sps:$4 sm:$0xff]  }
 0x34b   :  { %7728 = vmatprep.subr.bf16.mxu1 %v17611_v20  ;;  %15749 = vmatprep.subr.bf16.mxu0 %v19807_v14  ;;  %v8548_v14 = vmul.f32 %v24313_v0, %v24313_v0  ;;  %v613_v20 = vld [vmem:[%s28986_s1 + $0x1228] sm:$0xff] }
 0x34c   :  { %7758 = vmatprep.mubr.bf16.mxu1 %v21803_v22  ;;  %v8551_v61 = vmul.f32 %v24322_v9, %v24322_v9  ;;  %v697_v58 = vld [vmem:[%s28986_s1 + $0x14c8] sm:$0xff] }
 0x34d   :  { %7729 = vmatpush1.bf16.msra.mxu1 %v17610_v16  ;;  %v625_v16 = vld [vmem:[%s28986_s1 + $0x1288] sm:$0xff] }
 0x34e   :  { %15750 = vmatpush1.bf16.msra.mxu0 %v19805_v26  ;;  %7730 = vmatprep.subr.bf16.mxu1 %v17635_v28  ;;  %v19823_v26 = vld [vmem:[%s28988_s3 + $0x450] ss:$24 sps:$4 sm:$0xff]   ;;  %v17754_v28 = vcombine.low %v589_v8, %v601_v11  ;;  %v17779_v30 = vcombine.high %v613_v20, %v625_v16  ;;  %v17778_v39 = vcombine.low %v613_v20, %v625_v16 }
 0x34f   :  { %15751 = vmatprep.subr.bf16.mxu0 %v19810_v29  ;;  %v8572_v29 = vmul.f32 0.035677407, %v8548_v14  ;;  %v721_v8 = vld [vmem:[%s28986_s1 + $0x1588] sm:$0xff]  ;;  %v19840_v14 = vld [vmem:[%s28988_s3 + $0x544] ss:$24 sps:$4 sm:$0xff]  }
 0x350   :  { %v19835_v11 = vld [vmem:[%s28988_s3 + $0x510] ss:$24 sps:$4 sm:$0xff]  }
 0x351   :  { %7731 = vmatpush1.bf16.msra.mxu1 %v17634_v33  ;;  %v637_v33 = vld [vmem:[%s28986_s1 + $0x12e8] sm:$0xff]  ;;  %v8596_v40 = vadd.f32 0.7978846, %v8572_v29 }
 0x352   :  { %15752 = vmatpush1.bf16.msra.mxu0 %v19808_v34  ;;  %7732 = vmatprep.subr.bf16.mxu1 %v17659_v35  ;;  %v8575_v34 = vmul.f32 0.035677407, %v8551_v61  ;;  %v649_v35 = vld [vmem:[%s28986_s1 + $0x1348] sm:$0xff]  ;;  %v19838_v61 = vld [vmem:[%s28988_s3 + $0x540] ss:$24 sps:$4 sm:$0xff]  }
 0x353   :  { %15753 = vmatprep.subr.bf16.mxu0 %v19813_v37  ;;  %v19826_v37 = vld [vmem:[%s28988_s3 + $0x480] ss:$24 sps:$4 sm:$0xff]   ;;  %v8620_v51 = vmul.f32 %v24313_v0, %v8596_v40  ;;  %v769_v29 = vld [vmem:[%s28986_s1 + $0x1708] sm:$0xff] }
 0x354   :  { %v781_v40 = vld [vmem:[%s28986_s1 + $0x1768] sm:$0xff] }
 0x355   :  { %7733 = vmatpush1.bf16.msra.mxu1 %v17658_v41  ;;  %v17803_v41 = vcombine.high %v637_v33, %v649_v35  ;;  %21488 = vtanh.f32 %v8620_v51 }
 0x356   :  { %15754 = vmatpush1.bf16.msra.mxu0 %v19811_v43  ;;  %7734 = vmatprep.subr.bf16.mxu1 %v17683_v44  ;;  %v19831_v43 = vld [vmem:[%s28988_s3 + $0x4b4] ss:$24 sps:$4 sm:$0xff]  }
 0x357   :  { %15755 = vmatprep.subr.bf16.mxu0 %v19816_v1  ;;  %v661_v44 = vld [vmem:[%s28986_s1 + $0x13a8] sm:$0xff]  ;;  %v8599_v1 = vadd.f32 0.7978846, %v8575_v34 }
 0x358   :  { %v19841_v34 = vld [vmem:[%s28988_s3 + $0x570] ss:$24 sps:$4 sm:$0xff]  }
 0x359   :  { %7735 = vmatpush1.bf16.msra.mxu1 %v17682_v49  ;;  %v17802_v49 = vcombine.low %v637_v33, %v649_v35  ;;  %v8623_v56 = vmul.f32 %v24322_v9, %v8599_v1  ;;  %v19844_v1 = vld [vmem:[%s28988_s3 + $0x5a0] ss:$24 sps:$4 sm:$0xff]  }
 0x35a   :  { %15756 = vmatpush1.bf16.msra.mxu0 %v19814_v52  ;;  %7736 = vmatprep.subr.bf16.mxu1 %v17707_v53  ;;  %v17827_v52 = vcombine.high %v661_v44, %v673_v45  ;;  %v19834_v53 = vld [vmem:[%s28988_s3 + $0x4e4] ss:$24 sps:$4 sm:$0xff]  }
 0x35b   :  { %15757 = vmatprep.subr.bf16.mxu0 %v19819_v55  ;;  %v685_v55 = vld [vmem:[%s28986_s1 + $0x1468] sm:$0xff]  ;;  %21490 = vtanh.f32 %v8623_v56 }
 0x35c   :  { %v19847_v56 = vld [vmem:[%s28988_s3 + $0x5d0] ss:$24 sps:$4 sm:$0xff]  }
 0x35d   :  { %7737 = vmatpush1.bf16.msra.mxu1 %v17706_v63  ;;  %v17851_v63 = vcombine.high %v685_v55, %v697_v58 }
 0x35e   :  { %15758 = vmatpush1.bf16.msra.mxu0 %v19817_v60  ;;  %7738 = vmatprep.subr.bf16.mxu1 %v17731_v2  ;;  %v17826_v60 = vcombine.low %v661_v44, %v673_v45  ;;  %v19837_v2 = vld [vmem:[%s28988_s3 + $0x514] ss:$24 sps:$4 sm:$0xff]  }
 0x35f   :  { %15759 = vmatprep.subr.bf16.mxu0 %v19822_v5  ;;  %v709_v5 = vld [vmem:[%s28986_s1 + $0x1528] sm:$0xff] }
 0x360   :  { %v17874_v20 = vcombine.low %v709_v5, %v721_v8 }
 0x361   :  { %7739 = vmatpush1.bf16.msra.mxu1 %v17730_v3  ;;  %v17875_v3 = vcombine.high %v709_v5, %v721_v8  ;;  %v19850_v5 = vld [vmem:[%s28988_s3 + $0x600] ss:$24 sps:$4 sm:$0xff]  }
 0x362   :  { %15760 = vmatpush1.bf16.msra.mxu0 %v19820_v10  ;;  %7740 = vmatprep.subr.bf16.mxu1 %v17755_v6  ;;  %v17850_v10 = vcombine.low %v685_v55, %v697_v58  ;;  %v733_v6 = vld [vmem:[%s28986_s1 + $0x15e8] sm:$0xff] }
 0x363   :  { %15761 = vmatprep.subr.bf16.mxu0 %v19825_v18  ;;  %v745_v18 = vld [vmem:[%s28986_s1 + $0x1648] sm:$0xff] }
 0x364   :  { %v17899_v16 = vcombine.high %v733_v6, %v745_v18  ;;  %v17898_v33 = vcombine.low %v733_v6, %v745_v18 }
 0x365   :  { %7741 = vmatpush1.bf16.msra.mxu1 %v17754_v28  ;;  %v757_v28 = vld [vmem:[%s28986_s1 + $0x16a8] sm:$0xff] }
 0x366   :  { %15762 = vmatpush1.bf16.msra.mxu0 %v19823_v26  ;;  %7742 = vmatprep.subr.bf16.mxu1 %v17779_v30  ;;  %v19843_v26 = vld [vmem:[%s28988_s3 + $0x574] ss:$24 sps:$4 sm:$0xff]   ;;  %v21489_v30 = vpop.eup %21488  ;;  %v17923_v35 = vcombine.high %v757_v28, %v769_v29  ;;  %v17922_v44 = vcombine.low %v757_v28, %v769_v29 }
 0x367   :  { %15763 = vmatprep.subr.bf16.mxu0 %v19828_v31  ;;  %v21491_v31 = vpop.eup %21490  ;;  %v889_v28 = vld [vmem:[%s28986_s1 + $0x1ac8] sm:$0xff] }
 0x369   :  { %7743 = vmatpush1.bf16.msra.mxu1 %v17778_v39  ;;  %v8668_v39 = vmul.f32 0.5, %v21489_v30  ;;  %v19856_v30 = vld [vmem:[%s28988_s3 + $0x660] ss:$24 sps:$4 sm:$0xff]  }
 0x36a   :  { %15764 = vmatpush1.bf16.msra.mxu0 %v19826_v37  ;;  %7744 = vmatprep.subr.bf16.mxu1 %v17803_v41  ;;  %v19846_v37 = vld [vmem:[%s28988_s3 + $0x5a4] ss:$24 sps:$4 sm:$0xff]   ;;  %v793_v41 = vld [vmem:[%s28986_s1 + $0x17c8] sm:$0xff] }
 0x36b   :  { %15765 = vmatprep.subr.bf16.mxu0 %v19831_v43  ;;  %v8671_v43 = vmul.f32 0.5, %v21491_v31  ;;  %v17947_v45 = vcombine.high %v781_v40, %v793_v41  ;;  %v8692_v51 = vadd.f32 0.5, %v8668_v39  ;;  %v17946_v55 = vcombine.low %v781_v40, %v793_v41  ;;  %v19859_v39 = vld [vmem:[%s28988_s3 + $0x690] ss:$24 sps:$4 sm:$0xff]   ;;  %v19864_v41 = vld [vmem:[%s28988_s3 + $0x6c4] ss:$24 sps:$4 sm:$0xff]  }
 0x36d   :  { %7745 = vmatpush1.bf16.msra.mxu1 %v17802_v49  ;;  %v805_v49 = vld [vmem:[%s28986_s1 + $0x1828] sm:$0xff] }
 0x36e   :  { %15766 = vmatpush1.bf16.msra.mxu0 %v19829_v46  ;;  %7746 = vmatprep.subr.bf16.mxu1 %v17827_v52  ;;  %v19849_v46 = vld [vmem:[%s28988_s3 + $0x5d4] ss:$24 sps:$4 sm:$0xff]  }
 0x36f   :  { %15767 = vmatprep.subr.bf16.mxu0 %v19834_v53  ;;  %v817_v52 = vld [vmem:[%s28986_s1 + $0x1888] sm:$0xff]  ;;  %v8695_v53 = vadd.f32 0.5, %v8671_v43 }
 0x370   :  { %v17971_v58 = vcombine.high %v805_v49, %v817_v52  ;;  %v925_v43 = vld [vmem:[%s28986_s1 + $0x1be8] sm:$0xff] }
 0x371   :  { %7747 = vmatpush1.bf16.msra.mxu1 %v17826_v60  ;;  %v829_v60 = vld [vmem:[%s28986_s1 + $0x18e8] sm:$0xff]  ;;  %v8719_v8 = vmul.f32 %v24322_v9, %v8695_v53 }
 0x372   :  { %15768 = vmatpush1.bf16.msra.mxu0 %v19832_v59  ;;  %7748 = vmatprep.subr.bf16.mxu1 %v17851_v63  ;;  %v19852_v59 = vld [vmem:[%s28988_s3 + $0x604] ss:$24 sps:$4 sm:$0xff]   ;;  %v8716_v63 = vmul.f32 %v24313_v0, %v8692_v51  ;;  %v853_v0 = vld [vmem:[%s28986_s1 + $0x19a8] sm:$0xff] }
 0x373   :  { %15769 = vmatprep.subr.bf16.mxu0 %v19837_v2  ;;  %v841_v2 = vld [vmem:[%s28986_s1 + $0x1948] sm:$0xff]  ;;  %v24470_v6 = vpack.c.bf16 %v8719_v8, %v8719_v8  ;;  %v19868_v8 = vld [vmem:[%s28988_s3 + $0x720] ss:$24 sps:$4 sm:$0xff]  }
 0x374   :  { %v865_v9 = vld [vmem:[%s28986_s1 + $0x1a08] sm:$0xff]  ;;  %v17994_v18 = vcombine.low %v829_v60, %v841_v2 }
 0x375   :  { %7749 = vmatpush1.bf16.msra.mxu1 %v17850_v10  ;;  %v19855_v10 = vld [vmem:[%s28988_s3 + $0x634] ss:$24 sps:$4 sm:$0xff]   ;;  %v18018_v29 = vcombine.low %v853_v0, %v865_v9 }
 0x376   :  { %15770 = vmatpush1.bf16.msra.mxu0 %v19835_v11  ;;  %7750 = vmatprep.subr.bf16.mxu1 %v17875_v3  ;;  %v17970_v11 = vcombine.low %v805_v49, %v817_v52  ;;  %v24464_v3 = vpack.c.bf16 %v8716_v63, %v8716_v63  ;;  %v19862_v49 = vld [vmem:[%s28988_s3 + $0x6c0] ss:$24 sps:$4 sm:$0xff]   ;;  %v19867_v52 = vld [vmem:[%s28988_s3 + $0x6f4] ss:$24 sps:$4 sm:$0xff]  }
 0x377   :  { %15771 = vmatprep.subr.bf16.mxu0 %v19840_v14  ;;  %v17995_v14 = vcombine.high %v829_v60, %v841_v2  ;;  %v949_v53 = vld [vmem:[%s28986_s1 + $0x1ca8] sm:$0xff]  ;;  %v19870_v60 = vld [vmem:[%s28988_s3 + $0x724] ss:$24 sps:$4 sm:$0xff]  }
 0x378   :  { %v973_v63 = vld [vmem:[%s28986_s1 + $0x1d68] sm:$0xff] }
 0x379   :  { %7751 = vmatpush1.bf16.msra.mxu1 %v17874_v20  ;;  %v19853_v20 = vld [vmem:[%s28988_s3 + $0x630] ss:$24 sps:$4 sm:$0xff]  }
 0x37a   :  { %15772 = vmatpush1.bf16.msra.mxu0 %v19838_v61  ;;  %7752 = vmatprep.subr.bf16.mxu1 %v17899_v16  ;;  %v18019_v61 = vcombine.high %v853_v0, %v865_v9  ;;  %v19858_v16 = vld [vmem:[%s28988_s3 + $0x664] ss:$24 sps:$4 sm:$0xff]   ;;  %v997_v0 = vld [vmem:[%s28986_s1 + $0x1e28] sm:$0xff] }
 0x37b   :  { %15773 = vmatprep.subr.bf16.mxu0 %v19843_v26  ;;  %v877_v26 = vld [vmem:[%s28986_s1 + $0x1a68] sm:$0xff] }
 0x37c   :  { %v18043_v31 = vcombine.high %v877_v26, %v889_v28 }
 0x37d   :  { %7753 = vmatpush1.bf16.msra.mxu1 %v17898_v33  ;;  %v19861_v33 = vld [vmem:[%s28988_s3 + $0x694] ss:$24 sps:$4 sm:$0xff]  }
 0x37e   :  { %15774 = vmatpush1.bf16.msra.mxu0 %v19841_v34  ;;  %7754 = vmatprep.subr.bf16.mxu1 %v17923_v35  ;;  %v901_v34 = vld [vmem:[%s28986_s1 + $0x1b28] sm:$0xff] }
 0x37f   :  { %15775 = vmatprep.subr.bf16.mxu0 %v19846_v37  ;;  %v913_v35 = vld [vmem:[%s28986_s1 + $0x1b88] sm:$0xff]  ;;  %v18042_v37 = vcombine.low %v877_v26, %v889_v28 }
 0x380   :  { %v18067_v40 = vcombine.high %v901_v34, %v913_v35  ;;  %v1021_v26 = vld [vmem:[%s28986_s1 + $0x1ee8] sm:$0xff] }
 0x381   :  { %7755 = vmatpush1.bf16.msra.mxu1 %v17922_v44  ;;  %v24509_v44 = vsub.s32 4, %v23827_v62  ;;  %v1033_v28 = vld [vmem:[%s28986_s1 + $0x1f48] sm:$0xff] }
 0x382   :  { %15776 = vmatpush1.bf16.msra.mxu0 %v19844_v1  ;;  %7756 = vmatprep.subr.bf16.mxu1 %v17947_v45  ;;  %v937_v1 = vld [vmem:[%s28986_s1 + $0x1c48] sm:$0xff] }
 0x383   :  { %15777 = vmatprep.subr.bf16.mxu0 %v19849_v46  ;;  %v1209_v45 = vrot.slane %v24291_v50, %v24509_v44  ;;  %v18066_v46 = vcombine.low %v901_v34, %v913_v35  ;;  %v18091_v51 = vcombine.high %v925_v43, %v937_v1  ;;  %v961_v50 = vld [vmem:[%s28986_s1 + $0x1d08] sm:$0xff] }
 0x384   :  { %v19879_v34 = vld [vmem:[%s28988_s3 + $0x7b4] ss:$24 sps:$4 sm:$0xff]  }
 0x385   :  { %7757 = vmatpush1.bf16.msra.mxu1 %v17946_v55  ;;  %v24529_v55 = vadd.f32 %v24087_v15, %v1209_v45  ;;  %v985_v15 = vld [vmem:[%s28986_s1 + $0x1dc8] sm:$0xff] }
 0x386   :  { %15778 = vmatpush1.bf16.msra.mxu0 %v19847_v56  ;;  %7767 = vmatprep.subr.bf16.mxu1 %v17971_v58  ;;  %v18090_v56 = vcombine.low %v925_v43, %v937_v1  ;;  %v19865_v58 = vld [vmem:[%s28988_s3 + $0x6f0] ss:$24 sps:$4 sm:$0xff]   ;;  %v19882_v1 = vld [vmem:[%s28988_s3 + $0x7e4] ss:$24 sps:$4 sm:$0xff]  }
 0x387   :  { %15788 = vmatprep.subr.bf16.mxu0 %v19852_v59  ;;  %v18115_v59 = vcombine.high %v949_v53, %v961_v50  ;;  %v8550_v2 = vmul.f32 %v24529_v55, %v24529_v55  ;;  %v1045_v35 = vld [vmem:[%s28986_s1 + $0x1fa8] sm:$0xff] }
 0x388   :  { %7759 = vmatmul.mubr.bf16.vlgmr.msra.gmra.mrb[16].mxu1 %v21992_v21  ;;  %v1069_v45 = vld [vmem:[%s28986_s1 + $0x2068] sm:$0xff] }
 0x389   :  { %15780 = vmatmul.mubr.bf16.vlgmr.msra.gmra.mrb[16].mxu0 %v24464_v3  ;;  %7768 = vmatpush1.bf16.msra.mxu1 %v17970_v11  ;;  %v18139_v11 = vcombine.high %v973_v63, %v985_v15  ;;  %v8574_v9 = vmul.f32 0.035677407, %v8550_v2  ;;  %v1129_v2 = vld [vmem:[%s28986_s1 + $0x2248] sm:$0xff] }
 0x38a   :  { %15789 = vmatpush1.bf16.msra.mxu0 %v19850_v5  ;;  %15820 = vmatprep.mubr.bf16.mxu0 %v24470_v6  ;;  %v18114_v5 = vcombine.low %v949_v53, %v961_v50  ;;  %v19885_v53 = vld [vmem:[%s28988_s3 + $0x814] ss:$24 sps:$4 sm:$0xff]  }
 0x38b   :  { %7769 = vmatprep.subr.bf16.mxu1 %v17995_v14  ;;  %15790 = vmatprep.subr.bf16.mxu0 %v19855_v10  ;;  %v19873_v10 = vld [vmem:[%s28988_s3 + $0x754] ss:$24 sps:$4 sm:$0xff]  }
 0x38c   :  { %7799 = vmatprep.mubr.bf16.mxu1 %v22009_v32  ;;  %v1009_v14 = vld [vmem:[%s28986_s1 + $0x1e88] sm:$0xff] }
 0x38d   :  { %7770 = vmatpush1.bf16.msra.mxu1 %v17994_v18  ;;  %v18138_v18 = vcombine.low %v973_v63, %v985_v15  ;;  %v1093_v50 = vld [vmem:[%s28986_s1 + $0x2128] sm:$0xff]  ;;  %v19888_v63 = vld [vmem:[%s28988_s3 + $0x844] ss:$24 sps:$4 sm:$0xff]  }
 0x38e   :  { %15791 = vmatpush1.bf16.msra.mxu0 %v19853_v20  ;;  %7771 = vmatprep.subr.bf16.mxu1 %v18019_v61  ;;  %v19871_v20 = vld [vmem:[%s28988_s3 + $0x750] ss:$24 sps:$4 sm:$0xff]   ;;  %v18163_v61 = vcombine.high %v997_v0, %v1009_v14 }
 0x38f   :  { %15792 = vmatprep.subr.bf16.mxu0 %v19858_v16  ;;  %v19876_v16 = vld [vmem:[%s28988_s3 + $0x784] ss:$24 sps:$4 sm:$0xff]   ;;  %v1117_v15 = vld [vmem:[%s28986_s1 + $0x21e8] sm:$0xff] }
 0x391   :  { %7772 = vmatpush1.bf16.msra.mxu1 %v18018_v29  ;;  %v8598_v29 = vadd.f32 0.7978846, %v8574_v9 }
 0x392   :  { %15793 = vmatpush1.bf16.msra.mxu0 %v19856_v30  ;;  %7773 = vmatprep.subr.bf16.mxu1 %v18043_v31  ;;  %v18162_v30 = vcombine.low %v997_v0, %v1009_v14  ;;  %v19874_v31 = vld [vmem:[%s28988_s3 + $0x780] ss:$24 sps:$4 sm:$0xff]   ;;  %v1141_v0 = vld [vmem:[%s28986_s1 + $0x22a8] sm:$0xff] }
 0x393   :  { %15794 = vmatprep.subr.bf16.mxu0 %v19861_v33  ;;  %v18187_v33 = vcombine.high %v1021_v26, %v1033_v28  ;;  %v1153_v14 = vld [vmem:[%s28986_s1 + $0x2308] sm:$0xff] }
 0x395   :  { %7774 = vmatpush1.bf16.msra.mxu1 %v18042_v37  ;;  %v1057_v37 = vld [vmem:[%s28986_s1 + $0x2008] sm:$0xff] }
 0x396   :  { %15795 = vmatpush1.bf16.msra.mxu0 %v19859_v39  ;;  %7775 = vmatprep.subr.bf16.mxu1 %v18067_v40  ;;  %v18186_v39 = vcombine.low %v1021_v26, %v1033_v28  ;;  %v8622_v40 = vmul.f32 %v24529_v55, %v8598_v29  ;;  %v18211_v43 = vcombine.high %v1045_v35, %v1057_v37  ;;  %v1165_v26 = vld [vmem:[%s28986_s1 + $0x2368] sm:$0xff] }
 0x397   :  { %15796 = vmatprep.subr.bf16.mxu0 %v19864_v41  ;;  %v19877_v41 = vld [vmem:[%s28988_s3 + $0x7b0] ss:$24 sps:$4 sm:$0xff]  }
 0x398   :  { %21492 = vtanh.f32 %v8622_v40  ;;  %v1177_v29 = vld [vmem:[%s28986_s1 + $0x23c8] sm:$0xff] }
 0x399   :  { %7776 = vmatpush1.bf16.msra.mxu1 %v18066_v46  ;;  %v1081_v46 = vld [vmem:[%s28986_s1 + $0x20c8] sm:$0xff]  ;;  %v18330_v40 = vcombine.low %v1165_v26, %v1177_v29 }
 0x39a   :  { %15797 = vmatpush1.bf16.msra.mxu0 %v19862_v49  ;;  %7777 = vmatprep.subr.bf16.mxu1 %v18091_v51  ;;  %v18210_v49 = vcombine.low %v1045_v35, %v1057_v37  ;;  %v19880_v51 = vld [vmem:[%s28988_s3 + $0x7e0] ss:$24 sps:$4 sm:$0xff]  }
 0x39b   :  { %15798 = vmatprep.subr.bf16.mxu0 %v19867_v52  ;;  %v18235_v52 = vcombine.high %v1069_v45, %v1081_v46  ;;  %v39_v35 = vld [vmem:[%s28986_s1 + $0x38] sm:$0xff] }
 0x39d   :  { %7778 = vmatpush1.bf16.msra.mxu1 %v18090_v56  ;;  %v1105_v56 = vld [vmem:[%s28986_s1 + $0x2188] sm:$0xff] }
 0x39e   :  { %15799 = vmatpush1.bf16.msra.mxu0 %v19865_v58  ;;  %7779 = vmatprep.subr.bf16.mxu1 %v18115_v59  ;;  %v18234_v58 = vcombine.low %v1069_v45, %v1081_v46  ;;  %v19883_v59 = vld [vmem:[%s28988_s3 + $0x810] ss:$24 sps:$4 sm:$0xff]   ;;  %v63_v45 = vld [vmem:[%s28986_s1 + $0xf8] sm:$0xff] }
 0x39f   :  { %15800 = vmatprep.subr.bf16.mxu0 %v19870_v60  ;;  %v18259_v60 = vcombine.high %v1093_v50, %v1105_v56 }
 0x3a1   :  { %7780 = vmatpush1.bf16.msra.mxu1 %v18114_v5  ;;  %v18258_v5 = vcombine.low %v1093_v50, %v1105_v56  ;;  %v99_v56 = vld [vmem:[%s28986_s1 + $0x218] sm:$0xff] }
 0x3a2   :  { %15801 = vmatpush1.bf16.msra.mxu0 %v19868_v8  ;;  %7781 = vmatprep.subr.bf16.mxu1 %v18139_v11  ;;  %v19886_v8 = vld [vmem:[%s28988_s3 + $0x840] ss:$24 sps:$4 sm:$0xff]   ;;  %v18283_v11 = vcombine.high %v1117_v15, %v1129_v2  ;;  %v21493_v9 = vpop.eup %21492 }
 0x3a3   :  { %15802 = vmatprep.subr.bf16.mxu0 %v19873_v10  ;;  %v19891_v10 = vld [vmem:[%s28988_s3 + $0x874] ss:$24 sps:$4 sm:$0xff]   ;;  %v8670_v28 = vmul.f32 0.5, %v21493_v9 }
 0x3a5   :  { %7782 = vmatpush1.bf16.msra.mxu1 %v18138_v18  ;;  %v18282_v18 = vcombine.low %v1117_v15, %v1129_v2  ;;  %v8694_v37 = vadd.f32 0.5, %v8670_v28  ;;  %v111_v15 = vld [vmem:[%s28986_s1 + $0x278] sm:$0xff] }
 0x3a6   :  { %15803 = vmatpush1.bf16.msra.mxu0 %v19871_v20  ;;  %7783 = vmatprep.subr.bf16.mxu1 %v18163_v61  ;;  %v19889_v20 = vld [vmem:[%s28988_s3 + $0x870] ss:$24 sps:$4 sm:$0xff]   ;;  %v18307_v61 = vcombine.high %v1141_v0, %v1153_v14  ;;  %v123_v2 = vld [vmem:[%s28986_s1 + $0x2d8] sm:$0xff] }
 0x3a7   :  { %15804 = vmatprep.subr.bf16.mxu0 %v19876_v16  ;;  %v19894_v16 = vld [vmem:[%s28988_s3 + $0x8a4] ss:$24 sps:$4 sm:$0xff]   ;;  %v8718_v46 = vmul.f32 %v24529_v55, %v8694_v37  ;;  %v17279_v9 = vcombine.high %v111_v15, %v123_v2  ;;  %v19915_v37 = vld [vmem:[%s28988_s3 + $0x9f4] ss:$24 sps:$4 sm:$0xff]  }
 0x3a8   :  { %v87_v55 = vld [vmem:[%s28986_s1 + $0x1b8] sm:$0xff] }
 0x3a9   :  { %7784 = vmatpush1.bf16.msra.mxu1 %v18162_v30  ;;  %v18306_v30 = vcombine.low %v1141_v0, %v1153_v14  ;;  %v135_v0 = vld [vmem:[%s28986_s1 + $0x338] sm:$0xff] }
 0x3aa   :  { %15805 = vmatpush1.bf16.msra.mxu0 %v19874_v31  ;;  %7785 = vmatprep.subr.bf16.mxu1 %v18187_v33  ;;  %v19892_v31 = vld [vmem:[%s28988_s3 + $0x8a0] ss:$24 sps:$4 sm:$0xff]   ;;  %v18331_v33 = vcombine.high %v1165_v26, %v1177_v29 }
 0x3ab   :  { %15806 = vmatprep.subr.bf16.mxu0 %v19879_v34  ;;  %v19897_v34 = vld [vmem:[%s28988_s3 + $0x8d4] ss:$24 sps:$4 sm:$0xff]   ;;  %v147_v14 = vld [vmem:[%s28986_s1 + $0x398] sm:$0xff] }
 0x3ac   :  { %v159_v26 = vld [vmem:[%s28986_s1 + $0x3f8] sm:$0xff]  ;;  %v17303_v29 = vcombine.high %v135_v0, %v147_v14 }
 0x3ad   :  { %7786 = vmatpush1.bf16.msra.mxu1 %v18186_v39  ;;  %v51_v39 = vld [vmem:[%s28986_s1 + $0x98] sm:$0xff] }
 0x3ae   :  { %15807 = vmatpush1.bf16.msra.mxu0 %v19877_v41  ;;  %7787 = vmatprep.subr.bf16.mxu1 %v18211_v43  ;;  %v19895_v41 = vld [vmem:[%s28988_s3 + $0x8d0] ss:$24 sps:$4 sm:$0xff]   ;;  %v17207_v43 = vcombine.high %v39_v35, %v51_v39  ;;  %v171_v28 = vld [vmem:[%s28986_s1 + $0x458] sm:$0xff] }
 0x3af   :  { %15808 = vmatprep.subr.bf16.mxu0 %v19882_v1  ;;  %v19900_v1 = vld [vmem:[%s28988_s3 + $0x904] ss:$24 sps:$4 sm:$0xff]  }
 0x3b1   :  { %7788 = vmatpush1.bf16.msra.mxu1 %v18210_v49  ;;  %v75_v49 = vld [vmem:[%s28986_s1 + $0x158] sm:$0xff] }
 0x3b2   :  { %15809 = vmatpush1.bf16.msra.mxu0 %v19880_v51  ;;  %7789 = vmatprep.subr.bf16.mxu1 %v18235_v52  ;;  %v19898_v51 = vld [vmem:[%s28988_s3 + $0x900] ss:$24 sps:$4 sm:$0xff]   ;;  %v17206_v52 = vcombine.low %v39_v35, %v51_v39  ;;  %v17231_v50 = vcombine.high %v63_v45, %v75_v49  ;;  %v24734_v35 = vsub.s32 7, %v23827_v62 }
 0x3b3   :  { %15810 = vmatprep.subr.bf16.mxu0 %v19885_v53  ;;  %v19903_v53 = vld [vmem:[%s28988_s3 + $0x934] ss:$24 sps:$4 sm:$0xff]   ;;  %v183_v39 = vld [vmem:[%s28986_s1 + $0x4b8] sm:$0xff] }
 0x3b5   :  { %7790 = vmatpush1.bf16.msra.mxu1 %v18234_v58  ;;  %v24679_v58 = vpack.c.bf16 %v8718_v46, %v8718_v46 }
 0x3b6   :  { %15811 = vmatpush1.bf16.msra.mxu0 %v19883_v59  ;;  %7791 = vmatprep.subr.bf16.mxu1 %v18259_v60  ;;  %v19901_v59 = vld [vmem:[%s28988_s3 + $0x930] ss:$24 sps:$4 sm:$0xff]   ;;  %v17230_v60 = vcombine.low %v63_v45, %v75_v49  ;;  %v17326_v49 = vcombine.low %v159_v26, %v171_v28 }
 0x3b7   :  { %15812 = vmatprep.subr.bf16.mxu0 %v19888_v63  ;;  %v19906_v63 = vld [vmem:[%s28988_s3 + $0x964] ss:$24 sps:$4 sm:$0xff]   ;;  %v19913_v45 = vld [vmem:[%s28988_s3 + $0x9f0] ss:$24 sps:$4 sm:$0xff]  }
 0x3b9   :  { %7792 = vmatpush1.bf16.msra.mxu1 %v18258_v5  ;;  %v17255_v5 = vcombine.high %v87_v55, %v99_v56 }
 0x3ba   :  { %15813 = vmatpush1.bf16.msra.mxu0 %v19886_v8  ;;  %7793 = vmatprep.subr.bf16.mxu1 %v18283_v11  ;;  %v19904_v8 = vld [vmem:[%s28988_s3 + $0x960] ss:$24 sps:$4 sm:$0xff]   ;;  %v17254_v11 = vcombine.low %v87_v55, %v99_v56 }
 0x3bb   :  { %15814 = vmatprep.subr.bf16.mxu0 %v19891_v10  ;;  %v19909_v10 = vld [vmem:[%s28988_s3 + $0x994] ss:$24 sps:$4 sm:$0xff]  }
 0x3bd   :  { %7794 = vmatpush1.bf16.msra.mxu1 %v18282_v18  ;;  %v24711_v18 = vld [vmem:[%s28989_s2 + $0x8] sm:$0xff] }
 0x3be   :  { %15815 = vmatpush1.bf16.msra.mxu0 %v19889_v20  ;;  %7795 = vmatprep.subr.bf16.mxu1 %v18307_v61  ;;  %v19907_v20 = vld [vmem:[%s28988_s3 + $0x990] ss:$24 sps:$4 sm:$0xff]   ;;  %v17278_v61 = vcombine.low %v111_v15, %v123_v2 }
 0x3bf   :  { %15816 = vmatprep.subr.bf16.mxu0 %v19894_v16  ;;  %v19912_v16 = vld [vmem:[%s28988_s3 + $0x9c4] ss:$24 sps:$4 sm:$0xff]  }
 0x3c1   :  { %7796 = vmatpush1.bf16.msra.mxu1 %v18306_v30  ;;  %v1229_v30 = vrot.slane %v24711_v18, %v23847_v13 }
 0x3c2   :  { %15817 = vmatpush1.bf16.msra.mxu0 %v19892_v31  ;;  %7797 = vmatprep.subr.bf16.mxu1 %v18331_v33  ;;  %v19910_v31 = vld [vmem:[%s28988_s3 + $0x9c0] ss:$24 sps:$4 sm:$0xff]   ;;  %v24731_v33 = vsub.s32 6, %v23827_v62 }
 0x3c3   :  { %15818 = vmatprep.subr.bf16.mxu0 %v19897_v34  ;;  %v17302_v34 = vcombine.low %v135_v0, %v147_v14  ;;  %v21531_v62 = vld [vmem:[%s28989_s2] sm:$0xff] }
 0x3c4   :  { %v1221_v46 = vrot.slane %v21531_v62, %v24734_v35 }
 0x3c5   :  { %7798 = vmatpush1.bf16.msra.mxu1 %v18330_v40  ;;  %v195_v40 = vld [vmem:[%s28986_s1 + $0x518] sm:$0xff] }
 0x3c6   :  { %15819 = vmatpush1.bf16.msra.mxu0 %v19895_v41  ;;  %7931 = vmatprep.subr.bf16.mxu1 %v17207_v43  ;;  %v17327_v41 = vcombine.high %v159_v26, %v171_v28  ;;  %v24746_v43 = vadd.f32 %v22876_v7, %v1229_v30  ;;  %v207_v7 = vld [vmem:[%s28986_s1 + $0x578] sm:$0xff] }
 0x3c7   :  { %15829 = vmatprep.subr.bf16.mxu0 %v19900_v1  ;;  %v1217_v1 = vrot.slane %v21531_v62, %v24731_v33  ;;  %v267_v62 = vld [vmem:[%s28986_s1 + $0x758] sm:$0xff] }
 0x3c8   :  { %7800 = vmatmul.mubr.bf16.vlgmr.msra.gmra.mrb[16].mxu1 %v22198_v36  ;;  %v8555_v55 = vmul.f32 %v24746_v43, %v24746_v43 }
 0x3c9   :  { %15821 = vmatmul.mubr.bf16.vlgmr.msra.gmra.mrb[16].mxu0 %v24679_v58  ;;  %7932 = vmatpush1.bf16.msra.mxu1 %v17206_v52  ;;  %v219_v52 = vld [vmem:[%s28986_s1 + $0x5d8] sm:$0xff] }
 0x3ca   :  { %15830 = vmatpush1.bf16.msra.mxu0 %v19898_v51  ;;  %7933 = vmatprep.subr.bf16.mxu1 %v17231_v50  ;;  %v19918_v51 = vld [vmem:[%s28988_s3 + $0xa24] ss:$24 sps:$4 sm:$0xff]   ;;  %v8579_v28 = vmul.f32 0.035677407, %v8555_v55  ;;  %v17374_v30 = vcombine.low %v207_v7, %v219_v52  ;;  %v19925_v55 = vld [vmem:[%s28988_s3 + $0xab0] ss:$24 sps:$4 sm:$0xff]  }
 0x3cb   :  { %15831 = vmatprep.subr.bf16.mxu0 %v19903_v53  ;;  %7963 = vmatprep.mubr.bf16.mxu1 %v21659_v57  ;;  %v17351_v53 = vcombine.high %v183_v39, %v195_v40 }
 0x3cd   :  { %7934 = vmatpush1.bf16.msra.mxu1 %v17230_v60  ;;  %v19916_v60 = vld [vmem:[%s28988_s3 + $0xa20] ss:$24 sps:$4 sm:$0xff]  }
 0x3ce   :  { %15832 = vmatpush1.bf16.msra.mxu0 %v19901_v59  ;;  %7935 = vmatprep.subr.bf16.mxu1 %v17255_v5  ;;  %v17350_v5 = vcombine.low %v183_v39, %v195_v40  ;;  %v255_v40 = vld [vmem:[%s28986_s1 + $0x6f8] sm:$0xff] }
 0x3cf   :  { %15833 = vmatprep.subr.bf16.mxu0 %v19906_v63 }
 0x3d1   :  { %7936 = vmatpush1.bf16.msra.mxu1 %v17254_v11  ;;  %v231_v11 = vld [vmem:[%s28986_s1 + $0x638] sm:$0xff] }
 0x3d2   :  { %15834 = vmatpush1.bf16.msra.mxu0 %v19904_v8  ;;  %7937 = vmatprep.subr.bf16.mxu1 %v17279_v9  ;;  %v19921_v8 = vld [vmem:[%s28988_s3 + $0xa54] ss:$24 sps:$4 sm:$0xff]  }
 0x3d3   :  { %15835 = vmatprep.subr.bf16.mxu0 %v19909_v10  ;;  %v243_v10 = vld [vmem:[%s28986_s1 + $0x698] sm:$0xff] }
 0x3d4   :  { %v17399_v39 = vcombine.high %v231_v11, %v243_v10 }
 0x3d5   :  { %7938 = vmatpush1.bf16.msra.mxu1 %v17278_v61 }
 0x3d6   :  { %15836 = vmatpush1.bf16.msra.mxu0 %v19907_v20  ;;  %7939 = vmatprep.subr.bf16.mxu1 %v17303_v29  ;;  %v17375_v20 = vcombine.high %v207_v7, %v219_v52  ;;  %v291_v7 = vld [vmem:[%s28986_s1 + $0x818] sm:$0xff] }
 0x3d7   :  { %15837 = vmatprep.subr.bf16.mxu0 %v19912_v16 }
 0x3d9   :  { %7940 = vmatpush1.bf16.msra.mxu1 %v17302_v34  ;;  %v19924_v34 = vld [vmem:[%s28988_s3 + $0xa84] ss:$24 sps:$4 sm:$0xff]  }
 0x3da   :  { %15838 = vmatpush1.bf16.msra.mxu0 %v19910_v31  ;;  %7941 = vmatprep.subr.bf16.mxu1 %v17327_v41  ;;  %v19919_v31 = vld [vmem:[%s28988_s3 + $0xa50] ss:$24 sps:$4 sm:$0xff]  }
 0x3db   :  { %v7555_v50 = vpop.f32.mrb[12].mxu1  ;;  %15839 = vmatprep.subr.bf16.mxu0 %v19915_v37 }
 0x3dc   :  { %v24767_v56 = vadd.f32 %v7555_v50, %v1217_v1  ;;  %v7557_v59 = vpop.f32.mrb[13].mxu1  ;;  %v24772_v63 = vpop.f32.mrb[12].mxu0  ;;  %v19922_v1 = vld [vmem:[%s28988_s3 + $0xa80] ss:$24 sps:$4 sm:$0xff]   ;;  %v8603_v50 = vadd.f32 0.7978846, %v8579_v28 }
 0x3dd   :  { %v24774_v15 = vadd.f32 %v7557_v59, %v1221_v46  ;;  %v7559_v2 = vpop.f32.mrb[14].mxu1  ;;  %7942 = vmatpush1.bf16.msra.mxu1 %v17326_v49  ;;  %v24785_v0 = vpop.f32.mrb[13].mxu0  ;;  %v17398_v46 = vcombine.low %v231_v11, %v243_v10  ;;  %v19927_v49 = vld [vmem:[%s28988_s3 + $0xab4] ss:$24 sps:$4 sm:$0xff]   ;;  %v17422_v59 = vcombine.low %v255_v40, %v267_v62 }
 0x3de   :  { %v8552_v14 = vmul.f32 %v24767_v56, %v24767_v56  ;;  %15840 = vmatpush1.bf16.msra.mxu0 %v19913_v45  ;;  %v7560_v9 = vpop.f32.mrb[15].mxu1  ;;  %7943 = vmatprep.subr.bf16.mxu1 %v17351_v53  ;;  %v8420_v61 = vpop.f32.mrb[14].mxu0  ;;  %v17423_v53 = vcombine.high %v255_v40, %v267_v62  ;;  %v303_v2 = vld [vmem:[%s28986_s1 + $0x878] sm:$0xff]  ;;  %v8627_v10 = vmul.f32 %v24746_v43, %v8603_v50 }
 0x3df   :  { %v8553_v16 = vmul.f32 %v24774_v15, %v24774_v15  ;;  %15841 = vmatprep.subr.bf16.mxu0 %v19918_v51  ;;  %v8421_v26 = vpop.f32.mrb[15].mxu0  ;;  %v279_v51 = vld [vmem:[%s28986_s1 + $0x7b8] sm:$0xff] }
 0x3e0   :  { %v8576_v37 = vmul.f32 0.035677407, %v8552_v14  ;;  %v17447_v11 = vcombine.high %v279_v51, %v291_v7  ;;  %v19928_v14 = vld [vmem:[%s28988_s3 + $0xae0] ss:$24 sps:$4 sm:$0xff]   ;;  %v17446_v9 = vcombine.low %v279_v51, %v291_v7 }
 0x3e1   :  { %v8577_v29 = vmul.f32 0.035677407, %v8553_v16  ;;  %7944 = vmatpush1.bf16.msra.mxu1 %v17350_v5  ;;  %v315_v5 = vld [vmem:[%s28986_s1 + $0x8d8] sm:$0xff] }
 0x3e2   :  { %15842 = vmatpush1.bf16.msra.mxu0 %v19916_v60  ;;  %7945 = vmatprep.subr.bf16.mxu1 %v17375_v20  ;;  %v8600_v52 = vadd.f32 0.7978846, %v8576_v37  ;;  %v19930_v60 = vld [vmem:[%s28988_s3 + $0xae4] ss:$24 sps:$4 sm:$0xff]   ;;  %v19933_v20 = vld [vmem:[%s28988_s3 + $0xb14] ss:$24 sps:$4 sm:$0xff]   ;;  %v17471_v26 = vcombine.high %v303_v2, %v315_v5 }
 0x3e3   :  { %v8601_v41 = vadd.f32 0.7978846, %v8577_v29  ;;  %15843 = vmatprep.subr.bf16.mxu0 %v19921_v8  ;;  %v327_v61 = vld [vmem:[%s28986_s1 + $0x938] sm:$0xff]  ;;  %v17470_v29 = vcombine.low %v303_v2, %v315_v5 }
 0x3e4   :  { %v8624_v8 = vmul.f32 %v24767_v56, %v8600_v52  ;;  %v339_v16 = vld [vmem:[%s28986_s1 + $0x998] sm:$0xff] }
 0x3e5   :  { %v8625_v45 = vmul.f32 %v24774_v15, %v8601_v41  ;;  %7946 = vmatpush1.bf16.msra.mxu1 %v17374_v30  ;;  %v19931_v30 = vld [vmem:[%s28988_s3 + $0xb10] ss:$24 sps:$4 sm:$0xff]   ;;  %v363_v40 = vld [vmem:[%s28986_s1 + $0xa58] sm:$0xff] }
 0x3e6   :  { %15844 = vmatpush1.bf16.msra.mxu0 %v19919_v31  ;;  %7947 = vmatprep.subr.bf16.mxu1 %v17399_v39  ;;  %v19936_v31 = vld [vmem:[%s28988_s3 + $0xb44] ss:$24 sps:$4 sm:$0xff]   ;;  %v19934_v41 = vld [vmem:[%s28988_s3 + $0xb40] ss:$24 sps:$4 sm:$0xff]  }
 0x3e7   :  { %21494 = vtanh.f32 %v8625_v45  ;;  %15845 = vmatprep.subr.bf16.mxu0 %v19924_v34  ;;  %v17495_v34 = vcombine.high %v327_v61, %v339_v16  ;;  %v351_v39 = vld [vmem:[%s28986_s1 + $0x9f8] sm:$0xff]  ;;  %v19939_v45 = vld [vmem:[%s28988_s3 + $0xb74] ss:$24 sps:$4 sm:$0xff]  }
 0x3e8   :  { %21496 = vtanh.f32 %v8624_v8  ;;  %v17519_v7 = vcombine.high %v351_v39, %v363_v40  ;;  %v411_v5 = vld [vmem:[%s28986_s1 + $0xbd8] sm:$0xff] }
 0x3e9   :  { %7948 = vmatpush1.bf16.msra.mxu1 %v17398_v46  ;;  %21498 = vtanh.f32 %v8627_v10  ;;  %v375_v46 = vld [vmem:[%s28986_s1 + $0xab8] sm:$0xff] }
 0x3ea   :  { %15846 = vmatpush1.bf16.msra.mxu0 %v19922_v1  ;;  %7949 = vmatprep.subr.bf16.mxu1 %v17423_v53  ;;  %v17494_v1 = vcombine.low %v327_v61, %v339_v16  ;;  %v435_v16 = vld [vmem:[%s28986_s1 + $0xc98] sm:$0xff] }
 0x3eb   :  { %15847 = vmatprep.subr.bf16.mxu0 %v19927_v49  ;;  %v387_v49 = vld [vmem:[%s28986_s1 + $0xb18] sm:$0xff] }
 0x3ec   :  { %v17543_v2 = vcombine.high %v375_v46, %v387_v49  ;;  %v17542_v10 = vcombine.low %v375_v46, %v387_v49  ;;  %v471_v46 = vld [vmem:[%s28986_s1 + $0xdb8] sm:$0xff] }
 0x3ed   :  { %7950 = vmatpush1.bf16.msra.mxu1 %v17422_v59  ;;  %v19937_v59 = vld [vmem:[%s28988_s3 + $0xb70] ss:$24 sps:$4 sm:$0xff]  }
 0x3ee   :  { %15848 = vmatpush1.bf16.msra.mxu0 %v19925_v55  ;;  %7951 = vmatprep.subr.bf16.mxu1 %v17447_v11  ;;  %v17518_v55 = vcombine.low %v351_v39, %v363_v40  ;;  %v459_v39 = vld [vmem:[%s28986_s1 + $0xd58] sm:$0xff] }
 0x3ef   :  { %15849 = vmatprep.subr.bf16.mxu0 %v19930_v60  ;;  %v19942_v60 = vld [vmem:[%s28988_s3 + $0xba4] ss:$24 sps:$4 sm:$0xff]  }
 0x3f1   :  { %v21495_v28 = vpop.eup %21494  ;;  %7952 = vmatpush1.bf16.msra.mxu1 %v17446_v9  ;;  %v19945_v9 = vld [vmem:[%s28988_s3 + $0xbd4] ss:$24 sps:$4 sm:$0xff]  }
 0x3f2   :  { %15850 = vmatpush1.bf16.msra.mxu0 %v19928_v14  ;;  %7953 = vmatprep.subr.bf16.mxu1 %v17471_v26  ;;  %v8673_v37 = vmul.f32 0.5, %v21495_v28  ;;  %v21497_v52 = vpop.eup %21496  ;;  %v19940_v14 = vld [vmem:[%s28988_s3 + $0xba0] ss:$24 sps:$4 sm:$0xff]  }
 0x3f3   :  { %15851 = vmatprep.subr.bf16.mxu0 %v19933_v20  ;;  %v21499_v50 = vpop.eup %21498  ;;  %v8672_v8 = vmul.f32 0.5, %v21497_v52  ;;  %v423_v20 = vld [vmem:[%s28986_s1 + $0xc38] sm:$0xff]  ;;  %v19949_v52 = vld [vmem:[%s28988_s3 + $0xc30] ss:$24 sps:$4 sm:$0xff]  }
 0x3f4   :  { %v8697_v62 = vadd.f32 0.5, %v8673_v37  ;;  %v8675_v11 = vmul.f32 0.5, %v21499_v50  ;;  %v447_v37 = vld [vmem:[%s28986_s1 + $0xcf8] sm:$0xff] }
 0x3f5   :  { %7954 = vmatpush1.bf16.msra.mxu1 %v17470_v29  ;;  %v8696_v26 = vadd.f32 0.5, %v8672_v8  ;;  %v17615_v49 = vcombine.high %v447_v37, %v459_v39  ;;  %v19954_v50 = vld [vmem:[%s28988_s3 + $0xc64] ss:$24 sps:$4 sm:$0xff]  }
 0x3f6   :  { %15852 = vmatpush1.bf16.msra.mxu0 %v19931_v30  ;;  %7955 = vmatprep.subr.bf16.mxu1 %v17495_v34  ;;  %v8721_v51 = vmul.f32 %v24774_v15, %v8697_v62  ;;  %v399_v15 = vld [vmem:[%s28986_s1 + $0xb78] sm:$0xff]  ;;  %v8699_v28 = vadd.f32 0.5, %v8675_v11  ;;  %v19943_v30 = vld [vmem:[%s28988_s3 + $0xbd0] ss:$24 sps:$4 sm:$0xff]   ;;  %v17591_v34 = vcombine.high %v423_v20, %v435_v16  ;;  %v17590_v62 = vcombine.low %v423_v20, %v435_v16 }
 0x3f7   :  { %15853 = vmatprep.subr.bf16.mxu0 %v19936_v31  ;;  %v17567_v61 = vcombine.high %v399_v15, %v411_v5  ;;  %v17566_v29 = vcombine.low %v399_v15, %v411_v5  ;;  %v19948_v31 = vld [vmem:[%s28988_s3 + $0xc04] ss:$24 sps:$4 sm:$0xff]   ;;  %v8720_v40 = vmul.f32 %v24767_v56, %v8696_v26  ;;  %v19957_v5 = vld [vmem:[%s28988_s3 + $0xc94] ss:$24 sps:$4 sm:$0xff]  }
 0x3f8   :  { %v24867_v53 = vpack.c.bf16 %v8721_v51, %v8721_v51  ;;  %v519_v8 = vld [vmem:[%s28986_s1 + $0xf38] sm:$0xff] }
 0x3f9   :  { %7956 = vmatpush1.bf16.msra.mxu1 %v17494_v1  ;;  %v19946_v1 = vld [vmem:[%s28988_s3 + $0xc00] ss:$24 sps:$4 sm:$0xff]   ;;  %v24920_v56 = vpack.c.bf16 %v8720_v40, %v8720_v40  ;;  %v19960_v20 = vld [vmem:[%s28988_s3 + $0xcc4] ss:$24 sps:$4 sm:$0xff]  }
 0x3fa   :  { %15854 = vmatpush1.bf16.msra.mxu0 %v19934_v41  ;;  %15861 = vmatprep.mubr.bf16.mxu0 %v24867_v53  ;;  %v8723_v41 = vmul.f32 %v24746_v43, %v8699_v28  ;;  %v483_v43 = vld [vmem:[%s28986_s1 + $0xe18] sm:$0xff] }
 0x3fb   :  { %7957 = vmatprep.subr.bf16.mxu1 %v17519_v7  ;;  %15855 = vmatprep.subr.bf16.mxu0 %v19939_v45  ;;  %v19951_v45 = vld [vmem:[%s28988_s3 + $0xc34] ss:$24 sps:$4 sm:$0xff]   ;;  %v17614_v7 = vcombine.low %v447_v37, %v459_v39  ;;  %v17638_v15 = vcombine.low %v471_v46, %v483_v43  ;;  %v555_v26 = vld [vmem:[%s28986_s1 + $0x1058] sm:$0xff] }
 0x3fc   :  { %v24923_v51 = vpack.c.bf16 %v8723_v41, %v8723_v41  ;;  %v579_v39 = vld [vmem:[%s28986_s1 + $0x1118] sm:$0xff]  ;;  %v19961_v41 = vld [vmem:[%s28988_s3 + $0xcf0] ss:$24 sps:$4 sm:$0xff]  }
 0x3fd   :  { %7958 = vmatpush1.bf16.msra.mxu1 %v17518_v55  ;;  %v495_v55 = vld [vmem:[%s28986_s1 + $0xe78] sm:$0xff] }
 0x3fe   :  { %15856 = vmatpush1.bf16.msra.mxu0 %v19937_v59  ;;  %7959 = vmatprep.subr.bf16.mxu1 %v17543_v2  ;;  %v17639_v59 = vcombine.high %v471_v46, %v483_v43  ;;  %v19952_v2 = vld [vmem:[%s28988_s3 + $0xc60] ss:$24 sps:$4 sm:$0xff]  }
 0x3ff   :  { %15857 = vmatprep.subr.bf16.mxu0 %v19942_v60  ;;  %v507_v60 = vld [vmem:[%s28986_s1 + $0xed8] sm:$0xff] }
 0x400   :  { %v17663_v11 = vcombine.high %v495_v55, %v507_v60  ;;  %v603_v46 = vld [vmem:[%s28986_s1 + $0x11d8] sm:$0xff] }
 0x401   :  { %7960 = vmatpush1.bf16.msra.mxu1 %v17542_v10  ;;  %v531_v10 = vld [vmem:[%s28986_s1 + $0xf98] sm:$0xff] }
 0x402   :  { %15858 = vmatpush1.bf16.msra.mxu0 %v19940_v14  ;;  %7961 = vmatprep.subr.bf16.mxu1 %v17567_v61  ;;  %v17662_v14 = vcombine.low %v495_v55, %v507_v60  ;;  %v543_v61 = vld [vmem:[%s28986_s1 + $0xff8] sm:$0xff]  ;;  %v17687_v16 = vcombine.high %v519_v8, %v531_v10  ;;  %v17686_v28 = vcombine.low %v519_v8, %v531_v10  ;;  %v19967_v60 = vld [vmem:[%s28988_s3 + $0xd50] ss:$24 sps:$4 sm:$0xff]  }
 0x403   :  { %15859 = vmatprep.subr.bf16.mxu0 %v19945_v9  ;;  %v19955_v9 = vld [vmem:[%s28988_s3 + $0xc90] ss:$24 sps:$4 sm:$0xff]   ;;  %v17711_v37 = vcombine.high %v543_v61, %v555_v26  ;;  %v17710_v40 = vcombine.low %v543_v61, %v555_v26  ;;  %v627_v55 = vld [vmem:[%s28986_s1 + $0x1298] sm:$0xff]  ;;  %v19975_v61 = vld [vmem:[%s28988_s3 + $0xdb4] ss:$24 sps:$4 sm:$0xff]  }
 0x404   :  { %v639_v8 = vld [vmem:[%s28986_s1 + $0x12f8] sm:$0xff] }
 0x405   :  { %7962 = vmatpush1.bf16.msra.mxu1 %v17566_v29  ;;  %v19958_v29 = vld [vmem:[%s28988_s3 + $0xcc0] ss:$24 sps:$4 sm:$0xff]  }
 0x406   :  { %15860 = vmatpush1.bf16.msra.mxu0 %v19943_v30  ;;  %7972 = vmatprep.subr.bf16.mxu1 %v17591_v34  ;;  %v19963_v30 = vld [vmem:[%s28988_s3 + $0xcf4] ss:$24 sps:$4 sm:$0xff]   ;;  %v1225_v34 = vrot.slane %v24711_v18, %v24039_v48  ;;  %v675_v26 = vld [vmem:[%s28986_s1 + $0x1418] sm:$0xff] }
 0x407   :  { %15870 = vmatprep.subr.bf16.mxu0 %v19948_v31  ;;  %v567_v31 = vld [vmem:[%s28986_s1 + $0x10b8] sm:$0xff] }
 0x408   :  { %7964 = vmatmul.mubr.bf16.vlgmr.msra.gmra.mrb[20].mxu1 %v21786_v12  ;;  %v24985_v18 = vadd.f32 %v22874_v4, %v1225_v34  ;;  %v17734_v43 = vcombine.low %v567_v31, %v579_v39  ;;  %v19978_v34 = vld [vmem:[%s28988_s3 + $0xde4] ss:$24 sps:$4 sm:$0xff]  }
 0x409   :  { %15862 = vmatmul.mubr.bf16.vlgmr.msra.gmra.mrb[16].mxu0 %v24920_v56  ;;  %7973 = vmatpush1.bf16.msra.mxu1 %v17590_v62  ;;  %v19966_v62 = vld [vmem:[%s28988_s3 + $0xd24] ss:$24 sps:$4 sm:$0xff]  }
 0x40a   :  { %15871 = vmatpush1.bf16.msra.mxu0 %v19946_v1  ;;  %15902 = vmatprep.mubr.bf16.mxu0 %v24923_v51  ;;  %v17735_v1 = vcombine.high %v567_v31, %v579_v39  ;;  %v8554_v4 = vmul.f32 %v24985_v18, %v24985_v18  ;;  %v699_v39 = vld [vmem:[%s28986_s1 + $0x14d8] sm:$0xff] }
 0x40b   :  { %7974 = vmatprep.subr.bf16.mxu1 %v17615_v49  ;;  %15872 = vmatprep.subr.bf16.mxu0 %v19951_v45  ;;  %v591_v45 = vld [vmem:[%s28986_s1 + $0x1178] sm:$0xff] }
 0x40c   :  { %8004 = vmatprep.mubr.bf16.mxu1 %v21803_v22  ;;  %v19964_v49 = vld [vmem:[%s28988_s3 + $0xd20] ss:$24 sps:$4 sm:$0xff]  }
 0x40d   :  { %7975 = vmatpush1.bf16.msra.mxu1 %v17614_v7  ;;  %v17759_v7 = vcombine.high %v591_v45, %v603_v46 }
 0x40e   :  { %15873 = vmatpush1.bf16.msra.mxu0 %v19949_v52  ;;  %7976 = vmatprep.subr.bf16.mxu1 %v17639_v59  ;;  %v19969_v52 = vld [vmem:[%s28988_s3 + $0xd54] ss:$24 sps:$4 sm:$0xff]   ;;  %v17758_v59 = vcombine.low %v591_v45, %v603_v46  ;;  %v711_v45 = vld [vmem:[%s28986_s1 + $0x1538] sm:$0xff] }
 0x40f   :  { %15874 = vmatprep.subr.bf16.mxu0 %v19954_v50  ;;  %v615_v50 = vld [vmem:[%s28986_s1 + $0x1238] sm:$0xff] }
 0x410   :  { %v17782_v10 = vcombine.low %v615_v50, %v627_v55  ;;  %v723_v46 = vld [vmem:[%s28986_s1 + $0x1598] sm:$0xff] }
 0x411   :  { %7977 = vmatpush1.bf16.msra.mxu1 %v17638_v15  ;;  %v8578_v15 = vmul.f32 0.035677407, %v8554_v4  ;;  %v17879_v4 = vcombine.high %v711_v45, %v723_v46 }
 0x412   :  { %15875 = vmatpush1.bf16.msra.mxu0 %v19952_v2  ;;  %7978 = vmatprep.subr.bf16.mxu1 %v17663_v11  ;;  %v17783_v2 = vcombine.high %v615_v50, %v627_v55  ;;  %v651_v11 = vld [vmem:[%s28986_s1 + $0x1358] sm:$0xff]  ;;  %v17878_v55 = vcombine.low %v711_v45, %v723_v46 }
 0x413   :  { %15876 = vmatprep.subr.bf16.mxu0 %v19957_v5  ;;  %v19972_v5 = vld [vmem:[%s28988_s3 + $0xd84] ss:$24 sps:$4 sm:$0xff]  }
 0x414   :  { %v747_v50 = vld [vmem:[%s28986_s1 + $0x1658] sm:$0xff] }
 0x415   :  { %7979 = vmatpush1.bf16.msra.mxu1 %v17662_v14  ;;  %v19970_v14 = vld [vmem:[%s28988_s3 + $0xd80] ss:$24 sps:$4 sm:$0xff]   ;;  %v19996_v45 = vld [vmem:[%s28988_s3 + $0xf04] ss:$24 sps:$4 sm:$0xff]  }
 0x416   :  { %15877 = vmatpush1.bf16.msra.mxu0 %v19955_v9  ;;  %7980 = vmatprep.subr.bf16.mxu1 %v17687_v16  ;;  %v8602_v9 = vadd.f32 0.7978846, %v8578_v15  ;;  %v663_v16 = vld [vmem:[%s28986_s1 + $0x13b8] sm:$0xff]  ;;  %v19987_v15 = vld [vmem:[%s28988_s3 + $0xe74] ss:$24 sps:$4 sm:$0xff]  }
 0x417   :  { %15878 = vmatprep.subr.bf16.mxu0 %v19960_v20  ;;  %v17807_v20 = vcombine.high %v639_v8, %v651_v11  ;;  %v17831_v31 = vcombine.high %v663_v16, %v675_v26 }
 0x419   :  { %7981 = vmatpush1.bf16.msra.mxu1 %v17686_v28  ;;  %v17806_v28 = vcombine.low %v639_v8, %v651_v11 }
 0x41a   :  { %15879 = vmatpush1.bf16.msra.mxu0 %v19958_v29  ;;  %7982 = vmatprep.subr.bf16.mxu1 %v17711_v37  ;;  %v19973_v29 = vld [vmem:[%s28988_s3 + $0xdb0] ss:$24 sps:$4 sm:$0xff]   ;;  %v687_v37 = vld [vmem:[%s28986_s1 + $0x1478] sm:$0xff] }
 0x41b   :  { %15880 = vmatprep.subr.bf16.mxu0 %v19963_v30  ;;  %v8626_v30 = vmul.f32 %v24985_v18, %v8602_v9  ;;  %v19990_v9 = vld [vmem:[%s28988_s3 + $0xea4] ss:$24 sps:$4 sm:$0xff]  }
 0x41d   :  { %7983 = vmatpush1.bf16.msra.mxu1 %v17710_v40  ;;  %v17830_v40 = vcombine.low %v663_v16, %v675_v26  ;;  %21500 = vtanh.f32 %v8626_v30 }
 0x41e   :  { %15881 = vmatpush1.bf16.msra.mxu0 %v19961_v41  ;;  %7984 = vmatprep.subr.bf16.mxu1 %v17735_v1  ;;  %v19976_v41 = vld [vmem:[%s28988_s3 + $0xde0] ss:$24 sps:$4 sm:$0xff]   ;;  %v19981_v1 = vld [vmem:[%s28988_s3 + $0xe14] ss:$24 sps:$4 sm:$0xff]  }
 0x41f   :  { %15882 = vmatprep.subr.bf16.mxu0 %v19966_v62  ;;  %v17855_v62 = vcombine.high %v687_v37, %v699_v39 }
 0x421   :  { %7985 = vmatpush1.bf16.msra.mxu1 %v17734_v43  ;;  %v17854_v43 = vcombine.low %v687_v37, %v699_v39 }
 0x422   :  { %15883 = vmatpush1.bf16.msra.mxu0 %v19964_v49  ;;  %7986 = vmatprep.subr.bf16.mxu1 %v17759_v7  ;;  %v19979_v49 = vld [vmem:[%s28988_s3 + $0xe10] ss:$24 sps:$4 sm:$0xff]   ;;  %v19984_v7 = vld [vmem:[%s28988_s3 + $0xe44] ss:$24 sps:$4 sm:$0xff]  }
 0x423   :  { %15884 = vmatprep.subr.bf16.mxu0 %v19969_v52  ;;  %v735_v52 = vld [vmem:[%s28986_s1 + $0x15f8] sm:$0xff] }
 0x424   :  { %v17902_v11 = vcombine.low %v735_v52, %v747_v50 }
 0x425   :  { %7987 = vmatpush1.bf16.msra.mxu1 %v17758_v59  ;;  %v19982_v59 = vld [vmem:[%s28988_s3 + $0xe40] ss:$24 sps:$4 sm:$0xff]  }
 0x426   :  { %15885 = vmatpush1.bf16.msra.mxu0 %v19967_v60  ;;  %7988 = vmatprep.subr.bf16.mxu1 %v17783_v2  ;;  %v17903_v60 = vcombine.high %v735_v52, %v747_v50  ;;  %v759_v2 = vld [vmem:[%s28986_s1 + $0x16b8] sm:$0xff] }
 0x427   :  { %15886 = vmatprep.subr.bf16.mxu0 %v19972_v5  ;;  %v771_v5 = vld [vmem:[%s28986_s1 + $0x1718] sm:$0xff]  ;;  %v21501_v8 = vpop.eup %21500 }
 0x428   :  { %v8674_v16 = vmul.f32 0.5, %v21501_v8  ;;  %v17926_v26 = vcombine.low %v759_v2, %v771_v5  ;;  %v19994_v52 = vld [vmem:[%s28988_s3 + $0xf00] ss:$24 sps:$4 sm:$0xff]  }
 0x429   :  { %7989 = vmatpush1.bf16.msra.mxu1 %v17782_v10  ;;  %v19985_v10 = vld [vmem:[%s28988_s3 + $0xe70] ss:$24 sps:$4 sm:$0xff]  }
 0x42a   :  { %15887 = vmatpush1.bf16.msra.mxu0 %v19970_v14  ;;  %7990 = vmatprep.subr.bf16.mxu1 %v17807_v20  ;;  %v17927_v14 = vcombine.high %v759_v2, %v771_v5  ;;  %v783_v20 = vld [vmem:[%s28986_s1 + $0x1778] sm:$0xff]  ;;  %v8698_v37 = vadd.f32 0.5, %v8674_v16  ;;  %v19997_v2 = vld [vmem:[%s28988_s3 + $0xf30] ss:$24 sps:$4 sm:$0xff]  }
 0x42b   :  { %15888 = vmatprep.subr.bf16.mxu0 %v19975_v61  ;;  %v795_v61 = vld [vmem:[%s28986_s1 + $0x17d8] sm:$0xff] }
 0x42c   :  { %v17951_v30 = vcombine.high %v783_v20, %v795_v61  ;;  %v17950_v39 = vcombine.low %v783_v20, %v795_v61  ;;  %v8722_v46 = vmul.f32 %v24985_v18, %v8698_v37  ;;  %v19999_v18 = vld [vmem:[%s28988_s3 + $0xf34] ss:$24 sps:$4 sm:$0xff]   ;;  %v20002_v5 = vld [vmem:[%s28988_s3 + $0xf64] ss:$24 sps:$4 sm:$0xff]  }
 0x42d   :  { %7991 = vmatpush1.bf16.msra.mxu1 %v17806_v28  ;;  %v19988_v28 = vld [vmem:[%s28988_s3 + $0xea0] ss:$24 sps:$4 sm:$0xff]   ;;  %v20005_v20 = vld [vmem:[%s28988_s3 + $0xf94] ss:$24 sps:$4 sm:$0xff]  }
 0x42e   :  { %15889 = vmatpush1.bf16.msra.mxu0 %v19973_v29  ;;  %7992 = vmatprep.subr.bf16.mxu1 %v17831_v31  ;;  %v19993_v29 = vld [vmem:[%s28988_s3 + $0xed4] ss:$24 sps:$4 sm:$0xff]   ;;  %v807_v31 = vld [vmem:[%s28986_s1 + $0x1838] sm:$0xff]  ;;  %v25129_v50 = vpack.c.bf16 %v8722_v46, %v8722_v46 }
 0x42f   :  { %15890 = vmatprep.subr.bf16.mxu0 %v19978_v34  ;;  %v819_v34 = vld [vmem:[%s28986_s1 + $0x1898] sm:$0xff] }
 0x430   :  { %v927_v16 = vld [vmem:[%s28986_s1 + $0x1bf8] sm:$0xff] }
 0x431   :  { %7993 = vmatpush1.bf16.msra.mxu1 %v17830_v40  ;;  %v19991_v40 = vld [vmem:[%s28988_s3 + $0xed0] ss:$24 sps:$4 sm:$0xff]   ;;  %v963_v37 = vld [vmem:[%s28986_s1 + $0x1d18] sm:$0xff] }
 0x432   :  { %15891 = vmatpush1.bf16.msra.mxu0 %v19976_v41  ;;  %7994 = vmatprep.subr.bf16.mxu1 %v17855_v62  ;;  %v831_v41 = vld [vmem:[%s28986_s1 + $0x18f8] sm:$0xff]  ;;  %v17975_v62 = vcombine.high %v807_v31, %v819_v34 }
 0x433   :  { %15892 = vmatprep.subr.bf16.mxu0 %v19981_v1  ;;  %v843_v1 = vld [vmem:[%s28986_s1 + $0x1958] sm:$0xff] }
 0x435   :  { %7995 = vmatpush1.bf16.msra.mxu1 %v17854_v43  ;;  %v17974_v43 = vcombine.low %v807_v31, %v819_v34  ;;  %v951_v34 = vld [vmem:[%s28986_s1 + $0x1cb8] sm:$0xff] }
 0x436   :  { %15893 = vmatpush1.bf16.msra.mxu0 %v19979_v49  ;;  %7996 = vmatprep.subr.bf16.mxu1 %v17879_v4  ;;  %v855_v49 = vld [vmem:[%s28986_s1 + $0x19b8] sm:$0xff]  ;;  %v18119_v46 = vcombine.high %v951_v34, %v963_v37 }
 0x437   :  { %15894 = vmatprep.subr.bf16.mxu0 %v19984_v7  ;;  %v867_v4 = vld [vmem:[%s28986_s1 + $0x1a18] sm:$0xff]  ;;  %v17999_v7 = vcombine.high %v831_v41, %v843_v1 }
 0x438   :  { %v18022_v8 = vcombine.low %v855_v49, %v867_v4 }
 0x439   :  { %7997 = vmatpush1.bf16.msra.mxu1 %v17878_v55  ;;  %v17998_v55 = vcombine.low %v831_v41, %v843_v1  ;;  %v20011_v41 = vld [vmem:[%s28988_s3 + $0xff4] ss:$24 sps:$4 sm:$0xff]   ;;  %v975_v1 = vld [vmem:[%s28986_s1 + $0x1d78] sm:$0xff] }
 0x43a   :  { %15895 = vmatpush1.bf16.msra.mxu0 %v19982_v59  ;;  %7998 = vmatprep.subr.bf16.mxu1 %v17903_v60  ;;  %v879_v59 = vld [vmem:[%s28986_s1 + $0x1a78] sm:$0xff] }
 0x43b   :  { %15896 = vmatprep.subr.bf16.mxu0 %v19987_v15  ;;  %v891_v60 = vld [vmem:[%s28986_s1 + $0x1ad8] sm:$0xff]  ;;  %v18023_v15 = vcombine.high %v855_v49, %v867_v4  ;;  %v18118_v4 = vcombine.low %v951_v34, %v963_v37 }
 0x43c   :  { %v18046_v61 = vcombine.low %v879_v59, %v891_v60  ;;  %v20014_v49 = vld [vmem:[%s28988_s3 + $0x1024] ss:$24 sps:$4 sm:$0xff]  }
 0x43d   :  { %7999 = vmatpush1.bf16.msra.mxu1 %v17902_v11  ;;  %v903_v11 = vld [vmem:[%s28986_s1 + $0x1b38] sm:$0xff] }
 0x43e   :  { %15897 = vmatpush1.bf16.msra.mxu0 %v19985_v10  ;;  %8000 = vmatprep.subr.bf16.mxu1 %v17927_v14  ;;  %v915_v10 = vld [vmem:[%s28986_s1 + $0x1b98] sm:$0xff]  ;;  %v18047_v14 = vcombine.high %v879_v59, %v891_v60  ;;  %v20017_v59 = vld [vmem:[%s28988_s3 + $0x1054] ss:$24 sps:$4 sm:$0xff]  }
 0x43f   :  { %15898 = vmatprep.subr.bf16.mxu0 %v19990_v9  ;;  %v20000_v9 = vld [vmem:[%s28988_s3 + $0xf60] ss:$24 sps:$4 sm:$0xff]   ;;  %v18070_v31 = vcombine.low %v903_v11, %v915_v10  ;;  %v20026_v34 = vld [vmem:[%s28988_s3 + $0x10e4] ss:$24 sps:$4 sm:$0xff]  }
 0x441   :  { %8001 = vmatpush1.bf16.msra.mxu1 %v17926_v26  ;;  %v939_v26 = vld [vmem:[%s28986_s1 + $0x1c58] sm:$0xff] }
 0x442   :  { %15899 = vmatpush1.bf16.msra.mxu0 %v19988_v28  ;;  %8002 = vmatprep.subr.bf16.mxu1 %v17951_v30  ;;  %v18071_v28 = vcombine.high %v903_v11, %v915_v10  ;;  %v20008_v30 = vld [vmem:[%s28988_s3 + $0xfc4] ss:$24 sps:$4 sm:$0xff]  }
 0x443   :  { %15900 = vmatprep.subr.bf16.mxu0 %v19993_v29  ;;  %v20003_v29 = vld [vmem:[%s28988_s3 + $0xf90] ss:$24 sps:$4 sm:$0xff]   ;;  %v20020_v11 = vld [vmem:[%s28988_s3 + $0x1084] ss:$24 sps:$4 sm:$0xff]  }
 0x445   :  { %8003 = vmatpush1.bf16.msra.mxu1 %v17950_v39  ;;  %v18095_v39 = vcombine.high %v927_v16, %v939_v26 }
 0x446   :  { %15901 = vmatpush1.bf16.msra.mxu0 %v19991_v40  ;;  %8013 = vmatprep.subr.bf16.mxu1 %v17975_v62  ;;  %v20006_v40 = vld [vmem:[%s28988_s3 + $0xfc0] ss:$24 sps:$4 sm:$0xff]   ;;  %v18094_v62 = vcombine.low %v927_v16, %v939_v26  ;;  %v20023_v16 = vld [vmem:[%s28988_s3 + $0x10b4] ss:$24 sps:$4 sm:$0xff]  }
 0x447   :  { %15911 = vmatprep.subr.bf16.mxu0 %v19996_v45  ;;  %v987_v45 = vld [vmem:[%s28986_s1 + $0x1dd8] sm:$0xff] }
 0x448   :  { %8005 = vmatmul.mubr.bf16.vlgmr.msra.gmra.mrb[20].mxu1 %v21992_v21  ;;  %v18142_v60 = vcombine.low %v975_v1, %v987_v45 }
 0x449   :  { %15903 = vmatmul.mubr.bf16.vlgmr.msra.gmra.mrb[16].mxu0 %v25129_v50  ;;  %8014 = vmatpush1.bf16.msra.mxu1 %v17974_v43  ;;  %v20009_v43 = vld [vmem:[%s28988_s3 + $0xff0] ss:$24 sps:$4 sm:$0xff]  }
 0x44a   :  { %8015 = vmatprep.subr.bf16.mxu1 %v17999_v7  ;;  %15912 = vmatpush1.bf16.msra.mxu0 %v19994_v52  ;;  %v999_v7 = vld [vmem:[%s28986_s1 + $0x1e38] sm:$0xff] }
 0x44b   :  { %15913 = vmatprep.subr.bf16.mxu0 %v19999_v18  ;;  %8045 = vmatprep.mubr.bf16.mxu1 %v22009_v32  ;;  %v1011_v52 = vld [vmem:[%s28986_s1 + $0x1e98] sm:$0xff]  ;;  %v18143_v18 = vcombine.high %v975_v1, %v987_v45  ;;  %v20029_v1 = vld [vmem:[%s28988_s3 + $0x1114] ss:$24 sps:$4 sm:$0xff]  }
 0x44c   :  { %v18166_v10 = vcombine.low %v999_v7, %v1011_v52 }
 0x44d   :  { %8016 = vmatpush1.bf16.msra.mxu1 %v17998_v55  ;;  %v20012_v55 = vld [vmem:[%s28988_s3 + $0x1020] ss:$24 sps:$4 sm:$0xff]  }
 0x44e   :  { %8017 = vmatprep.subr.bf16.mxu1 %v18023_v15  ;;  %15914 = vmatpush1.bf16.msra.mxu0 %v19997_v2  ;;  %v1023_v15 = vld [vmem:[%s28986_s1 + $0x1ef8] sm:$0xff] }
 0x44f   :  { %15915 = vmatprep.subr.bf16.mxu0 %v20002_v5  ;;  %v1035_v2 = vld [vmem:[%s28986_s1 + $0x1f58] sm:$0xff]  ;;  %v18167_v5 = vcombine.high %v999_v7, %v1011_v52 }
 0x450   :  { %v18190_v26 = vcombine.low %v1023_v15, %v1035_v2  ;;  %v20032_v7 = vld [vmem:[%s28988_s3 + $0x1144] ss:$24 sps:$4 sm:$0xff]  }
 0x451   :  { %8018 = vmatpush1.bf16.msra.mxu1 %v18022_v8  ;;  %v20015_v8 = vld [vmem:[%s28988_s3 + $0x1050] ss:$24 sps:$4 sm:$0xff]  }
 0x452   :  { %8019 = vmatprep.subr.bf16.mxu1 %v18047_v14  ;;  %15916 = vmatpush1.bf16.msra.mxu0 %v20000_v9  ;;  %v1047_v14 = vld [vmem:[%s28986_s1 + $0x1fb8] sm:$0xff] }
 0x453   :  { %15917 = vmatprep.subr.bf16.mxu0 %v20005_v20  ;;  %v1059_v9 = vld [vmem:[%s28986_s1 + $0x2018] sm:$0xff]  ;;  %v18191_v20 = vcombine.high %v1023_v15, %v1035_v2  ;;  %v20035_v15 = vld [vmem:[%s28988_s3 + $0x1174] ss:$24 sps:$4 sm:$0xff]  }
 0x454   :  { %v18214_v37 = vcombine.low %v1047_v14, %v1059_v9 }
 0x455   :  { %8020 = vmatpush1.bf16.msra.mxu1 %v18046_v61  ;;  %v20018_v61 = vld [vmem:[%s28988_s3 + $0x1080] ss:$24 sps:$4 sm:$0xff]  }
 0x456   :  { %8021 = vmatprep.subr.bf16.mxu1 %v18071_v28  ;;  %15918 = vmatpush1.bf16.msra.mxu0 %v20003_v29  ;;  %v1071_v28 = vld [vmem:[%s28986_s1 + $0x2078] sm:$0xff] }
 0x457   :  { %15919 = vmatprep.subr.bf16.mxu0 %v20008_v30  ;;  %v1083_v29 = vld [vmem:[%s28986_s1 + $0x20d8] sm:$0xff]  ;;  %v18215_v30 = vcombine.high %v1047_v14, %v1059_v9 }
 0x458   :  { %v18238_v45 = vcombine.low %v1071_v28, %v1083_v29  ;;  %v20038_v14 = vld [vmem:[%s28988_s3 + $0x11a4] ss:$24 sps:$4 sm:$0xff]  }
 0x459   :  { %8022 = vmatpush1.bf16.msra.mxu1 %v18070_v31  ;;  %v20021_v31 = vld [vmem:[%s28988_s3 + $0x10b0] ss:$24 sps:$4 sm:$0xff]  }
 0x45a   :  { %8023 = vmatprep.subr.bf16.mxu1 %v18095_v39  ;;  %15920 = vmatpush1.bf16.msra.mxu0 %v20006_v40  ;;  %v1095_v39 = vld [vmem:[%s28986_s1 + $0x2138] sm:$0xff] }
 0x45b   :  { %15921 = vmatprep.subr.bf16.mxu0 %v20011_v41  ;;  %v1107_v40 = vld [vmem:[%s28986_s1 + $0x2198] sm:$0xff]  ;;  %v18239_v41 = vcombine.high %v1071_v28, %v1083_v29 }
 0x45c   :  { %v18262_v52 = vcombine.low %v1095_v39, %v1107_v40 }
 0x45d   :  { %8024 = vmatpush1.bf16.msra.mxu1 %v18094_v62  ;;  %v20024_v62 = vld [vmem:[%s28988_s3 + $0x10e0] ss:$24 sps:$4 sm:$0xff]  }
 0x45e   :  { %8025 = vmatprep.subr.bf16.mxu1 %v18119_v46  ;;  %15922 = vmatpush1.bf16.msra.mxu0 %v20009_v43  ;;  %v1119_v46 = vld [vmem:[%s28986_s1 + $0x21f8] sm:$0xff] }
 0x45f   :  { %15923 = vmatprep.subr.bf16.mxu0 %v20014_v49  ;;  %v1131_v43 = vld [vmem:[%s28986_s1 + $0x2258] sm:$0xff]  ;;  %v18263_v49 = vcombine.high %v1095_v39, %v1107_v40 }
 0x460   :  { %v18286_v2 = vcombine.low %v1119_v46, %v1131_v43 }
 0x461   :  { %8026 = vmatpush1.bf16.msra.mxu1 %v18118_v4  ;;  %v20027_v4 = vld [vmem:[%s28988_s3 + $0x1110] ss:$24 sps:$4 sm:$0xff]  }
 0x462   :  { %8027 = vmatprep.subr.bf16.mxu1 %v18143_v18  ;;  %15924 = vmatpush1.bf16.msra.mxu0 %v20012_v55  ;;  %v1143_v18 = vld [vmem:[%s28986_s1 + $0x22b8] sm:$0xff] }
 0x463   :  { %15925 = vmatprep.subr.bf16.mxu0 %v20017_v59  ;;  %v1155_v55 = vld [vmem:[%s28986_s1 + $0x2318] sm:$0xff]  ;;  %v18287_v59 = vcombine.high %v1119_v46, %v1131_v43 }
 0x464   :  { %v18310_v9 = vcombine.low %v1143_v18, %v1155_v55 }
 0x465   :  { %8028 = vmatpush1.bf16.msra.mxu1 %v18142_v60  ;;  %v20030_v60 = vld [vmem:[%s28988_s3 + $0x1140] ss:$24 sps:$4 sm:$0xff]  }
 0x466   :  { %8029 = vmatprep.subr.bf16.mxu1 %v18167_v5  ;;  %15926 = vmatpush1.bf16.msra.mxu0 %v20015_v8  ;;  %v1167_v5 = vld [vmem:[%s28986_s1 + $0x2378] sm:$0xff] }
 0x467   :  { %15927 = vmatprep.subr.bf16.mxu0 %v20020_v11  ;;  %v1179_v8 = vld [vmem:[%s28986_s1 + $0x23d8] sm:$0xff]  ;;  %v18311_v11 = vcombine.high %v1143_v18, %v1155_v55  ;;  %v137_v55 = vld [vmem:[%s28986_s1 + $0x348] sm:$0xff] }
 0x468   :  { %v18335_v28 = vcombine.high %v1167_v5, %v1179_v8  ;;  %v18334_v29 = vcombine.low %v1167_v5, %v1179_v8  ;;  %v173_v5 = vld [vmem:[%s28986_s1 + $0x468] sm:$0xff] }
 0x469   :  { %8030 = vmatpush1.bf16.msra.mxu1 %v18166_v10  ;;  %v20033_v10 = vld [vmem:[%s28988_s3 + $0x1170] ss:$24 sps:$4 sm:$0xff]  }
 0x46a   :  { %8031 = vmatprep.subr.bf16.mxu1 %v18191_v20  ;;  %15928 = vmatpush1.bf16.msra.mxu0 %v20018_v61  ;;  %v41_v20 = vld [vmem:[%s28986_s1 + $0x48] sm:$0xff] }
 0x46b   :  { %15929 = vmatprep.subr.bf16.mxu0 %v20023_v16  ;;  %v53_v61 = vld [vmem:[%s28986_s1 + $0xa8] sm:$0xff]  ;;  %v20036_v16 = vld [vmem:[%s28988_s3 + $0x11a0] ss:$24 sps:$4 sm:$0xff]  }
 0x46c   :  { %v17211_v39 = vcombine.high %v41_v20, %v53_v61  ;;  %v17210_v40 = vcombine.low %v41_v20, %v53_v61 }
 0x46d   :  { %8032 = vmatpush1.bf16.msra.mxu1 %v18190_v26  ;;  %v20041_v26 = vld [vmem:[%s28988_s3 + $0x11d4] ss:$24 sps:$4 sm:$0xff]  }
 0x46e   :  { %8033 = vmatprep.subr.bf16.mxu1 %v18215_v30  ;;  %15930 = vmatpush1.bf16.msra.mxu0 %v20021_v31  ;;  %v65_v30 = vld [vmem:[%s28986_s1 + $0x108] sm:$0xff] }
 0x46f   :  { %15931 = vmatprep.subr.bf16.mxu0 %v20026_v34  ;;  %v77_v31 = vld [vmem:[%s28986_s1 + $0x168] sm:$0xff] }
 0x470   :  { %v20039_v34 = vld [vmem:[%s28988_s3 + $0x11d0] ss:$24 sps:$4 sm:$0xff]   ;;  %v17234_v43 = vcombine.low %v65_v30, %v77_v31 }
 0x471   :  { %8034 = vmatpush1.bf16.msra.mxu1 %v18214_v37  ;;  %v20044_v37 = vld [vmem:[%s28988_s3 + $0x1204] ss:$24 sps:$4 sm:$0xff]  }
 0x472   :  { %8035 = vmatprep.subr.bf16.mxu1 %v18239_v41  ;;  %15932 = vmatpush1.bf16.msra.mxu0 %v20024_v62  ;;  %v89_v41 = vld [vmem:[%s28986_s1 + $0x1c8] sm:$0xff] }
 0x473   :  { %15933 = vmatprep.subr.bf16.mxu0 %v20029_v1  ;;  %v101_v62 = vld [vmem:[%s28986_s1 + $0x228] sm:$0xff]  ;;  %v17235_v1 = vcombine.high %v65_v30, %v77_v31 }
 0x474   :  { %v17258_v18 = vcombine.low %v89_v41, %v101_v62  ;;  %v221_v30 = vld [vmem:[%s28986_s1 + $0x5e8] sm:$0xff] }
 0x475   :  { %8036 = vmatpush1.bf16.msra.mxu1 %v18238_v45  ;;  %v25324_v45 = vld [vmem:[%s28989_s2 + $0x8] sm:$0xff] }
 0x476   :  { %8037 = vmatprep.subr.bf16.mxu1 %v18263_v49  ;;  %15934 = vmatpush1.bf16.msra.mxu0 %v20027_v4  ;;  %v1245_v46 = vrot.slane %v25324_v45, %v24286_v47  ;;  %v113_v49 = vld [vmem:[%s28986_s1 + $0x288] sm:$0xff]  ;;  %v1233_v61 = vrot.slane %v25324_v45, %v24271_v42 }
 0x477   :  { %15935 = vmatprep.subr.bf16.mxu0 %v20032_v7  ;;  %v125_v4 = vld [vmem:[%s28986_s1 + $0x2e8] sm:$0xff]  ;;  %v17259_v7 = vcombine.high %v89_v41, %v101_v62 }
 0x479   :  { %8038 = vmatpush1.bf16.msra.mxu1 %v18262_v52  ;;  %v25336_v52 = vadd.f32 %v23472_v24, %v1245_v46  ;;  %v161_v24 = vld [vmem:[%s28986_s1 + $0x408] sm:$0xff] }
 0x47a   :  { %8039 = vmatprep.subr.bf16.mxu1 %v18287_v59  ;;  %15936 = vmatpush1.bf16.msra.mxu0 %v20030_v60  ;;  %v149_v59 = vld [vmem:[%s28986_s1 + $0x3a8] sm:$0xff]  ;;  %v17283_v60 = vcombine.high %v113_v49, %v125_v4  ;;  %v17331_v20 = vcombine.high %v161_v24, %v173_v5 }
 0x47b   :  { %15937 = vmatprep.subr.bf16.mxu0 %v20035_v15  ;;  %v8559_v15 = vmul.f32 %v25336_v52, %v25336_v52  ;;  %v17307_v8 = vcombine.high %v137_v55, %v149_v59  ;;  %v233_v46 = vld [vmem:[%s28986_s1 + $0x648] sm:$0xff] }
 0x47d   :  { %8040 = vmatpush1.bf16.msra.mxu1 %v18286_v2  ;;  %v17282_v2 = vcombine.low %v113_v49, %v125_v4 }
 0x47e   :  { %8041 = vmatprep.subr.bf16.mxu1 %v18311_v11  ;;  %15938 = vmatpush1.bf16.msra.mxu0 %v20033_v10  ;;  %v8583_v11 = vmul.f32 0.035677407, %v8559_v15  ;;  %v17306_v10 = vcombine.low %v137_v55, %v149_v59  ;;  %v257_v15 = vld [vmem:[%s28986_s1 + $0x708] sm:$0xff] }
 0x47f   :  { %15939 = vmatprep.subr.bf16.mxu0 %v20038_v14  ;;  %v185_v14 = vld [vmem:[%s28986_s1 + $0x4c8] sm:$0xff] }
 0x481   :  { %8042 = vmatpush1.bf16.msra.mxu1 %v18310_v9  ;;  %v197_v9 = vld [vmem:[%s28986_s1 + $0x528] sm:$0xff] }
 0x482   :  { %8043 = vmatprep.subr.bf16.mxu1 %v18335_v28  ;;  %15940 = vmatpush1.bf16.msra.mxu0 %v20036_v16  ;;  %v8607_v16 = vadd.f32 0.7978846, %v8583_v11  ;;  %v17330_v28 = vcombine.low %v161_v24, %v173_v5  ;;  %v17355_v31 = vcombine.high %v185_v14, %v197_v9 }
 0x483   :  { %15941 = vmatprep.subr.bf16.mxu0 %v20041_v26  ;;  %v1237_v26 = vrot.slane %v25324_v45, %v24051_v54 }
 0x485   :  { %8044 = vmatpush1.bf16.msra.mxu1 %v18334_v29  ;;  %v209_v29 = vld [vmem:[%s28986_s1 + $0x588] sm:$0xff] }
 0x486   :  { %8177 = vmatprep.subr.bf16.mxu1 %v17211_v39  ;;  %15942 = vmatpush1.bf16.msra.mxu0 %v20039_v34 }
 0x487   :  { %15952 = vmatprep.subr.bf16.mxu0 %v20044_v37 }
 0x488   :  { %8046 = vmatmul.mubr.bf16.vlgmr.msra.gmra.mrb[20].mxu1 %v22198_v36 }
 0x489   :  { %8178 = vmatpush1.bf16.msra.mxu1 %v17210_v40  ;;  %8209 = vmatprep.mubr.bf16.mxu1 %v21659_v57  ;;  %v8631_v40 = vmul.f32 %v25336_v52, %v8607_v16 }
 0x48a   :  { %8179 = vmatprep.subr.bf16.mxu1 %v17235_v1  ;;  %v17354_v1 = vcombine.low %v185_v14, %v197_v9  ;;  %v281_v9 = vld [vmem:[%s28986_s1 + $0x7c8] sm:$0xff] }
 0x48b   :  { %21502 = vtanh.f32 %v8631_v40 }
 0x48d   :  { %8180 = vmatpush1.bf16.msra.mxu1 %v17234_v43  ;;  %v245_v43 = vld [vmem:[%s28986_s1 + $0x6a8] sm:$0xff] }
 0x48e   :  { %8181 = vmatprep.subr.bf16.mxu1 %v17259_v7  ;;  %v17379_v7 = vcombine.high %v209_v29, %v221_v30  ;;  %v17403_v5 = vcombine.high %v233_v46, %v245_v43  ;;  %v17402_v14 = vcombine.low %v233_v46, %v245_v43 }
 0x491   :  { %8182 = vmatpush1.bf16.msra.mxu1 %v17258_v18 }
 0x492   :  { %8183 = vmatprep.subr.bf16.mxu1 %v17283_v60  ;;  %v17378_v60 = vcombine.low %v209_v29, %v221_v30 }
 0x495   :  { %8184 = vmatpush1.bf16.msra.mxu1 %v17282_v2  ;;  %v269_v2 = vld [vmem:[%s28986_s1 + $0x768] sm:$0xff]  ;;  %v21503_v30 = vpop.eup %21502 }
 0x496   :  { %8185 = vmatprep.subr.bf16.mxu1 %v17307_v8  ;;  %v17426_v16 = vcombine.low %v257_v15, %v269_v2 }
 0x499   :  { %8186 = vmatpush1.bf16.msra.mxu1 %v17306_v10 }
 0x49a   :  { %8187 = vmatprep.subr.bf16.mxu1 %v17331_v20  ;;  %v293_v20 = vld [vmem:[%s28986_s1 + $0x828] sm:$0xff] }
 0x49b   :  { %v7801_v34 = vpop.f32.mrb[16].mxu1  ;;  %v17451_v29 = vcombine.high %v281_v9, %v293_v20 }
 0x49c   :  { %v19506_v37 = vadd.f32 %v7801_v34, %v1233_v61  ;;  %v7803_v39 = vpop.f32.mrb[17].mxu1  ;;  %v17427_v61 = vcombine.high %v257_v15, %v269_v2  ;;  %v329_v34 = vld [vmem:[%s28986_s1 + $0x948] sm:$0xff] }
 0x49d   :  { %v25369_v41 = vadd.f32 %v7803_v39, %v1237_v26  ;;  %v7805_v62 = vpop.f32.mrb[18].mxu1  ;;  %8188 = vmatpush1.bf16.msra.mxu1 %v17330_v28  ;;  %v305_v26 = vld [vmem:[%s28986_s1 + $0x888] sm:$0xff] }
 0x49e   :  { %v8556_v49 = vmul.f32 %v19506_v37, %v19506_v37  ;;  %v7806_v4 = vpop.f32.mrb[19].mxu1  ;;  %8189 = vmatprep.subr.bf16.mxu1 %v17355_v31  ;;  %v317_v28 = vld [vmem:[%s28986_s1 + $0x8e8] sm:$0xff]  ;;  %v17450_v31 = vcombine.low %v281_v9, %v293_v20  ;;  %v8679_v62 = vmul.f32 0.5, %v21503_v30 }
 0x49f   :  { %v8557_v18 = vmul.f32 %v25369_v41, %v25369_v41  ;;  %v341_v39 = vld [vmem:[%s28986_s1 + $0x9a8] sm:$0xff]  ;;  %v17475_v40 = vcombine.high %v305_v26, %v317_v28 }
 0x4a0   :  { %v8580_v55 = vmul.f32 0.035677407, %v8556_v49  ;;  %v17474_v49 = vcombine.low %v305_v26, %v317_v28  ;;  %v17499_v4 = vcombine.high %v329_v34, %v341_v39  ;;  %v401_v26 = vld [vmem:[%s28986_s1 + $0xb88] sm:$0xff] }
 0x4a1   :  { %v8581_v59 = vmul.f32 0.035677407, %v8557_v18  ;;  %8190 = vmatpush1.bf16.msra.mxu1 %v17354_v1  ;;  %v8703_v18 = vadd.f32 0.5, %v8679_v62  ;;  %v413_v28 = vld [vmem:[%s28986_s1 + $0xbe8] sm:$0xff]  ;;  %v20048_v62 = vld [vmem:[%s28988_s3 + $0x1260] ss:$24 sps:$4 sm:$0xff]  }
 0x4a2   :  { %v8604_v24 = vadd.f32 0.7978846, %v8580_v55  ;;  %8191 = vmatprep.subr.bf16.mxu1 %v17379_v7 }
 0x4a3   :  { %v8605_v8 = vadd.f32 0.7978846, %v8581_v59  ;;  %v353_v59 = vld [vmem:[%s28986_s1 + $0xa08] sm:$0xff] }
 0x4a4   :  { %v8628_v11 = vmul.f32 %v19506_v37, %v8604_v24  ;;  %v17498_v24 = vcombine.low %v329_v34, %v341_v39  ;;  %v17571_v34 = vcombine.high %v401_v26, %v413_v28  ;;  %v425_v39 = vld [vmem:[%s28986_s1 + $0xc48] sm:$0xff] }
 0x4a5   :  { %v8629_v10 = vmul.f32 %v25369_v41, %v8605_v8  ;;  %8192 = vmatpush1.bf16.msra.mxu1 %v17378_v60  ;;  %v365_v60 = vld [vmem:[%s28986_s1 + $0xa68] sm:$0xff] }
 0x4a6   :  { %21504 = vtanh.f32 %v8628_v11  ;;  %8193 = vmatprep.subr.bf16.mxu1 %v17403_v5  ;;  %v17523_v8 = vcombine.high %v353_v59, %v365_v60  ;;  %v8727_v11 = vmul.f32 %v25336_v52, %v8703_v18  ;;  %v20047_v52 = vld [vmem:[%s28988_s3 + $0x1234] ss:$24 sps:$4 sm:$0xff]  }
 0x4a7   :  { %21506 = vtanh.f32 %v8629_v10  ;;  %v377_v10 = vld [vmem:[%s28986_s1 + $0xac8] sm:$0xff] }
 0x4a9   :  { %8194 = vmatpush1.bf16.msra.mxu1 %v17402_v14  ;;  %v389_v14 = vld [vmem:[%s28986_s1 + $0xb28] sm:$0xff] }
 0x4aa   :  { %8195 = vmatprep.subr.bf16.mxu1 %v17427_v61  ;;  %v25429_v61 = vpack.c.bf16 %v8727_v11, %v8727_v11  ;;  %v17546_v30 = vcombine.low %v377_v10, %v389_v14 }
 0x4ad   :  { %8196 = vmatpush1.bf16.msra.mxu1 %v17426_v16  ;;  %v17547_v16 = vcombine.high %v377_v10, %v389_v14  ;;  %v509_v10 = vld [vmem:[%s28986_s1 + $0xee8] sm:$0xff] }
 0x4ae   :  { %8197 = vmatprep.subr.bf16.mxu1 %v17451_v29  ;;  %v20045_v29 = vld [vmem:[%s28988_s3 + $0x1230] ss:$24 sps:$4 sm:$0xff]  }
 0x4b0   :  { %v21505_v1 = vpop.eup %21504 }
 0x4b1   :  { %v21507_v46 = vpop.eup %21506  ;;  %v8676_v43 = vmul.f32 0.5, %v21505_v1  ;;  %8198 = vmatpush1.bf16.msra.mxu1 %v17450_v31  ;;  %v20050_v31 = vld [vmem:[%s28988_s3 + $0x1264] ss:$24 sps:$4 sm:$0xff]   ;;  %v17570_v1 = vcombine.low %v401_v26, %v413_v28  ;;  %v521_v26 = vld [vmem:[%s28986_s1 + $0xf48] sm:$0xff] }
 0x4b2   :  { %8199 = vmatprep.subr.bf16.mxu1 %v17475_v40  ;;  %v8677_v7 = vmul.f32 0.5, %v21507_v46  ;;  %v437_v40 = vld [vmem:[%s28986_s1 + $0xca8] sm:$0xff] }
 0x4b3   :  { %v8700_v55 = vadd.f32 0.5, %v8676_v43  ;;  %v20053_v46 = vld [vmem:[%s28988_s3 + $0x1294] ss:$24 sps:$4 sm:$0xff]   ;;  %v17595_v43 = vcombine.high %v425_v39, %v437_v40  ;;  %v17594_v18 = vcombine.low %v425_v39, %v437_v40 }
 0x4b4   :  { %v8701_v15 = vadd.f32 0.5, %v8677_v7  ;;  %v20051_v7 = vld [vmem:[%s28988_s3 + $0x1290] ss:$24 sps:$4 sm:$0xff]  }
 0x4b5   :  { %v8724_v2 = vmul.f32 %v19506_v37, %v8700_v55  ;;  %8200 = vmatpush1.bf16.msra.mxu1 %v17474_v49  ;;  %v20042_v37 = vld [vmem:[%s28988_s3 + $0x1200] ss:$24 sps:$4 sm:$0xff]   ;;  %v449_v49 = vld [vmem:[%s28986_s1 + $0xd08] sm:$0xff]  ;;  %v20056_v55 = vld [vmem:[%s28988_s3 + $0x12c4] ss:$24 sps:$4 sm:$0xff]  }
 0x4b6   :  { %8201 = vmatprep.subr.bf16.mxu1 %v17499_v4  ;;  %v8725_v5 = vmul.f32 %v25369_v41, %v8701_v15  ;;  %v17522_v41 = vcombine.low %v353_v59, %v365_v60  ;;  %v461_v4 = vld [vmem:[%s28986_s1 + $0xd68] sm:$0xff] }
 0x4b7   :  { %v25423_v20 = vpack.c.bf16 %v8724_v2, %v8724_v2  ;;  %v17619_v59 = vcombine.high %v449_v49, %v461_v4  ;;  %v473_v60 = vld [vmem:[%s28986_s1 + $0xdc8] sm:$0xff]  ;;  %v1241_v2 = vrot.slane %v25324_v45, %v24509_v44 }
 0x4b8   :  { %v25418_v9 = vpack.c.bf16 %v8725_v5, %v8725_v5  ;;  %v485_v15 = vld [vmem:[%s28986_s1 + $0xe28] sm:$0xff]  ;;  %v17618_v5 = vcombine.low %v449_v49, %v461_v4 }
 0x4b9   :  { %8202 = vmatpush1.bf16.msra.mxu1 %v17498_v24  ;;  %v20054_v24 = vld [vmem:[%s28988_s3 + $0x12c0] ss:$24 sps:$4 sm:$0xff]   ;;  %v17643_v11 = vcombine.high %v473_v60, %v485_v15  ;;  %v497_v45 = vld [vmem:[%s28986_s1 + $0xe88] sm:$0xff]  ;;  %v25492_v14 = vadd.f32 %v23470_v19, %v1241_v2 }
 0x4ba   :  { %15943 = vmatprep.mubr.bf16.mxu0 %v25418_v9  ;;  %8203 = vmatprep.subr.bf16.mxu1 %v17523_v8  ;;  %v20059_v8 = vld [vmem:[%s28988_s3 + $0x12f4] ss:$24 sps:$4 sm:$0xff]  }
 0x4bb   :  { %15944 = vmatmul.mubr.bf16.vlgmr.msra.gmra.mrb[16].mxu0 %v25423_v20  ;;  %v533_v19 = vld [vmem:[%s28986_s1 + $0xfa8] sm:$0xff]  ;;  %v8558_v28 = vmul.f32 %v25492_v14, %v25492_v14 }
 0x4bc   :  { %15953 = vmatpush1.bf16.msra.mxu0 %v20042_v37  ;;  %15984 = vmatprep.mubr.bf16.mxu0 %v25429_v61  ;;  %v20057_v37 = vld [vmem:[%s28988_s3 + $0x12f0] ss:$24 sps:$4 sm:$0xff]  }
 0x4bd   :  { %8204 = vmatpush1.bf16.msra.mxu1 %v17522_v41  ;;  %15954 = vmatprep.subr.bf16.mxu0 %v20047_v52  ;;  %v17642_v41 = vcombine.low %v473_v60, %v485_v15  ;;  %v20062_v52 = vld [vmem:[%s28988_s3 + $0x1324] ss:$24 sps:$4 sm:$0xff]   ;;  %v545_v39 = vld [vmem:[%s28986_s1 + $0x1008] sm:$0xff] }
 0x4be   :  { %8205 = vmatprep.subr.bf16.mxu1 %v17547_v16  ;;  %v17667_v16 = vcombine.high %v497_v45, %v509_v10  ;;  %v557_v40 = vld [vmem:[%s28986_s1 + $0x1068] sm:$0xff] }
 0x4bf   :  { %v17715_v49 = vcombine.high %v545_v39, %v557_v40  ;;  %v569_v4 = vld [vmem:[%s28986_s1 + $0x10c8] sm:$0xff] }
 0x4c0   :  { %15955 = vmatpush1.bf16.msra.mxu0 %v20045_v29  ;;  %v20060_v29 = vld [vmem:[%s28988_s3 + $0x1320] ss:$24 sps:$4 sm:$0xff]   ;;  %v20071_v60 = vld [vmem:[%s28988_s3 + $0x13b4] ss:$24 sps:$4 sm:$0xff]  }
 0x4c1   :  { %8206 = vmatpush1.bf16.msra.mxu1 %v17546_v30  ;;  %15956 = vmatprep.subr.bf16.mxu0 %v20050_v31  ;;  %v17666_v30 = vcombine.low %v497_v45, %v509_v10  ;;  %v20065_v31 = vld [vmem:[%s28988_s3 + $0x1354] ss:$24 sps:$4 sm:$0xff]   ;;  %v20074_v45 = vld [vmem:[%s28988_s3 + $0x13e4] ss:$24 sps:$4 sm:$0xff]  }
 0x4c2   :  { %8207 = vmatprep.subr.bf16.mxu1 %v17571_v34  ;;  %v17691_v34 = vcombine.high %v521_v26, %v533_v19  ;;  %v593_v2 = vld [vmem:[%s28986_s1 + $0x1188] sm:$0xff] }
 0x4c4   :  { %15957 = vmatpush1.bf16.msra.mxu0 %v20048_v62  ;;  %v8582_v62 = vmul.f32 0.035677407, %v8558_v28  ;;  %v641_v28 = vld [vmem:[%s28986_s1 + $0x1308] sm:$0xff] }
 0x4c5   :  { %8208 = vmatpush1.bf16.msra.mxu1 %v17570_v1  ;;  %15958 = vmatprep.subr.bf16.mxu0 %v20053_v46  ;;  %v20063_v1 = vld [vmem:[%s28988_s3 + $0x1350] ss:$24 sps:$4 sm:$0xff]   ;;  %v17690_v46 = vcombine.low %v521_v26, %v533_v19  ;;  %v20077_v26 = vld [vmem:[%s28988_s3 + $0x1414] ss:$24 sps:$4 sm:$0xff]  }
 0x4c6   :  { %8218 = vmatprep.subr.bf16.mxu1 %v17595_v43  ;;  %v20068_v43 = vld [vmem:[%s28988_s3 + $0x1384] ss:$24 sps:$4 sm:$0xff]  }
 0x4c8   :  { %15959 = vmatpush1.bf16.msra.mxu0 %v20051_v7  ;;  %8210 = vmatmul.mubr.bf16.vlgmr.msra.gmra.mrb[24].mxu1 %v21786_v12  ;;  %v581_v7 = vld [vmem:[%s28986_s1 + $0x1128] sm:$0xff] }
 0x4c9   :  { %8219 = vmatpush1.bf16.msra.mxu1 %v17594_v18  ;;  %15960 = vmatprep.subr.bf16.mxu0 %v20056_v55  ;;  %v8606_v18 = vadd.f32 0.7978846, %v8582_v62  ;;  %v20066_v55 = vld [vmem:[%s28988_s3 + $0x1380] ss:$24 sps:$4 sm:$0xff]   ;;  %v17739_v15 = vcombine.high %v569_v4, %v581_v7  ;;  %v677_v62 = vld [vmem:[%s28986_s1 + $0x1428] sm:$0xff] }
 0x4ca   :  { %8220 = vmatprep.subr.bf16.mxu1 %v17619_v59  ;;  %8250 = vmatprep.mubr.bf16.mxu1 %v21803_v22  ;;  %v17714_v59 = vcombine.low %v545_v39, %v557_v40  ;;  %v665_v40 = vld [vmem:[%s28986_s1 + $0x13c8] sm:$0xff] }
 0x4cc   :  { %15961 = vmatpush1.bf16.msra.mxu0 %v20054_v24  ;;  %v605_v24 = vld [vmem:[%s28986_s1 + $0x11e8] sm:$0xff] }
 0x4cd   :  { %8221 = vmatpush1.bf16.msra.mxu1 %v17618_v5  ;;  %15962 = vmatprep.subr.bf16.mxu0 %v20059_v8  ;;  %v8630_v5 = vmul.f32 %v25492_v14, %v8606_v18  ;;  %v20069_v8 = vld [vmem:[%s28988_s3 + $0x13b0] ss:$24 sps:$4 sm:$0xff]   ;;  %v17763_v10 = vcombine.high %v593_v2, %v605_v24 }
 0x4ce   :  { %8222 = vmatprep.subr.bf16.mxu1 %v17643_v11  ;;  %v17738_v11 = vcombine.low %v569_v4, %v581_v7  ;;  %v17835_v4 = vcombine.high %v665_v40, %v677_v62  ;;  %v689_v7 = vld [vmem:[%s28986_s1 + $0x1488] sm:$0xff] }
 0x4cf   :  { %21508 = vtanh.f32 %v8630_v5  ;;  %v701_v18 = vld [vmem:[%s28986_s1 + $0x14e8] sm:$0xff] }
 0x4d0   :  { %15963 = vmatpush1.bf16.msra.mxu0 %v20057_v37  ;;  %v617_v37 = vld [vmem:[%s28986_s1 + $0x1248] sm:$0xff] }
 0x4d1   :  { %8223 = vmatpush1.bf16.msra.mxu1 %v17642_v41  ;;  %15964 = vmatprep.subr.bf16.mxu0 %v20062_v52  ;;  %v629_v41 = vld [vmem:[%s28986_s1 + $0x12a8] sm:$0xff]  ;;  %v20072_v52 = vld [vmem:[%s28988_s3 + $0x13e0] ss:$24 sps:$4 sm:$0xff]  }
 0x4d2   :  { %8224 = vmatprep.subr.bf16.mxu1 %v17667_v16  ;;  %v17762_v16 = vcombine.low %v593_v2, %v605_v24  ;;  %v17787_v19 = vcombine.high %v617_v37, %v629_v41  ;;  %v17859_v2 = vcombine.high %v689_v7, %v701_v18  ;;  %v713_v24 = vld [vmem:[%s28986_s1 + $0x1548] sm:$0xff] }
 0x4d3   :  { %v725_v5 = vld [vmem:[%s28986_s1 + $0x15a8] sm:$0xff] }
 0x4d4   :  { %15965 = vmatpush1.bf16.msra.mxu0 %v20060_v29  ;;  %v653_v29 = vld [vmem:[%s28986_s1 + $0x1368] sm:$0xff] }
 0x4d5   :  { %8225 = vmatpush1.bf16.msra.mxu1 %v17666_v30  ;;  %15966 = vmatprep.subr.bf16.mxu0 %v20065_v31  ;;  %v20075_v30 = vld [vmem:[%s28988_s3 + $0x1410] ss:$24 sps:$4 sm:$0xff]   ;;  %v17786_v31 = vcombine.low %v617_v37, %v629_v41  ;;  %v17811_v39 = vcombine.high %v641_v28, %v653_v29  ;;  %v17883_v37 = vcombine.high %v713_v24, %v725_v5 }
 0x4d6   :  { %8226 = vmatprep.subr.bf16.mxu1 %v17691_v34  ;;  %v20080_v34 = vld [vmem:[%s28988_s3 + $0x1444] ss:$24 sps:$4 sm:$0xff]   ;;  %v737_v41 = vld [vmem:[%s28986_s1 + $0x1608] sm:$0xff] }
 0x4d8   :  { %15967 = vmatpush1.bf16.msra.mxu0 %v20063_v1  ;;  %v20078_v1 = vld [vmem:[%s28988_s3 + $0x1440] ss:$24 sps:$4 sm:$0xff]  }
 0x4d9   :  { %8227 = vmatpush1.bf16.msra.mxu1 %v17690_v46  ;;  %15968 = vmatprep.subr.bf16.mxu0 %v20068_v43  ;;  %v17810_v46 = vcombine.low %v641_v28, %v653_v29  ;;  %v20083_v43 = vld [vmem:[%s28988_s3 + $0x1474] ss:$24 sps:$4 sm:$0xff]   ;;  %v20092_v28 = vld [vmem:[%s28988_s3 + $0x1504] ss:$24 sps:$4 sm:$0xff]  }
 0x4da   :  { %8228 = vmatprep.subr.bf16.mxu1 %v17715_v49  ;;  %v21509_v49 = vpop.eup %21508 }
 0x4dc   :  { %15969 = vmatpush1.bf16.msra.mxu0 %v20066_v55  ;;  %v20081_v55 = vld [vmem:[%s28988_s3 + $0x1470] ss:$24 sps:$4 sm:$0xff]  }
 0x4dd   :  { %8229 = vmatpush1.bf16.msra.mxu1 %v17714_v59  ;;  %15970 = vmatprep.subr.bf16.mxu0 %v20071_v60  ;;  %v8678_v59 = vmul.f32 0.5, %v21509_v49  ;;  %v17834_v60 = vcombine.low %v665_v40, %v677_v62  ;;  %v20095_v40 = vld [vmem:[%s28988_s3 + $0x1534] ss:$24 sps:$4 sm:$0xff]  }
 0x4de   :  { %8230 = vmatprep.subr.bf16.mxu1 %v17739_v15  ;;  %v20086_v15 = vld [vmem:[%s28988_s3 + $0x14a4] ss:$24 sps:$4 sm:$0xff]  }
 0x4e0   :  { %15971 = vmatpush1.bf16.msra.mxu0 %v20069_v8  ;;  %v20084_v8 = vld [vmem:[%s28988_s3 + $0x14a0] ss:$24 sps:$4 sm:$0xff]  }
 0x4e1   :  { %8231 = vmatpush1.bf16.msra.mxu1 %v17738_v11  ;;  %15972 = vmatprep.subr.bf16.mxu0 %v20074_v45  ;;  %v8702_v11 = vadd.f32 0.5, %v8678_v59  ;;  %v17858_v45 = vcombine.low %v689_v7, %v701_v18  ;;  %v809_v18 = vld [vmem:[%s28986_s1 + $0x1848] sm:$0xff]  ;;  %v20096_v59 = vld [vmem:[%s28988_s3 + $0x1560] ss:$24 sps:$4 sm:$0xff]  }
 0x4e2   :  { %8232 = vmatprep.subr.bf16.mxu1 %v17763_v10  ;;  %v20089_v10 = vld [vmem:[%s28988_s3 + $0x14d4] ss:$24 sps:$4 sm:$0xff]  }
 0x4e4   :  { %15973 = vmatpush1.bf16.msra.mxu0 %v20072_v52  ;;  %v749_v52 = vld [vmem:[%s28986_s1 + $0x1668] sm:$0xff] }
 0x4e5   :  { %8233 = vmatpush1.bf16.msra.mxu1 %v17762_v16  ;;  %15974 = vmatprep.subr.bf16.mxu0 %v20077_v26  ;;  %v20087_v16 = vld [vmem:[%s28988_s3 + $0x14d0] ss:$24 sps:$4 sm:$0xff]   ;;  %v8726_v26 = vmul.f32 %v25492_v14, %v8702_v11  ;;  %v17907_v29 = vcombine.high %v737_v41, %v749_v52  ;;  %v20090_v14 = vld [vmem:[%s28988_s3 + $0x1500] ss:$24 sps:$4 sm:$0xff]  }
 0x4e6   :  { %8234 = vmatprep.subr.bf16.mxu1 %v17787_v19  ;;  %v17882_v19 = vcombine.low %v713_v24, %v725_v5  ;;  %v833_v24 = vld [vmem:[%s28986_s1 + $0x1908] sm:$0xff] }
 0x4e7   :  { %v845_v5 = vld [vmem:[%s28986_s1 + $0x1968] sm:$0xff] }
 0x4e8   :  { %15975 = vmatpush1.bf16.msra.mxu0 %v20075_v30  ;;  %v761_v30 = vld [vmem:[%s28986_s1 + $0x16c8] sm:$0xff] }
 0x4e9   :  { %8235 = vmatpush1.bf16.msra.mxu1 %v17786_v31  ;;  %15976 = vmatprep.subr.bf16.mxu0 %v20080_v34  ;;  %v773_v31 = vld [vmem:[%s28986_s1 + $0x1728] sm:$0xff]  ;;  %v25633_v34 = vpack.c.bf16 %v8726_v26, %v8726_v26 }
 0x4ea   :  { %8236 = vmatprep.subr.bf16.mxu1 %v17811_v39  ;;  %v17906_v39 = vcombine.low %v737_v41, %v749_v52  ;;  %v17931_v62 = vcombine.high %v761_v30, %v773_v31  ;;  %v17930_v49 = vcombine.low %v761_v30, %v773_v31  ;;  %v869_v41 = vld [vmem:[%s28986_s1 + $0x1a28] sm:$0xff]  ;;  %v20102_v52 = vld [vmem:[%s28988_s3 + $0x15c0] ss:$24 sps:$4 sm:$0xff]  }
 0x4eb   :  { %v20107_v26 = vld [vmem:[%s28988_s3 + $0x15f4] ss:$24 sps:$4 sm:$0xff]   ;;  %v20105_v30 = vld [vmem:[%s28988_s3 + $0x15f0] ss:$24 sps:$4 sm:$0xff]  }
 0x4ec   :  { %15977 = vmatpush1.bf16.msra.mxu0 %v20078_v1  ;;  %v785_v1 = vld [vmem:[%s28986_s1 + $0x1788] sm:$0xff] }
 0x4ed   :  { %8237 = vmatpush1.bf16.msra.mxu1 %v17810_v46  ;;  %15978 = vmatprep.subr.bf16.mxu0 %v20083_v43  ;;  %v797_v46 = vld [vmem:[%s28986_s1 + $0x17e8] sm:$0xff] }
 0x4ee   :  { %8238 = vmatprep.subr.bf16.mxu1 %v17835_v4  ;;  %v20093_v43 = vld [vmem:[%s28988_s3 + $0x1530] ss:$24 sps:$4 sm:$0xff]   ;;  %v20098_v4 = vld [vmem:[%s28988_s3 + $0x1564] ss:$24 sps:$4 sm:$0xff]   ;;  %v17955_v7 = vcombine.high %v785_v1, %v797_v46 }
 0x4f0   :  { %15979 = vmatpush1.bf16.msra.mxu0 %v20081_v55  ;;  %v821_v55 = vld [vmem:[%s28986_s1 + $0x18a8] sm:$0xff] }
 0x4f1   :  { %8239 = vmatpush1.bf16.msra.mxu1 %v17834_v60  ;;  %15980 = vmatprep.subr.bf16.mxu0 %v20086_v15  ;;  %v17954_v60 = vcombine.low %v785_v1, %v797_v46  ;;  %v20101_v15 = vld [vmem:[%s28988_s3 + $0x1594] ss:$24 sps:$4 sm:$0xff]   ;;  %v17978_v11 = vcombine.low %v809_v18, %v821_v55  ;;  %v20108_v1 = vld [vmem:[%s28988_s3 + $0x1620] ss:$24 sps:$4 sm:$0xff]  }
 0x4f2   :  { %8240 = vmatprep.subr.bf16.mxu1 %v17859_v2  ;;  %v17979_v2 = vcombine.high %v809_v18, %v821_v55  ;;  %v20111_v18 = vld [vmem:[%s28988_s3 + $0x1650] ss:$24 sps:$4 sm:$0xff]  }
 0x4f4   :  { %15981 = vmatpush1.bf16.msra.mxu0 %v20084_v8  ;;  %v20099_v8 = vld [vmem:[%s28988_s3 + $0x1590] ss:$24 sps:$4 sm:$0xff]  }
 0x4f5   :  { %8241 = vmatpush1.bf16.msra.mxu1 %v17858_v45  ;;  %15982 = vmatprep.subr.bf16.mxu0 %v20089_v10  ;;  %v18003_v45 = vcombine.high %v833_v24, %v845_v5  ;;  %v20104_v10 = vld [vmem:[%s28988_s3 + $0x15c4] ss:$24 sps:$4 sm:$0xff]  }
 0x4f6   :  { %8242 = vmatprep.subr.bf16.mxu1 %v17883_v37  ;;  %v857_v37 = vld [vmem:[%s28986_s1 + $0x19c8] sm:$0xff] }
 0x4f7   :  { %v18026_v31 = vcombine.low %v857_v37, %v869_v41 }
 0x4f8   :  { %15983 = vmatpush1.bf16.msra.mxu0 %v20087_v16  ;;  %v18002_v16 = vcombine.low %v833_v24, %v845_v5  ;;  %v20114_v24 = vld [vmem:[%s28988_s3 + $0x1680] ss:$24 sps:$4 sm:$0xff]  }
 0x4f9   :  { %8243 = vmatpush1.bf16.msra.mxu1 %v17882_v19  ;;  %15993 = vmatprep.subr.bf16.mxu0 %v20092_v28  ;;  %v18027_v19 = vcombine.high %v857_v37, %v869_v41  ;;  %v881_v28 = vld [vmem:[%s28986_s1 + $0x1a88] sm:$0xff] }
 0x4fa   :  { %8244 = vmatprep.subr.bf16.mxu1 %v17907_v29  ;;  %v893_v29 = vld [vmem:[%s28986_s1 + $0x1ae8] sm:$0xff] }
 0x4fb   :  { %15985 = vmatmul.mubr.bf16.vlgmr.msra.gmra.mrb[16].mxu0 %v25633_v34  ;;  %v18050_v46 = vcombine.low %v881_v28, %v893_v29  ;;  %v20117_v37 = vld [vmem:[%s28988_s3 + $0x16b0] ss:$24 sps:$4 sm:$0xff]  }
 0x4fc   :  { %15994 = vmatpush1.bf16.msra.mxu0 %v20090_v14  ;;  %v20110_v14 = vld [vmem:[%s28988_s3 + $0x1624] ss:$24 sps:$4 sm:$0xff]  }
 0x4fd   :  { %8245 = vmatpush1.bf16.msra.mxu1 %v17906_v39  ;;  %15995 = vmatprep.subr.bf16.mxu0 %v20095_v40  ;;  %v18051_v39 = vcombine.high %v881_v28, %v893_v29  ;;  %v905_v40 = vld [vmem:[%s28986_s1 + $0x1b48] sm:$0xff]  ;;  %v20120_v28 = vld [vmem:[%s28988_s3 + $0x16e0] ss:$24 sps:$4 sm:$0xff]  }
 0x4fe   :  { %8246 = vmatprep.subr.bf16.mxu1 %v17931_v62  ;;  %v917_v62 = vld [vmem:[%s28986_s1 + $0x1ba8] sm:$0xff] }
 0x4ff   :  { %v18074_v55 = vcombine.low %v905_v40, %v917_v62 }
 0x500   :  { %15996 = vmatpush1.bf16.msra.mxu0 %v20093_v43  ;;  %v20113_v43 = vld [vmem:[%s28988_s3 + $0x1654] ss:$24 sps:$4 sm:$0xff]  }
 0x501   :  { %8247 = vmatpush1.bf16.msra.mxu1 %v17930_v49  ;;  %15997 = vmatprep.subr.bf16.mxu0 %v20098_v4  ;;  %v18075_v49 = vcombine.high %v905_v40, %v917_v62  ;;  %v929_v4 = vld [vmem:[%s28986_s1 + $0x1c08] sm:$0xff] }
 0x502   :  { %8248 = vmatprep.subr.bf16.mxu1 %v17955_v7  ;;  %v941_v7 = vld [vmem:[%s28986_s1 + $0x1c68] sm:$0xff] }
 0x503   :  { %v18098_v5 = vcombine.low %v929_v4, %v941_v7  ;;  %v20123_v40 = vld [vmem:[%s28988_s3 + $0x1710] ss:$24 sps:$4 sm:$0xff]  }
 0x504   :  { %15998 = vmatpush1.bf16.msra.mxu0 %v20096_v59  ;;  %v20116_v59 = vld [vmem:[%s28988_s3 + $0x1684] ss:$24 sps:$4 sm:$0xff]  }
 0x505   :  { %8249 = vmatpush1.bf16.msra.mxu1 %v17954_v60  ;;  %15999 = vmatprep.subr.bf16.mxu0 %v20101_v15  ;;  %v18099_v60 = vcombine.high %v929_v4, %v941_v7  ;;  %v953_v15 = vld [vmem:[%s28986_s1 + $0x1cc8] sm:$0xff]  ;;  %v20126_v4 = vld [vmem:[%s28988_s3 + $0x1740] ss:$24 sps:$4 sm:$0xff]  }
 0x506   :  { %8259 = vmatprep.subr.bf16.mxu1 %v17979_v2  ;;  %v965_v2 = vld [vmem:[%s28986_s1 + $0x1d28] sm:$0xff] }
 0x507   :  { %v18122_v41 = vcombine.low %v953_v15, %v965_v2 }
 0x508   :  { %8251 = vmatmul.mubr.bf16.vlgmr.msra.gmra.mrb[24].mxu1 %v21992_v21  ;;  %16000 = vmatpush1.bf16.msra.mxu0 %v20099_v8  ;;  %v20119_v8 = vld [vmem:[%s28988_s3 + $0x16b4] ss:$24 sps:$4 sm:$0xff]  }
 0x509   :  { %8260 = vmatpush1.bf16.msra.mxu1 %v17978_v11  ;;  %8291 = vmatprep.mubr.bf16.mxu1 %v22009_v32  ;;  %v18123_v11 = vcombine.high %v953_v15, %v965_v2  ;;  %v20129_v15 = vld [vmem:[%s28988_s3 + $0x1770] ss:$24 sps:$4 sm:$0xff]  }
 0x50a   :  { %8261 = vmatprep.subr.bf16.mxu1 %v18003_v45  ;;  %16001 = vmatprep.subr.bf16.mxu0 %v20104_v10  ;;  %v977_v45 = vld [vmem:[%s28986_s1 + $0x1d88] sm:$0xff] }
 0x50b   :  { %v989_v10 = vld [vmem:[%s28986_s1 + $0x1de8] sm:$0xff] }
 0x50c   :  { %16002 = vmatpush1.bf16.msra.mxu0 %v20102_v52  ;;  %v20122_v52 = vld [vmem:[%s28988_s3 + $0x16e4] ss:$24 sps:$4 sm:$0xff]   ;;  %v18146_v29 = vcombine.low %v977_v45, %v989_v10 }
 0x50d   :  { %8262 = vmatpush1.bf16.msra.mxu1 %v18002_v16  ;;  %16003 = vmatprep.subr.bf16.mxu0 %v20107_v26  ;;  %v18147_v16 = vcombine.high %v977_v45, %v989_v10  ;;  %v1001_v26 = vld [vmem:[%s28986_s1 + $0x1e48] sm:$0xff]  ;;  %v20132_v45 = vld [vmem:[%s28988_s3 + $0x17a0] ss:$24 sps:$4 sm:$0xff]  }
 0x50e   :  { %8263 = vmatprep.subr.bf16.mxu1 %v18027_v19  ;;  %v1013_v19 = vld [vmem:[%s28986_s1 + $0x1ea8] sm:$0xff] }
 0x50f   :  { %v18170_v62 = vcombine.low %v1001_v26, %v1013_v19 }
 0x510   :  { %16004 = vmatpush1.bf16.msra.mxu0 %v20105_v30  ;;  %v20125_v30 = vld [vmem:[%s28988_s3 + $0x1714] ss:$24 sps:$4 sm:$0xff]  }
 0x511   :  { %8264 = vmatpush1.bf16.msra.mxu1 %v18026_v31  ;;  %16005 = vmatprep.subr.bf16.mxu0 %v20110_v14  ;;  %v18171_v31 = vcombine.high %v1001_v26, %v1013_v19  ;;  %v1025_v14 = vld [vmem:[%s28986_s1 + $0x1f08] sm:$0xff] }
 0x512   :  { %8265 = vmatprep.subr.bf16.mxu1 %v18051_v39  ;;  %v1037_v39 = vld [vmem:[%s28986_s1 + $0x1f68] sm:$0xff] }
 0x513   :  { %v18194_v7 = vcombine.low %v1025_v14, %v1037_v39  ;;  %v20135_v26 = vld [vmem:[%s28988_s3 + $0x17d0] ss:$24 sps:$4 sm:$0xff]  }
 0x514   :  { %16006 = vmatpush1.bf16.msra.mxu0 %v20108_v1  ;;  %v20128_v1 = vld [vmem:[%s28988_s3 + $0x1744] ss:$24 sps:$4 sm:$0xff]  }
 0x515   :  { %8266 = vmatpush1.bf16.msra.mxu1 %v18050_v46  ;;  %16007 = vmatprep.subr.bf16.mxu0 %v20113_v43  ;;  %v18195_v46 = vcombine.high %v1025_v14, %v1037_v39  ;;  %v1049_v43 = vld [vmem:[%s28986_s1 + $0x1fc8] sm:$0xff] }
 0x516   :  { %8267 = vmatprep.subr.bf16.mxu1 %v18075_v49  ;;  %v1061_v49 = vld [vmem:[%s28986_s1 + $0x2028] sm:$0xff] }
 0x517   :  { %v18218_v2 = vcombine.low %v1049_v43, %v1061_v49 }
 0x518   :  { %16008 = vmatpush1.bf16.msra.mxu0 %v20111_v18  ;;  %v20131_v18 = vld [vmem:[%s28988_s3 + $0x1774] ss:$24 sps:$4 sm:$0xff]  }
 0x519   :  { %8268 = vmatpush1.bf16.msra.mxu1 %v18074_v55  ;;  %16009 = vmatprep.subr.bf16.mxu0 %v20116_v59  ;;  %v18219_v55 = vcombine.high %v1049_v43, %v1061_v49  ;;  %v1073_v59 = vld [vmem:[%s28986_s1 + $0x2088] sm:$0xff]  ;;  %v43_v43 = vld [vmem:[%s28986_s1 + $0x58] sm:$0xff] }
 0x51a   :  { %8269 = vmatprep.subr.bf16.mxu1 %v18099_v60  ;;  %v1085_v60 = vld [vmem:[%s28986_s1 + $0x20e8] sm:$0xff]  ;;  %v55_v49 = vld [vmem:[%s28986_s1 + $0xb8] sm:$0xff] }
 0x51b   :  { %v18242_v10 = vcombine.low %v1073_v59, %v1085_v60 }
 0x51c   :  { %16010 = vmatpush1.bf16.msra.mxu0 %v20114_v24  ;;  %v20134_v24 = vld [vmem:[%s28988_s3 + $0x17a4] ss:$24 sps:$4 sm:$0xff]  }
 0x51d   :  { %8270 = vmatpush1.bf16.msra.mxu1 %v18098_v5  ;;  %16011 = vmatprep.subr.bf16.mxu0 %v20119_v8  ;;  %v18243_v5 = vcombine.high %v1073_v59, %v1085_v60  ;;  %v1097_v8 = vld [vmem:[%s28986_s1 + $0x2148] sm:$0xff]  ;;  %v17214_v59 = vcombine.low %v43_v43, %v55_v49  ;;  %v25848_v60 = vld [vmem:[%s28989_s2 + $0x10] sm:$0xff] }
 0x51e   :  { %8271 = vmatprep.subr.bf16.mxu1 %v18123_v11  ;;  %v1109_v11 = vld [vmem:[%s28986_s1 + $0x21a8] sm:$0xff] }
 0x51f   :  { %v18266_v19 = vcombine.low %v1097_v8, %v1109_v11 }
 0x520   :  { %16012 = vmatpush1.bf16.msra.mxu0 %v20117_v37  ;;  %v20137_v37 = vld [vmem:[%s28988_s3 + $0x17d4] ss:$24 sps:$4 sm:$0xff]  }
 0x521   :  { %8272 = vmatpush1.bf16.msra.mxu1 %v18122_v41  ;;  %16013 = vmatprep.subr.bf16.mxu0 %v20122_v52  ;;  %v18267_v41 = vcombine.high %v1097_v8, %v1109_v11  ;;  %v1121_v52 = vld [vmem:[%s28986_s1 + $0x2208] sm:$0xff] }
 0x522   :  { %8273 = vmatprep.subr.bf16.mxu1 %v18147_v16  ;;  %v1133_v16 = vld [vmem:[%s28986_s1 + $0x2268] sm:$0xff] }
 0x523   :  { %v18290_v14 = vcombine.low %v1121_v52, %v1133_v16 }
 0x524   :  { %16014 = vmatpush1.bf16.msra.mxu0 %v20120_v28  ;;  %v20140_v28 = vld [vmem:[%s28988_s3 + $0x1804] ss:$24 sps:$4 sm:$0xff]  }
 0x525   :  { %8274 = vmatpush1.bf16.msra.mxu1 %v18146_v29  ;;  %16015 = vmatprep.subr.bf16.mxu0 %v20125_v30  ;;  %v18291_v29 = vcombine.high %v1121_v52, %v1133_v16  ;;  %v1145_v30 = vld [vmem:[%s28986_s1 + $0x22c8] sm:$0xff]  ;;  %v151_v16 = vld [vmem:[%s28986_s1 + $0x3b8] sm:$0xff] }
 0x526   :  { %8275 = vmatprep.subr.bf16.mxu1 %v18171_v31  ;;  %v1157_v31 = vld [vmem:[%s28986_s1 + $0x2328] sm:$0xff] }
 0x527   :  { %v18315_v39 = vcombine.high %v1145_v30, %v1157_v31 }
 0x528   :  { %16016 = vmatpush1.bf16.msra.mxu0 %v20123_v40  ;;  %v1169_v40 = vld [vmem:[%s28986_s1 + $0x2388] sm:$0xff] }
 0x529   :  { %8276 = vmatpush1.bf16.msra.mxu1 %v18170_v62  ;;  %16017 = vmatprep.subr.bf16.mxu0 %v20128_v1  ;;  %v1181_v62 = vld [vmem:[%s28986_s1 + $0x23e8] sm:$0xff]  ;;  %v18314_v1 = vcombine.low %v1145_v30, %v1157_v31 }
 0x52a   :  { %8277 = vmatprep.subr.bf16.mxu1 %v18195_v46  ;;  %v18339_v46 = vcombine.high %v1169_v40, %v1181_v62 }
 0x52c   :  { %16018 = vmatpush1.bf16.msra.mxu0 %v20126_v4  ;;  %v18338_v4 = vcombine.low %v1169_v40, %v1181_v62  ;;  %v199_v40 = vld [vmem:[%s28986_s1 + $0x538] sm:$0xff]  ;;  %v21533_v62 = vld [vmem:[%s28989_s2 + $0x8] sm:$0xff] }
 0x52d   :  { %8278 = vmatpush1.bf16.msra.mxu1 %v18194_v7  ;;  %16019 = vmatprep.subr.bf16.mxu0 %v20131_v18  ;;  %v17215_v7 = vcombine.high %v43_v43, %v55_v49  ;;  %v67_v18 = vld [vmem:[%s28986_s1 + $0x118] sm:$0xff]  ;;  %v1253_v43 = vrot.slane %v21533_v62, %v24734_v35 }
 0x52e   :  { %8279 = vmatprep.subr.bf16.mxu1 %v18219_v55  ;;  %v79_v55 = vld [vmem:[%s28986_s1 + $0x178] sm:$0xff] }
 0x52f   :  { %v17238_v8 = vcombine.low %v67_v18, %v79_v55 }
 0x530   :  { %16020 = vmatpush1.bf16.msra.mxu0 %v20129_v15  ;;  %v17239_v15 = vcombine.high %v67_v18, %v79_v55  ;;  %v211_v18 = vld [vmem:[%s28986_s1 + $0x598] sm:$0xff] }
 0x531   :  { %8280 = vmatpush1.bf16.msra.mxu1 %v18218_v2  ;;  %16021 = vmatprep.subr.bf16.mxu0 %v20134_v24  ;;  %v91_v2 = vld [vmem:[%s28986_s1 + $0x1d8] sm:$0xff] }
 0x532   :  { %8281 = vmatprep.subr.bf16.mxu1 %v18243_v5  ;;  %v103_v24 = vld [vmem:[%s28986_s1 + $0x238] sm:$0xff]  ;;  %v1261_v5 = vrot.slane %v25848_v60, %v23847_v13 }
 0x533   :  { %v17263_v11 = vcombine.high %v91_v2, %v103_v24  ;;  %v223_v55 = vld [vmem:[%s28986_s1 + $0x5f8] sm:$0xff] }
 0x534   :  { %16022 = vmatpush1.bf16.msra.mxu0 %v20132_v45  ;;  %v115_v45 = vld [vmem:[%s28986_s1 + $0x298] sm:$0xff] }
 0x535   :  { %8282 = vmatpush1.bf16.msra.mxu1 %v18242_v10  ;;  %16023 = vmatprep.subr.bf16.mxu0 %v20137_v37  ;;  %v127_v10 = vld [vmem:[%s28986_s1 + $0x2f8] sm:$0xff]  ;;  %v25867_v37 = vadd.f32 %v24101_v27, %v1261_v5 }
 0x536   :  { %8283 = vmatprep.subr.bf16.mxu1 %v18267_v41  ;;  %v17262_v41 = vcombine.low %v91_v2, %v103_v24  ;;  %v17287_v52 = vcombine.high %v115_v45, %v127_v10 }
 0x538   :  { %16024 = vmatpush1.bf16.msra.mxu0 %v20135_v26  ;;  %v8563_v26 = vmul.f32 %v25867_v37, %v25867_v37 }
 0x539   :  { %8284 = vmatpush1.bf16.msra.mxu1 %v18266_v19  ;;  %16034 = vmatprep.subr.bf16.mxu0 %v20140_v28  ;;  %v17286_v19 = vcombine.low %v115_v45, %v127_v10  ;;  %v163_v28 = vld [vmem:[%s28986_s1 + $0x418] sm:$0xff]  ;;  %v17383_v10 = vcombine.high %v211_v18, %v223_v55 }
 0x53a   :  { %8285 = vmatprep.subr.bf16.mxu1 %v18291_v29  ;;  %v175_v29 = vld [vmem:[%s28986_s1 + $0x478] sm:$0xff]  ;;  %v8587_v30 = vmul.f32 0.035677407, %v8563_v26 }
 0x53b   :  { %v17334_v49 = vcombine.low %v163_v28, %v175_v29 }
 0x53d   :  { %8286 = vmatpush1.bf16.msra.mxu1 %v18290_v14  ;;  %v17335_v14 = vcombine.high %v163_v28, %v175_v29 }
 0x53e   :  { %8287 = vmatprep.subr.bf16.mxu1 %v18315_v39  ;;  %v187_v39 = vld [vmem:[%s28986_s1 + $0x4d8] sm:$0xff] }
 0x541   :  { %8288 = vmatpush1.bf16.msra.mxu1 %v18314_v1  ;;  %v1249_v1 = vrot.slane %v21533_v62, %v24731_v33 }
 0x542   :  { %8289 = vmatprep.subr.bf16.mxu1 %v18339_v46  ;;  %v8611_v46 = vadd.f32 0.7978846, %v8587_v30  ;;  %v259_v30 = vld [vmem:[%s28986_s1 + $0x718] sm:$0xff] }
 0x544   :  { %v8635_v2 = vmul.f32 %v25867_v37, %v8611_v46  ;;  %v295_v46 = vld [vmem:[%s28986_s1 + $0x838] sm:$0xff] }
 0x545   :  { %8290 = vmatpush1.bf16.msra.mxu1 %v18338_v4  ;;  %v17359_v4 = vcombine.high %v187_v39, %v199_v40 }
 0x546   :  { %8423 = vmatprep.subr.bf16.mxu1 %v17215_v7  ;;  %21510 = vtanh.f32 %v8635_v2 }
 0x548   :  { %8292 = vmatmul.mubr.bf16.vlgmr.msra.gmra.mrb[24].mxu1 %v22198_v36 }
 0x549   :  { %8424 = vmatpush1.bf16.msra.mxu1 %v17214_v59  ;;  %8455 = vmatprep.mubr.bf16.mxu1 %v21659_v57  ;;  %v139_v57 = vld [vmem:[%s28986_s1 + $0x358] sm:$0xff] }
 0x54a   :  { %8425 = vmatprep.subr.bf16.mxu1 %v17239_v15  ;;  %v17311_v27 = vcombine.high %v139_v57, %v151_v16  ;;  %v17310_v31 = vcombine.low %v139_v57, %v151_v16  ;;  %v247_v57 = vld [vmem:[%s28986_s1 + $0x6b8] sm:$0xff] }
 0x54d   :  { %8426 = vmatpush1.bf16.msra.mxu1 %v17238_v8  ;;  %v17358_v8 = vcombine.low %v187_v39, %v199_v40 }
 0x54e   :  { %8427 = vmatprep.subr.bf16.mxu1 %v17263_v11 }
 0x551   :  { %8428 = vmatpush1.bf16.msra.mxu1 %v17262_v41 }
 0x552   :  { %8429 = vmatprep.subr.bf16.mxu1 %v17287_v52  ;;  %v235_v52 = vld [vmem:[%s28986_s1 + $0x658] sm:$0xff] }
 0x553   :  { %v17407_v28 = vcombine.high %v235_v52, %v247_v57  ;;  %v17406_v40 = vcombine.low %v235_v52, %v247_v57 }
 0x555   :  { %8430 = vmatpush1.bf16.msra.mxu1 %v17286_v19  ;;  %v17382_v19 = vcombine.low %v211_v18, %v223_v55  ;;  %v319_v18 = vld [vmem:[%s28986_s1 + $0x8f8] sm:$0xff] }
 0x556   :  { %8431 = vmatprep.subr.bf16.mxu1 %v17311_v27 }
 0x559   :  { %8432 = vmatpush1.bf16.msra.mxu1 %v17310_v31  ;;  %v271_v31 = vld [vmem:[%s28986_s1 + $0x778] sm:$0xff] }
 0x55a   :  { %8433 = vmatprep.subr.bf16.mxu1 %v17335_v14  ;;  %v17431_v62 = vcombine.high %v259_v30, %v271_v31 }
 0x55b   :  { %v8047_v7 = vpop.f32.mrb[20].mxu1 }
 0x55c   :  { %v19510_v59 = vadd.f32 %v8047_v7, %v1249_v1  ;;  %v8049_v15 = vpop.f32.mrb[21].mxu1  ;;  %v283_v1 = vld [vmem:[%s28986_s1 + $0x7d8] sm:$0xff] }
 0x55d   :  { %v25901_v24 = vadd.f32 %v8049_v15, %v1253_v43  ;;  %v8051_v5 = vpop.f32.mrb[22].mxu1  ;;  %8434 = vmatpush1.bf16.msra.mxu1 %v17334_v49  ;;  %v17430_v43 = vcombine.low %v259_v30, %v271_v31  ;;  %v17455_v49 = vcombine.high %v283_v1, %v295_v46  ;;  %v307_v7 = vld [vmem:[%s28986_s1 + $0x898] sm:$0xff]  ;;  %v17454_v55 = vcombine.low %v283_v1, %v295_v46 }
 0x55e   :  { %v8560_v11 = vmul.f32 %v19510_v59, %v19510_v59  ;;  %v8052_v45 = vpop.f32.mrb[23].mxu1  ;;  %8435 = vmatprep.subr.bf16.mxu1 %v17359_v4  ;;  %v21511_v4 = vpop.eup %21510  ;;  %v17479_v15 = vcombine.high %v307_v7, %v319_v18  ;;  %v331_v5 = vld [vmem:[%s28986_s1 + $0x958] sm:$0xff] }
 0x55f   :  { %v8561_v41 = vmul.f32 %v25901_v24, %v25901_v24  ;;  %v8683_v2 = vmul.f32 0.5, %v21511_v4  ;;  %v403_v4 = vld [vmem:[%s28986_s1 + $0xb98] sm:$0xff] }
 0x560   :  { %v8584_v16 = vmul.f32 0.035677407, %v8560_v11 }
 0x561   :  { %v8585_v26 = vmul.f32 0.035677407, %v8561_v41  ;;  %8436 = vmatpush1.bf16.msra.mxu1 %v17358_v8  ;;  %v343_v8 = vld [vmem:[%s28986_s1 + $0x9b8] sm:$0xff]  ;;  %v17478_v41 = vcombine.low %v307_v7, %v319_v18  ;;  %v20141_v18 = vld [vmem:[%s28988_s3 + $0x1830] ss:$24 sps:$4 sm:$0xff]  }
 0x562   :  { %v8608_v27 = vadd.f32 0.7978846, %v8584_v16  ;;  %8437 = vmatprep.subr.bf16.mxu1 %v17383_v10  ;;  %v17503_v52 = vcombine.high %v331_v5, %v343_v8  ;;  %v8707_v16 = vadd.f32 0.5, %v8683_v2  ;;  %v17502_v30 = vcombine.low %v331_v5, %v343_v8  ;;  %v415_v7 = vld [vmem:[%s28986_s1 + $0xbf8] sm:$0xff] }
 0x563   :  { %v8609_v29 = vadd.f32 0.7978846, %v8585_v26  ;;  %v17575_v2 = vcombine.high %v403_v4, %v415_v7  ;;  %v427_v5 = vld [vmem:[%s28986_s1 + $0xc58] sm:$0xff] }
 0x564   :  { %v8632_v14 = vmul.f32 %v19510_v59, %v8608_v27  ;;  %v367_v27 = vld [vmem:[%s28986_s1 + $0xa78] sm:$0xff] }
 0x565   :  { %v8633_v39 = vmul.f32 %v25901_v24, %v8609_v29  ;;  %8438 = vmatpush1.bf16.msra.mxu1 %v17382_v19  ;;  %v355_v19 = vld [vmem:[%s28986_s1 + $0xa18] sm:$0xff] }
 0x566   :  { %21512 = vtanh.f32 %v8632_v14  ;;  %8439 = vmatprep.subr.bf16.mxu1 %v17407_v28  ;;  %v17527_v14 = vcombine.high %v355_v19, %v367_v27  ;;  %v439_v8 = vld [vmem:[%s28986_s1 + $0xcb8] sm:$0xff] }
 0x567   :  { %21514 = vtanh.f32 %v8633_v39  ;;  %v8731_v39 = vmul.f32 %v25867_v37, %v8707_v16  ;;  %v20143_v37 = vld [vmem:[%s28988_s3 + $0x1834] ss:$24 sps:$4 sm:$0xff]   ;;  %v20147_v16 = vld [vmem:[%s28988_s3 + $0x1890] ss:$24 sps:$4 sm:$0xff]  }
 0x569   :  { %8440 = vmatpush1.bf16.msra.mxu1 %v17406_v40  ;;  %v379_v40 = vld [vmem:[%s28986_s1 + $0xad8] sm:$0xff] }
 0x56a   :  { %8441 = vmatprep.subr.bf16.mxu1 %v17431_v62  ;;  %v391_v62 = vld [vmem:[%s28986_s1 + $0xb38] sm:$0xff] }
 0x56d   :  { %8442 = vmatpush1.bf16.msra.mxu1 %v17430_v43  ;;  %v25961_v43 = vpack.c.bf16 %v8731_v39, %v8731_v39  ;;  %v20155_v39 = vld [vmem:[%s28988_s3 + $0x18f4] ss:$24 sps:$4 sm:$0xff]  }
 0x56e   :  { %8443 = vmatprep.subr.bf16.mxu1 %v17455_v49  ;;  %v17551_v49 = vcombine.high %v379_v40, %v391_v62 }
 0x570   :  { %v21513_v11 = vpop.eup %21512 }
 0x571   :  { %v21515_v45 = vpop.eup %21514  ;;  %v8680_v10 = vmul.f32 0.5, %v21513_v11  ;;  %8444 = vmatpush1.bf16.msra.mxu1 %v17454_v55  ;;  %v17550_v55 = vcombine.low %v379_v40, %v391_v62  ;;  %v20144_v11 = vld [vmem:[%s28988_s3 + $0x1860] ss:$24 sps:$4 sm:$0xff]  }
 0x572   :  { %8445 = vmatprep.subr.bf16.mxu1 %v17479_v15  ;;  %v8681_v57 = vmul.f32 0.5, %v21515_v45  ;;  %v20146_v15 = vld [vmem:[%s28988_s3 + $0x1864] ss:$24 sps:$4 sm:$0xff]   ;;  %v17574_v45 = vcombine.low %v403_v4, %v415_v7 }
 0x573   :  { %v8704_v26 = vadd.f32 0.5, %v8680_v10  ;;  %v20149_v10 = vld [vmem:[%s28988_s3 + $0x1894] ss:$24 sps:$4 sm:$0xff]   ;;  %v499_v62 = vld [vmem:[%s28986_s1 + $0xe98] sm:$0xff] }
 0x574   :  { %v8705_v28 = vadd.f32 0.5, %v8681_v57  ;;  %v463_v57 = vld [vmem:[%s28986_s1 + $0xd78] sm:$0xff] }
 0x575   :  { %v8728_v29 = vmul.f32 %v19510_v59, %v8704_v26  ;;  %8446 = vmatpush1.bf16.msra.mxu1 %v17478_v41  ;;  %v20138_v59 = vld [vmem:[%s28988_s3 + $0x1800] ss:$24 sps:$4 sm:$0xff]   ;;  %v17599_v41 = vcombine.high %v427_v5, %v439_v8  ;;  %v17598_v26 = vcombine.low %v427_v5, %v439_v8 }
 0x576   :  { %8447 = vmatprep.subr.bf16.mxu1 %v17503_v52  ;;  %v8729_v31 = vmul.f32 %v25901_v24, %v8705_v28  ;;  %v17526_v24 = vcombine.low %v355_v19, %v367_v27  ;;  %v451_v52 = vld [vmem:[%s28986_s1 + $0xd18] sm:$0xff] }
 0x577   :  { %v25955_v46 = vpack.c.bf16 %v8728_v29, %v8728_v29  ;;  %v20152_v19 = vld [vmem:[%s28988_s3 + $0x18c4] ss:$24 sps:$4 sm:$0xff]   ;;  %v17623_v27 = vcombine.high %v451_v52, %v463_v57 }
 0x578   :  { %v25950_v1 = vpack.c.bf16 %v8729_v31, %v8729_v31  ;;  %v475_v28 = vld [vmem:[%s28986_s1 + $0xdd8] sm:$0xff] }
 0x579   :  { %8448 = vmatpush1.bf16.msra.mxu1 %v17502_v30  ;;  %v487_v29 = vld [vmem:[%s28986_s1 + $0xe38] sm:$0xff]  ;;  %v1257_v30 = vrot.slane %v25848_v60, %v24039_v48 }
 0x57a   :  { %16025 = vmatprep.mubr.bf16.mxu0 %v25950_v1  ;;  %8449 = vmatprep.subr.bf16.mxu1 %v17527_v14  ;;  %v20150_v31 = vld [vmem:[%s28988_s3 + $0x18c0] ss:$24 sps:$4 sm:$0xff]   ;;  %v17622_v14 = vcombine.low %v451_v52, %v463_v57  ;;  %v17647_v40 = vcombine.high %v475_v28, %v487_v29 }
 0x57b   :  { %16026 = vmatmul.mubr.bf16.vlgmr.msra.gmra.mrb[16].mxu0 %v25955_v46  ;;  %v523_v4 = vld [vmem:[%s28986_s1 + $0xf58] sm:$0xff] }
 0x57c   :  { %16035 = vmatpush1.bf16.msra.mxu0 %v20138_v59  ;;  %16066 = vmatprep.mubr.bf16.mxu0 %v25961_v43  ;;  %v26024_v59 = vadd.f32 %v24097_v23, %v1257_v30  ;;  %v535_v23 = vld [vmem:[%s28986_s1 + $0xfb8] sm:$0xff] }
 0x57d   :  { %8450 = vmatpush1.bf16.msra.mxu1 %v17526_v24  ;;  %16036 = vmatprep.subr.bf16.mxu0 %v20143_v37  ;;  %v20153_v24 = vld [vmem:[%s28988_s3 + $0x18f0] ss:$24 sps:$4 sm:$0xff]   ;;  %v17646_v37 = vcombine.low %v475_v28, %v487_v29  ;;  %v547_v5 = vld [vmem:[%s28986_s1 + $0x1018] sm:$0xff]  ;;  %v20167_v28 = vld [vmem:[%s28988_s3 + $0x19b4] ss:$24 sps:$4 sm:$0xff]  }
 0x57e   :  { %8451 = vmatprep.subr.bf16.mxu1 %v17551_v49  ;;  %v8562_v7 = vmul.f32 %v26024_v59, %v26024_v59  ;;  %v559_v8 = vld [vmem:[%s28986_s1 + $0x1078] sm:$0xff] }
 0x57f   :  { %v17719_v52 = vcombine.high %v547_v5, %v559_v8  ;;  %v571_v57 = vld [vmem:[%s28986_s1 + $0x10d8] sm:$0xff] }
 0x580   :  { %16037 = vmatpush1.bf16.msra.mxu0 %v20141_v18  ;;  %v20156_v18 = vld [vmem:[%s28988_s3 + $0x1920] ss:$24 sps:$4 sm:$0xff]  }
 0x581   :  { %8452 = vmatpush1.bf16.msra.mxu1 %v17550_v55  ;;  %16038 = vmatprep.subr.bf16.mxu0 %v20146_v15  ;;  %v20161_v15 = vld [vmem:[%s28988_s3 + $0x1954] ss:$24 sps:$4 sm:$0xff]   ;;  %v595_v30 = vld [vmem:[%s28986_s1 + $0x1198] sm:$0xff] }
 0x582   :  { %8453 = vmatprep.subr.bf16.mxu1 %v17575_v2  ;;  %v17695_v2 = vcombine.high %v523_v4, %v535_v23 }
 0x584   :  { %16039 = vmatpush1.bf16.msra.mxu0 %v20144_v11  ;;  %v8586_v11 = vmul.f32 0.035677407, %v8562_v7  ;;  %v643_v7 = vld [vmem:[%s28986_s1 + $0x1318] sm:$0xff] }
 0x585   :  { %8454 = vmatpush1.bf16.msra.mxu1 %v17574_v45  ;;  %16040 = vmatprep.subr.bf16.mxu0 %v20149_v10  ;;  %v20159_v45 = vld [vmem:[%s28988_s3 + $0x1950] ss:$24 sps:$4 sm:$0xff]   ;;  %v17694_v10 = vcombine.low %v523_v4, %v535_v23  ;;  %v20173_v4 = vld [vmem:[%s28988_s3 + $0x1a14] ss:$24 sps:$4 sm:$0xff]  }
 0x586   :  { %8464 = vmatprep.subr.bf16.mxu1 %v17599_v41  ;;  %v20164_v41 = vld [vmem:[%s28988_s3 + $0x1984] ss:$24 sps:$4 sm:$0xff]  }
 0x588   :  { %16041 = vmatpush1.bf16.msra.mxu0 %v20147_v16  ;;  %8456 = vmatmul.mubr.bf16.vlgmr.msra.gmra.mrb[28].mxu1 %v21786_v12  ;;  %v511_v12 = vld [vmem:[%s28986_s1 + $0xef8] sm:$0xff] }
 0x589   :  { %8465 = vmatpush1.bf16.msra.mxu1 %v17598_v26  ;;  %16042 = vmatprep.subr.bf16.mxu0 %v20152_v19  ;;  %v17671_v49 = vcombine.high %v499_v62, %v511_v12  ;;  %v17670_v55 = vcombine.low %v499_v62, %v511_v12  ;;  %v583_v16 = vld [vmem:[%s28986_s1 + $0x1138] sm:$0xff]  ;;  %v8610_v26 = vadd.f32 0.7978846, %v8586_v11 }
 0x58a   :  { %8466 = vmatprep.subr.bf16.mxu1 %v17623_v27  ;;  %8496 = vmatprep.mubr.bf16.mxu1 %v21803_v22  ;;  %v20158_v22 = vld [vmem:[%s28988_s3 + $0x1924] ss:$24 sps:$4 sm:$0xff]   ;;  %v20162_v19 = vld [vmem:[%s28988_s3 + $0x1980] ss:$24 sps:$4 sm:$0xff]   ;;  %v17718_v27 = vcombine.low %v547_v5, %v559_v8  ;;  %v17743_v29 = vcombine.high %v571_v57, %v583_v16 }
 0x58b   :  { %v20170_v62 = vld [vmem:[%s28988_s3 + $0x19e4] ss:$24 sps:$4 sm:$0xff]  }
 0x58c   :  { %16043 = vmatpush1.bf16.msra.mxu0 %v20150_v31  ;;  %v607_v31 = vld [vmem:[%s28986_s1 + $0x11f8] sm:$0xff] }
 0x58d   :  { %8467 = vmatpush1.bf16.msra.mxu1 %v17622_v14  ;;  %16044 = vmatprep.subr.bf16.mxu0 %v20155_v39  ;;  %v8634_v14 = vmul.f32 %v26024_v59, %v8610_v26  ;;  %v20165_v39 = vld [vmem:[%s28988_s3 + $0x19b0] ss:$24 sps:$4 sm:$0xff]   ;;  %v17767_v12 = vcombine.high %v595_v30, %v607_v31  ;;  %v667_v8 = vld [vmem:[%s28986_s1 + $0x13d8] sm:$0xff] }
 0x58e   :  { %8468 = vmatprep.subr.bf16.mxu1 %v17647_v40  ;;  %v17742_v40 = vcombine.low %v571_v57, %v583_v16  ;;  %v679_v11 = vld [vmem:[%s28986_s1 + $0x1438] sm:$0xff] }
 0x58f   :  { %21516 = vtanh.f32 %v8634_v14  ;;  %v17839_v57 = vcombine.high %v667_v8, %v679_v11  ;;  %v691_v16 = vld [vmem:[%s28986_s1 + $0x1498] sm:$0xff] }
 0x590   :  { %16045 = vmatpush1.bf16.msra.mxu0 %v20153_v24  ;;  %v619_v24 = vld [vmem:[%s28986_s1 + $0x1258] sm:$0xff] }
 0x591   :  { %8469 = vmatpush1.bf16.msra.mxu1 %v17646_v37  ;;  %16046 = vmatprep.subr.bf16.mxu0 %v20158_v22  ;;  %v631_v37 = vld [vmem:[%s28986_s1 + $0x12b8] sm:$0xff] }
 0x592   :  { %8470 = vmatprep.subr.bf16.mxu1 %v17671_v49  ;;  %v20168_v22 = vld [vmem:[%s28988_s3 + $0x19e0] ss:$24 sps:$4 sm:$0xff]   ;;  %v17766_v49 = vcombine.low %v595_v30, %v607_v31  ;;  %v17791_v23 = vcombine.high %v619_v24, %v631_v37 }
 0x593   :  { %v703_v26 = vld [vmem:[%s28986_s1 + $0x14f8] sm:$0xff] }
 0x594   :  { %16047 = vmatpush1.bf16.msra.mxu0 %v20156_v18  ;;  %v655_v18 = vld [vmem:[%s28986_s1 + $0x1378] sm:$0xff]  ;;  %v17863_v30 = vcombine.high %v691_v16, %v703_v26 }
 0x595   :  { %8471 = vmatpush1.bf16.msra.mxu1 %v17670_v55  ;;  %16048 = vmatprep.subr.bf16.mxu0 %v20161_v15  ;;  %v20171_v55 = vld [vmem:[%s28988_s3 + $0x1a10] ss:$24 sps:$4 sm:$0xff]   ;;  %v17790_v15 = vcombine.low %v619_v24, %v631_v37  ;;  %v17815_v5 = vcombine.high %v643_v7, %v655_v18  ;;  %v715_v31 = vld [vmem:[%s28986_s1 + $0x1558] sm:$0xff] }
 0x596   :  { %8472 = vmatprep.subr.bf16.mxu1 %v17695_v2  ;;  %v20176_v2 = vld [vmem:[%s28988_s3 + $0x1a44] ss:$24 sps:$4 sm:$0xff]  }
 0x597   :  { %v727_v14 = vld [vmem:[%s28986_s1 + $0x15b8] sm:$0xff] }
 0x598   :  { %16049 = vmatpush1.bf16.msra.mxu0 %v20159_v45  ;;  %v20174_v45 = vld [vmem:[%s28988_s3 + $0x1a40] ss:$24 sps:$4 sm:$0xff]   ;;  %v17887_v24 = vcombine.high %v715_v31, %v727_v14 }
 0x599   :  { %8473 = vmatpush1.bf16.msra.mxu1 %v17694_v10  ;;  %16050 = vmatprep.subr.bf16.mxu0 %v20164_v41  ;;  %v17814_v10 = vcombine.low %v643_v7, %v655_v18  ;;  %v20179_v41 = vld [vmem:[%s28988_s3 + $0x1a74] ss:$24 sps:$4 sm:$0xff]   ;;  %v739_v37 = vld [vmem:[%s28986_s1 + $0x1618] sm:$0xff] }
 0x59a   :  { %8474 = vmatprep.subr.bf16.mxu1 %v17719_v52  ;;  %v21517_v52 = vpop.eup %21516  ;;  %v20188_v7 = vld [vmem:[%s28988_s3 + $0x1b04] ss:$24 sps:$4 sm:$0xff]  }
 0x59c   :  { %16051 = vmatpush1.bf16.msra.mxu0 %v20162_v19  ;;  %v20177_v19 = vld [vmem:[%s28988_s3 + $0x1a70] ss:$24 sps:$4 sm:$0xff]  }
 0x59d   :  { %8475 = vmatpush1.bf16.msra.mxu1 %v17718_v27  ;;  %16052 = vmatprep.subr.bf16.mxu0 %v20167_v28  ;;  %v8682_v27 = vmul.f32 0.5, %v21517_v52  ;;  %v17838_v28 = vcombine.low %v667_v8, %v679_v11  ;;  %v20191_v8 = vld [vmem:[%s28988_s3 + $0x1b34] ss:$24 sps:$4 sm:$0xff]  }
 0x59e   :  { %8476 = vmatprep.subr.bf16.mxu1 %v17743_v29  ;;  %v20182_v29 = vld [vmem:[%s28988_s3 + $0x1aa4] ss:$24 sps:$4 sm:$0xff]  }
 0x5a0   :  { %16053 = vmatpush1.bf16.msra.mxu0 %v20165_v39  ;;  %v20180_v39 = vld [vmem:[%s28988_s3 + $0x1aa0] ss:$24 sps:$4 sm:$0xff]  }
 0x5a1   :  { %8477 = vmatpush1.bf16.msra.mxu1 %v17742_v40  ;;  %16054 = vmatprep.subr.bf16.mxu0 %v20170_v62  ;;  %v8706_v40 = vadd.f32 0.5, %v8682_v27  ;;  %v17862_v62 = vcombine.low %v691_v16, %v703_v26  ;;  %v811_v26 = vld [vmem:[%s28986_s1 + $0x1858] sm:$0xff] }
 0x5a2   :  { %8478 = vmatprep.subr.bf16.mxu1 %v17767_v12  ;;  %v20185_v12 = vld [vmem:[%s28988_s3 + $0x1ad4] ss:$24 sps:$4 sm:$0xff]   ;;  %v20192_v27 = vld [vmem:[%s28988_s3 + $0x1b60] ss:$24 sps:$4 sm:$0xff]  }
 0x5a4   :  { %16055 = vmatpush1.bf16.msra.mxu0 %v20168_v22  ;;  %v751_v22 = vld [vmem:[%s28986_s1 + $0x1678] sm:$0xff] }
 0x5a5   :  { %8479 = vmatpush1.bf16.msra.mxu1 %v17766_v49  ;;  %16056 = vmatprep.subr.bf16.mxu0 %v20173_v4  ;;  %v20183_v49 = vld [vmem:[%s28988_s3 + $0x1ad0] ss:$24 sps:$4 sm:$0xff]   ;;  %v8730_v4 = vmul.f32 %v26024_v59, %v8706_v40  ;;  %v17911_v18 = vcombine.high %v739_v37, %v751_v22  ;;  %v20186_v59 = vld [vmem:[%s28988_s3 + $0x1b00] ss:$24 sps:$4 sm:$0xff]  }
 0x5a6   :  { %8480 = vmatprep.subr.bf16.mxu1 %v17791_v23  ;;  %v17886_v23 = vcombine.low %v715_v31, %v727_v14  ;;  %v835_v31 = vld [vmem:[%s28986_s1 + $0x1918] sm:$0xff] }
 0x5a7   :  { %v847_v14 = vld [vmem:[%s28986_s1 + $0x1978] sm:$0xff] }
 0x5a8   :  { %16057 = vmatpush1.bf16.msra.mxu0 %v20171_v55  ;;  %v763_v55 = vld [vmem:[%s28986_s1 + $0x16d8] sm:$0xff] }
 0x5a9   :  { %8481 = vmatpush1.bf16.msra.mxu1 %v17790_v15  ;;  %16058 = vmatprep.subr.bf16.mxu0 %v20176_v2  ;;  %v775_v15 = vld [vmem:[%s28986_s1 + $0x1738] sm:$0xff]  ;;  %v26165_v2 = vpack.c.bf16 %v8730_v4, %v8730_v4  ;;  %v20209_v4 = vld [vmem:[%s28988_s3 + $0x1bf4] ss:$24 sps:$4 sm:$0xff]  }
 0x5aa   :  { %8482 = vmatprep.subr.bf16.mxu1 %v17815_v5  ;;  %v17910_v5 = vcombine.low %v739_v37, %v751_v22  ;;  %v17935_v11 = vcombine.high %v763_v55, %v775_v15  ;;  %v17934_v52 = vcombine.low %v763_v55, %v775_v15  ;;  %v871_v37 = vld [vmem:[%s28986_s1 + $0x1a38] sm:$0xff] }
 0x5ab   :  { %v20201_v22 = vld [vmem:[%s28988_s3 + $0x1bc0] ss:$24 sps:$4 sm:$0xff]   ;;  %v20215_v55 = vld [vmem:[%s28988_s3 + $0x1c24] ss:$24 sps:$4 sm:$0xff]  }
 0x5ac   :  { %16059 = vmatpush1.bf16.msra.mxu0 %v20174_v45  ;;  %v787_v45 = vld [vmem:[%s28986_s1 + $0x1798] sm:$0xff] }
 0x5ad   :  { %8483 = vmatpush1.bf16.msra.mxu1 %v17814_v10  ;;  %16060 = vmatprep.subr.bf16.mxu0 %v20179_v41  ;;  %v799_v10 = vld [vmem:[%s28986_s1 + $0x17f8] sm:$0xff]  ;;  %v20189_v41 = vld [vmem:[%s28988_s3 + $0x1b30] ss:$24 sps:$4 sm:$0xff]  }
 0x5ae   :  { %8484 = vmatprep.subr.bf16.mxu1 %v17839_v57  ;;  %v20194_v57 = vld [vmem:[%s28988_s3 + $0x1b64] ss:$24 sps:$4 sm:$0xff]   ;;  %v17959_v16 = vcombine.high %v787_v45, %v799_v10 }
 0x5b0   :  { %16061 = vmatpush1.bf16.msra.mxu0 %v20177_v19  ;;  %v823_v19 = vld [vmem:[%s28986_s1 + $0x18b8] sm:$0xff] }
 0x5b1   :  { %8485 = vmatpush1.bf16.msra.mxu1 %v17838_v28  ;;  %16062 = vmatprep.subr.bf16.mxu0 %v20182_v29  ;;  %v17958_v28 = vcombine.low %v787_v45, %v799_v10  ;;  %v20197_v29 = vld [vmem:[%s28988_s3 + $0x1b94] ss:$24 sps:$4 sm:$0xff]   ;;  %v17982_v40 = vcombine.low %v811_v26, %v823_v19 }
 0x5b2   :  { %8486 = vmatprep.subr.bf16.mxu1 %v17863_v30  ;;  %v17983_v30 = vcombine.high %v811_v26, %v823_v19  ;;  %v20221_v45 = vld [vmem:[%s28988_s3 + $0x1c54] ss:$24 sps:$4 sm:$0xff]   ;;  %v20227_v26 = vld [vmem:[%s28988_s3 + $0x1c84] ss:$24 sps:$4 sm:$0xff]  }
 0x5b4   :  { %16063 = vmatpush1.bf16.msra.mxu0 %v20180_v39  ;;  %v20195_v39 = vld [vmem:[%s28988_s3 + $0x1b90] ss:$24 sps:$4 sm:$0xff]  }
 0x5b5   :  { %8487 = vmatpush1.bf16.msra.mxu1 %v17862_v62  ;;  %16064 = vmatprep.subr.bf16.mxu0 %v20185_v12  ;;  %v18007_v62 = vcombine.high %v835_v31, %v847_v14  ;;  %v20203_v12 = vld [vmem:[%s28988_s3 + $0x1bc4] ss:$24 sps:$4 sm:$0xff]  }
 0x5b6   :  { %8488 = vmatprep.subr.bf16.mxu1 %v17887_v24  ;;  %v859_v24 = vld [vmem:[%s28986_s1 + $0x19d8] sm:$0xff] }
 0x5b8   :  { %16065 = vmatpush1.bf16.msra.mxu0 %v20183_v49  ;;  %v18006_v49 = vcombine.low %v835_v31, %v847_v14  ;;  %v20233_v31 = vld [vmem:[%s28988_s3 + $0x1cb4] ss:$24 sps:$4 sm:$0xff]  }
 0x5b9   :  { %8489 = vmatpush1.bf16.msra.mxu1 %v17886_v23  ;;  %16075 = vmatprep.subr.bf16.mxu0 %v20188_v7  ;;  %v18031_v23 = vcombine.high %v859_v24, %v871_v37  ;;  %v895_v7 = vld [vmem:[%s28986_s1 + $0x1af8] sm:$0xff] }
 0x5ba   :  { %8490 = vmatprep.subr.bf16.mxu1 %v17911_v18  ;;  %v18030_v18 = vcombine.low %v859_v24, %v871_v37  ;;  %v20239_v24 = vld [vmem:[%s28988_s3 + $0x1ce4] ss:$24 sps:$4 sm:$0xff]  }
 0x5bb   :  { %16067 = vmatmul.mubr.bf16.vlgmr.msra.gmra.mrb[16].mxu0 %v26165_v2 }
 0x5bc   :  { %16076 = vmatpush1.bf16.msra.mxu0 %v20186_v59  ;;  %v907_v59 = vld [vmem:[%s28986_s1 + $0x1b58] sm:$0xff] }
 0x5bd   :  { %8491 = vmatpush1.bf16.msra.mxu1 %v17910_v5  ;;  %16077 = vmatprep.subr.bf16.mxu0 %v20191_v8  ;;  %v919_v5 = vld [vmem:[%s28986_s1 + $0x1bb8] sm:$0xff] }
 0x5be   :  { %8492 = vmatprep.subr.bf16.mxu1 %v17935_v11  ;;  %v20213_v8 = vld [vmem:[%s28988_s3 + $0x1c20] ss:$24 sps:$4 sm:$0xff]   ;;  %v18079_v10 = vcombine.high %v907_v59, %v919_v5 }
 0x5c0   :  { %16078 = vmatpush1.bf16.msra.mxu0 %v20189_v41  ;;  %v931_v41 = vld [vmem:[%s28986_s1 + $0x1c18] sm:$0xff] }
 0x5c1   :  { %8493 = vmatpush1.bf16.msra.mxu1 %v17934_v52  ;;  %16079 = vmatprep.subr.bf16.mxu0 %v20194_v57  ;;  %v943_v52 = vld [vmem:[%s28986_s1 + $0x1c78] sm:$0xff]  ;;  %v20219_v57 = vld [vmem:[%s28988_s3 + $0x1c50] ss:$24 sps:$4 sm:$0xff]  }
 0x5c2   :  { %8494 = vmatprep.subr.bf16.mxu1 %v17959_v16  ;;  %v18078_v16 = vcombine.low %v907_v59, %v919_v5  ;;  %v18103_v19 = vcombine.high %v931_v41, %v943_v52  ;;  %v20251_v59 = vld [vmem:[%s28988_s3 + $0x1d44] ss:$24 sps:$4 sm:$0xff]  }
 0x5c4   :  { %16080 = vmatpush1.bf16.msra.mxu0 %v20192_v27  ;;  %v955_v27 = vld [vmem:[%s28986_s1 + $0x1cd8] sm:$0xff] }
 0x5c5   :  { %8495 = vmatpush1.bf16.msra.mxu1 %v17958_v28  ;;  %16081 = vmatprep.subr.bf16.mxu0 %v20197_v29  ;;  %v967_v28 = vld [vmem:[%s28986_s1 + $0x1d38] sm:$0xff] }
 0x5c6   :  { %8505 = vmatprep.subr.bf16.mxu1 %v17983_v30  ;;  %v20225_v29 = vld [vmem:[%s28988_s3 + $0x1c80] ss:$24 sps:$4 sm:$0xff]   ;;  %v18102_v30 = vcombine.low %v931_v41, %v943_v52  ;;  %v18127_v14 = vcombine.high %v955_v27, %v967_v28  ;;  %v20257_v41 = vld [vmem:[%s28988_s3 + $0x1d74] ss:$24 sps:$4 sm:$0xff]  }
 0x5c8   :  { %8497 = vmatmul.mubr.bf16.vlgmr.msra.gmra.mrb[28].mxu1 %v21992_v21  ;;  %16082 = vmatpush1.bf16.msra.mxu0 %v20195_v39  ;;  %v883_v21 = vld [vmem:[%s28986_s1 + $0x1a98] sm:$0xff] }
 0x5c9   :  { %8506 = vmatpush1.bf16.msra.mxu1 %v17982_v40  ;;  %8537 = vmatprep.mubr.bf16.mxu1 %v22009_v32  ;;  %v20207_v32 = vld [vmem:[%s28988_s3 + $0x1bf0] ss:$24 sps:$4 sm:$0xff]   ;;  %v18055_v15 = vcombine.high %v883_v21, %v895_v7  ;;  %v18054_v11 = vcombine.low %v883_v21, %v895_v7  ;;  %v979_v39 = vld [vmem:[%s28986_s1 + $0x1d98] sm:$0xff]  ;;  %v20245_v21 = vld [vmem:[%s28988_s3 + $0x1d14] ss:$24 sps:$4 sm:$0xff]  }
 0x5ca   :  { %8507 = vmatprep.subr.bf16.mxu1 %v18007_v62  ;;  %16083 = vmatprep.subr.bf16.mxu0 %v20203_v12  ;;  %v991_v40 = vld [vmem:[%s28986_s1 + $0x1df8] sm:$0xff]  ;;  %v20231_v62 = vld [vmem:[%s28988_s3 + $0x1cb0] ss:$24 sps:$4 sm:$0xff]   ;;  %v18126_v12 = vcombine.low %v955_v27, %v967_v28 }
 0x5cb   :  { %v18151_v37 = vcombine.high %v979_v39, %v991_v40  ;;  %v20263_v27 = vld [vmem:[%s28988_s3 + $0x1da4] ss:$24 sps:$4 sm:$0xff]  }
 0x5cc   :  { %16084 = vmatpush1.bf16.msra.mxu0 %v20201_v22  ;;  %v1003_v22 = vld [vmem:[%s28986_s1 + $0x1e58] sm:$0xff] }
 0x5cd   :  { %8508 = vmatpush1.bf16.msra.mxu1 %v18006_v49  ;;  %16085 = vmatprep.subr.bf16.mxu0 %v20209_v4  ;;  %v1015_v49 = vld [vmem:[%s28986_s1 + $0x1eb8] sm:$0xff] }
 0x5ce   :  { %8509 = vmatprep.subr.bf16.mxu1 %v18031_v23  ;;  %v20237_v4 = vld [vmem:[%s28988_s3 + $0x1ce0] ss:$24 sps:$4 sm:$0xff]   ;;  %v18150_v23 = vcombine.low %v979_v39, %v991_v40  ;;  %v18175_v7 = vcombine.high %v1003_v22, %v1015_v49  ;;  %v20269_v39 = vld [vmem:[%s28988_s3 + $0x1dd4] ss:$24 sps:$4 sm:$0xff]  }
 0x5d0   :  { %16086 = vmatpush1.bf16.msra.mxu0 %v20207_v32  ;;  %v1027_v32 = vld [vmem:[%s28986_s1 + $0x1f18] sm:$0xff] }
 0x5d1   :  { %8510 = vmatpush1.bf16.msra.mxu1 %v18030_v18  ;;  %16087 = vmatprep.subr.bf16.mxu0 %v20215_v55  ;;  %v1039_v18 = vld [vmem:[%s28986_s1 + $0x1f78] sm:$0xff]  ;;  %v20243_v55 = vld [vmem:[%s28988_s3 + $0x1d10] ss:$24 sps:$4 sm:$0xff]  }
 0x5d2   :  { %8511 = vmatprep.subr.bf16.mxu1 %v18055_v15  ;;  %v18174_v15 = vcombine.low %v1003_v22, %v1015_v49  ;;  %v18199_v5 = vcombine.high %v1027_v32, %v1039_v18  ;;  %v20275_v22 = vld [vmem:[%s28988_s3 + $0x1e04] ss:$24 sps:$4 sm:$0xff]  }
 0x5d4   :  { %16088 = vmatpush1.bf16.msra.mxu0 %v20213_v8  ;;  %v1051_v8 = vld [vmem:[%s28986_s1 + $0x1fd8] sm:$0xff] }
 0x5d5   :  { %8512 = vmatpush1.bf16.msra.mxu1 %v18054_v11  ;;  %16089 = vmatprep.subr.bf16.mxu0 %v20221_v45  ;;  %v1063_v11 = vld [vmem:[%s28986_s1 + $0x2038] sm:$0xff] }
 0x5d6   :  { %8513 = vmatprep.subr.bf16.mxu1 %v18079_v10  ;;  %v20249_v45 = vld [vmem:[%s28988_s3 + $0x1d40] ss:$24 sps:$4 sm:$0xff]   ;;  %v18198_v10 = vcombine.low %v1027_v32, %v1039_v18  ;;  %v18223_v52 = vcombine.high %v1051_v8, %v1063_v11 }
 0x5d7   :  { %v1171_v32 = vld [vmem:[%s28986_s1 + $0x2398] sm:$0xff] }
 0x5d8   :  { %16090 = vmatpush1.bf16.msra.mxu0 %v20219_v57  ;;  %v1075_v57 = vld [vmem:[%s28986_s1 + $0x2098] sm:$0xff] }
 0x5d9   :  { %8514 = vmatpush1.bf16.msra.mxu1 %v18078_v16  ;;  %16091 = vmatprep.subr.bf16.mxu0 %v20227_v26  ;;  %v1087_v16 = vld [vmem:[%s28986_s1 + $0x20f8] sm:$0xff]  ;;  %v20255_v26 = vld [vmem:[%s28988_s3 + $0x1d70] ss:$24 sps:$4 sm:$0xff]  }
 0x5da   :  { %8515 = vmatprep.subr.bf16.mxu1 %v18103_v19  ;;  %v18222_v19 = vcombine.low %v1051_v8, %v1063_v11  ;;  %v18247_v28 = vcombine.high %v1075_v57, %v1087_v16  ;;  %v1183_v18 = vld [vmem:[%s28986_s1 + $0x23f8] sm:$0xff]  ;;  %v20198_v8 = vld [vmem:[%s28988_s3 + $0x8] ss:$24 sps:$4 sm:$0xff]  }
 0x5db   :  { %v20206_v11 = vld [vmem:[%s28988_s3 + $0x3c] ss:$24 sps:$4 sm:$0xff]  }
 0x5dc   :  { %16092 = vmatpush1.bf16.msra.mxu0 %v20225_v29  ;;  %v1099_v29 = vld [vmem:[%s28986_s1 + $0x2158] sm:$0xff] }
 0x5dd   :  { %8516 = vmatpush1.bf16.msra.mxu1 %v18102_v30  ;;  %16093 = vmatprep.subr.bf16.mxu0 %v20233_v31  ;;  %v1111_v30 = vld [vmem:[%s28986_s1 + $0x21b8] sm:$0xff] }
 0x5de   :  { %8517 = vmatprep.subr.bf16.mxu1 %v18127_v14  ;;  %v20261_v31 = vld [vmem:[%s28988_s3 + $0x1da0] ss:$24 sps:$4 sm:$0xff]   ;;  %v18246_v14 = vcombine.low %v1075_v57, %v1087_v16  ;;  %v18271_v40 = vcombine.high %v1099_v29, %v1111_v30  ;;  %v20218_v57 = vld [vmem:[%s28988_s3 + $0x9c] ss:$24 sps:$4 sm:$0xff]  }
 0x5e0   :  { %16094 = vmatpush1.bf16.msra.mxu0 %v20231_v62  ;;  %v1123_v62 = vld [vmem:[%s28986_s1 + $0x2218] sm:$0xff] }
 0x5e1   :  { %8518 = vmatpush1.bf16.msra.mxu1 %v18126_v12  ;;  %16095 = vmatprep.subr.bf16.mxu0 %v20239_v24  ;;  %v1135_v12 = vld [vmem:[%s28986_s1 + $0x2278] sm:$0xff]  ;;  %v20267_v24 = vld [vmem:[%s28988_s3 + $0x1dd0] ss:$24 sps:$4 sm:$0xff]  }
 0x5e2   :  { %8519 = vmatprep.subr.bf16.mxu1 %v18151_v37  ;;  %v18270_v37 = vcombine.low %v1099_v29, %v1111_v30  ;;  %v18295_v49 = vcombine.high %v1123_v62, %v1135_v12  ;;  %v1265_v29 = vrot.slane %v25848_v60, %v24271_v42 }
 0x5e4   :  { %16096 = vmatpush1.bf16.msra.mxu0 %v20237_v4  ;;  %v1147_v4 = vld [vmem:[%s28986_s1 + $0x22d8] sm:$0xff] }
 0x5e5   :  { %8520 = vmatpush1.bf16.msra.mxu1 %v18150_v23  ;;  %16097 = vmatprep.subr.bf16.mxu0 %v20245_v21  ;;  %v1159_v23 = vld [vmem:[%s28986_s1 + $0x2338] sm:$0xff]  ;;  %v18294_v21 = vcombine.low %v1123_v62, %v1135_v12 }
 0x5e6   :  { %8521 = vmatprep.subr.bf16.mxu1 %v18175_v7  ;;  %v18319_v7 = vcombine.high %v1147_v4, %v1159_v23 }
 0x5e8   :  { %16098 = vmatpush1.bf16.msra.mxu0 %v20243_v55  ;;  %v18318_v55 = vcombine.low %v1147_v4, %v1159_v23  ;;  %v20242_v23 = vld [vmem:[%s28988_s3 + $0x15c] ss:$24 sps:$4 sm:$0xff]  }
 0x5e9   :  { %8522 = vmatpush1.bf16.msra.mxu1 %v18174_v15  ;;  %16099 = vmatprep.subr.bf16.mxu0 %v20251_v59  ;;  %v18343_v15 = vcombine.high %v1171_v32, %v1183_v18  ;;  %v18342_v59 = vcombine.low %v1171_v32, %v1183_v18  ;;  %v20240_v18 = vld [vmem:[%s28988_s3 + $0x158] ss:$24 sps:$4 sm:$0xff]  }
 0x5ea   :  { %8523 = vmatprep.subr.bf16.mxu1 %v18199_v5  ;;  %v20200_v5 = vld [vmem:[%s28988_s3 + $0xc] ss:$24 sps:$4 sm:$0xff]  }
 0x5ec   :  { %16100 = vmatpush1.bf16.msra.mxu0 %v20249_v45  ;;  %v1277_v45 = vrot.slane %v25848_v60, %v24286_v47 }
 0x5ed   :  { %8524 = vmatpush1.bf16.msra.mxu1 %v18198_v10  ;;  %16101 = vmatprep.subr.bf16.mxu0 %v20257_v41  ;;  %v20204_v10 = vld [vmem:[%s28988_s3 + $0x38] ss:$24 sps:$4 sm:$0xff]   ;;  %v20212_v41 = vld [vmem:[%s28988_s3 + $0x6c] ss:$24 sps:$4 sm:$0xff]  }
 0x5ee   :  { %8525 = vmatprep.subr.bf16.mxu1 %v18223_v52  ;;  %v26385_v52 = vadd.f32 %v24785_v0, %v1277_v45  ;;  %v20224_v0 = vld [vmem:[%s28988_s3 + $0xcc] ss:$24 sps:$4 sm:$0xff]   ;;  %v20254_v45 = vld [vmem:[%s28988_s3 + $0x1bc] ss:$24 sps:$4 sm:$0xff]  }
 0x5f0   :  { %16102 = vmatpush1.bf16.msra.mxu0 %v20255_v26  ;;  %v8567_v16 = vmul.f32 %v26385_v52, %v26385_v52  ;;  %v20216_v26 = vld [vmem:[%s28988_s3 + $0x98] ss:$24 sps:$4 sm:$0xff]  }
 0x5f1   :  { %8526 = vmatpush1.bf16.msra.mxu1 %v18222_v19  ;;  %16103 = vmatprep.subr.bf16.mxu0 %v20263_v27  ;;  %v20222_v27 = vld [vmem:[%s28988_s3 + $0xc8] ss:$24 sps:$4 sm:$0xff]  }
 0x5f2   :  { %8527 = vmatprep.subr.bf16.mxu1 %v18247_v28  ;;  %v8591_v19 = vmul.f32 0.035677407, %v8567_v16  ;;  %v20230_v28 = vld [vmem:[%s28988_s3 + $0xfc] ss:$24 sps:$4 sm:$0xff]  }
 0x5f3   :  { %v20266_v16 = vld [vmem:[%s28988_s3 + $0x21c] ss:$24 sps:$4 sm:$0xff]  }
 0x5f4   :  { %16104 = vmatpush1.bf16.msra.mxu0 %v20261_v31  ;;  %v8615_v30 = vadd.f32 0.7978846, %v8591_v19  ;;  %v1269_v31 = vrot.slane %v25848_v60, %v24051_v54  ;;  %v20234_v60 = vld [vmem:[%s28988_s3 + $0x128] ss:$24 sps:$4 sm:$0xff]  }
 0x5f5   :  { %8528 = vmatpush1.bf16.msra.mxu1 %v18246_v14  ;;  %16105 = vmatprep.subr.bf16.mxu0 %v20269_v39  ;;  %v20228_v14 = vld [vmem:[%s28988_s3 + $0xf8] ss:$24 sps:$4 sm:$0xff]   ;;  %v20236_v39 = vld [vmem:[%s28988_s3 + $0x12c] ss:$24 sps:$4 sm:$0xff]  }
 0x5f6   :  { %8529 = vmatprep.subr.bf16.mxu1 %v18271_v40 }
 0x5f8   :  { %16106 = vmatpush1.bf16.msra.mxu0 %v20267_v24  ;;  %v8639_v24 = vmul.f32 %v26385_v52, %v8615_v30 }
 0x5f9   :  { %8530 = vmatpush1.bf16.msra.mxu1 %v18270_v37  ;;  %16116 = vmatprep.subr.bf16.mxu0 %v20275_v22 }
 0x5fa   :  { %8531 = vmatprep.subr.bf16.mxu1 %v18295_v49  ;;  %21518 = vtanh.f32 %v8639_v24 }
 0x5fd   :  { %8532 = vmatpush1.bf16.msra.mxu1 %v18294_v21 }
 0x5fe   :  { %8533 = vmatprep.subr.bf16.mxu1 %v18319_v7 }
 0x601   :  { %8534 = vmatpush1.bf16.msra.mxu1 %v18318_v55 }
 0x602   :  { %8535 = vmatprep.subr.bf16.mxu1 %v18343_v15  ;;  %v20248_v15 = vld [vmem:[%s28988_s3 + $0x18c] ss:$24 sps:$4 sm:$0xff]  }
 0x605   :  { %8536 = vmatpush1.bf16.msra.mxu1 %v18342_v59 }
 0x606   :  { %16198 = vmatprep.subr.bf16.mxu1 %v20200_v5 }
 0x608   :  { %8538 = vmatmul.mubr.bf16.vlgmr.msra.gmra.mrb[28].mxu1 %v22198_v36  ;;  %v20210_v36 = vld [vmem:[%s28988_s3 + $0x68] ss:$24 sps:$4 sm:$0xff]  }
 0x609   :  { %16199 = vmatpush1.bf16.msra.mxu1 %v20198_v8  ;;  %16230 = vmatprep.mubr.bf16.mxu1 %v24009_v38 }
 0x60a   :  { %16200 = vmatprep.subr.bf16.mxu1 %v20206_v11  ;;  %v20246_v11 = vld [vmem:[%s28988_s3 + $0x188] ss:$24 sps:$4 sm:$0xff]  }
 0x60d   :  { %16201 = vmatpush1.bf16.msra.mxu1 %v20204_v10  ;;  %v20252_v10 = vld [vmem:[%s28988_s3 + $0x1b8] ss:$24 sps:$4 sm:$0xff]  }
 0x60e   :  { %16202 = vmatprep.subr.bf16.mxu1 %v20212_v41  ;;  %v20260_v41 = vld [vmem:[%s28988_s3 + $0x1ec] ss:$24 sps:$4 sm:$0xff]  }
 0x611   :  { %16203 = vmatpush1.bf16.msra.mxu1 %v20210_v36  ;;  %v21519_v36 = vpop.eup %21518 }
 0x612   :  { %16204 = vmatprep.subr.bf16.mxu1 %v20218_v57  ;;  %v20258_v57 = vld [vmem:[%s28988_s3 + $0x1e8] ss:$24 sps:$4 sm:$0xff]  }
 0x615   :  { %16205 = vmatpush1.bf16.msra.mxu1 %v20216_v26  ;;  %v8687_v26 = vmul.f32 0.5, %v21519_v36  ;;  %v26521_v36 = vld [vmem:[%s28989_s2 + $0x10] sm:$0xff] }
 0x616   :  { %16206 = vmatprep.subr.bf16.mxu1 %v20224_v0 }
 0x619   :  { %16207 = vmatpush1.bf16.msra.mxu1 %v20222_v27 }
 0x61a   :  { %16208 = vmatprep.subr.bf16.mxu1 %v20230_v28  ;;  %v20264_v28 = vld [vmem:[%s28988_s3 + $0x218] ss:$24 sps:$4 sm:$0xff]  }
 0x61b   :  { %v8293_v40 = vpop.f32.mrb[24].mxu1 }
 0x61c   :  { %v19514_v62 = vadd.f32 %v8293_v40, %v1265_v29  ;;  %v8295_v12 = vpop.f32.mrb[25].mxu1  ;;  %v20272_v29 = vld [vmem:[%s28988_s3 + $0x24c] ss:$24 sps:$4 sm:$0xff]  }
 0x61d   :  { %v19515_v37 = vadd.f32 %v8295_v12, %v1269_v31  ;;  %v8297_v22 = vpop.f32.mrb[26].mxu1  ;;  %16209 = vmatpush1.bf16.msra.mxu1 %v20228_v14  ;;  %v8711_v31 = vadd.f32 0.5, %v8687_v26  ;;  %v20270_v12 = vld [vmem:[%s28988_s3 + $0x248] ss:$24 sps:$4 sm:$0xff]   ;;  %v20300_v26 = vld [vmem:[%s28988_s3 + $0x338] ss:$24 sps:$4 sm:$0xff]  }
 0x61e   :  { %v8564_v49 = vmul.f32 %v19514_v62, %v19514_v62  ;;  %v8298_v4 = vpop.f32.mrb[27].mxu1  ;;  %16210 = vmatprep.subr.bf16.mxu1 %v20236_v39 }
 0x61f   :  { %v8565_v21 = vmul.f32 %v19515_v37, %v19515_v37  ;;  %v8735_v22 = vmul.f32 %v26385_v52, %v8711_v31  ;;  %v20273_v4 = vld [vmem:[%s28988_s3 + $0x1e00] ss:$24 sps:$4 sm:$0xff]   ;;  %v20281_v52 = vld [vmem:[%s28988_s3 + $0x1e34] ss:$24 sps:$4 sm:$0xff]  }
 0x620   :  { %v8588_v7 = vmul.f32 0.035677407, %v8564_v49 }
 0x621   :  { %v8589_v32 = vmul.f32 0.035677407, %v8565_v21  ;;  %16211 = vmatpush1.bf16.msra.mxu1 %v20234_v60  ;;  %v20278_v60 = vld [vmem:[%s28988_s3 + $0x27c] ss:$24 sps:$4 sm:$0xff]   ;;  %v20284_v21 = vld [vmem:[%s28988_s3 + $0x2ac] ss:$24 sps:$4 sm:$0xff]  }
 0x622   :  { %v8612_v55 = vadd.f32 0.7978846, %v8588_v7  ;;  %16212 = vmatprep.subr.bf16.mxu1 %v20242_v23  ;;  %v20276_v23 = vld [vmem:[%s28988_s3 + $0x278] ss:$24 sps:$4 sm:$0xff]  }
 0x623   :  { %v8613_v59 = vadd.f32 0.7978846, %v8589_v32  ;;  %v20279_v7 = vld [vmem:[%s28988_s3 + $0x1e30] ss:$24 sps:$4 sm:$0xff]  }
 0x624   :  { %v8636_v5 = vmul.f32 %v19514_v62, %v8612_v55  ;;  %v20282_v32 = vld [vmem:[%s28988_s3 + $0x2a8] ss:$24 sps:$4 sm:$0xff]   ;;  %v20290_v55 = vld [vmem:[%s28988_s3 + $0x2dc] ss:$24 sps:$4 sm:$0xff]  }
 0x625   :  { %v8637_v8 = vmul.f32 %v19515_v37, %v8613_v59  ;;  %16213 = vmatpush1.bf16.msra.mxu1 %v20240_v18  ;;  %v20287_v18 = vld [vmem:[%s28988_s3 + $0x1e64] ss:$24 sps:$4 sm:$0xff]   ;;  %v20288_v59 = vld [vmem:[%s28988_s3 + $0x2d8] ss:$24 sps:$4 sm:$0xff]  }
 0x626   :  { %21520 = vtanh.f32 %v8636_v5  ;;  %16214 = vmatprep.subr.bf16.mxu1 %v20248_v15  ;;  %v20285_v15 = vld [vmem:[%s28988_s3 + $0x1e60] ss:$24 sps:$4 sm:$0xff]   ;;  %v20293_v5 = vld [vmem:[%s28988_s3 + $0x1e94] ss:$24 sps:$4 sm:$0xff]  }
 0x627   :  { %21522 = vtanh.f32 %v8637_v8  ;;  %v20296_v8 = vld [vmem:[%s28988_s3 + $0x30c] ss:$24 sps:$4 sm:$0xff]  }
 0x629   :  { %16215 = vmatpush1.bf16.msra.mxu1 %v20246_v11  ;;  %v20291_v11 = vld [vmem:[%s28988_s3 + $0x1e90] ss:$24 sps:$4 sm:$0xff]  }
 0x62a   :  { %16216 = vmatprep.subr.bf16.mxu1 %v20254_v45  ;;  %v20294_v45 = vld [vmem:[%s28988_s3 + $0x308] ss:$24 sps:$4 sm:$0xff]  }
 0x62d   :  { %16217 = vmatpush1.bf16.msra.mxu1 %v20252_v10  ;;  %v20299_v10 = vld [vmem:[%s28988_s3 + $0x1ec4] ss:$24 sps:$4 sm:$0xff]  }
 0x62e   :  { %16218 = vmatprep.subr.bf16.mxu1 %v20260_v41  ;;  %v20302_v41 = vld [vmem:[%s28988_s3 + $0x33c] ss:$24 sps:$4 sm:$0xff]  }
 0x630   :  { %v21521_v0 = vpop.eup %21520 }
 0x631   :  { %v21523_v19 = vpop.eup %21522  ;;  %v8684_v27 = vmul.f32 0.5, %v21521_v0  ;;  %16219 = vmatpush1.bf16.msra.mxu1 %v20258_v57  ;;  %v1273_v57 = vrot.slane %v26521_v36, %v24509_v44  ;;  %v20305_v0 = vld [vmem:[%s28988_s3 + $0x1ef4] ss:$24 sps:$4 sm:$0xff]  }
 0x632   :  { %16220 = vmatprep.subr.bf16.mxu1 %v20266_v16  ;;  %v8685_v30 = vmul.f32 0.5, %v21523_v19  ;;  %v20297_v16 = vld [vmem:[%s28988_s3 + $0x1ec0] ss:$24 sps:$4 sm:$0xff]   ;;  %v20308_v19 = vld [vmem:[%s28988_s3 + $0x36c] ss:$24 sps:$4 sm:$0xff]  }
 0x633   :  { %v8708_v14 = vadd.f32 0.5, %v8684_v27  ;;  %v26540_v27 = vadd.f32 %v24772_v63, %v1273_v57  ;;  %v20314_v63 = vld [vmem:[%s28988_s3 + $0x39c] ss:$24 sps:$4 sm:$0xff]   ;;  %v20339_v57 = vld [vmem:[%s28988_s3 + $0x2010] ss:$24 sps:$4 sm:$0xff]  }
 0x634   :  { %v8709_v39 = vadd.f32 0.5, %v8685_v30  ;;  %v20311_v30 = vld [vmem:[%s28988_s3 + $0x1f24] ss:$24 sps:$4 sm:$0xff]  }
 0x635   :  { %v8732_v40 = vmul.f32 %v19514_v62, %v8708_v14  ;;  %16221 = vmatpush1.bf16.msra.mxu1 %v20264_v28  ;;  %v20303_v28 = vld [vmem:[%s28988_s3 + $0x1ef0] ss:$24 sps:$4 sm:$0xff]   ;;  %v8566_v31 = vmul.f32 %v26540_v27, %v26540_v27  ;;  %v20309_v14 = vld [vmem:[%s28988_s3 + $0x1f20] ss:$24 sps:$4 sm:$0xff]  }
 0x636   :  { %16222 = vmatprep.subr.bf16.mxu1 %v20272_v29  ;;  %v8733_v24 = vmul.f32 %v19515_v37, %v8709_v39  ;;  %v26475_v37 = vpack.c.bf16 %v8735_v22, %v8735_v22  ;;  %v20306_v29 = vld [vmem:[%s28988_s3 + $0x368] ss:$24 sps:$4 sm:$0xff]   ;;  %v20312_v39 = vld [vmem:[%s28988_s3 + $0x398] ss:$24 sps:$4 sm:$0xff]  }
 0x637   :  { %v26466_v62 = vpack.c.bf16 %v8732_v40, %v8732_v40  ;;  %v20317_v40 = vld [vmem:[%s28988_s3 + $0x1f54] ss:$24 sps:$4 sm:$0xff]   ;;  %v20315_v22 = vld [vmem:[%s28988_s3 + $0x1f50] ss:$24 sps:$4 sm:$0xff]  }
 0x638   :  { %v26461_v49 = vpack.c.bf16 %v8733_v24, %v8733_v24  ;;  %v8590_v24 = vmul.f32 0.035677407, %v8566_v31  ;;  %v20351_v31 = vld [vmem:[%s28988_s3 + $0x2070] ss:$24 sps:$4 sm:$0xff]  }
 0x639   :  { %16223 = vmatpush1.bf16.msra.mxu1 %v20270_v12  ;;  %v20320_v12 = vld [vmem:[%s28988_s3 + $0x3cc] ss:$24 sps:$4 sm:$0xff]  }
 0x63a   :  { %16107 = vmatprep.mubr.bf16.mxu0 %v26461_v49  ;;  %16224 = vmatprep.subr.bf16.mxu1 %v20278_v60  ;;  %v20318_v60 = vld [vmem:[%s28988_s3 + $0x3c8] ss:$24 sps:$4 sm:$0xff]  }
 0x63b   :  { %16108 = vmatmul.mubr.bf16.vlgmr.msra.gmra.mrb[16].mxu0 %v26466_v62 }
 0x63c   :  { %16117 = vmatpush1.bf16.msra.mxu0 %v20273_v4  ;;  %16148 = vmatprep.mubr.bf16.mxu0 %v26475_v37  ;;  %v20323_v4 = vld [vmem:[%s28988_s3 + $0x1f84] ss:$24 sps:$4 sm:$0xff]  }
 0x63d   :  { %16225 = vmatpush1.bf16.msra.mxu1 %v20276_v23  ;;  %16118 = vmatprep.subr.bf16.mxu0 %v20281_v52  ;;  %v20326_v23 = vld [vmem:[%s28988_s3 + $0x3fc] ss:$24 sps:$4 sm:$0xff]   ;;  %v8614_v52 = vadd.f32 0.7978846, %v8590_v24  ;;  %v20357_v24 = vld [vmem:[%s28988_s3 + $0x20a0] ss:$24 sps:$4 sm:$0xff]  }
 0x63e   :  { %16226 = vmatprep.subr.bf16.mxu1 %v20284_v21  ;;  %v20321_v21 = vld [vmem:[%s28988_s3 + $0x1f80] ss:$24 sps:$4 sm:$0xff]  }
 0x640   :  { %16119 = vmatpush1.bf16.msra.mxu0 %v20279_v7  ;;  %v20324_v7 = vld [vmem:[%s28988_s3 + $0x3f8] ss:$24 sps:$4 sm:$0xff]  }
 0x641   :  { %16227 = vmatpush1.bf16.msra.mxu1 %v20282_v32  ;;  %16120 = vmatprep.subr.bf16.mxu0 %v20287_v18  ;;  %v20329_v32 = vld [vmem:[%s28988_s3 + $0x1fb4] ss:$24 sps:$4 sm:$0xff]  }
 0x642   :  { %16228 = vmatprep.subr.bf16.mxu1 %v20290_v55  ;;  %v20332_v18 = vld [vmem:[%s28988_s3 + $0x42c] ss:$24 sps:$4 sm:$0xff]   ;;  %v8638_v55 = vmul.f32 %v26540_v27, %v8614_v52  ;;  %v20363_v52 = vld [vmem:[%s28988_s3 + $0x20d0] ss:$24 sps:$4 sm:$0xff]  }
 0x644   :  { %16121 = vmatpush1.bf16.msra.mxu0 %v20285_v15  ;;  %v20327_v15 = vld [vmem:[%s28988_s3 + $0x1fb0] ss:$24 sps:$4 sm:$0xff]   ;;  %21524 = vtanh.f32 %v8638_v55 }
 0x645   :  { %16229 = vmatpush1.bf16.msra.mxu1 %v20288_v59  ;;  %16122 = vmatprep.subr.bf16.mxu0 %v20293_v5  ;;  %v20330_v59 = vld [vmem:[%s28988_s3 + $0x428] ss:$24 sps:$4 sm:$0xff]   ;;  %v20335_v5 = vld [vmem:[%s28988_s3 + $0x1fe4] ss:$24 sps:$4 sm:$0xff]  }
 0x646   :  { %16239 = vmatprep.subr.bf16.mxu1 %v20296_v8  ;;  %v20338_v8 = vld [vmem:[%s28988_s3 + $0x45c] ss:$24 sps:$4 sm:$0xff]  }
 0x648   :  { %16123 = vmatpush1.bf16.msra.mxu0 %v20291_v11  ;;  %16231 = vmatmul.mubr.bf16.vlgmr.msra.gmra.mrb[32].mxu1 %v24235_v17  ;;  %v20333_v11 = vld [vmem:[%s28988_s3 + $0x1fe0] ss:$24 sps:$4 sm:$0xff]  }
 0x649   :  { %16240 = vmatpush1.bf16.msra.mxu1 %v20294_v45  ;;  %16271 = vmatprep.mubr.bf16.mxu1 %v24241_v25  ;;  %v20336_v45 = vld [vmem:[%s28988_s3 + $0x458] ss:$24 sps:$4 sm:$0xff]  }
 0x64a   :  { %16124 = vmatprep.subr.bf16.mxu0 %v20299_v10  ;;  %16241 = vmatprep.subr.bf16.mxu1 %v20302_v41  ;;  %v20341_v10 = vld [vmem:[%s28988_s3 + $0x2014] ss:$24 sps:$4 sm:$0xff]  }
 0x64b   :  { %v20344_v41 = vld [vmem:[%s28988_s3 + $0x48c] ss:$24 sps:$4 sm:$0xff]  }
 0x64c   :  { %16125 = vmatpush1.bf16.msra.mxu0 %v20297_v16  ;;  %v20342_v16 = vld [vmem:[%s28988_s3 + $0x488] ss:$24 sps:$4 sm:$0xff]  }
 0x64d   :  { %16242 = vmatpush1.bf16.msra.mxu1 %v20300_v26  ;;  %16126 = vmatprep.subr.bf16.mxu0 %v20305_v0  ;;  %v20347_v26 = vld [vmem:[%s28988_s3 + $0x2044] ss:$24 sps:$4 sm:$0xff]  }
 0x64e   :  { %16243 = vmatprep.subr.bf16.mxu1 %v20308_v19  ;;  %v20350_v0 = vld [vmem:[%s28988_s3 + $0x4bc] ss:$24 sps:$4 sm:$0xff]   ;;  %v20345_v19 = vld [vmem:[%s28988_s3 + $0x2040] ss:$24 sps:$4 sm:$0xff]  }
 0x650   :  { %16127 = vmatpush1.bf16.msra.mxu0 %v20303_v28  ;;  %v20348_v28 = vld [vmem:[%s28988_s3 + $0x4b8] ss:$24 sps:$4 sm:$0xff]  }
 0x651   :  { %16244 = vmatpush1.bf16.msra.mxu1 %v20306_v29  ;;  %16128 = vmatprep.subr.bf16.mxu0 %v20311_v30  ;;  %v20353_v29 = vld [vmem:[%s28988_s3 + $0x2074] ss:$24 sps:$4 sm:$0xff]   ;;  %v21525_v30 = vpop.eup %21524 }
 0x652   :  { %16245 = vmatprep.subr.bf16.mxu1 %v20314_v63  ;;  %v20356_v63 = vld [vmem:[%s28988_s3 + $0x4ec] ss:$24 sps:$4 sm:$0xff]  }
 0x654   :  { %16129 = vmatpush1.bf16.msra.mxu0 %v20309_v14  ;;  %v8686_v14 = vmul.f32 0.5, %v21525_v30  ;;  %v20441_v30 = vld [vmem:[%s28988_s3 + $0x21c0] ss:$24 sps:$4 sm:$0xff]  }
 0x655   :  { %16246 = vmatpush1.bf16.msra.mxu1 %v20312_v39  ;;  %16130 = vmatprep.subr.bf16.mxu0 %v20317_v40  ;;  %v20354_v39 = vld [vmem:[%s28988_s3 + $0x4e8] ss:$24 sps:$4 sm:$0xff]   ;;  %v20359_v40 = vld [vmem:[%s28988_s3 + $0x20a4] ss:$24 sps:$4 sm:$0xff]  }
 0x656   :  { %16247 = vmatprep.subr.bf16.mxu1 %v20320_v12  ;;  %v20362_v12 = vld [vmem:[%s28988_s3 + $0x51c] ss:$24 sps:$4 sm:$0xff]  }
 0x658   :  { %16131 = vmatpush1.bf16.msra.mxu0 %v20315_v22  ;;  %v8710_v22 = vadd.f32 0.5, %v8686_v14  ;;  %v20386_v14 = vld [vmem:[%s28988_s3 + $0x66c] ss:$24 sps:$4 sm:$0xff]  }
 0x659   :  { %16248 = vmatpush1.bf16.msra.mxu1 %v20318_v60  ;;  %16132 = vmatprep.subr.bf16.mxu0 %v20323_v4  ;;  %v20360_v60 = vld [vmem:[%s28988_s3 + $0x518] ss:$24 sps:$4 sm:$0xff]   ;;  %v20365_v4 = vld [vmem:[%s28988_s3 + $0x20d4] ss:$24 sps:$4 sm:$0xff]  }
 0x65a   :  { %16249 = vmatprep.subr.bf16.mxu1 %v20326_v23  ;;  %v20368_v23 = vld [vmem:[%s28988_s3 + $0x54c] ss:$24 sps:$4 sm:$0xff]  }
 0x65c   :  { %16133 = vmatpush1.bf16.msra.mxu0 %v20321_v21  ;;  %v8734_v21 = vmul.f32 %v26540_v27, %v8710_v22  ;;  %v20417_v27 = vld [vmem:[%s28988_s3 + $0x2100] ss:$24 sps:$4 sm:$0xff]  }
 0x65d   :  { %16250 = vmatpush1.bf16.msra.mxu1 %v20324_v7  ;;  %16134 = vmatprep.subr.bf16.mxu0 %v20329_v32  ;;  %v20366_v7 = vld [vmem:[%s28988_s3 + $0x548] ss:$24 sps:$4 sm:$0xff]   ;;  %v20419_v32 = vld [vmem:[%s28988_s3 + $0x2104] ss:$24 sps:$4 sm:$0xff]  }
 0x65e   :  { %16251 = vmatprep.subr.bf16.mxu1 %v20332_v18  ;;  %v20371_v18 = vld [vmem:[%s28988_s3 + $0x57c] ss:$24 sps:$4 sm:$0xff]   ;;  %v26681_v55 = vpack.c.bf16 %v8734_v21, %v8734_v21  ;;  %v20453_v22 = vld [vmem:[%s28988_s3 + $0x2220] ss:$24 sps:$4 sm:$0xff]  }
 0x65f   :  { %v20390_v21 = vld [vmem:[%s28988_s3 + $0x6c8] ss:$24 sps:$4 sm:$0xff]  }
 0x660   :  { %16135 = vmatpush1.bf16.msra.mxu0 %v20327_v15  ;;  %v20369_v15 = vld [vmem:[%s28988_s3 + $0x578] ss:$24 sps:$4 sm:$0xff]  }
 0x661   :  { %16252 = vmatpush1.bf16.msra.mxu1 %v20330_v59  ;;  %16136 = vmatprep.subr.bf16.mxu0 %v20335_v5  ;;  %v20425_v59 = vld [vmem:[%s28988_s3 + $0x2134] ss:$24 sps:$4 sm:$0xff]  }
 0x662   :  { %16253 = vmatprep.subr.bf16.mxu1 %v20338_v8  ;;  %v20374_v5 = vld [vmem:[%s28988_s3 + $0x5ac] ss:$24 sps:$4 sm:$0xff]   ;;  %v20423_v8 = vld [vmem:[%s28988_s3 + $0x2130] ss:$24 sps:$4 sm:$0xff]  }
 0x664   :  { %16137 = vmatpush1.bf16.msra.mxu0 %v20333_v11  ;;  %v20372_v11 = vld [vmem:[%s28988_s3 + $0x5a8] ss:$24 sps:$4 sm:$0xff]  }
 0x665   :  { %16254 = vmatpush1.bf16.msra.mxu1 %v20336_v45  ;;  %16138 = vmatprep.subr.bf16.mxu0 %v20341_v10  ;;  %v20431_v45 = vld [vmem:[%s28988_s3 + $0x2164] ss:$24 sps:$4 sm:$0xff]  }
 0x666   :  { %16255 = vmatprep.subr.bf16.mxu1 %v20344_v41  ;;  %v20377_v10 = vld [vmem:[%s28988_s3 + $0x5dc] ss:$24 sps:$4 sm:$0xff]   ;;  %v20429_v41 = vld [vmem:[%s28988_s3 + $0x2160] ss:$24 sps:$4 sm:$0xff]  }
 0x668   :  { %16139 = vmatpush1.bf16.msra.mxu0 %v20339_v57  ;;  %v20375_v57 = vld [vmem:[%s28988_s3 + $0x5d8] ss:$24 sps:$4 sm:$0xff]  }
 0x669   :  { %16256 = vmatpush1.bf16.msra.mxu1 %v20342_v16  ;;  %16140 = vmatprep.subr.bf16.mxu0 %v20347_v26  ;;  %v20437_v16 = vld [vmem:[%s28988_s3 + $0x2194] ss:$24 sps:$4 sm:$0xff]  }
 0x66a   :  { %16257 = vmatprep.subr.bf16.mxu1 %v20350_v0  ;;  %v20380_v26 = vld [vmem:[%s28988_s3 + $0x60c] ss:$24 sps:$4 sm:$0xff]   ;;  %v20435_v0 = vld [vmem:[%s28988_s3 + $0x2190] ss:$24 sps:$4 sm:$0xff]  }
 0x66c   :  { %16141 = vmatpush1.bf16.msra.mxu0 %v20345_v19  ;;  %v20378_v19 = vld [vmem:[%s28988_s3 + $0x608] ss:$24 sps:$4 sm:$0xff]  }
 0x66d   :  { %16258 = vmatpush1.bf16.msra.mxu1 %v20348_v28  ;;  %16142 = vmatprep.subr.bf16.mxu0 %v20353_v29  ;;  %v20383_v28 = vld [vmem:[%s28988_s3 + $0x63c] ss:$24 sps:$4 sm:$0xff]  }
 0x66e   :  { %16259 = vmatprep.subr.bf16.mxu1 %v20356_v63  ;;  %v20443_v29 = vld [vmem:[%s28988_s3 + $0x21c4] ss:$24 sps:$4 sm:$0xff]   ;;  %v20381_v63 = vld [vmem:[%s28988_s3 + $0x638] ss:$24 sps:$4 sm:$0xff]  }
 0x670   :  { %16143 = vmatpush1.bf16.msra.mxu0 %v20351_v31  ;;  %v20449_v31 = vld [vmem:[%s28988_s3 + $0x21f4] ss:$24 sps:$4 sm:$0xff]  }
 0x671   :  { %16260 = vmatpush1.bf16.msra.mxu1 %v20354_v39  ;;  %16144 = vmatprep.subr.bf16.mxu0 %v20359_v40  ;;  %v20447_v39 = vld [vmem:[%s28988_s3 + $0x21f0] ss:$24 sps:$4 sm:$0xff]  }
 0x672   :  { %16261 = vmatprep.subr.bf16.mxu1 %v20362_v12  ;;  %v20384_v40 = vld [vmem:[%s28988_s3 + $0x668] ss:$24 sps:$4 sm:$0xff]   ;;  %v20455_v12 = vld [vmem:[%s28988_s3 + $0x2224] ss:$24 sps:$4 sm:$0xff]  }
 0x674   :  { %16145 = vmatpush1.bf16.msra.mxu0 %v20357_v24  ;;  %v20389_v24 = vld [vmem:[%s28988_s3 + $0x69c] ss:$24 sps:$4 sm:$0xff]  }
 0x675   :  { %16262 = vmatpush1.bf16.msra.mxu1 %v20360_v60  ;;  %16146 = vmatprep.subr.bf16.mxu0 %v20365_v4  ;;  %v20387_v60 = vld [vmem:[%s28988_s3 + $0x698] ss:$24 sps:$4 sm:$0xff]   ;;  %v20461_v4 = vld [vmem:[%s28988_s3 + $0x2254] ss:$24 sps:$4 sm:$0xff]  }
 0x676   :  { %16263 = vmatprep.subr.bf16.mxu1 %v20368_v23  ;;  %v20392_v23 = vld [vmem:[%s28988_s3 + $0x6cc] ss:$24 sps:$4 sm:$0xff]  }
 0x678   :  { %16147 = vmatpush1.bf16.msra.mxu0 %v20363_v52  ;;  %v20459_v52 = vld [vmem:[%s28988_s3 + $0x2250] ss:$24 sps:$4 sm:$0xff]  }
 0x679   :  { %16264 = vmatpush1.bf16.msra.mxu1 %v20366_v7  ;;  %16157 = vmatprep.subr.bf16.mxu0 %v20419_v32  ;;  %v20467_v7 = vld [vmem:[%s28988_s3 + $0x2284] ss:$24 sps:$4 sm:$0xff]  }
 0x67a   :  { %16265 = vmatprep.subr.bf16.mxu1 %v20371_v18  ;;  %v20395_v32 = vld [vmem:[%s28988_s3 + $0x6fc] ss:$24 sps:$4 sm:$0xff]   ;;  %v20465_v18 = vld [vmem:[%s28988_s3 + $0x2280] ss:$24 sps:$4 sm:$0xff]  }
 0x67b   :  { %16149 = vmatmul.mubr.bf16.vlgmr.msra.gmra.mrb[16].mxu0 %v26681_v55 }
 0x67c   :  { %16158 = vmatpush1.bf16.msra.mxu0 %v20417_v27  ;;  %v20393_v27 = vld [vmem:[%s28988_s3 + $0x6f8] ss:$24 sps:$4 sm:$0xff]  }
 0x67d   :  { %16266 = vmatpush1.bf16.msra.mxu1 %v20369_v15  ;;  %16159 = vmatprep.subr.bf16.mxu0 %v20425_v59  ;;  %v20473_v15 = vld [vmem:[%s28988_s3 + $0x22b4] ss:$24 sps:$4 sm:$0xff]  }
 0x67e   :  { %16267 = vmatprep.subr.bf16.mxu1 %v20374_v5  ;;  %v20398_v59 = vld [vmem:[%s28988_s3 + $0x72c] ss:$24 sps:$4 sm:$0xff]   ;;  %v20471_v5 = vld [vmem:[%s28988_s3 + $0x22b0] ss:$24 sps:$4 sm:$0xff]  }
 0x680   :  { %16160 = vmatpush1.bf16.msra.mxu0 %v20423_v8  ;;  %v20396_v8 = vld [vmem:[%s28988_s3 + $0x728] ss:$24 sps:$4 sm:$0xff]  }
 0x681   :  { %16268 = vmatpush1.bf16.msra.mxu1 %v20372_v11  ;;  %16161 = vmatprep.subr.bf16.mxu0 %v20431_v45  ;;  %v20479_v11 = vld [vmem:[%s28988_s3 + $0x22e4] ss:$24 sps:$4 sm:$0xff]  }
 0x682   :  { %16269 = vmatprep.subr.bf16.mxu1 %v20377_v10  ;;  %v20401_v45 = vld [vmem:[%s28988_s3 + $0x75c] ss:$24 sps:$4 sm:$0xff]   ;;  %v20477_v10 = vld [vmem:[%s28988_s3 + $0x22e0] ss:$24 sps:$4 sm:$0xff]  }
 0x684   :  { %16162 = vmatpush1.bf16.msra.mxu0 %v20429_v41  ;;  %v20399_v41 = vld [vmem:[%s28988_s3 + $0x758] ss:$24 sps:$4 sm:$0xff]  }
 0x685   :  { %16270 = vmatpush1.bf16.msra.mxu1 %v20375_v57  ;;  %16163 = vmatprep.subr.bf16.mxu0 %v20437_v16  ;;  %v20485_v57 = vld [vmem:[%s28988_s3 + $0x2314] ss:$24 sps:$4 sm:$0xff]  }
 0x686   :  { %16280 = vmatprep.subr.bf16.mxu1 %v20380_v26  ;;  %v20404_v16 = vld [vmem:[%s28988_s3 + $0x78c] ss:$24 sps:$4 sm:$0xff]   ;;  %v20483_v26 = vld [vmem:[%s28988_s3 + $0x2310] ss:$24 sps:$4 sm:$0xff]  }
 0x688   :  { %16272 = vmatmul.mubr.bf16.vlgmr.msra.gmra.mrb[32].mxu1 %v24464_v3  ;;  %16164 = vmatpush1.bf16.msra.mxu0 %v20435_v0  ;;  %v20402_v0 = vld [vmem:[%s28988_s3 + $0x788] ss:$24 sps:$4 sm:$0xff]  }
 0x689   :  { %16281 = vmatpush1.bf16.msra.mxu1 %v20378_v19  ;;  %16312 = vmatprep.mubr.bf16.mxu1 %v24470_v6  ;;  %v20491_v19 = vld [vmem:[%s28988_s3 + $0x2344] ss:$24 sps:$4 sm:$0xff]  }
 0x68a   :  { %16282 = vmatprep.subr.bf16.mxu1 %v20383_v28  ;;  %16165 = vmatprep.subr.bf16.mxu0 %v20443_v29  ;;  %v20407_v28 = vld [vmem:[%s28988_s3 + $0x7bc] ss:$24 sps:$4 sm:$0xff]   ;;  %v20489_v29 = vld [vmem:[%s28988_s3 + $0x2340] ss:$24 sps:$4 sm:$0xff]  }
 0x68c   :  { %16166 = vmatpush1.bf16.msra.mxu0 %v20441_v30  ;;  %v20405_v30 = vld [vmem:[%s28988_s3 + $0x7b8] ss:$24 sps:$4 sm:$0xff]  }
 0x68d   :  { %16283 = vmatpush1.bf16.msra.mxu1 %v20381_v63  ;;  %16167 = vmatprep.subr.bf16.mxu0 %v20449_v31  ;;  %v20497_v63 = vld [vmem:[%s28988_s3 + $0x2374] ss:$24 sps:$4 sm:$0xff]  }
 0x68e   :  { %16284 = vmatprep.subr.bf16.mxu1 %v20386_v14  ;;  %v20410_v31 = vld [vmem:[%s28988_s3 + $0x7ec] ss:$24 sps:$4 sm:$0xff]   ;;  %v20495_v14 = vld [vmem:[%s28988_s3 + $0x2370] ss:$24 sps:$4 sm:$0xff]  }
 0x690   :  { %16168 = vmatpush1.bf16.msra.mxu0 %v20447_v39  ;;  %v20408_v39 = vld [vmem:[%s28988_s3 + $0x7e8] ss:$24 sps:$4 sm:$0xff]  }
 0x691   :  { %16285 = vmatpush1.bf16.msra.mxu1 %v20384_v40  ;;  %16169 = vmatprep.subr.bf16.mxu0 %v20455_v12  ;;  %v20503_v40 = vld [vmem:[%s28988_s3 + $0x23a4] ss:$24 sps:$4 sm:$0xff]  }
 0x692   :  { %16286 = vmatprep.subr.bf16.mxu1 %v20389_v24  ;;  %v20413_v12 = vld [vmem:[%s28988_s3 + $0x81c] ss:$24 sps:$4 sm:$0xff]   ;;  %v20501_v24 = vld [vmem:[%s28988_s3 + $0x23a0] ss:$24 sps:$4 sm:$0xff]  }
 0x694   :  { %16170 = vmatpush1.bf16.msra.mxu0 %v20453_v22  ;;  %v20411_v22 = vld [vmem:[%s28988_s3 + $0x818] ss:$24 sps:$4 sm:$0xff]  }
 0x695   :  { %16287 = vmatpush1.bf16.msra.mxu1 %v20387_v60  ;;  %16171 = vmatprep.subr.bf16.mxu0 %v20461_v4  ;;  %v20509_v60 = vld [vmem:[%s28988_s3 + $0x23d4] ss:$24 sps:$4 sm:$0xff]  }
 0x696   :  { %16288 = vmatprep.subr.bf16.mxu1 %v20392_v23  ;;  %v20416_v4 = vld [vmem:[%s28988_s3 + $0x84c] ss:$24 sps:$4 sm:$0xff]   ;;  %v20507_v23 = vld [vmem:[%s28988_s3 + $0x23d0] ss:$24 sps:$4 sm:$0xff]  }
 0x698   :  { %16172 = vmatpush1.bf16.msra.mxu0 %v20459_v52  ;;  %v20414_v52 = vld [vmem:[%s28988_s3 + $0x848] ss:$24 sps:$4 sm:$0xff]  }
 0x699   :  { %16289 = vmatpush1.bf16.msra.mxu1 %v20390_v21  ;;  %16173 = vmatprep.subr.bf16.mxu0 %v20467_v7  ;;  %v20515_v21 = vld [vmem:[%s28988_s3 + $0x14] ss:$24 sps:$4 sm:$0xff]  }
 0x69a   :  { %16290 = vmatprep.subr.bf16.mxu1 %v20395_v32  ;;  %v20422_v7 = vld [vmem:[%s28988_s3 + $0x87c] ss:$24 sps:$4 sm:$0xff]   ;;  %v20420_v32 = vld [vmem:[%s28988_s3 + $0x878] ss:$24 sps:$4 sm:$0xff]  }
 0x69c   :  { %16174 = vmatpush1.bf16.msra.mxu0 %v20465_v18  ;;  %v20428_v18 = vld [vmem:[%s28988_s3 + $0x8ac] ss:$24 sps:$4 sm:$0xff]  }
 0x69d   :  { %16291 = vmatpush1.bf16.msra.mxu1 %v20393_v27  ;;  %16175 = vmatprep.subr.bf16.mxu0 %v20473_v15  ;;  %v20426_v27 = vld [vmem:[%s28988_s3 + $0x8a8] ss:$24 sps:$4 sm:$0xff]   ;;  %v20434_v15 = vld [vmem:[%s28988_s3 + $0x8dc] ss:$24 sps:$4 sm:$0xff]  }
 0x69e   :  { %16292 = vmatprep.subr.bf16.mxu1 %v20398_v59  ;;  %v20432_v59 = vld [vmem:[%s28988_s3 + $0x8d8] ss:$24 sps:$4 sm:$0xff]  }
 0x6a0   :  { %16176 = vmatpush1.bf16.msra.mxu0 %v20471_v5  ;;  %v20440_v5 = vld [vmem:[%s28988_s3 + $0x90c] ss:$24 sps:$4 sm:$0xff]  }
 0x6a1   :  { %16293 = vmatpush1.bf16.msra.mxu1 %v20396_v8  ;;  %16177 = vmatprep.subr.bf16.mxu0 %v20479_v11  ;;  %v20438_v8 = vld [vmem:[%s28988_s3 + $0x908] ss:$24 sps:$4 sm:$0xff]   ;;  %v20446_v11 = vld [vmem:[%s28988_s3 + $0x93c] ss:$24 sps:$4 sm:$0xff]  }
 0x6a2   :  { %16294 = vmatprep.subr.bf16.mxu1 %v20401_v45  ;;  %v20444_v45 = vld [vmem:[%s28988_s3 + $0x938] ss:$24 sps:$4 sm:$0xff]  }
 0x6a4   :  { %16178 = vmatpush1.bf16.msra.mxu0 %v20477_v10  ;;  %v20452_v10 = vld [vmem:[%s28988_s3 + $0x96c] ss:$24 sps:$4 sm:$0xff]  }
 0x6a5   :  { %16295 = vmatpush1.bf16.msra.mxu1 %v20399_v41  ;;  %16179 = vmatprep.subr.bf16.mxu0 %v20485_v57  ;;  %v20450_v41 = vld [vmem:[%s28988_s3 + $0x968] ss:$24 sps:$4 sm:$0xff]   ;;  %v20458_v57 = vld [vmem:[%s28988_s3 + $0x99c] ss:$24 sps:$4 sm:$0xff]  }
 0x6a6   :  { %16296 = vmatprep.subr.bf16.mxu1 %v20404_v16  ;;  %v20456_v16 = vld [vmem:[%s28988_s3 + $0x998] ss:$24 sps:$4 sm:$0xff]  }
 0x6a8   :  { %16180 = vmatpush1.bf16.msra.mxu0 %v20483_v26  ;;  %v20464_v26 = vld [vmem:[%s28988_s3 + $0x9cc] ss:$24 sps:$4 sm:$0xff]  }
 0x6a9   :  { %16297 = vmatpush1.bf16.msra.mxu1 %v20402_v0  ;;  %16181 = vmatprep.subr.bf16.mxu0 %v20491_v19  ;;  %v20462_v0 = vld [vmem:[%s28988_s3 + $0x9c8] ss:$24 sps:$4 sm:$0xff]   ;;  %v20470_v19 = vld [vmem:[%s28988_s3 + $0x9fc] ss:$24 sps:$4 sm:$0xff]  }
 0x6aa   :  { %16298 = vmatprep.subr.bf16.mxu1 %v20407_v28  ;;  %v1281_v28 = vrot.slane %v26521_v36, %v24731_v33  ;;  %v20474_v33 = vld [vmem:[%s28988_s3 + $0xa28] ss:$24 sps:$4 sm:$0xff]  }
 0x6ac   :  { %16182 = vmatpush1.bf16.msra.mxu0 %v20489_v29  ;;  %v1285_v29 = vrot.slane %v26521_v36, %v24734_v35 }
 0x6ad   :  { %16299 = vmatpush1.bf16.msra.mxu1 %v20405_v30  ;;  %16183 = vmatprep.subr.bf16.mxu0 %v20497_v63  ;;  %v20468_v30 = vld [vmem:[%s28988_s3 + $0x9f8] ss:$24 sps:$4 sm:$0xff]   ;;  %v20476_v63 = vld [vmem:[%s28988_s3 + $0xa2c] ss:$24 sps:$4 sm:$0xff]  }
 0x6ae   :  { %16300 = vmatprep.subr.bf16.mxu1 %v20410_v31 }
 0x6b0   :  { %16184 = vmatpush1.bf16.msra.mxu0 %v20495_v14 }
 0x6b1   :  { %16301 = vmatpush1.bf16.msra.mxu1 %v20408_v39  ;;  %16185 = vmatprep.subr.bf16.mxu0 %v20503_v40 }
 0x6b2   :  { %16302 = vmatprep.subr.bf16.mxu1 %v20413_v12 }
 0x6b4   :  { %16186 = vmatpush1.bf16.msra.mxu0 %v20501_v24  ;;  %v20482_v24 = vld [vmem:[%s28988_s3 + $0xa5c] ss:$24 sps:$4 sm:$0xff]  }
 0x6b5   :  { %16303 = vmatpush1.bf16.msra.mxu1 %v20411_v22  ;;  %16187 = vmatprep.subr.bf16.mxu0 %v20509_v60 }
 0x6b6   :  { %16304 = vmatprep.subr.bf16.mxu1 %v20416_v4 }
 0x6b8   :  { %16188 = vmatpush1.bf16.msra.mxu0 %v20507_v23  ;;  %v20480_v23 = vld [vmem:[%s28988_s3 + $0xa58] ss:$24 sps:$4 sm:$0xff]  }
 0x6b9   :  { %16305 = vmatpush1.bf16.msra.mxu1 %v20414_v52  ;;  %16690 = vmatprep.subr.bf16.mxu0 %v20515_v21  ;;  %v20488_v21 = vld [vmem:[%s28988_s3 + $0xa8c] ss:$24 sps:$4 sm:$0xff]  }
 0x6ba   :  { %16306 = vmatprep.subr.bf16.mxu1 %v20422_v7 }
 0x6bd   :  { %16307 = vmatpush1.bf16.msra.mxu1 %v20420_v32 }
 0x6be   :  { %16308 = vmatprep.subr.bf16.mxu1 %v20428_v18 }
 0x6c1   :  { %16309 = vmatpush1.bf16.msra.mxu1 %v20426_v27  ;;  %v20486_v27 = vld [vmem:[%s28988_s3 + $0xa88] ss:$24 sps:$4 sm:$0xff]  }
 0x6c2   :  { %16310 = vmatprep.subr.bf16.mxu1 %v20434_v15  ;;  %v20494_v15 = vld [vmem:[%s28988_s3 + $0xabc] ss:$24 sps:$4 sm:$0xff]  }
 0x6c5   :  { %16311 = vmatpush1.bf16.msra.mxu1 %v20432_v59  ;;  %v20492_v59 = vld [vmem:[%s28988_s3 + $0xab8] ss:$24 sps:$4 sm:$0xff]  }
 0x6c6   :  { %16321 = vmatprep.subr.bf16.mxu1 %v20440_v5  ;;  %v20500_v5 = vld [vmem:[%s28988_s3 + $0xaec] ss:$24 sps:$4 sm:$0xff]  }
 0x6c8   :  { %16313 = vmatmul.mubr.bf16.vlgmr.msra.gmra.mrb[32].mxu1 %v24679_v58 }
 0x6c9   :  { %16322 = vmatpush1.bf16.msra.mxu1 %v20438_v8  ;;  %16353 = vmatprep.mubr.bf16.mxu1 %v24867_v53  ;;  %v20498_v8 = vld [vmem:[%s28988_s3 + $0xae8] ss:$24 sps:$4 sm:$0xff]  }
 0x6ca   :  { %16323 = vmatprep.subr.bf16.mxu1 %v20446_v11  ;;  %v20506_v11 = vld [vmem:[%s28988_s3 + $0xb1c] ss:$24 sps:$4 sm:$0xff]  }
 0x6cd   :  { %16324 = vmatpush1.bf16.msra.mxu1 %v20444_v45 }
 0x6ce   :  { %16325 = vmatprep.subr.bf16.mxu1 %v20452_v10 }
 0x6d1   :  { %16326 = vmatpush1.bf16.msra.mxu1 %v20450_v41 }
 0x6d2   :  { %16327 = vmatprep.subr.bf16.mxu1 %v20458_v57  ;;  %v20504_v57 = vld [vmem:[%s28988_s3 + $0xb18] ss:$24 sps:$4 sm:$0xff]  }
 0x6d5   :  { %16328 = vmatpush1.bf16.msra.mxu1 %v20456_v16  ;;  %v20512_v16 = vld [vmem:[%s28988_s3 + $0xb4c] ss:$24 sps:$4 sm:$0xff]  }
 0x6d6   :  { %16329 = vmatprep.subr.bf16.mxu1 %v20464_v26 }
 0x6d9   :  { %16330 = vmatpush1.bf16.msra.mxu1 %v20462_v0 }
 0x6da   :  { %16331 = vmatprep.subr.bf16.mxu1 %v20470_v19 }
 0x6db   :  { %v8539_v31 = vpop.f32.mrb[28].mxu1 }
 0x6dc   :  { %v19518_v14 = vadd.f32 %v8539_v31, %v1281_v28  ;;  %v8541_v39 = vpop.f32.mrb[29].mxu1 }
 0x6dd   :  { %v19519_v40 = vadd.f32 %v8541_v39, %v1285_v29  ;;  %v8543_v12 = vpop.f32.mrb[30].mxu1  ;;  %16332 = vmatpush1.bf16.msra.mxu1 %v20468_v30  ;;  %v20510_v29 = vld [vmem:[%s28988_s3 + $0xb48] ss:$24 sps:$4 sm:$0xff]  }
 0x6de   :  { %v8568_v35 = vmul.f32 %v19518_v14, %v19518_v14  ;;  %v8544_v36 = vpop.f32.mrb[31].mxu1  ;;  %16333 = vmatprep.subr.bf16.mxu1 %v20476_v63  ;;  %v20518_v63 = vld [vmem:[%s28988_s3 + $0xb7c] ss:$24 sps:$4 sm:$0xff]   ;;  %v20513_v39 = vld [vmem:[%s28988_s3 + $0x10] ss:$24 sps:$4 sm:$0xff]  }
 0x6df   :  { %v8569_v22 = vmul.f32 %v19519_v40, %v19519_v40  ;;  %v20522_v36 = vld [vmem:[%s28988_s3 + $0xba8] ss:$24 sps:$4 sm:$0xff]  }
 0x6e0   :  { %v8592_v60 = vmul.f32 0.035677407, %v8568_v35  ;;  %v20519_v35 = vld [vmem:[%s28988_s3 + $0x40] ss:$24 sps:$4 sm:$0xff]  }
 0x6e1   :  { %v8593_v4 = vmul.f32 0.035677407, %v8569_v22  ;;  %16334 = vmatpush1.bf16.msra.mxu1 %v20474_v33  ;;  %v20524_v33 = vld [vmem:[%s28988_s3 + $0xbac] ss:$24 sps:$4 sm:$0xff]   ;;  %v20530_v22 = vld [vmem:[%s28988_s3 + $0xbdc] ss:$24 sps:$4 sm:$0xff]  }
 0x6e2   :  { %v8616_v52 = vadd.f32 0.7978846, %v8592_v60  ;;  %16335 = vmatprep.subr.bf16.mxu1 %v20482_v24  ;;  %v20527_v24 = vld [vmem:[%s28988_s3 + $0x74] ss:$24 sps:$4 sm:$0xff]   ;;  %v20528_v60 = vld [vmem:[%s28988_s3 + $0xbd8] ss:$24 sps:$4 sm:$0xff]  }
 0x6e3   :  { %v8617_v7 = vadd.f32 0.7978846, %v8593_v4  ;;  %v20533_v4 = vld [vmem:[%s28988_s3 + $0xa4] ss:$24 sps:$4 sm:$0xff]  }
 0x6e4   :  { %v8640_v32 = vmul.f32 %v19518_v14, %v8616_v52  ;;  %v20531_v52 = vld [vmem:[%s28988_s3 + $0xa0] ss:$24 sps:$4 sm:$0xff]  }
 0x6e5   :  { %v8641_v18 = vmul.f32 %v19519_v40, %v8617_v7  ;;  %16336 = vmatpush1.bf16.msra.mxu1 %v20480_v23  ;;  %v20536_v23 = vld [vmem:[%s28988_s3 + $0xc0c] ss:$24 sps:$4 sm:$0xff]  }
 0x6e6   :  { %21526 = vtanh.f32 %v8640_v32  ;;  %16337 = vmatprep.subr.bf16.mxu1 %v20488_v21  ;;  %v20534_v21 = vld [vmem:[%s28988_s3 + $0xc08] ss:$24 sps:$4 sm:$0xff]   ;;  %v20539_v7 = vld [vmem:[%s28988_s3 + $0xd4] ss:$24 sps:$4 sm:$0xff]  }
 0x6e7   :  { %21528 = vtanh.f32 %v8641_v18  ;;  %v20542_v32 = vld [vmem:[%s28988_s3 + $0xc3c] ss:$24 sps:$4 sm:$0xff]   ;;  %v20537_v18 = vld [vmem:[%s28988_s3 + $0xd0] ss:$24 sps:$4 sm:$0xff]  }
 0x6e9   :  { %16338 = vmatpush1.bf16.msra.mxu1 %v20486_v27  ;;  %v20540_v27 = vld [vmem:[%s28988_s3 + $0xc38] ss:$24 sps:$4 sm:$0xff]  }
 0x6ea   :  { %16339 = vmatprep.subr.bf16.mxu1 %v20494_v15  ;;  %v20545_v15 = vld [vmem:[%s28988_s3 + $0x104] ss:$24 sps:$4 sm:$0xff]  }
 0x6ed   :  { %16340 = vmatpush1.bf16.msra.mxu1 %v20492_v59  ;;  %v20548_v59 = vld [vmem:[%s28988_s3 + $0xc6c] ss:$24 sps:$4 sm:$0xff]  }
 0x6ee   :  { %16341 = vmatprep.subr.bf16.mxu1 %v20500_v5  ;;  %v20543_v5 = vld [vmem:[%s28988_s3 + $0x100] ss:$24 sps:$4 sm:$0xff]  }
 0x6f0   :  { %v21527_v45 = vpop.eup %21526 }
 0x6f1   :  { %v21529_v10 = vpop.eup %21528  ;;  %v8688_v41 = vmul.f32 0.5, %v21527_v45  ;;  %16342 = vmatpush1.bf16.msra.mxu1 %v20498_v8  ;;  %v20546_v8 = vld [vmem:[%s28988_s3 + $0xc68] ss:$24 sps:$4 sm:$0xff]   ;;  %v20554_v45 = vld [vmem:[%s28988_s3 + $0xc9c] ss:$24 sps:$4 sm:$0xff]  }
 0x6f2   :  { %16343 = vmatprep.subr.bf16.mxu1 %v20506_v11  ;;  %v8689_v26 = vmul.f32 0.5, %v21529_v10  ;;  %v20551_v11 = vld [vmem:[%s28988_s3 + $0x134] ss:$24 sps:$4 sm:$0xff]   ;;  %v20549_v10 = vld [vmem:[%s28988_s3 + $0x130] ss:$24 sps:$4 sm:$0xff]  }
 0x6f3   :  { %v8712_v0 = vadd.f32 0.5, %v8688_v41  ;;  %v20552_v41 = vld [vmem:[%s28988_s3 + $0xc98] ss:$24 sps:$4 sm:$0xff]  }
 0x6f4   :  { %v8713_v19 = vadd.f32 0.5, %v8689_v26  ;;  %v20555_v26 = vld [vmem:[%s28988_s3 + $0x160] ss:$24 sps:$4 sm:$0xff]  }
 0x6f5   :  { %v8736_v28 = vmul.f32 %v19518_v14, %v8712_v0  ;;  %16344 = vmatpush1.bf16.msra.mxu1 %v20504_v57  ;;  %v20516_v14 = vld [vmem:[%s28988_s3 + $0xb78] ss:$24 sps:$4 sm:$0xff]   ;;  %v20557_v57 = vld [vmem:[%s28988_s3 + $0x164] ss:$24 sps:$4 sm:$0xff]   ;;  %v20558_v0 = vld [vmem:[%s28988_s3 + $0xcc8] ss:$24 sps:$4 sm:$0xff]  }
 0x6f6   :  { %16345 = vmatprep.subr.bf16.mxu1 %v20512_v16  ;;  %v8737_v30 = vmul.f32 %v19519_v40, %v8713_v19  ;;  %v20521_v40 = vld [vmem:[%s28988_s3 + $0x44] ss:$24 sps:$4 sm:$0xff]   ;;  %v20563_v19 = vld [vmem:[%s28988_s3 + $0x194] ss:$24 sps:$4 sm:$0xff]  }
 0x6f7   :  { %v26982_v12 = vpack.c.bf16 %v8736_v28, %v8736_v28  ;;  %v20560_v16 = vld [vmem:[%s28988_s3 + $0xccc] ss:$24 sps:$4 sm:$0xff]   ;;  %v20566_v28 = vld [vmem:[%s28988_s3 + $0xcfc] ss:$24 sps:$4 sm:$0xff]  }
 0x6f8   :  { %v26977_v31 = vpack.c.bf16 %v8737_v30, %v8737_v30  ;;  %v20564_v30 = vld [vmem:[%s28988_s3 + $0xcf8] ss:$24 sps:$4 sm:$0xff]  }
 0x6f9   :  { %16346 = vmatpush1.bf16.msra.mxu1 %v20510_v29  ;;  %v20561_v29 = vld [vmem:[%s28988_s3 + $0x190] ss:$24 sps:$4 sm:$0xff]  }
 0x6fa   :  { %16189 = vmatprep.mubr.bf16.mxu0 %v26977_v31  ;;  %16347 = vmatprep.subr.bf16.mxu1 %v20518_v63  ;;  %v20569_v63 = vld [vmem:[%s28988_s3 + $0x1c4] ss:$24 sps:$4 sm:$0xff]  }
 0x6fb   :  { %16190 = vmatmul.mubr.bf16.vlgmr.msra.gmra.mrb[16].mxu0 %v26982_v12 }
 0x6fc   :  { %16691 = vmatpush1.bf16.msra.mxu0 %v20513_v39  ;;  %16722 = vmatprep.mubr.bf16.mxu0 %v24009_v38  ;;  %v20525_v38 = vld [vmem:[%s28988_s3 + $0x70] ss:$24 sps:$4 sm:$0xff]   ;;  %v20572_v39 = vld [vmem:[%s28988_s3 + $0xd2c] ss:$24 sps:$4 sm:$0xff]  }
 0x6fd   :  { %16348 = vmatpush1.bf16.msra.mxu1 %v20516_v14  ;;  %16692 = vmatprep.subr.bf16.mxu0 %v20521_v40  ;;  %v20567_v14 = vld [vmem:[%s28988_s3 + $0x1c0] ss:$24 sps:$4 sm:$0xff]  }
 0x6fe   :  { %16349 = vmatprep.subr.bf16.mxu1 %v20524_v33  ;;  %v20570_v40 = vld [vmem:[%s28988_s3 + $0xd28] ss:$24 sps:$4 sm:$0xff]   ;;  %v20575_v33 = vld [vmem:[%s28988_s3 + $0x1f4] ss:$24 sps:$4 sm:$0xff]  }
 0x700   :  { %16693 = vmatpush1.bf16.msra.mxu0 %v20519_v35  ;;  %v20578_v35 = vld [vmem:[%s28988_s3 + $0xd5c] ss:$24 sps:$4 sm:$0xff]  }
 0x701   :  { %16350 = vmatpush1.bf16.msra.mxu1 %v20522_v36  ;;  %16694 = vmatprep.subr.bf16.mxu0 %v20527_v24  ;;  %v20573_v36 = vld [vmem:[%s28988_s3 + $0x1f0] ss:$24 sps:$4 sm:$0xff]  }
 0x702   :  { %16351 = vmatprep.subr.bf16.mxu1 %v20530_v22  ;;  %v20576_v24 = vld [vmem:[%s28988_s3 + $0xd58] ss:$24 sps:$4 sm:$0xff]   ;;  %v20581_v22 = vld [vmem:[%s28988_s3 + $0x224] ss:$24 sps:$4 sm:$0xff]  }
 0x704   :  { %16695 = vmatpush1.bf16.msra.mxu0 %v20525_v38  ;;  %v20584_v38 = vld [vmem:[%s28988_s3 + $0xd8c] ss:$24 sps:$4 sm:$0xff]  }
 0x705   :  { %16352 = vmatpush1.bf16.msra.mxu1 %v20528_v60  ;;  %16696 = vmatprep.subr.bf16.mxu0 %v20533_v4  ;;  %v20579_v60 = vld [vmem:[%s28988_s3 + $0x220] ss:$24 sps:$4 sm:$0xff]  }
 0x706   :  { %16362 = vmatprep.subr.bf16.mxu1 %v20536_v23  ;;  %v20582_v4 = vld [vmem:[%s28988_s3 + $0xd88] ss:$24 sps:$4 sm:$0xff]   ;;  %v20587_v23 = vld [vmem:[%s28988_s3 + $0x254] ss:$24 sps:$4 sm:$0xff]  }
 0x708   :  { %16697 = vmatpush1.bf16.msra.mxu0 %v20531_v52  ;;  %16354 = vmatmul.mubr.bf16.vlgmr.msra.gmra.mrb[32].mxu1 %v24920_v56  ;;  %v20590_v52 = vld [vmem:[%s28988_s3 + $0xdbc] ss:$24 sps:$4 sm:$0xff]  }
 0x709   :  { %16363 = vmatpush1.bf16.msra.mxu1 %v20534_v21  ;;  %16394 = vmatprep.mubr.bf16.mxu1 %v24923_v51  ;;  %v20585_v21 = vld [vmem:[%s28988_s3 + $0x250] ss:$24 sps:$4 sm:$0xff]  }
 0x70a   :  { %16698 = vmatprep.subr.bf16.mxu0 %v20539_v7  ;;  %16364 = vmatprep.subr.bf16.mxu1 %v20542_v32  ;;  %v20588_v7 = vld [vmem:[%s28988_s3 + $0xdb8] ss:$24 sps:$4 sm:$0xff]   ;;  %v20593_v32 = vld [vmem:[%s28988_s3 + $0x284] ss:$24 sps:$4 sm:$0xff]  }
 0x70c   :  { %16699 = vmatpush1.bf16.msra.mxu0 %v20537_v18  ;;  %v20596_v18 = vld [vmem:[%s28988_s3 + $0xdec] ss:$24 sps:$4 sm:$0xff]  }
 0x70d   :  { %16365 = vmatpush1.bf16.msra.mxu1 %v20540_v27  ;;  %16700 = vmatprep.subr.bf16.mxu0 %v20545_v15  ;;  %v20591_v27 = vld [vmem:[%s28988_s3 + $0x280] ss:$24 sps:$4 sm:$0xff]  }
 0x70e   :  { %16366 = vmatprep.subr.bf16.mxu1 %v20548_v59  ;;  %v20594_v15 = vld [vmem:[%s28988_s3 + $0xde8] ss:$24 sps:$4 sm:$0xff]   ;;  %v20599_v59 = vld [vmem:[%s28988_s3 + $0x2b4] ss:$24 sps:$4 sm:$0xff]  }
 0x710   :  { %16701 = vmatpush1.bf16.msra.mxu0 %v20543_v5  ;;  %v20602_v5 = vld [vmem:[%s28988_s3 + $0xe1c] ss:$24 sps:$4 sm:$0xff]  }
 0x711   :  { %16367 = vmatpush1.bf16.msra.mxu1 %v20546_v8  ;;  %16702 = vmatprep.subr.bf16.mxu0 %v20551_v11  ;;  %v20597_v8 = vld [vmem:[%s28988_s3 + $0x2b0] ss:$24 sps:$4 sm:$0xff]  }
 0x712   :  { %16368 = vmatprep.subr.bf16.mxu1 %v20554_v45  ;;  %v20600_v11 = vld [vmem:[%s28988_s3 + $0xe18] ss:$24 sps:$4 sm:$0xff]   ;;  %v20605_v45 = vld [vmem:[%s28988_s3 + $0x2e4] ss:$24 sps:$4 sm:$0xff]  }
 0x714   :  { %16703 = vmatpush1.bf16.msra.mxu0 %v20549_v10  ;;  %v20608_v10 = vld [vmem:[%s28988_s3 + $0xe4c] ss:$24 sps:$4 sm:$0xff]  }
 0x715   :  { %16369 = vmatpush1.bf16.msra.mxu1 %v20552_v41  ;;  %16704 = vmatprep.subr.bf16.mxu0 %v20557_v57  ;;  %v20603_v41 = vld [vmem:[%s28988_s3 + $0x2e0] ss:$24 sps:$4 sm:$0xff]  }
 0x716   :  { %16370 = vmatprep.subr.bf16.mxu1 %v20560_v16  ;;  %v20606_v57 = vld [vmem:[%s28988_s3 + $0xe48] ss:$24 sps:$4 sm:$0xff]   ;;  %v20611_v16 = vld [vmem:[%s28988_s3 + $0x314] ss:$24 sps:$4 sm:$0xff]  }
 0x718   :  { %16705 = vmatpush1.bf16.msra.mxu0 %v20555_v26  ;;  %v20614_v26 = vld [vmem:[%s28988_s3 + $0xe7c] ss:$24 sps:$4 sm:$0xff]  }
 0x719   :  { %16371 = vmatpush1.bf16.msra.mxu1 %v20558_v0  ;;  %16706 = vmatprep.subr.bf16.mxu0 %v20563_v19  ;;  %v20609_v0 = vld [vmem:[%s28988_s3 + $0x310] ss:$24 sps:$4 sm:$0xff]  }
 0x71a   :  { %16372 = vmatprep.subr.bf16.mxu1 %v20566_v28  ;;  %v20612_v19 = vld [vmem:[%s28988_s3 + $0xe78] ss:$24 sps:$4 sm:$0xff]   ;;  %v20617_v28 = vld [vmem:[%s28988_s3 + $0x344] ss:$24 sps:$4 sm:$0xff]  }
 0x71c   :  { %16707 = vmatpush1.bf16.msra.mxu0 %v20561_v29  ;;  %v20620_v29 = vld [vmem:[%s28988_s3 + $0xeac] ss:$24 sps:$4 sm:$0xff]  }
 0x71d   :  { %16373 = vmatpush1.bf16.msra.mxu1 %v20564_v30  ;;  %16708 = vmatprep.subr.bf16.mxu0 %v20569_v63  ;;  %v20615_v30 = vld [vmem:[%s28988_s3 + $0x340] ss:$24 sps:$4 sm:$0xff]  }
 0x71e   :  { %16374 = vmatprep.subr.bf16.mxu1 %v20572_v39  ;;  %v20618_v63 = vld [vmem:[%s28988_s3 + $0xea8] ss:$24 sps:$4 sm:$0xff]   ;;  %v20623_v39 = vld [vmem:[%s28988_s3 + $0x374] ss:$24 sps:$4 sm:$0xff]  }
 0x720   :  { %16709 = vmatpush1.bf16.msra.mxu0 %v20567_v14  ;;  %v20624_v14 = vld [vmem:[%s28988_s3 + $0xed8] ss:$24 sps:$4 sm:$0xff]  }
 0x721   :  { %16375 = vmatpush1.bf16.msra.mxu1 %v20570_v40  ;;  %16710 = vmatprep.subr.bf16.mxu0 %v20575_v33  ;;  %v20629_v40 = vld [vmem:[%s28988_s3 + $0x3a4] ss:$24 sps:$4 sm:$0xff]  }
 0x722   :  { %16376 = vmatprep.subr.bf16.mxu1 %v20578_v35  ;;  %v20632_v33 = vld [vmem:[%s28988_s3 + $0xf0c] ss:$24 sps:$4 sm:$0xff]   ;;  %v20627_v35 = vld [vmem:[%s28988_s3 + $0x3a0] ss:$24 sps:$4 sm:$0xff]  }
 0x724   :  { %16711 = vmatpush1.bf16.msra.mxu0 %v20573_v36  ;;  %v20630_v36 = vld [vmem:[%s28988_s3 + $0xf08] ss:$24 sps:$4 sm:$0xff]  }
 0x725   :  { %16377 = vmatpush1.bf16.msra.mxu1 %v20576_v24  ;;  %16712 = vmatprep.subr.bf16.mxu0 %v20581_v22  ;;  %v20635_v24 = vld [vmem:[%s28988_s3 + $0x3d4] ss:$24 sps:$4 sm:$0xff]  }
 0x726   :  { %16378 = vmatprep.subr.bf16.mxu1 %v20584_v38  ;;  %v20638_v22 = vld [vmem:[%s28988_s3 + $0xf3c] ss:$24 sps:$4 sm:$0xff]   ;;  %v20633_v38 = vld [vmem:[%s28988_s3 + $0x3d0] ss:$24 sps:$4 sm:$0xff]  }
 0x728   :  { %16713 = vmatpush1.bf16.msra.mxu0 %v20579_v60  ;;  %v20636_v60 = vld [vmem:[%s28988_s3 + $0xf38] ss:$24 sps:$4 sm:$0xff]  }
 0x729   :  { %16379 = vmatpush1.bf16.msra.mxu1 %v20582_v4  ;;  %16714 = vmatprep.subr.bf16.mxu0 %v20587_v23  ;;  %v20641_v4 = vld [vmem:[%s28988_s3 + $0x404] ss:$24 sps:$4 sm:$0xff]  }
 0x72a   :  { %16380 = vmatprep.subr.bf16.mxu1 %v20590_v52  ;;  %v20644_v23 = vld [vmem:[%s28988_s3 + $0xf6c] ss:$24 sps:$4 sm:$0xff]   ;;  %v20639_v52 = vld [vmem:[%s28988_s3 + $0x400] ss:$24 sps:$4 sm:$0xff]  }
 0x72c   :  { %16715 = vmatpush1.bf16.msra.mxu0 %v20585_v21  ;;  %v20642_v21 = vld [vmem:[%s28988_s3 + $0xf68] ss:$24 sps:$4 sm:$0xff]  }
 0x72d   :  { %16381 = vmatpush1.bf16.msra.mxu1 %v20588_v7  ;;  %16716 = vmatprep.subr.bf16.mxu0 %v20593_v32  ;;  %v20647_v7 = vld [vmem:[%s28988_s3 + $0x434] ss:$24 sps:$4 sm:$0xff]  }
 0x72e   :  { %16382 = vmatprep.subr.bf16.mxu1 %v20596_v18  ;;  %v20650_v32 = vld [vmem:[%s28988_s3 + $0xf9c] ss:$24 sps:$4 sm:$0xff]   ;;  %v20645_v18 = vld [vmem:[%s28988_s3 + $0x430] ss:$24 sps:$4 sm:$0xff]  }
 0x730   :  { %16717 = vmatpush1.bf16.msra.mxu0 %v20591_v27  ;;  %v20648_v27 = vld [vmem:[%s28988_s3 + $0xf98] ss:$24 sps:$4 sm:$0xff]  }
 0x731   :  { %16383 = vmatpush1.bf16.msra.mxu1 %v20594_v15  ;;  %16718 = vmatprep.subr.bf16.mxu0 %v20599_v59  ;;  %v20653_v15 = vld [vmem:[%s28988_s3 + $0x464] ss:$24 sps:$4 sm:$0xff]  }
 0x732   :  { %16384 = vmatprep.subr.bf16.mxu1 %v20602_v5  ;;  %v20656_v59 = vld [vmem:[%s28988_s3 + $0xfcc] ss:$24 sps:$4 sm:$0xff]   ;;  %v20651_v5 = vld [vmem:[%s28988_s3 + $0x460] ss:$24 sps:$4 sm:$0xff]  }
 0x734   :  { %16719 = vmatpush1.bf16.msra.mxu0 %v20597_v8  ;;  %v20654_v8 = vld [vmem:[%s28988_s3 + $0xfc8] ss:$24 sps:$4 sm:$0xff]  }
 0x735   :  { %16385 = vmatpush1.bf16.msra.mxu1 %v20600_v11  ;;  %16720 = vmatprep.subr.bf16.mxu0 %v20605_v45  ;;  %v20659_v11 = vld [vmem:[%s28988_s3 + $0x494] ss:$24 sps:$4 sm:$0xff]  }
 0x736   :  { %16386 = vmatprep.subr.bf16.mxu1 %v20608_v10  ;;  %v20662_v45 = vld [vmem:[%s28988_s3 + $0xffc] ss:$24 sps:$4 sm:$0xff]   ;;  %v20657_v10 = vld [vmem:[%s28988_s3 + $0x490] ss:$24 sps:$4 sm:$0xff]  }
 0x738   :  { %16721 = vmatpush1.bf16.msra.mxu0 %v20603_v41  ;;  %v20660_v41 = vld [vmem:[%s28988_s3 + $0xff8] ss:$24 sps:$4 sm:$0xff]  }
 0x739   :  { %16387 = vmatpush1.bf16.msra.mxu1 %v20606_v57  ;;  %16731 = vmatprep.subr.bf16.mxu0 %v20611_v16  ;;  %v20665_v57 = vld [vmem:[%s28988_s3 + $0x4c4] ss:$24 sps:$4 sm:$0xff]  }
 0x73a   :  { %16388 = vmatprep.subr.bf16.mxu1 %v20614_v26  ;;  %v20668_v16 = vld [vmem:[%s28988_s3 + $0x102c] ss:$24 sps:$4 sm:$0xff]   ;;  %v20663_v26 = vld [vmem:[%s28988_s3 + $0x4c0] ss:$24 sps:$4 sm:$0xff]  }
 0x73b   :  { %16723 = vmatmul.mubr.bf16.vlgmr.msra.gmra.mrb[20].mxu0 %v24235_v17  ;;  %v20626_v17 = vld [vmem:[%s28988_s3 + $0xedc] ss:$24 sps:$4 sm:$0xff]  }
 0x73c   :  { %16732 = vmatpush1.bf16.msra.mxu0 %v20609_v0  ;;  %16763 = vmatprep.mubr.bf16.mxu0 %v24241_v25  ;;  %v20621_v25 = vld [vmem:[%s28988_s3 + $0x370] ss:$24 sps:$4 sm:$0xff]  }
 0x73d   :  { %16389 = vmatpush1.bf16.msra.mxu1 %v20612_v19  ;;  %16733 = vmatprep.subr.bf16.mxu0 %v20617_v28  ;;  %v20666_v0 = vld [vmem:[%s28988_s3 + $0x1028] ss:$24 sps:$4 sm:$0xff]   ;;  %v20671_v19 = vld [vmem:[%s28988_s3 + $0x4f4] ss:$24 sps:$4 sm:$0xff]  }
 0x73e   :  { %16390 = vmatprep.subr.bf16.mxu1 %v20620_v29  ;;  %v20674_v28 = vld [vmem:[%s28988_s3 + $0x105c] ss:$24 sps:$4 sm:$0xff]   ;;  %v20669_v29 = vld [vmem:[%s28988_s3 + $0x4f0] ss:$24 sps:$4 sm:$0xff]  }
 0x740   :  { %16734 = vmatpush1.bf16.msra.mxu0 %v20615_v30  ;;  %v20672_v30 = vld [vmem:[%s28988_s3 + $0x1058] ss:$24 sps:$4 sm:$0xff]  }
 0x741   :  { %16391 = vmatpush1.bf16.msra.mxu1 %v20618_v63  ;;  %16735 = vmatprep.subr.bf16.mxu0 %v20623_v39  ;;  %v20677_v63 = vld [vmem:[%s28988_s3 + $0x524] ss:$24 sps:$4 sm:$0xff]  }
 0x742   :  { %16392 = vmatprep.subr.bf16.mxu1 %v20626_v17  ;;  %v20680_v39 = vld [vmem:[%s28988_s3 + $0x108c] ss:$24 sps:$4 sm:$0xff]   ;;  %v20675_v17 = vld [vmem:[%s28988_s3 + $0x520] ss:$24 sps:$4 sm:$0xff]  }
 0x744   :  { %16736 = vmatpush1.bf16.msra.mxu0 %v20621_v25  ;;  %v20678_v25 = vld [vmem:[%s28988_s3 + $0x1088] ss:$24 sps:$4 sm:$0xff]  }
 0x745   :  { %16393 = vmatpush1.bf16.msra.mxu1 %v20624_v14  ;;  %16737 = vmatprep.subr.bf16.mxu0 %v20629_v40  ;;  %v20683_v14 = vld [vmem:[%s28988_s3 + $0x554] ss:$24 sps:$4 sm:$0xff]  }
 0x746   :  { %16403 = vmatprep.subr.bf16.mxu1 %v20632_v33  ;;  %v20686_v40 = vld [vmem:[%s28988_s3 + $0x10bc] ss:$24 sps:$4 sm:$0xff]   ;;  %v20681_v33 = vld [vmem:[%s28988_s3 + $0x550] ss:$24 sps:$4 sm:$0xff]  }
 0x748   :  { %16738 = vmatpush1.bf16.msra.mxu0 %v20627_v35  ;;  %16395 = vmatmul.mubr.bf16.vlgmr.msra.gmra.mrb[32].mxu1 %v25129_v50  ;;  %v20684_v35 = vld [vmem:[%s28988_s3 + $0x10b8] ss:$24 sps:$4 sm:$0xff]  }
 0x749   :  { %16404 = vmatpush1.bf16.msra.mxu1 %v20630_v36  ;;  %16435 = vmatprep.mubr.bf16.mxu1 %v25418_v9  ;;  %v20689_v36 = vld [vmem:[%s28988_s3 + $0x584] ss:$24 sps:$4 sm:$0xff]  }
 0x74a   :  { %16739 = vmatprep.subr.bf16.mxu0 %v20635_v24  ;;  %16405 = vmatprep.subr.bf16.mxu1 %v20638_v22  ;;  %v20692_v24 = vld [vmem:[%s28988_s3 + $0x10ec] ss:$24 sps:$4 sm:$0xff]   ;;  %v20687_v22 = vld [vmem:[%s28988_s3 + $0x580] ss:$24 sps:$4 sm:$0xff]  }
 0x74c   :  { %16740 = vmatpush1.bf16.msra.mxu0 %v20633_v38  ;;  %v20690_v38 = vld [vmem:[%s28988_s3 + $0x10e8] ss:$24 sps:$4 sm:$0xff]  }
 0x74d   :  { %16406 = vmatpush1.bf16.msra.mxu1 %v20636_v60  ;;  %16741 = vmatprep.subr.bf16.mxu0 %v20641_v4  ;;  %v20695_v60 = vld [vmem:[%s28988_s3 + $0x5b4] ss:$24 sps:$4 sm:$0xff]  }
 0x74e   :  { %16407 = vmatprep.subr.bf16.mxu1 %v20644_v23  ;;  %v20698_v4 = vld [vmem:[%s28988_s3 + $0x111c] ss:$24 sps:$4 sm:$0xff]   ;;  %v20693_v23 = vld [vmem:[%s28988_s3 + $0x5b0] ss:$24 sps:$4 sm:$0xff]  }
 0x750   :  { %16742 = vmatpush1.bf16.msra.mxu0 %v20639_v52  ;;  %v20696_v52 = vld [vmem:[%s28988_s3 + $0x1118] ss:$24 sps:$4 sm:$0xff]  }
 0x751   :  { %16408 = vmatpush1.bf16.msra.mxu1 %v20642_v21  ;;  %16743 = vmatprep.subr.bf16.mxu0 %v20647_v7  ;;  %v20701_v21 = vld [vmem:[%s28988_s3 + $0x5e4] ss:$24 sps:$4 sm:$0xff]  }
 0x752   :  { %16409 = vmatprep.subr.bf16.mxu1 %v20650_v32  ;;  %v20704_v7 = vld [vmem:[%s28988_s3 + $0x114c] ss:$24 sps:$4 sm:$0xff]   ;;  %v20699_v32 = vld [vmem:[%s28988_s3 + $0x5e0] ss:$24 sps:$4 sm:$0xff]  }
 0x754   :  { %16744 = vmatpush1.bf16.msra.mxu0 %v20645_v18  ;;  %v20702_v18 = vld [vmem:[%s28988_s3 + $0x1148] ss:$24 sps:$4 sm:$0xff]  }
 0x755   :  { %16410 = vmatpush1.bf16.msra.mxu1 %v20648_v27  ;;  %16745 = vmatprep.subr.bf16.mxu0 %v20653_v15  ;;  %v20707_v27 = vld [vmem:[%s28988_s3 + $0x614] ss:$24 sps:$4 sm:$0xff]  }
 0x756   :  { %16411 = vmatprep.subr.bf16.mxu1 %v20656_v59  ;;  %v20710_v15 = vld [vmem:[%s28988_s3 + $0x117c] ss:$24 sps:$4 sm:$0xff]   ;;  %v20705_v59 = vld [vmem:[%s28988_s3 + $0x610] ss:$24 sps:$4 sm:$0xff]  }
 0x758   :  { %16746 = vmatpush1.bf16.msra.mxu0 %v20651_v5  ;;  %v20708_v5 = vld [vmem:[%s28988_s3 + $0x1178] ss:$24 sps:$4 sm:$0xff]  }
 0x759   :  { %16412 = vmatpush1.bf16.msra.mxu1 %v20654_v8  ;;  %16747 = vmatprep.subr.bf16.mxu0 %v20659_v11  ;;  %v20713_v8 = vld [vmem:[%s28988_s3 + $0x644] ss:$24 sps:$4 sm:$0xff]  }
 0x75a   :  { %16413 = vmatprep.subr.bf16.mxu1 %v20662_v45  ;;  %v20716_v11 = vld [vmem:[%s28988_s3 + $0x11ac] ss:$24 sps:$4 sm:$0xff]   ;;  %v20711_v45 = vld [vmem:[%s28988_s3 + $0x640] ss:$24 sps:$4 sm:$0xff]  }
 0x75c   :  { %16748 = vmatpush1.bf16.msra.mxu0 %v20657_v10  ;;  %v20714_v10 = vld [vmem:[%s28988_s3 + $0x11a8] ss:$24 sps:$4 sm:$0xff]  }
 0x75d   :  { %16414 = vmatpush1.bf16.msra.mxu1 %v20660_v41  ;;  %16749 = vmatprep.subr.bf16.mxu0 %v20665_v57  ;;  %v20719_v41 = vld [vmem:[%s28988_s3 + $0x674] ss:$24 sps:$4 sm:$0xff]   ;;  %v20720_v57 = vld [vmem:[%s28988_s3 + $0x11d8] ss:$24 sps:$4 sm:$0xff]  }
 0x75e   :  { %16415 = vmatprep.subr.bf16.mxu1 %v20668_v16  ;;  %v20725_v16 = vld [vmem:[%s28988_s3 + $0x6a4] ss:$24 sps:$4 sm:$0xff]  }
 0x760   :  { %16750 = vmatpush1.bf16.msra.mxu0 %v20663_v26  ;;  %v20728_v26 = vld [vmem:[%s28988_s3 + $0x120c] ss:$24 sps:$4 sm:$0xff]  }
 0x761   :  { %16416 = vmatpush1.bf16.msra.mxu1 %v20666_v0  ;;  %16751 = vmatprep.subr.bf16.mxu0 %v20671_v19  ;;  %v20723_v0 = vld [vmem:[%s28988_s3 + $0x6a0] ss:$24 sps:$4 sm:$0xff]  }
 0x762   :  { %16417 = vmatprep.subr.bf16.mxu1 %v20674_v28  ;;  %v20726_v19 = vld [vmem:[%s28988_s3 + $0x1208] ss:$24 sps:$4 sm:$0xff]   ;;  %v20731_v28 = vld [vmem:[%s28988_s3 + $0x6d4] ss:$24 sps:$4 sm:$0xff]  }
 0x764   :  { %16752 = vmatpush1.bf16.msra.mxu0 %v20669_v29  ;;  %v20734_v29 = vld [vmem:[%s28988_s3 + $0x123c] ss:$24 sps:$4 sm:$0xff]  }
 0x765   :  { %16418 = vmatpush1.bf16.msra.mxu1 %v20672_v30  ;;  %16753 = vmatprep.subr.bf16.mxu0 %v20677_v63  ;;  %v20729_v30 = vld [vmem:[%s28988_s3 + $0x6d0] ss:$24 sps:$4 sm:$0xff]  }
 0x766   :  { %16419 = vmatprep.subr.bf16.mxu1 %v20680_v39  ;;  %v20732_v63 = vld [vmem:[%s28988_s3 + $0x1238] ss:$24 sps:$4 sm:$0xff]   ;;  %v20737_v39 = vld [vmem:[%s28988_s3 + $0x704] ss:$24 sps:$4 sm:$0xff]  }
 0x768   :  { %16754 = vmatpush1.bf16.msra.mxu0 %v20675_v17  ;;  %v20740_v17 = vld [vmem:[%s28988_s3 + $0x126c] ss:$24 sps:$4 sm:$0xff]  }
 0x769   :  { %16420 = vmatpush1.bf16.msra.mxu1 %v20678_v25  ;;  %16755 = vmatprep.subr.bf16.mxu0 %v20683_v14  ;;  %v20735_v25 = vld [vmem:[%s28988_s3 + $0x700] ss:$24 sps:$4 sm:$0xff]  }
 0x76a   :  { %16421 = vmatprep.subr.bf16.mxu1 %v20686_v40  ;;  %v20738_v14 = vld [vmem:[%s28988_s3 + $0x1268] ss:$24 sps:$4 sm:$0xff]   ;;  %v20743_v40 = vld [vmem:[%s28988_s3 + $0x734] ss:$24 sps:$4 sm:$0xff]  }
 0x76c   :  { %16756 = vmatpush1.bf16.msra.mxu0 %v20681_v33  ;;  %v20746_v33 = vld [vmem:[%s28988_s3 + $0x129c] ss:$24 sps:$4 sm:$0xff]  }
 0x76d   :  { %16422 = vmatpush1.bf16.msra.mxu1 %v20684_v35  ;;  %16757 = vmatprep.subr.bf16.mxu0 %v20689_v36  ;;  %v20741_v35 = vld [vmem:[%s28988_s3 + $0x730] ss:$24 sps:$4 sm:$0xff]  }
 0x76e   :  { %16423 = vmatprep.subr.bf16.mxu1 %v20692_v24  ;;  %v20744_v36 = vld [vmem:[%s28988_s3 + $0x1298] ss:$24 sps:$4 sm:$0xff]   ;;  %v20749_v24 = vld [vmem:[%s28988_s3 + $0x764] ss:$24 sps:$4 sm:$0xff]  }
 0x770   :  { %16758 = vmatpush1.bf16.msra.mxu0 %v20687_v22  ;;  %v20752_v22 = vld [vmem:[%s28988_s3 + $0x12cc] ss:$24 sps:$4 sm:$0xff]  }
 0x771   :  { %16424 = vmatpush1.bf16.msra.mxu1 %v20690_v38  ;;  %16759 = vmatprep.subr.bf16.mxu0 %v20695_v60  ;;  %v20747_v38 = vld [vmem:[%s28988_s3 + $0x760] ss:$24 sps:$4 sm:$0xff]  }
 0x772   :  { %16425 = vmatprep.subr.bf16.mxu1 %v20698_v4  ;;  %v20750_v60 = vld [vmem:[%s28988_s3 + $0x12c8] ss:$24 sps:$4 sm:$0xff]   ;;  %v20755_v4 = vld [vmem:[%s28988_s3 + $0x794] ss:$24 sps:$4 sm:$0xff]  }
 0x774   :  { %16760 = vmatpush1.bf16.msra.mxu0 %v20693_v23  ;;  %v20758_v23 = vld [vmem:[%s28988_s3 + $0x12fc] ss:$24 sps:$4 sm:$0xff]  }
 0x775   :  { %16426 = vmatpush1.bf16.msra.mxu1 %v20696_v52  ;;  %16761 = vmatprep.subr.bf16.mxu0 %v20701_v21  ;;  %v20753_v52 = vld [vmem:[%s28988_s3 + $0x790] ss:$24 sps:$4 sm:$0xff]  }
 0x776   :  { %16427 = vmatprep.subr.bf16.mxu1 %v20704_v7  ;;  %v20756_v21 = vld [vmem:[%s28988_s3 + $0x12f8] ss:$24 sps:$4 sm:$0xff]   ;;  %v20761_v7 = vld [vmem:[%s28988_s3 + $0x7c4] ss:$24 sps:$4 sm:$0xff]  }
 0x778   :  { %16762 = vmatpush1.bf16.msra.mxu0 %v20699_v32  ;;  %v20764_v32 = vld [vmem:[%s28988_s3 + $0x132c] ss:$24 sps:$4 sm:$0xff]  }
 0x779   :  { %16428 = vmatpush1.bf16.msra.mxu1 %v20702_v18  ;;  %16772 = vmatprep.subr.bf16.mxu0 %v20707_v27  ;;  %v20759_v18 = vld [vmem:[%s28988_s3 + $0x7c0] ss:$24 sps:$4 sm:$0xff]  }
 0x77a   :  { %16429 = vmatprep.subr.bf16.mxu1 %v20710_v15  ;;  %v20762_v27 = vld [vmem:[%s28988_s3 + $0x1328] ss:$24 sps:$4 sm:$0xff]   ;;  %v20767_v15 = vld [vmem:[%s28988_s3 + $0x7f4] ss:$24 sps:$4 sm:$0xff]  }
 0x77b   :  { %16764 = vmatmul.mubr.bf16.vlgmr.msra.gmra.mrb[20].mxu0 %v24464_v3  ;;  %v20722_v3 = vld [vmem:[%s28988_s3 + $0x11dc] ss:$24 sps:$4 sm:$0xff]  }
 0x77c   :  { %16773 = vmatpush1.bf16.msra.mxu0 %v20705_v59  ;;  %16804 = vmatprep.mubr.bf16.mxu0 %v24470_v6  ;;  %v20717_v6 = vld [vmem:[%s28988_s3 + $0x670] ss:$24 sps:$4 sm:$0xff]   ;;  %v20770_v59 = vld [vmem:[%s28988_s3 + $0x135c] ss:$24 sps:$4 sm:$0xff]  }
 0x77d   :  { %16430 = vmatpush1.bf16.msra.mxu1 %v20708_v5  ;;  %16774 = vmatprep.subr.bf16.mxu0 %v20713_v8  ;;  %v20765_v5 = vld [vmem:[%s28988_s3 + $0x7f0] ss:$24 sps:$4 sm:$0xff]  }
 0x77e   :  { %16431 = vmatprep.subr.bf16.mxu1 %v20716_v11  ;;  %v20768_v8 = vld [vmem:[%s28988_s3 + $0x1358] ss:$24 sps:$4 sm:$0xff]   ;;  %v20773_v11 = vld [vmem:[%s28988_s3 + $0x824] ss:$24 sps:$4 sm:$0xff]  }
 0x780   :  { %16775 = vmatpush1.bf16.msra.mxu0 %v20711_v45  ;;  %v20776_v45 = vld [vmem:[%s28988_s3 + $0x138c] ss:$24 sps:$4 sm:$0xff]  }
 0x781   :  { %16432 = vmatpush1.bf16.msra.mxu1 %v20714_v10  ;;  %16776 = vmatprep.subr.bf16.mxu0 %v20719_v41  ;;  %v20771_v10 = vld [vmem:[%s28988_s3 + $0x820] ss:$24 sps:$4 sm:$0xff]  }
 0x782   :  { %16433 = vmatprep.subr.bf16.mxu1 %v20722_v3  ;;  %v20774_v41 = vld [vmem:[%s28988_s3 + $0x1388] ss:$24 sps:$4 sm:$0xff]   ;;  %v20779_v3 = vld [vmem:[%s28988_s3 + $0x854] ss:$24 sps:$4 sm:$0xff]  }
 0x784   :  { %16777 = vmatpush1.bf16.msra.mxu0 %v20717_v6  ;;  %v20782_v6 = vld [vmem:[%s28988_s3 + $0x13bc] ss:$24 sps:$4 sm:$0xff]  }
 0x785   :  { %16434 = vmatpush1.bf16.msra.mxu1 %v20720_v57  ;;  %16778 = vmatprep.subr.bf16.mxu0 %v20725_v16  ;;  %v20777_v57 = vld [vmem:[%s28988_s3 + $0x850] ss:$24 sps:$4 sm:$0xff]  }
 0x786   :  { %16444 = vmatprep.subr.bf16.mxu1 %v20728_v26  ;;  %v20780_v16 = vld [vmem:[%s28988_s3 + $0x13b8] ss:$24 sps:$4 sm:$0xff]   ;;  %v20785_v26 = vld [vmem:[%s28988_s3 + $0x884] ss:$24 sps:$4 sm:$0xff]  }
 0x788   :  { %16779 = vmatpush1.bf16.msra.mxu0 %v20723_v0  ;;  %16436 = vmatmul.mubr.bf16.vlgmr.msra.gmra.mrb[32].mxu1 %v25423_v20  ;;  %v20788_v0 = vld [vmem:[%s28988_s3 + $0x13ec] ss:$24 sps:$4 sm:$0xff]  }
 0x789   :  { %16445 = vmatpush1.bf16.msra.mxu1 %v20726_v19  ;;  %16476 = vmatprep.mubr.bf16.mxu1 %v25429_v61  ;;  %v20783_v19 = vld [vmem:[%s28988_s3 + $0x880] ss:$24 sps:$4 sm:$0xff]  }
 0x78a   :  { %16780 = vmatprep.subr.bf16.mxu0 %v20731_v28  ;;  %16446 = vmatprep.subr.bf16.mxu1 %v20734_v29  ;;  %v20786_v28 = vld [vmem:[%s28988_s3 + $0x13e8] ss:$24 sps:$4 sm:$0xff]   ;;  %v20791_v29 = vld [vmem:[%s28988_s3 + $0x8b4] ss:$24 sps:$4 sm:$0xff]  }
 0x78c   :  { %16781 = vmatpush1.bf16.msra.mxu0 %v20729_v30  ;;  %v20794_v30 = vld [vmem:[%s28988_s3 + $0x141c] ss:$24 sps:$4 sm:$0xff]  }
 0x78d   :  { %16447 = vmatpush1.bf16.msra.mxu1 %v20732_v63  ;;  %16782 = vmatprep.subr.bf16.mxu0 %v20737_v39  ;;  %v20789_v63 = vld [vmem:[%s28988_s3 + $0x8b0] ss:$24 sps:$4 sm:$0xff]  }
 0x78e   :  { %16448 = vmatprep.subr.bf16.mxu1 %v20740_v17  ;;  %v20792_v39 = vld [vmem:[%s28988_s3 + $0x1418] ss:$24 sps:$4 sm:$0xff]   ;;  %v20797_v17 = vld [vmem:[%s28988_s3 + $0x8e4] ss:$24 sps:$4 sm:$0xff]  }
 0x790   :  { %16783 = vmatpush1.bf16.msra.mxu0 %v20735_v25  ;;  %v20800_v25 = vld [vmem:[%s28988_s3 + $0x144c] ss:$24 sps:$4 sm:$0xff]  }
 0x791   :  { %16449 = vmatpush1.bf16.msra.mxu1 %v20738_v14  ;;  %16784 = vmatprep.subr.bf16.mxu0 %v20743_v40  ;;  %v20795_v14 = vld [vmem:[%s28988_s3 + $0x8e0] ss:$24 sps:$4 sm:$0xff]  }
 0x792   :  { %16450 = vmatprep.subr.bf16.mxu1 %v20746_v33  ;;  %v20798_v40 = vld [vmem:[%s28988_s3 + $0x1448] ss:$24 sps:$4 sm:$0xff]   ;;  %v20803_v33 = vld [vmem:[%s28988_s3 + $0x914] ss:$24 sps:$4 sm:$0xff]  }
 0x794   :  { %16785 = vmatpush1.bf16.msra.mxu0 %v20741_v35  ;;  %v20806_v35 = vld [vmem:[%s28988_s3 + $0x147c] ss:$24 sps:$4 sm:$0xff]  }
 0x795   :  { %16451 = vmatpush1.bf16.msra.mxu1 %v20744_v36  ;;  %16786 = vmatprep.subr.bf16.mxu0 %v20749_v24  ;;  %v20801_v36 = vld [vmem:[%s28988_s3 + $0x910] ss:$24 sps:$4 sm:$0xff]  }
 0x796   :  { %16452 = vmatprep.subr.bf16.mxu1 %v20752_v22  ;;  %v20804_v24 = vld [vmem:[%s28988_s3 + $0x1478] ss:$24 sps:$4 sm:$0xff]   ;;  %v20809_v22 = vld [vmem:[%s28988_s3 + $0x944] ss:$24 sps:$4 sm:$0xff]  }
 0x798   :  { %16787 = vmatpush1.bf16.msra.mxu0 %v20747_v38  ;;  %v20812_v38 = vld [vmem:[%s28988_s3 + $0x14ac] ss:$24 sps:$4 sm:$0xff]  }
 0x799   :  { %16453 = vmatpush1.bf16.msra.mxu1 %v20750_v60  ;;  %16788 = vmatprep.subr.bf16.mxu0 %v20755_v4  ;;  %v20807_v60 = vld [vmem:[%s28988_s3 + $0x940] ss:$24 sps:$4 sm:$0xff]  }
 0x79a   :  { %16454 = vmatprep.subr.bf16.mxu1 %v20758_v23  ;;  %v20810_v4 = vld [vmem:[%s28988_s3 + $0x14a8] ss:$24 sps:$4 sm:$0xff]   ;;  %v20815_v23 = vld [vmem:[%s28988_s3 + $0x974] ss:$24 sps:$4 sm:$0xff]  }
 0x79c   :  { %16789 = vmatpush1.bf16.msra.mxu0 %v20753_v52  ;;  %v20816_v52 = vld [vmem:[%s28988_s3 + $0x14d8] ss:$24 sps:$4 sm:$0xff]  }
 0x79d   :  { %16455 = vmatpush1.bf16.msra.mxu1 %v20756_v21  ;;  %16790 = vmatprep.subr.bf16.mxu0 %v20761_v7  ;;  %v20821_v21 = vld [vmem:[%s28988_s3 + $0x9a4] ss:$24 sps:$4 sm:$0xff]  }
 0x79e   :  { %16456 = vmatprep.subr.bf16.mxu1 %v20764_v32  ;;  %v20824_v7 = vld [vmem:[%s28988_s3 + $0x150c] ss:$24 sps:$4 sm:$0xff]   ;;  %v20819_v32 = vld [vmem:[%s28988_s3 + $0x9a0] ss:$24 sps:$4 sm:$0xff]  }
 0x7a0   :  { %16791 = vmatpush1.bf16.msra.mxu0 %v20759_v18  ;;  %v20822_v18 = vld [vmem:[%s28988_s3 + $0x1508] ss:$24 sps:$4 sm:$0xff]  }
 0x7a1   :  { %16457 = vmatpush1.bf16.msra.mxu1 %v20762_v27  ;;  %16792 = vmatprep.subr.bf16.mxu0 %v20767_v15  ;;  %v20827_v27 = vld [vmem:[%s28988_s3 + $0x9d4] ss:$24 sps:$4 sm:$0xff]  }
 0x7a2   :  { %16458 = vmatprep.subr.bf16.mxu1 %v20770_v59  ;;  %v20830_v15 = vld [vmem:[%s28988_s3 + $0x153c] ss:$24 sps:$4 sm:$0xff]   ;;  %v20825_v59 = vld [vmem:[%s28988_s3 + $0x9d0] ss:$24 sps:$4 sm:$0xff]  }
 0x7a4   :  { %16793 = vmatpush1.bf16.msra.mxu0 %v20765_v5  ;;  %v9914_v5 = vld [vmem:[%s28990_s4] sm:$0x3f] }
 0x7a5   :  { %16459 = vmatpush1.bf16.msra.mxu1 %v20768_v8  ;;  %16794 = vmatprep.subr.bf16.mxu0 %v20773_v11  ;;  %v20828_v8 = vld [vmem:[%s28988_s3 + $0x1538] ss:$24 sps:$4 sm:$0xff]   ;;  %v20833_v11 = vld [vmem:[%s28988_s3 + $0xa04] ss:$24 sps:$4 sm:$0xff]  }
 0x7a6   :  { %16460 = vmatprep.subr.bf16.mxu1 %v20776_v45  ;;  %v20836_v45 = vld [vmem:[%s28988_s3 + $0x156c] ss:$24 sps:$4 sm:$0xff]  }
 0x7a8   :  { %16795 = vmatpush1.bf16.msra.mxu0 %v20771_v10  ;;  %v9919_v10 = vrot.slane %v9914_v5, %v24039_v48  ;;  %v20842_v48 = vld [vmem:[%s28988_s3 + $0x159c] ss:$24 sps:$4 sm:$0xff]  }
 0x7a9   :  { %16461 = vmatpush1.bf16.msra.mxu1 %v20774_v41  ;;  %16796 = vmatprep.subr.bf16.mxu0 %v20779_v3  ;;  %v20831_v41 = vld [vmem:[%s28988_s3 + $0xa00] ss:$24 sps:$4 sm:$0xff]   ;;  %v9923_v3 = vrot.slane %v9914_v5, %v23847_v13  ;;  %v20884_v5 = vld [vmem:[%s28988_s3 + $0x16ec] ss:$24 sps:$4 sm:$0xff]  }
 0x7aa   :  { %16462 = vmatprep.subr.bf16.mxu1 %v20782_v6  ;;  %v20834_v6 = vld [vmem:[%s28988_s3 + $0x1568] ss:$24 sps:$4 sm:$0xff]  }
 0x7ac   :  { %16797 = vmatpush1.bf16.msra.mxu0 %v20777_v57  ;;  %v20839_v57 = vld [vmem:[%s28988_s3 + $0xa34] ss:$24 sps:$4 sm:$0xff]  }
 0x7ad   :  { %16463 = vmatpush1.bf16.msra.mxu1 %v20780_v16  ;;  %16798 = vmatprep.subr.bf16.mxu0 %v20785_v26 }
 0x7ae   :  { %16464 = vmatprep.subr.bf16.mxu1 %v20788_v0 }
 0x7b0   :  { %16799 = vmatpush1.bf16.msra.mxu0 %v20783_v19 }
 0x7b1   :  { %16465 = vmatpush1.bf16.msra.mxu1 %v20786_v28  ;;  %16800 = vmatprep.subr.bf16.mxu0 %v20791_v29  ;;  %v20837_v28 = vld [vmem:[%s28988_s3 + $0xa30] ss:$24 sps:$4 sm:$0xff]  }
 0x7b2   :  { %16466 = vmatprep.subr.bf16.mxu1 %v20794_v30  ;;  %v20840_v30 = vld [vmem:[%s28988_s3 + $0x1598] ss:$24 sps:$4 sm:$0xff]  }
 0x7b4   :  { %16801 = vmatpush1.bf16.msra.mxu0 %v20789_v63  ;;  %v20845_v63 = vld [vmem:[%s28988_s3 + $0xa64] ss:$24 sps:$4 sm:$0xff]  }
 0x7b5   :  { %16467 = vmatpush1.bf16.msra.mxu1 %v20792_v39  ;;  %16802 = vmatprep.subr.bf16.mxu0 %v20797_v17  ;;  %v20848_v39 = vld [vmem:[%s28988_s3 + $0x15cc] ss:$24 sps:$4 sm:$0xff]   ;;  %v20843_v17 = vld [vmem:[%s28988_s3 + $0xa60] ss:$24 sps:$4 sm:$0xff]  }
 0x7b6   :  { %16468 = vmatprep.subr.bf16.mxu1 %v20800_v25  ;;  %v20846_v25 = vld [vmem:[%s28988_s3 + $0x15c8] ss:$24 sps:$4 sm:$0xff]  }
 0x7b8   :  { %16803 = vmatpush1.bf16.msra.mxu0 %v20795_v14  ;;  %v20851_v14 = vld [vmem:[%s28988_s3 + $0xa94] ss:$24 sps:$4 sm:$0xff]  }
 0x7b9   :  { %16469 = vmatpush1.bf16.msra.mxu1 %v20798_v40  ;;  %16813 = vmatprep.subr.bf16.mxu0 %v20803_v33  ;;  %v20854_v40 = vld [vmem:[%s28988_s3 + $0x15fc] ss:$24 sps:$4 sm:$0xff]   ;;  %v20849_v33 = vld [vmem:[%s28988_s3 + $0xa90] ss:$24 sps:$4 sm:$0xff]  }
 0x7ba   :  { %16470 = vmatprep.subr.bf16.mxu1 %v20806_v35  ;;  %v20852_v35 = vld [vmem:[%s28988_s3 + $0x15f8] ss:$24 sps:$4 sm:$0xff]  }
 0x7bb   :  { %16805 = vmatmul.mubr.bf16.vlgmr.msra.gmra.mrb[20].mxu0 %v24679_v58  ;;  %v20818_v58 = vld [vmem:[%s28988_s3 + $0x14dc] ss:$24 sps:$4 sm:$0xff]  }
 0x7bc   :  { %16814 = vmatpush1.bf16.msra.mxu0 %v20801_v36  ;;  %16845 = vmatprep.mubr.bf16.mxu0 %v24867_v53  ;;  %v20813_v53 = vld [vmem:[%s28988_s3 + $0x970] ss:$24 sps:$4 sm:$0xff]   ;;  %v20857_v36 = vld [vmem:[%s28988_s3 + $0xac4] ss:$24 sps:$4 sm:$0xff]  }
 0x7bd   :  { %16471 = vmatpush1.bf16.msra.mxu1 %v20804_v24  ;;  %16815 = vmatprep.subr.bf16.mxu0 %v20809_v22  ;;  %v20860_v24 = vld [vmem:[%s28988_s3 + $0x162c] ss:$24 sps:$4 sm:$0xff]   ;;  %v20855_v22 = vld [vmem:[%s28988_s3 + $0xac0] ss:$24 sps:$4 sm:$0xff]  }
 0x7be   :  { %16472 = vmatprep.subr.bf16.mxu1 %v20812_v38  ;;  %v20858_v38 = vld [vmem:[%s28988_s3 + $0x1628] ss:$24 sps:$4 sm:$0xff]  }
 0x7c0   :  { %16816 = vmatpush1.bf16.msra.mxu0 %v20807_v60  ;;  %v20863_v60 = vld [vmem:[%s28988_s3 + $0xaf4] ss:$24 sps:$4 sm:$0xff]  }
 0x7c1   :  { %16473 = vmatpush1.bf16.msra.mxu1 %v20810_v4  ;;  %16817 = vmatprep.subr.bf16.mxu0 %v20815_v23  ;;  %v20866_v4 = vld [vmem:[%s28988_s3 + $0x165c] ss:$24 sps:$4 sm:$0xff]   ;;  %v20861_v23 = vld [vmem:[%s28988_s3 + $0xaf0] ss:$24 sps:$4 sm:$0xff]  }
 0x7c2   :  { %16474 = vmatprep.subr.bf16.mxu1 %v20818_v58  ;;  %v20864_v58 = vld [vmem:[%s28988_s3 + $0x1658] ss:$24 sps:$4 sm:$0xff]  }
 0x7c4   :  { %16818 = vmatpush1.bf16.msra.mxu0 %v20813_v53  ;;  %v20869_v53 = vld [vmem:[%s28988_s3 + $0xb24] ss:$24 sps:$4 sm:$0xff]  }
 0x7c5   :  { %16475 = vmatpush1.bf16.msra.mxu1 %v20816_v52  ;;  %16819 = vmatprep.subr.bf16.mxu0 %v20821_v21  ;;  %v20872_v52 = vld [vmem:[%s28988_s3 + $0x168c] ss:$24 sps:$4 sm:$0xff]   ;;  %v20867_v21 = vld [vmem:[%s28988_s3 + $0xb20] ss:$24 sps:$4 sm:$0xff]  }
 0x7c6   :  { %16485 = vmatprep.subr.bf16.mxu1 %v20824_v7  ;;  %v20870_v7 = vld [vmem:[%s28988_s3 + $0x1688] ss:$24 sps:$4 sm:$0xff]  }
 0x7c8   :  { %16820 = vmatpush1.bf16.msra.mxu0 %v20819_v32  ;;  %16477 = vmatmul.mubr.bf16.vlgmr.msra.gmra.mrb[32].mxu1 %v25633_v34  ;;  %v20875_v32 = vld [vmem:[%s28988_s3 + $0xb54] ss:$24 sps:$4 sm:$0xff]  }
 0x7c9   :  { %16486 = vmatpush1.bf16.msra.mxu1 %v20822_v18  ;;  %16517 = vmatprep.mubr.bf16.mxu1 %v25950_v1  ;;  %v20878_v18 = vld [vmem:[%s28988_s3 + $0x16bc] ss:$24 sps:$4 sm:$0xff]  }
 0x7ca   :  { %16821 = vmatprep.subr.bf16.mxu0 %v20827_v27  ;;  %16487 = vmatprep.subr.bf16.mxu1 %v20830_v15  ;;  %v20873_v27 = vld [vmem:[%s28988_s3 + $0xb50] ss:$24 sps:$4 sm:$0xff]  }
 0x7cb   :  { %v20876_v15 = vld [vmem:[%s28988_s3 + $0x16b8] ss:$24 sps:$4 sm:$0xff]  }
 0x7cc   :  { %16822 = vmatpush1.bf16.msra.mxu0 %v20825_v59  ;;  %v20881_v59 = vld [vmem:[%s28988_s3 + $0xb84] ss:$24 sps:$4 sm:$0xff]  }
 0x7cd   :  { %16488 = vmatpush1.bf16.msra.mxu1 %v20828_v8  ;;  %16823 = vmatprep.subr.bf16.mxu0 %v20833_v11  ;;  %v20879_v8 = vld [vmem:[%s28988_s3 + $0xb80] ss:$24 sps:$4 sm:$0xff]  }
 0x7ce   :  { %v16191_v16 = vpop.f32.mrb[16].mxu0  ;;  %16489 = vmatprep.subr.bf16.mxu1 %v20836_v45  ;;  %v20882_v11 = vld [vmem:[%s28988_s3 + $0x16e8] ss:$24 sps:$4 sm:$0xff]   ;;  %v20887_v45 = vld [vmem:[%s28988_s3 + $0xbb4] ss:$24 sps:$4 sm:$0xff]  }
 0x7cf   :  { %v19520_v26 = vadd.f32 %v16191_v16, %v9919_v10  ;;  %v16193_v0 = vpop.f32.mrb[17].mxu0  ;;  %v20890_v10 = vld [vmem:[%s28988_s3 + $0x171c] ss:$24 sps:$4 sm:$0xff]   ;;  %v20891_v16 = vld [vmem:[%s28988_s3 + $0xbe0] ss:$24 sps:$4 sm:$0xff]  }
 0x7d0   :  { %v19521_v19 = vadd.f32 %v16193_v0, %v9923_v3  ;;  %16824 = vmatpush1.bf16.msra.mxu0 %v20831_v41  ;;  %v16195_v13 = vpop.f32.mrb[18].mxu0  ;;  %v20885_v41 = vld [vmem:[%s28988_s3 + $0xbb0] ss:$24 sps:$4 sm:$0xff]   ;;  %v20902_v0 = vld [vmem:[%s28988_s3 + $0x177c] ss:$24 sps:$4 sm:$0xff]  }
 0x7d1   :  { %17182 = vst [vmem:[%s28991_s5] sm:$0xff] %v19520_v26  ;;  %v16196_v29 = vpop.f32.mrb[19].mxu0  ;;  %16490 = vmatpush1.bf16.msra.mxu1 %v20834_v6  ;;  %16825 = vmatprep.subr.bf16.mxu0 %v20839_v57  ;;  %v20888_v3 = vld [vmem:[%s28988_s3 + $0x1718] ss:$24 sps:$4 sm:$0xff]   ;;  %v20893_v6 = vld [vmem:[%s28988_s3 + $0xbe4] ss:$24 sps:$4 sm:$0xff]  }
 0x7d2   :  { %17183 = vst [vmem:[%s28991_s5 + $0x8] sm:$0xff] %v19521_v19  ;;  %16491 = vmatprep.subr.bf16.mxu1 %v20842_v48  ;;  %v20896_v57 = vld [vmem:[%s28988_s3 + $0x174c] ss:$24 sps:$4 sm:$0xff]   ;;  %v20894_v48 = vld [vmem:[%s28988_s3 + $0x1748] ss:$24 sps:$4 sm:$0xff]  }
 0x7d3   :  { %v20899_v26 = vld [vmem:[%s28988_s3 + $0xc14] ss:$24 sps:$4 sm:$0xff]   ;;  %v20897_v19 = vld [vmem:[%s28988_s3 + $0xc10] ss:$24 sps:$4 sm:$0xff]  }
 0x7d4   :  { %16826 = vmatpush1.bf16.msra.mxu0 %v20837_v28  ;;  %v20900_v13 = vld [vmem:[%s28988_s3 + $0x1778] ss:$24 sps:$4 sm:$0xff]   ;;  %v20905_v28 = vld [vmem:[%s28988_s3 + $0xc44] ss:$24 sps:$4 sm:$0xff]  }
 0x7d5   :  { %16492 = vmatpush1.bf16.msra.mxu1 %v20840_v30  ;;  %16827 = vmatprep.subr.bf16.mxu0 %v20845_v63  ;;  %v20908_v29 = vld [vmem:[%s28988_s3 + $0x17ac] ss:$24 sps:$4 sm:$0xff]   ;;  %v20903_v30 = vld [vmem:[%s28988_s3 + $0xc40] ss:$24 sps:$4 sm:$0xff]  }
 0x7d6   :  { %16493 = vmatprep.subr.bf16.mxu1 %v20848_v39  ;;  %v20906_v63 = vld [vmem:[%s28988_s3 + $0x17a8] ss:$24 sps:$4 sm:$0xff]   ;;  %v20911_v39 = vld [vmem:[%s28988_s3 + $0xc74] ss:$24 sps:$4 sm:$0xff]  }
 0x7d8   :  { %16828 = vmatpush1.bf16.msra.mxu0 %v20843_v17  ;;  %v20912_v17 = vld [vmem:[%s28988_s3 + $0x17d8] ss:$24 sps:$4 sm:$0xff]  }
 0x7d9   :  { %16494 = vmatpush1.bf16.msra.mxu1 %v20846_v25  ;;  %16829 = vmatprep.subr.bf16.mxu0 %v20851_v14  ;;  %v20917_v25 = vld [vmem:[%s28988_s3 + $0xca4] ss:$24 sps:$4 sm:$0xff]  }
 0x7da   :  { %16495 = vmatprep.subr.bf16.mxu1 %v20854_v40  ;;  %v20920_v14 = vld [vmem:[%s28988_s3 + $0x180c] ss:$24 sps:$4 sm:$0xff]   ;;  %v20915_v40 = vld [vmem:[%s28988_s3 + $0xca0] ss:$24 sps:$4 sm:$0xff]  }
 0x7dc   :  { %16830 = vmatpush1.bf16.msra.mxu0 %v20849_v33  ;;  %v20918_v33 = vld [vmem:[%s28988_s3 + $0x1808] ss:$24 sps:$4 sm:$0xff]  }
 0x7dd   :  { %16496 = vmatpush1.bf16.msra.mxu1 %v20852_v35  ;;  %16831 = vmatprep.subr.bf16.mxu0 %v20857_v36  ;;  %v20923_v35 = vld [vmem:[%s28988_s3 + $0xcd4] ss:$24 sps:$4 sm:$0xff]  }
 0x7de   :  { %16497 = vmatprep.subr.bf16.mxu1 %v20860_v24  ;;  %v20926_v36 = vld [vmem:[%s28988_s3 + $0x183c] ss:$24 sps:$4 sm:$0xff]   ;;  %v20921_v24 = vld [vmem:[%s28988_s3 + $0xcd0] ss:$24 sps:$4 sm:$0xff]  }
 0x7e0   :  { %16832 = vmatpush1.bf16.msra.mxu0 %v20855_v22  ;;  %v20924_v22 = vld [vmem:[%s28988_s3 + $0x1838] ss:$24 sps:$4 sm:$0xff]  }
 0x7e1   :  { %16498 = vmatpush1.bf16.msra.mxu1 %v20858_v38  ;;  %16833 = vmatprep.subr.bf16.mxu0 %v20863_v60  ;;  %v20929_v38 = vld [vmem:[%s28988_s3 + $0xd04] ss:$24 sps:$4 sm:$0xff]  }
 0x7e2   :  { %16499 = vmatprep.subr.bf16.mxu1 %v20866_v4  ;;  %v20932_v60 = vld [vmem:[%s28988_s3 + $0x186c] ss:$24 sps:$4 sm:$0xff]   ;;  %v20927_v4 = vld [vmem:[%s28988_s3 + $0xd00] ss:$24 sps:$4 sm:$0xff]  }
 0x7e4   :  { %16834 = vmatpush1.bf16.msra.mxu0 %v20861_v23  ;;  %v20930_v23 = vld [vmem:[%s28988_s3 + $0x1868] ss:$24 sps:$4 sm:$0xff]  }
 0x7e5   :  { %16500 = vmatpush1.bf16.msra.mxu1 %v20864_v58  ;;  %16835 = vmatprep.subr.bf16.mxu0 %v20869_v53  ;;  %v20935_v58 = vld [vmem:[%s28988_s3 + $0xd34] ss:$24 sps:$4 sm:$0xff]  }
 0x7e6   :  { %16501 = vmatprep.subr.bf16.mxu1 %v20872_v52  ;;  %v20938_v53 = vld [vmem:[%s28988_s3 + $0x189c] ss:$24 sps:$4 sm:$0xff]   ;;  %v20933_v52 = vld [vmem:[%s28988_s3 + $0xd30] ss:$24 sps:$4 sm:$0xff]  }
 0x7e8   :  { %16836 = vmatpush1.bf16.msra.mxu0 %v20867_v21  ;;  %v20936_v21 = vld [vmem:[%s28988_s3 + $0x1898] ss:$24 sps:$4 sm:$0xff]  }
 0x7e9   :  { %16502 = vmatpush1.bf16.msra.mxu1 %v20870_v7  ;;  %16837 = vmatprep.subr.bf16.mxu0 %v20875_v32  ;;  %v20941_v7 = vld [vmem:[%s28988_s3 + $0xd64] ss:$24 sps:$4 sm:$0xff]  }
 0x7ea   :  { %16503 = vmatprep.subr.bf16.mxu1 %v20878_v18  ;;  %v20944_v32 = vld [vmem:[%s28988_s3 + $0x18cc] ss:$24 sps:$4 sm:$0xff]   ;;  %v20939_v18 = vld [vmem:[%s28988_s3 + $0xd60] ss:$24 sps:$4 sm:$0xff]  }
 0x7ec   :  { %16838 = vmatpush1.bf16.msra.mxu0 %v20873_v27  ;;  %v20942_v27 = vld [vmem:[%s28988_s3 + $0x18c8] ss:$24 sps:$4 sm:$0xff]  }
 0x7ed   :  { %16504 = vmatpush1.bf16.msra.mxu1 %v20876_v15  ;;  %16839 = vmatprep.subr.bf16.mxu0 %v20881_v59  ;;  %v20947_v15 = vld [vmem:[%s28988_s3 + $0xd94] ss:$24 sps:$4 sm:$0xff]  }
 0x7ee   :  { %16505 = vmatprep.subr.bf16.mxu1 %v20884_v5  ;;  %v20950_v59 = vld [vmem:[%s28988_s3 + $0x18fc] ss:$24 sps:$4 sm:$0xff]   ;;  %v20945_v5 = vld [vmem:[%s28988_s3 + $0xd90] ss:$24 sps:$4 sm:$0xff]  }
 0x7f0   :  { %16840 = vmatpush1.bf16.msra.mxu0 %v20879_v8  ;;  %v20948_v8 = vld [vmem:[%s28988_s3 + $0x18f8] ss:$24 sps:$4 sm:$0xff]  }
 0x7f1   :  { %16506 = vmatpush1.bf16.msra.mxu1 %v20882_v11  ;;  %16841 = vmatprep.subr.bf16.mxu0 %v20887_v45  ;;  %v20953_v11 = vld [vmem:[%s28988_s3 + $0xdc4] ss:$24 sps:$4 sm:$0xff]  }
 0x7f2   :  { %16507 = vmatprep.subr.bf16.mxu1 %v20890_v10  ;;  %v20956_v45 = vld [vmem:[%s28988_s3 + $0x192c] ss:$24 sps:$4 sm:$0xff]   ;;  %v20951_v10 = vld [vmem:[%s28988_s3 + $0xdc0] ss:$24 sps:$4 sm:$0xff]  }
 0x7f4   :  { %16842 = vmatpush1.bf16.msra.mxu0 %v20885_v41  ;;  %v20954_v41 = vld [vmem:[%s28988_s3 + $0x1928] ss:$24 sps:$4 sm:$0xff]  }
 0x7f5   :  { %16508 = vmatpush1.bf16.msra.mxu1 %v20888_v3  ;;  %16843 = vmatprep.subr.bf16.mxu0 %v20893_v6  ;;  %v20959_v3 = vld [vmem:[%s28988_s3 + $0xdf4] ss:$24 sps:$4 sm:$0xff]  }
 0x7f6   :  { %16509 = vmatprep.subr.bf16.mxu1 %v20896_v57  ;;  %v20962_v6 = vld [vmem:[%s28988_s3 + $0x195c] ss:$24 sps:$4 sm:$0xff]   ;;  %v20957_v57 = vld [vmem:[%s28988_s3 + $0xdf0] ss:$24 sps:$4 sm:$0xff]  }
 0x7f8   :  { %16844 = vmatpush1.bf16.msra.mxu0 %v20891_v16  ;;  %v20960_v16 = vld [vmem:[%s28988_s3 + $0x1958] ss:$24 sps:$4 sm:$0xff]  }
 0x7f9   :  { %16510 = vmatpush1.bf16.msra.mxu1 %v20894_v48  ;;  %16854 = vmatprep.subr.bf16.mxu0 %v20899_v26  ;;  %v20965_v48 = vld [vmem:[%s28988_s3 + $0xe24] ss:$24 sps:$4 sm:$0xff]  }
 0x7fa   :  { %16511 = vmatprep.subr.bf16.mxu1 %v20902_v0  ;;  %v20968_v26 = vld [vmem:[%s28988_s3 + $0x198c] ss:$24 sps:$4 sm:$0xff]   ;;  %v20963_v0 = vld [vmem:[%s28988_s3 + $0xe20] ss:$24 sps:$4 sm:$0xff]  }
 0x7fb   :  { %16846 = vmatmul.mubr.bf16.vlgmr.msra.gmra.mrb[20].mxu0 %v24920_v56  ;;  %v20914_v56 = vld [vmem:[%s28988_s3 + $0x17dc] ss:$24 sps:$4 sm:$0xff]  }
 0x7fc   :  { %16855 = vmatpush1.bf16.msra.mxu0 %v20897_v19  ;;  %16886 = vmatprep.mubr.bf16.mxu0 %v24923_v51  ;;  %v20909_v51 = vld [vmem:[%s28988_s3 + $0xc70] ss:$24 sps:$4 sm:$0xff]  }
 0x7fd   :  { %16512 = vmatpush1.bf16.msra.mxu1 %v20900_v13  ;;  %16856 = vmatprep.subr.bf16.mxu0 %v20905_v28  ;;  %v20966_v19 = vld [vmem:[%s28988_s3 + $0x1988] ss:$24 sps:$4 sm:$0xff]   ;;  %v20971_v13 = vld [vmem:[%s28988_s3 + $0xe54] ss:$24 sps:$4 sm:$0xff]  }
 0x7fe   :  { %16513 = vmatprep.subr.bf16.mxu1 %v20908_v29  ;;  %v20974_v28 = vld [vmem:[%s28988_s3 + $0x19bc] ss:$24 sps:$4 sm:$0xff]   ;;  %v20969_v29 = vld [vmem:[%s28988_s3 + $0xe50] ss:$24 sps:$4 sm:$0xff]  }
 0x800   :  { %16857 = vmatpush1.bf16.msra.mxu0 %v20903_v30  ;;  %v20972_v30 = vld [vmem:[%s28988_s3 + $0x19b8] ss:$24 sps:$4 sm:$0xff]  }
 0x801   :  { %16514 = vmatpush1.bf16.msra.mxu1 %v20906_v63  ;;  %16858 = vmatprep.subr.bf16.mxu0 %v20911_v39  ;;  %v20977_v63 = vld [vmem:[%s28988_s3 + $0xe84] ss:$24 sps:$4 sm:$0xff]  }
 0x802   :  { %16515 = vmatprep.subr.bf16.mxu1 %v20914_v56  ;;  %v20980_v39 = vld [vmem:[%s28988_s3 + $0x19ec] ss:$24 sps:$4 sm:$0xff]   ;;  %v20975_v56 = vld [vmem:[%s28988_s3 + $0xe80] ss:$24 sps:$4 sm:$0xff]  }
 0x804   :  { %16859 = vmatpush1.bf16.msra.mxu0 %v20909_v51  ;;  %v20978_v51 = vld [vmem:[%s28988_s3 + $0x19e8] ss:$24 sps:$4 sm:$0xff]  }
 0x805   :  { %16516 = vmatpush1.bf16.msra.mxu1 %v20912_v17  ;;  %16860 = vmatprep.subr.bf16.mxu0 %v20917_v25  ;;  %v20983_v17 = vld [vmem:[%s28988_s3 + $0xeb4] ss:$24 sps:$4 sm:$0xff]  }
 0x806   :  { %16526 = vmatprep.subr.bf16.mxu1 %v20920_v14  ;;  %v20986_v25 = vld [vmem:[%s28988_s3 + $0x1a1c] ss:$24 sps:$4 sm:$0xff]   ;;  %v20981_v14 = vld [vmem:[%s28988_s3 + $0xeb0] ss:$24 sps:$4 sm:$0xff]  }
 0x808   :  { %16861 = vmatpush1.bf16.msra.mxu0 %v20915_v40  ;;  %16518 = vmatmul.mubr.bf16.vlgmr.msra.gmra.mrb[32].mxu1 %v25955_v46  ;;  %v20984_v40 = vld [vmem:[%s28988_s3 + $0x1a18] ss:$24 sps:$4 sm:$0xff]  }
 0x809   :  { %16527 = vmatpush1.bf16.msra.mxu1 %v20918_v33  ;;  %16558 = vmatprep.mubr.bf16.mxu1 %v25961_v43  ;;  %v20989_v33 = vld [vmem:[%s28988_s3 + $0xee4] ss:$24 sps:$4 sm:$0xff]  }
 0x80a   :  { %16862 = vmatprep.subr.bf16.mxu0 %v20923_v35  ;;  %16528 = vmatprep.subr.bf16.mxu1 %v20926_v36  ;;  %v20992_v35 = vld [vmem:[%s28988_s3 + $0x1a4c] ss:$24 sps:$4 sm:$0xff]   ;;  %v20987_v36 = vld [vmem:[%s28988_s3 + $0xee0] ss:$24 sps:$4 sm:$0xff]  }
 0x80c   :  { %16863 = vmatpush1.bf16.msra.mxu0 %v20921_v24  ;;  %v20990_v24 = vld [vmem:[%s28988_s3 + $0x1a48] ss:$24 sps:$4 sm:$0xff]  }
 0x80d   :  { %16529 = vmatpush1.bf16.msra.mxu1 %v20924_v22  ;;  %16864 = vmatprep.subr.bf16.mxu0 %v20929_v38  ;;  %v20995_v22 = vld [vmem:[%s28988_s3 + $0xf14] ss:$24 sps:$4 sm:$0xff]  }
 0x80e   :  { %16530 = vmatprep.subr.bf16.mxu1 %v20932_v60  ;;  %v20998_v38 = vld [vmem:[%s28988_s3 + $0x1a7c] ss:$24 sps:$4 sm:$0xff]   ;;  %v20993_v60 = vld [vmem:[%s28988_s3 + $0xf10] ss:$24 sps:$4 sm:$0xff]  }
 0x810   :  { %16865 = vmatpush1.bf16.msra.mxu0 %v20927_v4  ;;  %v20996_v4 = vld [vmem:[%s28988_s3 + $0x1a78] ss:$24 sps:$4 sm:$0xff]  }
 0x811   :  { %16531 = vmatpush1.bf16.msra.mxu1 %v20930_v23  ;;  %16866 = vmatprep.subr.bf16.mxu0 %v20935_v58  ;;  %v21001_v23 = vld [vmem:[%s28988_s3 + $0xf44] ss:$24 sps:$4 sm:$0xff]  }
 0x812   :  { %16532 = vmatprep.subr.bf16.mxu1 %v20938_v53  ;;  %v21004_v58 = vld [vmem:[%s28988_s3 + $0x1aac] ss:$24 sps:$4 sm:$0xff]   ;;  %v20999_v53 = vld [vmem:[%s28988_s3 + $0xf40] ss:$24 sps:$4 sm:$0xff]  }
 0x814   :  { %16867 = vmatpush1.bf16.msra.mxu0 %v20933_v52  ;;  %v21002_v52 = vld [vmem:[%s28988_s3 + $0x1aa8] ss:$24 sps:$4 sm:$0xff]  }
 0x815   :  { %16533 = vmatpush1.bf16.msra.mxu1 %v20936_v21  ;;  %16868 = vmatprep.subr.bf16.mxu0 %v20941_v7  ;;  %v21007_v21 = vld [vmem:[%s28988_s3 + $0xf74] ss:$24 sps:$4 sm:$0xff]   ;;  %v21008_v7 = vld [vmem:[%s28988_s3 + $0x1ad8] ss:$24 sps:$4 sm:$0xff]  }
 0x816   :  { %16534 = vmatprep.subr.bf16.mxu1 %v20944_v32  ;;  %v21013_v32 = vld [vmem:[%s28988_s3 + $0xfa4] ss:$24 sps:$4 sm:$0xff]  }
 0x818   :  { %16869 = vmatpush1.bf16.msra.mxu0 %v20939_v18  ;;  %v21016_v18 = vld [vmem:[%s28988_s3 + $0x1b0c] ss:$24 sps:$4 sm:$0xff]  }
 0x819   :  { %16535 = vmatpush1.bf16.msra.mxu1 %v20942_v27  ;;  %16870 = vmatprep.subr.bf16.mxu0 %v20947_v15  ;;  %v21011_v27 = vld [vmem:[%s28988_s3 + $0xfa0] ss:$24 sps:$4 sm:$0xff]  }
 0x81a   :  { %16536 = vmatprep.subr.bf16.mxu1 %v20950_v59  ;;  %v21014_v15 = vld [vmem:[%s28988_s3 + $0x1b08] ss:$24 sps:$4 sm:$0xff]   ;;  %v21019_v59 = vld [vmem:[%s28988_s3 + $0xfd4] ss:$24 sps:$4 sm:$0xff]  }
 0x81c   :  { %16871 = vmatpush1.bf16.msra.mxu0 %v20945_v5  ;;  %v21022_v5 = vld [vmem:[%s28988_s3 + $0x1b3c] ss:$24 sps:$4 sm:$0xff]  }
 0x81d   :  { %16537 = vmatpush1.bf16.msra.mxu1 %v20948_v8  ;;  %16872 = vmatprep.subr.bf16.mxu0 %v20953_v11  ;;  %v21017_v8 = vld [vmem:[%s28988_s3 + $0xfd0] ss:$24 sps:$4 sm:$0xff]  }
 0x81e   :  { %16538 = vmatprep.subr.bf16.mxu1 %v20956_v45  ;;  %v21020_v11 = vld [vmem:[%s28988_s3 + $0x1b38] ss:$24 sps:$4 sm:$0xff]   ;;  %v21025_v45 = vld [vmem:[%s28988_s3 + $0x1004] ss:$24 sps:$4 sm:$0xff]  }
 0x820   :  { %16873 = vmatpush1.bf16.msra.mxu0 %v20951_v10  ;;  %v21028_v10 = vld [vmem:[%s28988_s3 + $0x1b6c] ss:$24 sps:$4 sm:$0xff]  }
 0x821   :  { %16539 = vmatpush1.bf16.msra.mxu1 %v20954_v41  ;;  %16874 = vmatprep.subr.bf16.mxu0 %v20959_v3  ;;  %v21023_v41 = vld [vmem:[%s28988_s3 + $0x1000] ss:$24 sps:$4 sm:$0xff]  }
 0x822   :  { %16540 = vmatprep.subr.bf16.mxu1 %v20962_v6  ;;  %v21026_v3 = vld [vmem:[%s28988_s3 + $0x1b68] ss:$24 sps:$4 sm:$0xff]   ;;  %v21031_v6 = vld [vmem:[%s28988_s3 + $0x1034] ss:$24 sps:$4 sm:$0xff]  }
 0x824   :  { %16875 = vmatpush1.bf16.msra.mxu0 %v20957_v57  ;;  %v21034_v57 = vld [vmem:[%s28988_s3 + $0x1b9c] ss:$24 sps:$4 sm:$0xff]  }
 0x825   :  { %16541 = vmatpush1.bf16.msra.mxu1 %v20960_v16  ;;  %16876 = vmatprep.subr.bf16.mxu0 %v20965_v48  ;;  %v21029_v16 = vld [vmem:[%s28988_s3 + $0x1030] ss:$24 sps:$4 sm:$0xff]  }
 0x826   :  { %16542 = vmatprep.subr.bf16.mxu1 %v20968_v26  ;;  %v21032_v48 = vld [vmem:[%s28988_s3 + $0x1b98] ss:$24 sps:$4 sm:$0xff]   ;;  %v21037_v26 = vld [vmem:[%s28988_s3 + $0x1064] ss:$24 sps:$4 sm:$0xff]  }
 0x828   :  { %16877 = vmatpush1.bf16.msra.mxu0 %v20963_v0  ;;  %v21040_v0 = vld [vmem:[%s28988_s3 + $0x1bcc] ss:$24 sps:$4 sm:$0xff]  }
 0x829   :  { %16543 = vmatpush1.bf16.msra.mxu1 %v20966_v19  ;;  %16878 = vmatprep.subr.bf16.mxu0 %v20971_v13  ;;  %v21035_v19 = vld [vmem:[%s28988_s3 + $0x1060] ss:$24 sps:$4 sm:$0xff]  }
 0x82a   :  { %16544 = vmatprep.subr.bf16.mxu1 %v20974_v28  ;;  %v21038_v13 = vld [vmem:[%s28988_s3 + $0x1bc8] ss:$24 sps:$4 sm:$0xff]   ;;  %v21043_v28 = vld [vmem:[%s28988_s3 + $0x1094] ss:$24 sps:$4 sm:$0xff]  }
 0x82c   :  { %16879 = vmatpush1.bf16.msra.mxu0 %v20969_v29  ;;  %v21046_v29 = vld [vmem:[%s28988_s3 + $0x1bfc] ss:$24 sps:$4 sm:$0xff]  }
 0x82d   :  { %16545 = vmatpush1.bf16.msra.mxu1 %v20972_v30  ;;  %16880 = vmatprep.subr.bf16.mxu0 %v20977_v63  ;;  %v21041_v30 = vld [vmem:[%s28988_s3 + $0x1090] ss:$24 sps:$4 sm:$0xff]  }
 0x82e   :  { %16546 = vmatprep.subr.bf16.mxu1 %v20980_v39  ;;  %v21044_v63 = vld [vmem:[%s28988_s3 + $0x1bf8] ss:$24 sps:$4 sm:$0xff]   ;;  %v21049_v39 = vld [vmem:[%s28988_s3 + $0x10c4] ss:$24 sps:$4 sm:$0xff]  }
 0x830   :  { %16881 = vmatpush1.bf16.msra.mxu0 %v20975_v56  ;;  %v21052_v56 = vld [vmem:[%s28988_s3 + $0x1c2c] ss:$24 sps:$4 sm:$0xff]  }
 0x831   :  { %16547 = vmatpush1.bf16.msra.mxu1 %v20978_v51  ;;  %16882 = vmatprep.subr.bf16.mxu0 %v20983_v17  ;;  %v21047_v51 = vld [vmem:[%s28988_s3 + $0x10c0] ss:$24 sps:$4 sm:$0xff]  }
 0x832   :  { %16548 = vmatprep.subr.bf16.mxu1 %v20986_v25  ;;  %v21050_v17 = vld [vmem:[%s28988_s3 + $0x1c28] ss:$24 sps:$4 sm:$0xff]   ;;  %v21055_v25 = vld [vmem:[%s28988_s3 + $0x10f4] ss:$24 sps:$4 sm:$0xff]  }
 0x834   :  { %16883 = vmatpush1.bf16.msra.mxu0 %v20981_v14  ;;  %v21058_v14 = vld [vmem:[%s28988_s3 + $0x1c5c] ss:$24 sps:$4 sm:$0xff]  }
 0x835   :  { %16549 = vmatpush1.bf16.msra.mxu1 %v20984_v40  ;;  %16884 = vmatprep.subr.bf16.mxu0 %v20989_v33  ;;  %v21053_v40 = vld [vmem:[%s28988_s3 + $0x10f0] ss:$24 sps:$4 sm:$0xff]  }
 0x836   :  { %16550 = vmatprep.subr.bf16.mxu1 %v20992_v35  ;;  %v21056_v33 = vld [vmem:[%s28988_s3 + $0x1c58] ss:$24 sps:$4 sm:$0xff]   ;;  %v21061_v35 = vld [vmem:[%s28988_s3 + $0x1124] ss:$24 sps:$4 sm:$0xff]  }
 0x838   :  { %16885 = vmatpush1.bf16.msra.mxu0 %v20987_v36  ;;  %v21064_v36 = vld [vmem:[%s28988_s3 + $0x1c8c] ss:$24 sps:$4 sm:$0xff]  }
 0x839   :  { %16551 = vmatpush1.bf16.msra.mxu1 %v20990_v24  ;;  %16895 = vmatprep.subr.bf16.mxu0 %v20995_v22  ;;  %v21059_v24 = vld [vmem:[%s28988_s3 + $0x1120] ss:$24 sps:$4 sm:$0xff]  }
 0x83a   :  { %16552 = vmatprep.subr.bf16.mxu1 %v20998_v38  ;;  %v21062_v22 = vld [vmem:[%s28988_s3 + $0x1c88] ss:$24 sps:$4 sm:$0xff]   ;;  %v21067_v38 = vld [vmem:[%s28988_s3 + $0x1154] ss:$24 sps:$4 sm:$0xff]  }
 0x83b   :  { %16887 = vmatmul.mubr.bf16.vlgmr.msra.gmra.mrb[20].mxu0 %v25129_v50  ;;  %v21010_v50 = vld [vmem:[%s28988_s3 + $0x1adc] ss:$24 sps:$4 sm:$0xff]  }
 0x83c   :  { %16896 = vmatpush1.bf16.msra.mxu0 %v20993_v60  ;;  %16927 = vmatprep.mubr.bf16.mxu0 %v25418_v9  ;;  %v21005_v9 = vld [vmem:[%s28988_s3 + $0xf70] ss:$24 sps:$4 sm:$0xff]   ;;  %v21070_v60 = vld [vmem:[%s28988_s3 + $0x1cbc] ss:$24 sps:$4 sm:$0xff]  }
 0x83d   :  { %16553 = vmatpush1.bf16.msra.mxu1 %v20996_v4  ;;  %16897 = vmatprep.subr.bf16.mxu0 %v21001_v23  ;;  %v21065_v4 = vld [vmem:[%s28988_s3 + $0x1150] ss:$24 sps:$4 sm:$0xff]  }
 0x83e   :  { %16554 = vmatprep.subr.bf16.mxu1 %v21004_v58  ;;  %v21068_v23 = vld [vmem:[%s28988_s3 + $0x1cb8] ss:$24 sps:$4 sm:$0xff]   ;;  %v21073_v58 = vld [vmem:[%s28988_s3 + $0x1184] ss:$24 sps:$4 sm:$0xff]  }
 0x840   :  { %16898 = vmatpush1.bf16.msra.mxu0 %v20999_v53  ;;  %v21076_v53 = vld [vmem:[%s28988_s3 + $0x1cec] ss:$24 sps:$4 sm:$0xff]  }
 0x841   :  { %16555 = vmatpush1.bf16.msra.mxu1 %v21002_v52  ;;  %16899 = vmatprep.subr.bf16.mxu0 %v21007_v21  ;;  %v21071_v52 = vld [vmem:[%s28988_s3 + $0x1180] ss:$24 sps:$4 sm:$0xff]  }
 0x842   :  { %16556 = vmatprep.subr.bf16.mxu1 %v21010_v50  ;;  %v21074_v21 = vld [vmem:[%s28988_s3 + $0x1ce8] ss:$24 sps:$4 sm:$0xff]   ;;  %v21079_v50 = vld [vmem:[%s28988_s3 + $0x11b4] ss:$24 sps:$4 sm:$0xff]  }
 0x844   :  { %16900 = vmatpush1.bf16.msra.mxu0 %v21005_v9  ;;  %v21082_v9 = vld [vmem:[%s28988_s3 + $0x1d1c] ss:$24 sps:$4 sm:$0xff]  }
 0x845   :  { %16557 = vmatpush1.bf16.msra.mxu1 %v21008_v7  ;;  %16901 = vmatprep.subr.bf16.mxu0 %v21013_v32  ;;  %v21077_v7 = vld [vmem:[%s28988_s3 + $0x11b0] ss:$24 sps:$4 sm:$0xff]  }
 0x846   :  { %16567 = vmatprep.subr.bf16.mxu1 %v21016_v18  ;;  %v21080_v32 = vld [vmem:[%s28988_s3 + $0x1d18] ss:$24 sps:$4 sm:$0xff]   ;;  %v21085_v18 = vld [vmem:[%s28988_s3 + $0x11e4] ss:$24 sps:$4 sm:$0xff]  }
 0x848   :  { %16902 = vmatpush1.bf16.msra.mxu0 %v21011_v27  ;;  %16559 = vmatmul.mubr.bf16.vlgmr.msra.gmra.mrb[32].mxu1 %v26165_v2  ;;  %v21088_v27 = vld [vmem:[%s28988_s3 + $0x1d4c] ss:$24 sps:$4 sm:$0xff]  }
 0x849   :  { %16568 = vmatpush1.bf16.msra.mxu1 %v21014_v15  ;;  %16599 = vmatprep.mubr.bf16.mxu1 %v26461_v49  ;;  %v21083_v15 = vld [vmem:[%s28988_s3 + $0x11e0] ss:$24 sps:$4 sm:$0xff]  }
 0x84a   :  { %16903 = vmatprep.subr.bf16.mxu0 %v21019_v59  ;;  %16569 = vmatprep.subr.bf16.mxu1 %v21022_v5  ;;  %v21086_v59 = vld [vmem:[%s28988_s3 + $0x1d48] ss:$24 sps:$4 sm:$0xff]   ;;  %v21091_v5 = vld [vmem:[%s28988_s3 + $0x1214] ss:$24 sps:$4 sm:$0xff]  }
 0x84c   :  { %16904 = vmatpush1.bf16.msra.mxu0 %v21017_v8  ;;  %v21094_v8 = vld [vmem:[%s28988_s3 + $0x1d7c] ss:$24 sps:$4 sm:$0xff]  }
 0x84d   :  { %16570 = vmatpush1.bf16.msra.mxu1 %v21020_v11  ;;  %16905 = vmatprep.subr.bf16.mxu0 %v21025_v45  ;;  %v21089_v11 = vld [vmem:[%s28988_s3 + $0x1210] ss:$24 sps:$4 sm:$0xff]  }
 0x84e   :  { %16571 = vmatprep.subr.bf16.mxu1 %v21028_v10  ;;  %v21092_v45 = vld [vmem:[%s28988_s3 + $0x1d78] ss:$24 sps:$4 sm:$0xff]   ;;  %v21097_v10 = vld [vmem:[%s28988_s3 + $0x1244] ss:$24 sps:$4 sm:$0xff]  }
 0x850   :  { %16906 = vmatpush1.bf16.msra.mxu0 %v21023_v41  ;;  %v21100_v41 = vld [vmem:[%s28988_s3 + $0x1dac] ss:$24 sps:$4 sm:$0xff]  }
 0x851   :  { %16572 = vmatpush1.bf16.msra.mxu1 %v21026_v3  ;;  %16907 = vmatprep.subr.bf16.mxu0 %v21031_v6  ;;  %v21095_v3 = vld [vmem:[%s28988_s3 + $0x1240] ss:$24 sps:$4 sm:$0xff]  }
 0x852   :  { %16573 = vmatprep.subr.bf16.mxu1 %v21034_v57  ;;  %v21098_v6 = vld [vmem:[%s28988_s3 + $0x1da8] ss:$24 sps:$4 sm:$0xff]   ;;  %v21103_v57 = vld [vmem:[%s28988_s3 + $0x1274] ss:$24 sps:$4 sm:$0xff]  }
 0x854   :  { %16908 = vmatpush1.bf16.msra.mxu0 %v21029_v16  ;;  %v21104_v16 = vld [vmem:[%s28988_s3 + $0x1dd8] ss:$24 sps:$4 sm:$0xff]  }
 0x855   :  { %16574 = vmatpush1.bf16.msra.mxu1 %v21032_v48  ;;  %16909 = vmatprep.subr.bf16.mxu0 %v21037_v26  ;;  %v21109_v48 = vld [vmem:[%s28988_s3 + $0x12a4] ss:$24 sps:$4 sm:$0xff]  }
 0x856   :  { %16575 = vmatprep.subr.bf16.mxu1 %v21040_v0  ;;  %v21112_v26 = vld [vmem:[%s28988_s3 + $0x1e0c] ss:$24 sps:$4 sm:$0xff]   ;;  %v21107_v0 = vld [vmem:[%s28988_s3 + $0x12a0] ss:$24 sps:$4 sm:$0xff]  }
 0x858   :  { %16910 = vmatpush1.bf16.msra.mxu0 %v21035_v19  ;;  %v21110_v19 = vld [vmem:[%s28988_s3 + $0x1e08] ss:$24 sps:$4 sm:$0xff]  }
 0x859   :  { %16576 = vmatpush1.bf16.msra.mxu1 %v21038_v13  ;;  %16911 = vmatprep.subr.bf16.mxu0 %v21043_v28  ;;  %v21115_v13 = vld [vmem:[%s28988_s3 + $0x12d4] ss:$24 sps:$4 sm:$0xff]  }
 0x85a   :  { %16577 = vmatprep.subr.bf16.mxu1 %v21046_v29  ;;  %v21118_v28 = vld [vmem:[%s28988_s3 + $0x1e3c] ss:$24 sps:$4 sm:$0xff]   ;;  %v21113_v29 = vld [vmem:[%s28988_s3 + $0x12d0] ss:$24 sps:$4 sm:$0xff]  }
 0x85c   :  { %16912 = vmatpush1.bf16.msra.mxu0 %v21041_v30  ;;  %v21116_v30 = vld [vmem:[%s28988_s3 + $0x1e38] ss:$24 sps:$4 sm:$0xff]  }
 0x85d   :  { %16578 = vmatpush1.bf16.msra.mxu1 %v21044_v63  ;;  %16913 = vmatprep.subr.bf16.mxu0 %v21049_v39  ;;  %v21121_v63 = vld [vmem:[%s28988_s3 + $0x1304] ss:$24 sps:$4 sm:$0xff]  }
 0x85e   :  { %16579 = vmatprep.subr.bf16.mxu1 %v21052_v56  ;;  %v21124_v39 = vld [vmem:[%s28988_s3 + $0x1e6c] ss:$24 sps:$4 sm:$0xff]   ;;  %v21119_v56 = vld [vmem:[%s28988_s3 + $0x1300] ss:$24 sps:$4 sm:$0xff]  }
 0x860   :  { %16914 = vmatpush1.bf16.msra.mxu0 %v21047_v51  ;;  %v21122_v51 = vld [vmem:[%s28988_s3 + $0x1e68] ss:$24 sps:$4 sm:$0xff]  }
 0x861   :  { %16580 = vmatpush1.bf16.msra.mxu1 %v21050_v17  ;;  %16915 = vmatprep.subr.bf16.mxu0 %v21055_v25  ;;  %v21127_v17 = vld [vmem:[%s28988_s3 + $0x1334] ss:$24 sps:$4 sm:$0xff]  }
 0x862   :  { %16581 = vmatprep.subr.bf16.mxu1 %v21058_v14  ;;  %v21130_v25 = vld [vmem:[%s28988_s3 + $0x1e9c] ss:$24 sps:$4 sm:$0xff]   ;;  %v21125_v14 = vld [vmem:[%s28988_s3 + $0x1330] ss:$24 sps:$4 sm:$0xff]  }
 0x864   :  { %16916 = vmatpush1.bf16.msra.mxu0 %v21053_v40  ;;  %v21128_v40 = vld [vmem:[%s28988_s3 + $0x1e98] ss:$24 sps:$4 sm:$0xff]  }
 0x865   :  { %16582 = vmatpush1.bf16.msra.mxu1 %v21056_v33  ;;  %16917 = vmatprep.subr.bf16.mxu0 %v21061_v35  ;;  %v21133_v33 = vld [vmem:[%s28988_s3 + $0x1364] ss:$24 sps:$4 sm:$0xff]  }
 0x866   :  { %16583 = vmatprep.subr.bf16.mxu1 %v21064_v36  ;;  %v21136_v35 = vld [vmem:[%s28988_s3 + $0x1ecc] ss:$24 sps:$4 sm:$0xff]   ;;  %v21131_v36 = vld [vmem:[%s28988_s3 + $0x1360] ss:$24 sps:$4 sm:$0xff]  }
 0x868   :  { %16918 = vmatpush1.bf16.msra.mxu0 %v21059_v24  ;;  %v21134_v24 = vld [vmem:[%s28988_s3 + $0x1ec8] ss:$24 sps:$4 sm:$0xff]  }
 0x869   :  { %16584 = vmatpush1.bf16.msra.mxu1 %v21062_v22  ;;  %16919 = vmatprep.subr.bf16.mxu0 %v21067_v38  ;;  %v21139_v22 = vld [vmem:[%s28988_s3 + $0x1394] ss:$24 sps:$4 sm:$0xff]  }
 0x86a   :  { %16585 = vmatprep.subr.bf16.mxu1 %v21070_v60  ;;  %v21142_v38 = vld [vmem:[%s28988_s3 + $0x1efc] ss:$24 sps:$4 sm:$0xff]   ;;  %v21137_v60 = vld [vmem:[%s28988_s3 + $0x1390] ss:$24 sps:$4 sm:$0xff]  }
 0x86c   :  { %16920 = vmatpush1.bf16.msra.mxu0 %v21065_v4  ;;  %v21140_v4 = vld [vmem:[%s28988_s3 + $0x1ef8] ss:$24 sps:$4 sm:$0xff]  }
 0x86d   :  { %16586 = vmatpush1.bf16.msra.mxu1 %v21068_v23  ;;  %16921 = vmatprep.subr.bf16.mxu0 %v21073_v58  ;;  %v21145_v23 = vld [vmem:[%s28988_s3 + $0x13c4] ss:$24 sps:$4 sm:$0xff]  }
 0x86e   :  { %16587 = vmatprep.subr.bf16.mxu1 %v21076_v53  ;;  %v21148_v58 = vld [vmem:[%s28988_s3 + $0x1f2c] ss:$24 sps:$4 sm:$0xff]   ;;  %v21143_v53 = vld [vmem:[%s28988_s3 + $0x13c0] ss:$24 sps:$4 sm:$0xff]  }
 0x870   :  { %16922 = vmatpush1.bf16.msra.mxu0 %v21071_v52  ;;  %v21146_v52 = vld [vmem:[%s28988_s3 + $0x1f28] ss:$24 sps:$4 sm:$0xff]  }
 0x871   :  { %16588 = vmatpush1.bf16.msra.mxu1 %v21074_v21  ;;  %16923 = vmatprep.subr.bf16.mxu0 %v21079_v50  ;;  %v21151_v21 = vld [vmem:[%s28988_s3 + $0x13f4] ss:$24 sps:$4 sm:$0xff]  }
 0x872   :  { %16589 = vmatprep.subr.bf16.mxu1 %v21082_v9  ;;  %v21154_v50 = vld [vmem:[%s28988_s3 + $0x1f5c] ss:$24 sps:$4 sm:$0xff]   ;;  %v21149_v9 = vld [vmem:[%s28988_s3 + $0x13f0] ss:$24 sps:$4 sm:$0xff]  }
 0x874   :  { %16924 = vmatpush1.bf16.msra.mxu0 %v21077_v7  ;;  %v21152_v7 = vld [vmem:[%s28988_s3 + $0x1f58] ss:$24 sps:$4 sm:$0xff]  }
 0x875   :  { %16590 = vmatpush1.bf16.msra.mxu1 %v21080_v32  ;;  %16925 = vmatprep.subr.bf16.mxu0 %v21085_v18  ;;  %v21157_v32 = vld [vmem:[%s28988_s3 + $0x1424] ss:$24 sps:$4 sm:$0xff]  }
 0x876   :  { %16591 = vmatprep.subr.bf16.mxu1 %v21088_v27  ;;  %v21160_v18 = vld [vmem:[%s28988_s3 + $0x1f8c] ss:$24 sps:$4 sm:$0xff]   ;;  %v21155_v27 = vld [vmem:[%s28988_s3 + $0x1420] ss:$24 sps:$4 sm:$0xff]  }
 0x878   :  { %16926 = vmatpush1.bf16.msra.mxu0 %v21083_v15  ;;  %v21158_v15 = vld [vmem:[%s28988_s3 + $0x1f88] ss:$24 sps:$4 sm:$0xff]  }
 0x879   :  { %16592 = vmatpush1.bf16.msra.mxu1 %v21086_v59  ;;  %16936 = vmatprep.subr.bf16.mxu0 %v21091_v5  ;;  %v21163_v59 = vld [vmem:[%s28988_s3 + $0x1454] ss:$24 sps:$4 sm:$0xff]  }
 0x87a   :  { %16593 = vmatprep.subr.bf16.mxu1 %v21094_v8  ;;  %v21166_v5 = vld [vmem:[%s28988_s3 + $0x1fbc] ss:$24 sps:$4 sm:$0xff]   ;;  %v21161_v8 = vld [vmem:[%s28988_s3 + $0x1450] ss:$24 sps:$4 sm:$0xff]  }
 0x87b   :  { %16928 = vmatmul.mubr.bf16.vlgmr.msra.gmra.mrb[20].mxu0 %v25423_v20  ;;  %v21106_v20 = vld [vmem:[%s28988_s3 + $0x1ddc] ss:$24 sps:$4 sm:$0xff]  }
 0x87c   :  { %16937 = vmatpush1.bf16.msra.mxu0 %v21089_v11  ;;  %16968 = vmatprep.mubr.bf16.mxu0 %v25429_v61  ;;  %v21101_v61 = vld [vmem:[%s28988_s3 + $0x1270] ss:$24 sps:$4 sm:$0xff]  }
 0x87d   :  { %16594 = vmatpush1.bf16.msra.mxu1 %v21092_v45  ;;  %16938 = vmatprep.subr.bf16.mxu0 %v21097_v10  ;;  %v21164_v11 = vld [vmem:[%s28988_s3 + $0x1fb8] ss:$24 sps:$4 sm:$0xff]   ;;  %v21169_v45 = vld [vmem:[%s28988_s3 + $0x1484] ss:$24 sps:$4 sm:$0xff]  }
 0x87e   :  { %16595 = vmatprep.subr.bf16.mxu1 %v21100_v41  ;;  %v21172_v10 = vld [vmem:[%s28988_s3 + $0x1fec] ss:$24 sps:$4 sm:$0xff]   ;;  %v21167_v41 = vld [vmem:[%s28988_s3 + $0x1480] ss:$24 sps:$4 sm:$0xff]  }
 0x880   :  { %16939 = vmatpush1.bf16.msra.mxu0 %v21095_v3  ;;  %v21170_v3 = vld [vmem:[%s28988_s3 + $0x1fe8] ss:$24 sps:$4 sm:$0xff]  }
 0x881   :  { %16596 = vmatpush1.bf16.msra.mxu1 %v21098_v6  ;;  %16940 = vmatprep.subr.bf16.mxu0 %v21103_v57  ;;  %v21175_v6 = vld [vmem:[%s28988_s3 + $0x14b4] ss:$24 sps:$4 sm:$0xff]  }
 0x882   :  { %16597 = vmatprep.subr.bf16.mxu1 %v21106_v20  ;;  %v21178_v57 = vld [vmem:[%s28988_s3 + $0x201c] ss:$24 sps:$4 sm:$0xff]   ;;  %v21173_v20 = vld [vmem:[%s28988_s3 + $0x14b0] ss:$24 sps:$4 sm:$0xff]  }
 0x884   :  { %16941 = vmatpush1.bf16.msra.mxu0 %v21101_v61  ;;  %v21176_v61 = vld [vmem:[%s28988_s3 + $0x2018] ss:$24 sps:$4 sm:$0xff]  }
 0x885   :  { %16598 = vmatpush1.bf16.msra.mxu1 %v21104_v16  ;;  %16942 = vmatprep.subr.bf16.mxu0 %v21109_v48  ;;  %v21181_v16 = vld [vmem:[%s28988_s3 + $0x14e4] ss:$24 sps:$4 sm:$0xff]  }
 0x886   :  { %16608 = vmatprep.subr.bf16.mxu1 %v21112_v26  ;;  %v21184_v48 = vld [vmem:[%s28988_s3 + $0x204c] ss:$24 sps:$4 sm:$0xff]   ;;  %v21179_v26 = vld [vmem:[%s28988_s3 + $0x14e0] ss:$24 sps:$4 sm:$0xff]  }
 0x888   :  { %16943 = vmatpush1.bf16.msra.mxu0 %v21107_v0  ;;  %16600 = vmatmul.mubr.bf16.vlgmr.msra.gmra.mrb[32].mxu1 %v26466_v62  ;;  %v21182_v0 = vld [vmem:[%s28988_s3 + $0x2048] ss:$24 sps:$4 sm:$0xff]  }
 0x889   :  { %16609 = vmatpush1.bf16.msra.mxu1 %v21110_v19  ;;  %16640 = vmatprep.mubr.bf16.mxu1 %v26475_v37  ;;  %v21187_v19 = vld [vmem:[%s28988_s3 + $0x1514] ss:$24 sps:$4 sm:$0xff]  }
 0x88a   :  { %16944 = vmatprep.subr.bf16.mxu0 %v21115_v13  ;;  %16610 = vmatprep.subr.bf16.mxu1 %v21118_v28  ;;  %v21190_v13 = vld [vmem:[%s28988_s3 + $0x207c] ss:$24 sps:$4 sm:$0xff]   ;;  %v21185_v28 = vld [vmem:[%s28988_s3 + $0x1510] ss:$24 sps:$4 sm:$0xff]  }
 0x88c   :  { %16945 = vmatpush1.bf16.msra.mxu0 %v21113_v29  ;;  %v21188_v29 = vld [vmem:[%s28988_s3 + $0x2078] ss:$24 sps:$4 sm:$0xff]  }
 0x88d   :  { %16611 = vmatpush1.bf16.msra.mxu1 %v21116_v30  ;;  %16946 = vmatprep.subr.bf16.mxu0 %v21121_v63  ;;  %v21193_v30 = vld [vmem:[%s28988_s3 + $0x1544] ss:$24 sps:$4 sm:$0xff]  }
 0x88e   :  { %16612 = vmatprep.subr.bf16.mxu1 %v21124_v39  ;;  %v21196_v63 = vld [vmem:[%s28988_s3 + $0x20ac] ss:$24 sps:$4 sm:$0xff]   ;;  %v21191_v39 = vld [vmem:[%s28988_s3 + $0x1540] ss:$24 sps:$4 sm:$0xff]  }
 0x890   :  { %16947 = vmatpush1.bf16.msra.mxu0 %v21119_v56  ;;  %v21194_v56 = vld [vmem:[%s28988_s3 + $0x20a8] ss:$24 sps:$4 sm:$0xff]  }
 0x891   :  { %16613 = vmatpush1.bf16.msra.mxu1 %v21122_v51  ;;  %16948 = vmatprep.subr.bf16.mxu0 %v21127_v17  ;;  %v21199_v51 = vld [vmem:[%s28988_s3 + $0x1574] ss:$24 sps:$4 sm:$0xff]   ;;  %v21200_v17 = vld [vmem:[%s28988_s3 + $0x20d8] ss:$24 sps:$4 sm:$0xff]  }
 0x892   :  { %16614 = vmatprep.subr.bf16.mxu1 %v21130_v25  ;;  %v21205_v25 = vld [vmem:[%s28988_s3 + $0x15a4] ss:$24 sps:$4 sm:$0xff]  }
 0x894   :  { %16949 = vmatpush1.bf16.msra.mxu0 %v21125_v14  ;;  %v21208_v14 = vld [vmem:[%s28988_s3 + $0x210c] ss:$24 sps:$4 sm:$0xff]  }
 0x895   :  { %16615 = vmatpush1.bf16.msra.mxu1 %v21128_v40  ;;  %16950 = vmatprep.subr.bf16.mxu0 %v21133_v33  ;;  %v21203_v40 = vld [vmem:[%s28988_s3 + $0x15a0] ss:$24 sps:$4 sm:$0xff]  }
 0x896   :  { %16616 = vmatprep.subr.bf16.mxu1 %v21136_v35  ;;  %v21206_v33 = vld [vmem:[%s28988_s3 + $0x2108] ss:$24 sps:$4 sm:$0xff]   ;;  %v21211_v35 = vld [vmem:[%s28988_s3 + $0x15d4] ss:$24 sps:$4 sm:$0xff]  }
 0x898   :  { %16951 = vmatpush1.bf16.msra.mxu0 %v21131_v36  ;;  %v21214_v36 = vld [vmem:[%s28988_s3 + $0x213c] ss:$24 sps:$4 sm:$0xff]  }
 0x899   :  { %16617 = vmatpush1.bf16.msra.mxu1 %v21134_v24  ;;  %16952 = vmatprep.subr.bf16.mxu0 %v21139_v22  ;;  %v21209_v24 = vld [vmem:[%s28988_s3 + $0x15d0] ss:$24 sps:$4 sm:$0xff]  }
 0x89a   :  { %16618 = vmatprep.subr.bf16.mxu1 %v21142_v38  ;;  %v21212_v22 = vld [vmem:[%s28988_s3 + $0x2138] ss:$24 sps:$4 sm:$0xff]   ;;  %v21217_v38 = vld [vmem:[%s28988_s3 + $0x1604] ss:$24 sps:$4 sm:$0xff]  }
 0x89c   :  { %16953 = vmatpush1.bf16.msra.mxu0 %v21137_v60  ;;  %v21220_v60 = vld [vmem:[%s28988_s3 + $0x216c] ss:$24 sps:$4 sm:$0xff]  }
 0x89d   :  { %16619 = vmatpush1.bf16.msra.mxu1 %v21140_v4  ;;  %16954 = vmatprep.subr.bf16.mxu0 %v21145_v23  ;;  %v21215_v4 = vld [vmem:[%s28988_s3 + $0x1600] ss:$24 sps:$4 sm:$0xff]  }
 0x89e   :  { %16620 = vmatprep.subr.bf16.mxu1 %v21148_v58  ;;  %v21218_v23 = vld [vmem:[%s28988_s3 + $0x2168] ss:$24 sps:$4 sm:$0xff]   ;;  %v21223_v58 = vld [vmem:[%s28988_s3 + $0x1634] ss:$24 sps:$4 sm:$0xff]  }
 0x8a0   :  { %16955 = vmatpush1.bf16.msra.mxu0 %v21143_v53  ;;  %v21226_v53 = vld [vmem:[%s28988_s3 + $0x219c] ss:$24 sps:$4 sm:$0xff]  }
 0x8a1   :  { %16621 = vmatpush1.bf16.msra.mxu1 %v21146_v52  ;;  %16956 = vmatprep.subr.bf16.mxu0 %v21151_v21  ;;  %v21221_v52 = vld [vmem:[%s28988_s3 + $0x1630] ss:$24 sps:$4 sm:$0xff]  }
 0x8a2   :  { %16622 = vmatprep.subr.bf16.mxu1 %v21154_v50  ;;  %v21224_v21 = vld [vmem:[%s28988_s3 + $0x2198] ss:$24 sps:$4 sm:$0xff]   ;;  %v21229_v50 = vld [vmem:[%s28988_s3 + $0x1664] ss:$24 sps:$4 sm:$0xff]  }
 0x8a4   :  { %16957 = vmatpush1.bf16.msra.mxu0 %v21149_v9  ;;  %v21232_v9 = vld [vmem:[%s28988_s3 + $0x21cc] ss:$24 sps:$4 sm:$0xff]  }
 0x8a5   :  { %16623 = vmatpush1.bf16.msra.mxu1 %v21152_v7  ;;  %16958 = vmatprep.subr.bf16.mxu0 %v21157_v32  ;;  %v21227_v7 = vld [vmem:[%s28988_s3 + $0x1660] ss:$24 sps:$4 sm:$0xff]  }
 0x8a6   :  { %16624 = vmatprep.subr.bf16.mxu1 %v21160_v18  ;;  %v21230_v32 = vld [vmem:[%s28988_s3 + $0x21c8] ss:$24 sps:$4 sm:$0xff]   ;;  %v21235_v18 = vld [vmem:[%s28988_s3 + $0x1694] ss:$24 sps:$4 sm:$0xff]  }
 0x8a8   :  { %16959 = vmatpush1.bf16.msra.mxu0 %v21155_v27  ;;  %v21238_v27 = vld [vmem:[%s28988_s3 + $0x21fc] ss:$24 sps:$4 sm:$0xff]  }
 0x8a9   :  { %16625 = vmatpush1.bf16.msra.mxu1 %v21158_v15  ;;  %16960 = vmatprep.subr.bf16.mxu0 %v21163_v59  ;;  %v21233_v15 = vld [vmem:[%s28988_s3 + $0x1690] ss:$24 sps:$4 sm:$0xff]  }
 0x8aa   :  { %16626 = vmatprep.subr.bf16.mxu1 %v21166_v5  ;;  %v21236_v59 = vld [vmem:[%s28988_s3 + $0x21f8] ss:$24 sps:$4 sm:$0xff]   ;;  %v21241_v5 = vld [vmem:[%s28988_s3 + $0x16c4] ss:$24 sps:$4 sm:$0xff]  }
 0x8ac   :  { %16961 = vmatpush1.bf16.msra.mxu0 %v21161_v8  ;;  %v21244_v8 = vld [vmem:[%s28988_s3 + $0x222c] ss:$24 sps:$4 sm:$0xff]  }
 0x8ad   :  { %16627 = vmatpush1.bf16.msra.mxu1 %v21164_v11  ;;  %16962 = vmatprep.subr.bf16.mxu0 %v21169_v45  ;;  %v21239_v11 = vld [vmem:[%s28988_s3 + $0x16c0] ss:$24 sps:$4 sm:$0xff]  }
 0x8ae   :  { %16628 = vmatprep.subr.bf16.mxu1 %v21172_v10  ;;  %v21242_v45 = vld [vmem:[%s28988_s3 + $0x2228] ss:$24 sps:$4 sm:$0xff]   ;;  %v21247_v10 = vld [vmem:[%s28988_s3 + $0x16f4] ss:$24 sps:$4 sm:$0xff]  }
 0x8b0   :  { %16963 = vmatpush1.bf16.msra.mxu0 %v21167_v41  ;;  %v21250_v41 = vld [vmem:[%s28988_s3 + $0x225c] ss:$24 sps:$4 sm:$0xff]  }
 0x8b1   :  { %16629 = vmatpush1.bf16.msra.mxu1 %v21170_v3  ;;  %16964 = vmatprep.subr.bf16.mxu0 %v21175_v6  ;;  %v21245_v3 = vld [vmem:[%s28988_s3 + $0x16f0] ss:$24 sps:$4 sm:$0xff]  }
 0x8b2   :  { %16630 = vmatprep.subr.bf16.mxu1 %v21178_v57  ;;  %v21248_v6 = vld [vmem:[%s28988_s3 + $0x2258] ss:$24 sps:$4 sm:$0xff]   ;;  %v21253_v57 = vld [vmem:[%s28988_s3 + $0x1724] ss:$24 sps:$4 sm:$0xff]  }
 0x8b4   :  { %16965 = vmatpush1.bf16.msra.mxu0 %v21173_v20  ;;  %v21256_v20 = vld [vmem:[%s28988_s3 + $0x228c] ss:$24 sps:$4 sm:$0xff]  }
 0x8b5   :  { %16631 = vmatpush1.bf16.msra.mxu1 %v21176_v61  ;;  %16966 = vmatprep.subr.bf16.mxu0 %v21181_v16  ;;  %v21251_v61 = vld [vmem:[%s28988_s3 + $0x1720] ss:$24 sps:$4 sm:$0xff]  }
 0x8b6   :  { %16632 = vmatprep.subr.bf16.mxu1 %v21184_v48  ;;  %v21254_v16 = vld [vmem:[%s28988_s3 + $0x2288] ss:$24 sps:$4 sm:$0xff]   ;;  %v21259_v48 = vld [vmem:[%s28988_s3 + $0x1754] ss:$24 sps:$4 sm:$0xff]  }
 0x8b8   :  { %16967 = vmatpush1.bf16.msra.mxu0 %v21179_v26  ;;  %v21262_v26 = vld [vmem:[%s28988_s3 + $0x22bc] ss:$24 sps:$4 sm:$0xff]  }
 0x8b9   :  { %16633 = vmatpush1.bf16.msra.mxu1 %v21182_v0  ;;  %16977 = vmatprep.subr.bf16.mxu0 %v21187_v19  ;;  %v21257_v0 = vld [vmem:[%s28988_s3 + $0x1750] ss:$24 sps:$4 sm:$0xff]  }
 0x8ba   :  { %16634 = vmatprep.subr.bf16.mxu1 %v21190_v13  ;;  %v21260_v19 = vld [vmem:[%s28988_s3 + $0x22b8] ss:$24 sps:$4 sm:$0xff]   ;;  %v21265_v13 = vld [vmem:[%s28988_s3 + $0x1784] ss:$24 sps:$4 sm:$0xff]  }
 0x8bb   :  { %16969 = vmatmul.mubr.bf16.vlgmr.msra.gmra.mrb[20].mxu0 %v25633_v34  ;;  %v21202_v34 = vld [vmem:[%s28988_s3 + $0x20dc] ss:$24 sps:$4 sm:$0xff]  }
 0x8bc   :  { %16978 = vmatpush1.bf16.msra.mxu0 %v21185_v28  ;;  %17009 = vmatprep.mubr.bf16.mxu0 %v25950_v1  ;;  %v21197_v1 = vld [vmem:[%s28988_s3 + $0x1570] ss:$24 sps:$4 sm:$0xff]   ;;  %v21268_v28 = vld [vmem:[%s28988_s3 + $0x22ec] ss:$24 sps:$4 sm:$0xff]  }
 0x8bd   :  { %16635 = vmatpush1.bf16.msra.mxu1 %v21188_v29  ;;  %16979 = vmatprep.subr.bf16.mxu0 %v21193_v30  ;;  %v21263_v29 = vld [vmem:[%s28988_s3 + $0x1780] ss:$24 sps:$4 sm:$0xff]  }
 0x8be   :  { %16636 = vmatprep.subr.bf16.mxu1 %v21196_v63  ;;  %v21266_v30 = vld [vmem:[%s28988_s3 + $0x22e8] ss:$24 sps:$4 sm:$0xff]   ;;  %v21271_v63 = vld [vmem:[%s28988_s3 + $0x17b4] ss:$24 sps:$4 sm:$0xff]  }
 0x8c0   :  { %16980 = vmatpush1.bf16.msra.mxu0 %v21191_v39  ;;  %v21274_v39 = vld [vmem:[%s28988_s3 + $0x231c] ss:$24 sps:$4 sm:$0xff]  }
 0x8c1   :  { %16637 = vmatpush1.bf16.msra.mxu1 %v21194_v56  ;;  %16981 = vmatprep.subr.bf16.mxu0 %v21199_v51  ;;  %v21269_v56 = vld [vmem:[%s28988_s3 + $0x17b0] ss:$24 sps:$4 sm:$0xff]  }
 0x8c2   :  { %16638 = vmatprep.subr.bf16.mxu1 %v21202_v34  ;;  %v21272_v51 = vld [vmem:[%s28988_s3 + $0x2318] ss:$24 sps:$4 sm:$0xff]   ;;  %v21277_v34 = vld [vmem:[%s28988_s3 + $0x17e4] ss:$24 sps:$4 sm:$0xff]  }
 0x8c4   :  { %16982 = vmatpush1.bf16.msra.mxu0 %v21197_v1  ;;  %v21280_v1 = vld [vmem:[%s28988_s3 + $0x234c] ss:$24 sps:$4 sm:$0xff]  }
 0x8c5   :  { %16639 = vmatpush1.bf16.msra.mxu1 %v21200_v17  ;;  %16983 = vmatprep.subr.bf16.mxu0 %v21205_v25  ;;  %v21275_v17 = vld [vmem:[%s28988_s3 + $0x17e0] ss:$24 sps:$4 sm:$0xff]  }
 0x8c6   :  { %16649 = vmatprep.subr.bf16.mxu1 %v21208_v14  ;;  %v21278_v25 = vld [vmem:[%s28988_s3 + $0x2348] ss:$24 sps:$4 sm:$0xff]   ;;  %v21283_v14 = vld [vmem:[%s28988_s3 + $0x1814] ss:$24 sps:$4 sm:$0xff]  }
 0x8c8   :  { %16984 = vmatpush1.bf16.msra.mxu0 %v21203_v40  ;;  %16641 = vmatmul.mubr.bf16.vlgmr.msra.gmra.mrb[32].mxu1 %v26681_v55  ;;  %v21286_v40 = vld [vmem:[%s28988_s3 + $0x237c] ss:$24 sps:$4 sm:$0xff]  }
 0x8c9   :  { %16650 = vmatpush1.bf16.msra.mxu1 %v21206_v33  ;;  %16681 = vmatprep.mubr.bf16.mxu1 %v26977_v31  ;;  %v21281_v33 = vld [vmem:[%s28988_s3 + $0x1810] ss:$24 sps:$4 sm:$0xff]  }
 0x8ca   :  { %16985 = vmatprep.subr.bf16.mxu0 %v21211_v35  ;;  %16651 = vmatprep.subr.bf16.mxu1 %v21214_v36  ;;  %v21284_v35 = vld [vmem:[%s28988_s3 + $0x2378] ss:$24 sps:$4 sm:$0xff]   ;;  %v21289_v36 = vld [vmem:[%s28988_s3 + $0x1844] ss:$24 sps:$4 sm:$0xff]  }
 0x8cc   :  { %16986 = vmatpush1.bf16.msra.mxu0 %v21209_v24  ;;  %v21292_v24 = vld [vmem:[%s28988_s3 + $0x23ac] ss:$24 sps:$4 sm:$0xff]  }
 0x8cd   :  { %16652 = vmatpush1.bf16.msra.mxu1 %v21212_v22  ;;  %16987 = vmatprep.subr.bf16.mxu0 %v21217_v38  ;;  %v21287_v22 = vld [vmem:[%s28988_s3 + $0x1840] ss:$24 sps:$4 sm:$0xff]  }
 0x8ce   :  { %16653 = vmatprep.subr.bf16.mxu1 %v21220_v60  ;;  %v21290_v38 = vld [vmem:[%s28988_s3 + $0x23a8] ss:$24 sps:$4 sm:$0xff]   ;;  %v21295_v60 = vld [vmem:[%s28988_s3 + $0x1874] ss:$24 sps:$4 sm:$0xff]  }
 0x8d0   :  { %16988 = vmatpush1.bf16.msra.mxu0 %v21215_v4  ;;  %v21296_v4 = vld [vmem:[%s28988_s3 + $0x23d8] ss:$24 sps:$4 sm:$0xff]  }
 0x8d1   :  { %16654 = vmatpush1.bf16.msra.mxu1 %v21218_v23  ;;  %16989 = vmatprep.subr.bf16.mxu0 %v21223_v58  ;;  %v21301_v23 = vld [vmem:[%s28988_s3 + $0x18a4] ss:$24 sps:$4 sm:$0xff]   ;;  %v21299_v58 = vld [vmem:[%s28988_s3 + $0x18a0] ss:$24 sps:$4 sm:$0xff]  }
 0x8d2   :  { %16655 = vmatprep.subr.bf16.mxu1 %v21226_v53  ;;  %v21304_v53 = vld [vmem:[%s28988_s3 + $0x18d4] ss:$24 sps:$4 sm:$0xff]  }
 0x8d4   :  { %16990 = vmatpush1.bf16.msra.mxu0 %v21221_v52  ;;  %v21302_v52 = vld [vmem:[%s28988_s3 + $0x18d0] ss:$24 sps:$4 sm:$0xff]  }
 0x8d5   :  { %16656 = vmatpush1.bf16.msra.mxu1 %v21224_v21  ;;  %16991 = vmatprep.subr.bf16.mxu0 %v21229_v50  ;;  %v21307_v21 = vld [vmem:[%s28988_s3 + $0x1904] ss:$24 sps:$4 sm:$0xff]   ;;  %v21305_v50 = vld [vmem:[%s28988_s3 + $0x1900] ss:$24 sps:$4 sm:$0xff]  }
 0x8d6   :  { %16657 = vmatprep.subr.bf16.mxu1 %v21232_v9  ;;  %v21310_v9 = vld [vmem:[%s28988_s3 + $0x1934] ss:$24 sps:$4 sm:$0xff]  }
 0x8d8   :  { %16992 = vmatpush1.bf16.msra.mxu0 %v21227_v7  ;;  %v21308_v7 = vld [vmem:[%s28988_s3 + $0x1930] ss:$24 sps:$4 sm:$0xff]  }
 0x8d9   :  { %16658 = vmatpush1.bf16.msra.mxu1 %v21230_v32  ;;  %16993 = vmatprep.subr.bf16.mxu0 %v21235_v18  ;;  %v21313_v32 = vld [vmem:[%s28988_s3 + $0x1964] ss:$24 sps:$4 sm:$0xff]   ;;  %v21311_v18 = vld [vmem:[%s28988_s3 + $0x1960] ss:$24 sps:$4 sm:$0xff]  }
 0x8da   :  { %16659 = vmatprep.subr.bf16.mxu1 %v21238_v27  ;;  %v21316_v27 = vld [vmem:[%s28988_s3 + $0x1994] ss:$24 sps:$4 sm:$0xff]  }
 0x8dc   :  { %16994 = vmatpush1.bf16.msra.mxu0 %v21233_v15  ;;  %v21314_v15 = vld [vmem:[%s28988_s3 + $0x1990] ss:$24 sps:$4 sm:$0xff]  }
 0x8dd   :  { %16660 = vmatpush1.bf16.msra.mxu1 %v21236_v59  ;;  %16995 = vmatprep.subr.bf16.mxu0 %v21241_v5  ;;  %v21319_v59 = vld [vmem:[%s28988_s3 + $0x19c4] ss:$24 sps:$4 sm:$0xff]   ;;  %v21317_v5 = vld [vmem:[%s28988_s3 + $0x19c0] ss:$24 sps:$4 sm:$0xff]  }
 0x8de   :  { %16661 = vmatprep.subr.bf16.mxu1 %v21244_v8  ;;  %v21322_v8 = vld [vmem:[%s28988_s3 + $0x19f4] ss:$24 sps:$4 sm:$0xff]  }
 0x8e0   :  { %16996 = vmatpush1.bf16.msra.mxu0 %v21239_v11  ;;  %v21320_v11 = vld [vmem:[%s28988_s3 + $0x19f0] ss:$24 sps:$4 sm:$0xff]  }
 0x8e1   :  { %16662 = vmatpush1.bf16.msra.mxu1 %v21242_v45  ;;  %16997 = vmatprep.subr.bf16.mxu0 %v21247_v10  ;;  %v21325_v45 = vld [vmem:[%s28988_s3 + $0x1a24] ss:$24 sps:$4 sm:$0xff]   ;;  %v21323_v10 = vld [vmem:[%s28988_s3 + $0x1a20] ss:$24 sps:$4 sm:$0xff]  }
 0x8e2   :  { %16663 = vmatprep.subr.bf16.mxu1 %v21250_v41  ;;  %v21328_v41 = vld [vmem:[%s28988_s3 + $0x1a54] ss:$24 sps:$4 sm:$0xff]  }
 0x8e4   :  { %16998 = vmatpush1.bf16.msra.mxu0 %v21245_v3  ;;  %v21326_v3 = vld [vmem:[%s28988_s3 + $0x1a50] ss:$24 sps:$4 sm:$0xff]  }
 0x8e5   :  { %16664 = vmatpush1.bf16.msra.mxu1 %v21248_v6  ;;  %16999 = vmatprep.subr.bf16.mxu0 %v21253_v57  ;;  %v21331_v6 = vld [vmem:[%s28988_s3 + $0x1a84] ss:$24 sps:$4 sm:$0xff]   ;;  %v21329_v57 = vld [vmem:[%s28988_s3 + $0x1a80] ss:$24 sps:$4 sm:$0xff]  }
 0x8e6   :  { %16665 = vmatprep.subr.bf16.mxu1 %v21256_v20  ;;  %v21334_v20 = vld [vmem:[%s28988_s3 + $0x1ab4] ss:$24 sps:$4 sm:$0xff]  }
 0x8e8   :  { %17000 = vmatpush1.bf16.msra.mxu0 %v21251_v61  ;;  %v21332_v61 = vld [vmem:[%s28988_s3 + $0x1ab0] ss:$24 sps:$4 sm:$0xff]  }
 0x8e9   :  { %16666 = vmatpush1.bf16.msra.mxu1 %v21254_v16  ;;  %17001 = vmatprep.subr.bf16.mxu0 %v21259_v48  ;;  %v21337_v16 = vld [vmem:[%s28988_s3 + $0x1ae4] ss:$24 sps:$4 sm:$0xff]   ;;  %v21335_v48 = vld [vmem:[%s28988_s3 + $0x1ae0] ss:$24 sps:$4 sm:$0xff]  }
 0x8ea   :  { %16667 = vmatprep.subr.bf16.mxu1 %v21262_v26  ;;  %v21340_v26 = vld [vmem:[%s28988_s3 + $0x1b14] ss:$24 sps:$4 sm:$0xff]  }
 0x8ec   :  { %17002 = vmatpush1.bf16.msra.mxu0 %v21257_v0  ;;  %v21338_v0 = vld [vmem:[%s28988_s3 + $0x1b10] ss:$24 sps:$4 sm:$0xff]  }
 0x8ed   :  { %16668 = vmatpush1.bf16.msra.mxu1 %v21260_v19  ;;  %17003 = vmatprep.subr.bf16.mxu0 %v21265_v13  ;;  %v21343_v19 = vld [vmem:[%s28988_s3 + $0x1b44] ss:$24 sps:$4 sm:$0xff]   ;;  %v21341_v13 = vld [vmem:[%s28988_s3 + $0x1b40] ss:$24 sps:$4 sm:$0xff]  }
 0x8ee   :  { %16669 = vmatprep.subr.bf16.mxu1 %v21268_v28  ;;  %v21346_v28 = vld [vmem:[%s28988_s3 + $0x1b74] ss:$24 sps:$4 sm:$0xff]  }
 0x8f0   :  { %17004 = vmatpush1.bf16.msra.mxu0 %v21263_v29  ;;  %v21344_v29 = vld [vmem:[%s28988_s3 + $0x1b70] ss:$24 sps:$4 sm:$0xff]  }
 0x8f1   :  { %16670 = vmatpush1.bf16.msra.mxu1 %v21266_v30  ;;  %17005 = vmatprep.subr.bf16.mxu0 %v21271_v63  ;;  %v21352_v30 = vld [vmem:[%s28988_s3 + $0x1bd4] ss:$24 sps:$4 sm:$0xff]   ;;  %v21350_v63 = vld [vmem:[%s28988_s3 + $0x1bd0] ss:$24 sps:$4 sm:$0xff]  }
 0x8f2   :  { %16671 = vmatprep.subr.bf16.mxu1 %v21274_v39  ;;  %v21355_v39 = vld [vmem:[%s28988_s3 + $0x1c04] ss:$24 sps:$4 sm:$0xff]  }
 0x8f4   :  { %17006 = vmatpush1.bf16.msra.mxu0 %v21269_v56  ;;  %v21353_v56 = vld [vmem:[%s28988_s3 + $0x1c00] ss:$24 sps:$4 sm:$0xff]  }
 0x8f5   :  { %16672 = vmatpush1.bf16.msra.mxu1 %v21272_v51  ;;  %17007 = vmatprep.subr.bf16.mxu0 %v21277_v34  ;;  %v21358_v51 = vld [vmem:[%s28988_s3 + $0x1c34] ss:$24 sps:$4 sm:$0xff]   ;;  %v21356_v34 = vld [vmem:[%s28988_s3 + $0x1c30] ss:$24 sps:$4 sm:$0xff]  }
 0x8f6   :  { %16673 = vmatprep.subr.bf16.mxu1 %v21280_v1  ;;  %v21361_v1 = vld [vmem:[%s28988_s3 + $0x1c64] ss:$24 sps:$4 sm:$0xff]  }
 0x8f8   :  { %17008 = vmatpush1.bf16.msra.mxu0 %v21275_v17  ;;  %v21359_v17 = vld [vmem:[%s28988_s3 + $0x1c60] ss:$24 sps:$4 sm:$0xff]  }
 0x8f9   :  { %16674 = vmatpush1.bf16.msra.mxu1 %v21278_v25  ;;  %17018 = vmatprep.subr.bf16.mxu0 %v21283_v14  ;;  %v21364_v25 = vld [vmem:[%s28988_s3 + $0x1c94] ss:$24 sps:$4 sm:$0xff]   ;;  %v21362_v14 = vld [vmem:[%s28988_s3 + $0x1c90] ss:$24 sps:$4 sm:$0xff]  }
 0x8fa   :  { %16675 = vmatprep.subr.bf16.mxu1 %v21286_v40  ;;  %v21367_v40 = vld [vmem:[%s28988_s3 + $0x1cc4] ss:$24 sps:$4 sm:$0xff]  }
 0x8fb   :  { %17010 = vmatmul.mubr.bf16.vlgmr.msra.gmra.mrb[20].mxu0 %v25955_v46  ;;  %v21298_v46 = vld [vmem:[%s28988_s3 + $0x23dc] ss:$24 sps:$4 sm:$0xff]  }
 0x8fc   :  { %17019 = vmatpush1.bf16.msra.mxu0 %v21281_v33  ;;  %17050 = vmatprep.mubr.bf16.mxu0 %v25961_v43  ;;  %v21293_v43 = vld [vmem:[%s28988_s3 + $0x1870] ss:$24 sps:$4 sm:$0xff]   ;;  %v21365_v33 = vld [vmem:[%s28988_s3 + $0x1cc0] ss:$24 sps:$4 sm:$0xff]  }
 0x8fd   :  { %16676 = vmatpush1.bf16.msra.mxu1 %v21284_v35  ;;  %17020 = vmatprep.subr.bf16.mxu0 %v21289_v36  ;;  %v21370_v35 = vld [vmem:[%s28988_s3 + $0x1cf4] ss:$24 sps:$4 sm:$0xff]   ;;  %v21368_v36 = vld [vmem:[%s28988_s3 + $0x1cf0] ss:$24 sps:$4 sm:$0xff]  }
 0x8fe   :  { %16677 = vmatprep.subr.bf16.mxu1 %v21292_v24  ;;  %v21373_v24 = vld [vmem:[%s28988_s3 + $0x1d24] ss:$24 sps:$4 sm:$0xff]  }
 0x900   :  { %17021 = vmatpush1.bf16.msra.mxu0 %v21287_v22  ;;  %v21371_v22 = vld [vmem:[%s28988_s3 + $0x1d20] ss:$24 sps:$4 sm:$0xff]  }
 0x901   :  { %16678 = vmatpush1.bf16.msra.mxu1 %v21290_v38  ;;  %17022 = vmatprep.subr.bf16.mxu0 %v21295_v60  ;;  %v21376_v38 = vld [vmem:[%s28988_s3 + $0x1d54] ss:$24 sps:$4 sm:$0xff]   ;;  %v21374_v60 = vld [vmem:[%s28988_s3 + $0x1d50] ss:$24 sps:$4 sm:$0xff]  }
 0x902   :  { %16679 = vmatprep.subr.bf16.mxu1 %v21298_v46  ;;  %v21379_v46 = vld [vmem:[%s28988_s3 + $0x1d84] ss:$24 sps:$4 sm:$0xff]  }
 0x904   :  { %17023 = vmatpush1.bf16.msra.mxu0 %v21293_v43  ;;  %v21377_v43 = vld [vmem:[%s28988_s3 + $0x1d80] ss:$24 sps:$4 sm:$0xff]  }
 0x905   :  { %16680 = vmatpush1.bf16.msra.mxu1 %v21296_v4  ;;  %17024 = vmatprep.subr.bf16.mxu0 %v21301_v23  ;;  %v21382_v4 = vld [vmem:[%s28988_s3 + $0x1db4] ss:$24 sps:$4 sm:$0xff]   ;;  %v21380_v23 = vld [vmem:[%s28988_s3 + $0x1db0] ss:$24 sps:$4 sm:$0xff]  }
 0x908   :  { %17025 = vmatpush1.bf16.msra.mxu0 %v21299_v58  ;;  %16682 = vmatmul.mubr.bf16.vlgmr.msra.gmra.mrb[32].mxu1 %v26982_v12  ;;  %v21385_v58 = vld [vmem:[%s28988_s3 + $0x1de4] ss:$24 sps:$4 sm:$0xff]  }
 0x909   :  { %17026 = vmatprep.subr.bf16.mxu0 %v21304_v53  ;;  %v21383_v53 = vld [vmem:[%s28988_s3 + $0x1de0] ss:$24 sps:$4 sm:$0xff]  }
 0x90c   :  { %17027 = vmatpush1.bf16.msra.mxu0 %v21302_v52  ;;  %v21388_v52 = vld [vmem:[%s28988_s3 + $0x1e14] ss:$24 sps:$4 sm:$0xff]  }
 0x90d   :  { %17028 = vmatprep.subr.bf16.mxu0 %v21307_v21  ;;  %v21386_v21 = vld [vmem:[%s28988_s3 + $0x1e10] ss:$24 sps:$4 sm:$0xff]  }
 0x910   :  { %17029 = vmatpush1.bf16.msra.mxu0 %v21305_v50  ;;  %v21391_v50 = vld [vmem:[%s28988_s3 + $0x1e44] ss:$24 sps:$4 sm:$0xff]  }
 0x911   :  { %17030 = vmatprep.subr.bf16.mxu0 %v21310_v9  ;;  %v21389_v9 = vld [vmem:[%s28988_s3 + $0x1e40] ss:$24 sps:$4 sm:$0xff]  }
 0x914   :  { %17031 = vmatpush1.bf16.msra.mxu0 %v21308_v7  ;;  %v21394_v7 = vld [vmem:[%s28988_s3 + $0x1e74] ss:$24 sps:$4 sm:$0xff]  }
 0x915   :  { %17032 = vmatprep.subr.bf16.mxu0 %v21313_v32  ;;  %v21392_v32 = vld [vmem:[%s28988_s3 + $0x1e70] ss:$24 sps:$4 sm:$0xff]  }
 0x918   :  { %17033 = vmatpush1.bf16.msra.mxu0 %v21311_v18  ;;  %v21400_v18 = vld [vmem:[%s28988_s3 + $0x1ed4] ss:$24 sps:$4 sm:$0xff]  }
 0x919   :  { %17034 = vmatprep.subr.bf16.mxu0 %v21316_v27  ;;  %v21398_v27 = vld [vmem:[%s28988_s3 + $0x1ed0] ss:$24 sps:$4 sm:$0xff]  }
 0x91c   :  { %17035 = vmatpush1.bf16.msra.mxu0 %v21314_v15  ;;  %v21403_v15 = vld [vmem:[%s28988_s3 + $0x1f04] ss:$24 sps:$4 sm:$0xff]  }
 0x91d   :  { %17036 = vmatprep.subr.bf16.mxu0 %v21319_v59  ;;  %v21401_v59 = vld [vmem:[%s28988_s3 + $0x1f00] ss:$24 sps:$4 sm:$0xff]  }
 0x920   :  { %17037 = vmatpush1.bf16.msra.mxu0 %v21317_v5  ;;  %v21406_v5 = vld [vmem:[%s28988_s3 + $0x1f34] ss:$24 sps:$4 sm:$0xff]  }
 0x921   :  { %17038 = vmatprep.subr.bf16.mxu0 %v21322_v8  ;;  %v21404_v8 = vld [vmem:[%s28988_s3 + $0x1f30] ss:$24 sps:$4 sm:$0xff]  }
 0x924   :  { %17039 = vmatpush1.bf16.msra.mxu0 %v21320_v11  ;;  %v21409_v11 = vld [vmem:[%s28988_s3 + $0x1f64] ss:$24 sps:$4 sm:$0xff]  }
 0x925   :  { %17040 = vmatprep.subr.bf16.mxu0 %v21325_v45  ;;  %v21407_v45 = vld [vmem:[%s28988_s3 + $0x1f60] ss:$24 sps:$4 sm:$0xff]  }
 0x928   :  { %17041 = vmatpush1.bf16.msra.mxu0 %v21323_v10  ;;  %v21412_v10 = vld [vmem:[%s28988_s3 + $0x1f94] ss:$24 sps:$4 sm:$0xff]  }
 0x929   :  { %17042 = vmatprep.subr.bf16.mxu0 %v21328_v41  ;;  %v21410_v41 = vld [vmem:[%s28988_s3 + $0x1f90] ss:$24 sps:$4 sm:$0xff]  }
 0x92c   :  { %17043 = vmatpush1.bf16.msra.mxu0 %v21326_v3  ;;  %v21415_v3 = vld [vmem:[%s28988_s3 + $0x1fc4] ss:$24 sps:$4 sm:$0xff]  }
 0x92d   :  { %17044 = vmatprep.subr.bf16.mxu0 %v21331_v6  ;;  %v21413_v6 = vld [vmem:[%s28988_s3 + $0x1fc0] ss:$24 sps:$4 sm:$0xff]  }
 0x930   :  { %17045 = vmatpush1.bf16.msra.mxu0 %v21329_v57  ;;  %v21418_v57 = vld [vmem:[%s28988_s3 + $0x1ff4] ss:$24 sps:$4 sm:$0xff]  }
 0x931   :  { %17046 = vmatprep.subr.bf16.mxu0 %v21334_v20  ;;  %v21416_v20 = vld [vmem:[%s28988_s3 + $0x1ff0] ss:$24 sps:$4 sm:$0xff]  }
 0x934   :  { %17047 = vmatpush1.bf16.msra.mxu0 %v21332_v61  ;;  %v21421_v61 = vld [vmem:[%s28988_s3 + $0x2024] ss:$24 sps:$4 sm:$0xff]  }
 0x935   :  { %17048 = vmatprep.subr.bf16.mxu0 %v21337_v16  ;;  %v21419_v16 = vld [vmem:[%s28988_s3 + $0x2020] ss:$24 sps:$4 sm:$0xff]  }
 0x938   :  { %17049 = vmatpush1.bf16.msra.mxu0 %v21335_v48  ;;  %v21424_v48 = vld [vmem:[%s28988_s3 + $0x2054] ss:$24 sps:$4 sm:$0xff]  }
 0x939   :  { %17059 = vmatprep.subr.bf16.mxu0 %v21340_v26  ;;  %v21422_v26 = vld [vmem:[%s28988_s3 + $0x2050] ss:$24 sps:$4 sm:$0xff]  }
 0x93b   :  { %17051 = vmatmul.mubr.bf16.vlgmr.msra.gmra.mrb[20].mxu0 %v26165_v2  ;;  %v21349_v2 = vld [vmem:[%s28988_s3 + $0x1ba4] ss:$24 sps:$4 sm:$0xff]  }
 0x93c   :  { %17060 = vmatpush1.bf16.msra.mxu0 %v21338_v0  ;;  %17091 = vmatprep.mubr.bf16.mxu0 %v26461_v49  ;;  %v21347_v49 = vld [vmem:[%s28988_s3 + $0x1ba0] ss:$24 sps:$4 sm:$0xff]   ;;  %v21427_v0 = vld [vmem:[%s28988_s3 + $0x2084] ss:$24 sps:$4 sm:$0xff]  }
 0x93d   :  { %17061 = vmatprep.subr.bf16.mxu0 %v21343_v19  ;;  %v21425_v19 = vld [vmem:[%s28988_s3 + $0x2080] ss:$24 sps:$4 sm:$0xff]  }
 0x940   :  { %17062 = vmatpush1.bf16.msra.mxu0 %v21341_v13  ;;  %v21430_v13 = vld [vmem:[%s28988_s3 + $0x20b4] ss:$24 sps:$4 sm:$0xff]  }
 0x941   :  { %17063 = vmatprep.subr.bf16.mxu0 %v21346_v28  ;;  %v21428_v28 = vld [vmem:[%s28988_s3 + $0x20b0] ss:$24 sps:$4 sm:$0xff]  }
 0x944   :  { %17064 = vmatpush1.bf16.msra.mxu0 %v21344_v29  ;;  %v21433_v29 = vld [vmem:[%s28988_s3 + $0x20e4] ss:$24 sps:$4 sm:$0xff]  }
 0x945   :  { %17065 = vmatprep.subr.bf16.mxu0 %v21349_v2  ;;  %v21431_v2 = vld [vmem:[%s28988_s3 + $0x20e0] ss:$24 sps:$4 sm:$0xff]  }
 0x948   :  { %17066 = vmatpush1.bf16.msra.mxu0 %v21347_v49  ;;  %v21436_v49 = vld [vmem:[%s28988_s3 + $0x2114] ss:$24 sps:$4 sm:$0xff]  }
 0x949   :  { %17067 = vmatprep.subr.bf16.mxu0 %v21352_v30  ;;  %v21434_v30 = vld [vmem:[%s28988_s3 + $0x2110] ss:$24 sps:$4 sm:$0xff]  }
 0x94c   :  { %17068 = vmatpush1.bf16.msra.mxu0 %v21350_v63  ;;  %v21439_v63 = vld [vmem:[%s28988_s3 + $0x2144] ss:$24 sps:$4 sm:$0xff]  }
 0x94d   :  { %17069 = vmatprep.subr.bf16.mxu0 %v21355_v39  ;;  %v21437_v39 = vld [vmem:[%s28988_s3 + $0x2140] ss:$24 sps:$4 sm:$0xff]  }
 0x950   :  { %17070 = vmatpush1.bf16.msra.mxu0 %v21353_v56  ;;  %v21442_v56 = vld [vmem:[%s28988_s3 + $0x2174] ss:$24 sps:$4 sm:$0xff]  }
 0x951   :  { %17071 = vmatprep.subr.bf16.mxu0 %v21358_v51  ;;  %v21440_v51 = vld [vmem:[%s28988_s3 + $0x2170] ss:$24 sps:$4 sm:$0xff]  }
 0x954   :  { %17072 = vmatpush1.bf16.msra.mxu0 %v21356_v34  ;;  %v21448_v34 = vld [vmem:[%s28988_s3 + $0x21d4] ss:$24 sps:$4 sm:$0xff]  }
 0x955   :  { %17073 = vmatprep.subr.bf16.mxu0 %v21361_v1  ;;  %v21446_v1 = vld [vmem:[%s28988_s3 + $0x21d0] ss:$24 sps:$4 sm:$0xff]  }
 0x958   :  { %17074 = vmatpush1.bf16.msra.mxu0 %v21359_v17  ;;  %v21451_v17 = vld [vmem:[%s28988_s3 + $0x2204] ss:$24 sps:$4 sm:$0xff]  }
 0x959   :  { %17075 = vmatprep.subr.bf16.mxu0 %v21364_v25  ;;  %v21449_v25 = vld [vmem:[%s28988_s3 + $0x2200] ss:$24 sps:$4 sm:$0xff]  }
 0x95c   :  { %17076 = vmatpush1.bf16.msra.mxu0 %v21362_v14  ;;  %v21454_v14 = vld [vmem:[%s28988_s3 + $0x2234] ss:$24 sps:$4 sm:$0xff]  }
 0x95d   :  { %17077 = vmatprep.subr.bf16.mxu0 %v21367_v40  ;;  %v21452_v40 = vld [vmem:[%s28988_s3 + $0x2230] ss:$24 sps:$4 sm:$0xff]  }
 0x960   :  { %17078 = vmatpush1.bf16.msra.mxu0 %v21365_v33  ;;  %v21457_v33 = vld [vmem:[%s28988_s3 + $0x2264] ss:$24 sps:$4 sm:$0xff]  }
 0x961   :  { %17079 = vmatprep.subr.bf16.mxu0 %v21370_v35  ;;  %v21455_v35 = vld [vmem:[%s28988_s3 + $0x2260] ss:$24 sps:$4 sm:$0xff]  }
 0x964   :  { %17080 = vmatpush1.bf16.msra.mxu0 %v21368_v36  ;;  %v21460_v36 = vld [vmem:[%s28988_s3 + $0x2294] ss:$24 sps:$4 sm:$0xff]  }
 0x965   :  { %17081 = vmatprep.subr.bf16.mxu0 %v21373_v24  ;;  %v21458_v24 = vld [vmem:[%s28988_s3 + $0x2290] ss:$24 sps:$4 sm:$0xff]  }
 0x968   :  { %17082 = vmatpush1.bf16.msra.mxu0 %v21371_v22  ;;  %v21535_v22 = vld [vmem:[%s28990_s4] sm:$0x3f] }
 0x969   :  { %17083 = vmatprep.subr.bf16.mxu0 %v21376_v38  ;;  %v9927_v38 = vrot.slane %v21535_v22, %v24271_v42  ;;  %v21466_v42 = vld [vmem:[%s28988_s3 + $0x22f4] ss:$24 sps:$4 sm:$0xff]  }
 0x96c   :  { %17084 = vmatpush1.bf16.msra.mxu0 %v21374_v60  ;;  %v9931_v60 = vrot.slane %v21535_v22, %v24051_v54 }
 0x96d   :  { %17085 = vmatprep.subr.bf16.mxu0 %v21379_v46  ;;  %v21463_v46 = vld [vmem:[%s28988_s3 + $0x22c4] ss:$24 sps:$4 sm:$0xff]  }
 0x970   :  { %17086 = vmatpush1.bf16.msra.mxu0 %v21377_v43 }
 0x971   :  { %17087 = vmatprep.subr.bf16.mxu0 %v21382_v4 }
 0x974   :  { %17088 = vmatpush1.bf16.msra.mxu0 %v21380_v23 }
 0x975   :  { %17089 = vmatprep.subr.bf16.mxu0 %v21385_v58  ;;  %v21461_v58 = vld [vmem:[%s28988_s3 + $0x22c0] ss:$24 sps:$4 sm:$0xff]  }
 0x978   :  { %17090 = vmatpush1.bf16.msra.mxu0 %v21383_v53 }
 0x979   :  { %17100 = vmatprep.subr.bf16.mxu0 %v21388_v52 }
 0x97b   :  { %17092 = vmatmul.mubr.bf16.vlgmr.msra.gmra.mrb[20].mxu0 %v26466_v62  ;;  %v21397_v62 = vld [vmem:[%s28988_s3 + $0x1ea4] ss:$24 sps:$4 sm:$0xff]  }
 0x97c   :  { %17101 = vmatpush1.bf16.msra.mxu0 %v21386_v21  ;;  %17132 = vmatprep.mubr.bf16.mxu0 %v26475_v37  ;;  %v21395_v37 = vld [vmem:[%s28988_s3 + $0x1ea0] ss:$24 sps:$4 sm:$0xff]   ;;  %v21464_v21 = vld [vmem:[%s28988_s3 + $0x22f0] ss:$24 sps:$4 sm:$0xff]  }
 0x97d   :  { %17102 = vmatprep.subr.bf16.mxu0 %v21391_v50  ;;  %v21469_v50 = vld [vmem:[%s28988_s3 + $0x2324] ss:$24 sps:$4 sm:$0xff]  }
 0x980   :  { %17103 = vmatpush1.bf16.msra.mxu0 %v21389_v9  ;;  %v21467_v9 = vld [vmem:[%s28988_s3 + $0x2320] ss:$24 sps:$4 sm:$0xff]  }
 0x981   :  { %17104 = vmatprep.subr.bf16.mxu0 %v21394_v7  ;;  %v21472_v7 = vld [vmem:[%s28988_s3 + $0x2354] ss:$24 sps:$4 sm:$0xff]  }
 0x984   :  { %17105 = vmatpush1.bf16.msra.mxu0 %v21392_v32  ;;  %v21470_v32 = vld [vmem:[%s28988_s3 + $0x2350] ss:$24 sps:$4 sm:$0xff]  }
 0x985   :  { %17106 = vmatprep.subr.bf16.mxu0 %v21397_v62  ;;  %v21475_v62 = vld [vmem:[%s28988_s3 + $0x2384] ss:$24 sps:$4 sm:$0xff]  }
 0x988   :  { %17107 = vmatpush1.bf16.msra.mxu0 %v21395_v37  ;;  %v21473_v37 = vld [vmem:[%s28988_s3 + $0x2380] ss:$24 sps:$4 sm:$0xff]  }
 0x989   :  { %17108 = vmatprep.subr.bf16.mxu0 %v21400_v18  ;;  %v21478_v18 = vld [vmem:[%s28988_s3 + $0x23b4] ss:$24 sps:$4 sm:$0xff]  }
 0x98c   :  { %17109 = vmatpush1.bf16.msra.mxu0 %v21398_v27  ;;  %v21476_v27 = vld [vmem:[%s28988_s3 + $0x23b0] ss:$24 sps:$4 sm:$0xff]  }
 0x98d   :  { %17110 = vmatprep.subr.bf16.mxu0 %v21403_v15  ;;  %v21481_v15 = vld [vmem:[%s28988_s3 + $0x23e4] ss:$24 sps:$4 sm:$0xff]  }
 0x990   :  { %17111 = vmatpush1.bf16.msra.mxu0 %v21401_v59  ;;  %v21479_v59 = vld [vmem:[%s28988_s3 + $0x23e0] ss:$24 sps:$4 sm:$0xff]  }
 0x991   :  { %17112 = vmatprep.subr.bf16.mxu0 %v21406_v5  ;;  %v9935_v5 = vrot.slane %v21535_v22, %v24509_v44 }
 0x994   :  { %17113 = vmatpush1.bf16.msra.mxu0 %v21404_v8  ;;  %v9939_v8 = vrot.slane %v21535_v22, %v24286_v47 }
 0x995   :  { %17114 = vmatprep.subr.bf16.mxu0 %v21409_v11 }
 0x998   :  { %17115 = vmatpush1.bf16.msra.mxu0 %v21407_v45 }
 0x999   :  { %17116 = vmatprep.subr.bf16.mxu0 %v21412_v10 }
 0x99c   :  { %17117 = vmatpush1.bf16.msra.mxu0 %v21410_v41 }
 0x99d   :  { %17118 = vmatprep.subr.bf16.mxu0 %v21415_v3 }
 0x9a0   :  { %17119 = vmatpush1.bf16.msra.mxu0 %v21413_v6 }
 0x9a1   :  { %17120 = vmatprep.subr.bf16.mxu0 %v21418_v57 }
 0x9a4   :  { %17121 = vmatpush1.bf16.msra.mxu0 %v21416_v20 }
 0x9a5   :  { %17122 = vmatprep.subr.bf16.mxu0 %v21421_v61 }
 0x9a8   :  { %17123 = vmatpush1.bf16.msra.mxu0 %v21419_v16 }
 0x9a9   :  { %17124 = vmatprep.subr.bf16.mxu0 %v21424_v48 }
 0x9ac   :  { %17125 = vmatpush1.bf16.msra.mxu0 %v21422_v26 }
 0x9ad   :  { %17126 = vmatprep.subr.bf16.mxu0 %v21427_v0 }
 0x9b0   :  { %17127 = vmatpush1.bf16.msra.mxu0 %v21425_v19 }
 0x9b1   :  { %17128 = vmatprep.subr.bf16.mxu0 %v21430_v13 }
 0x9b4   :  { %17129 = vmatpush1.bf16.msra.mxu0 %v21428_v28 }
 0x9b5   :  { %17130 = vmatprep.subr.bf16.mxu0 %v21433_v29 }
 0x9b8   :  { %17131 = vmatpush1.bf16.msra.mxu0 %v21431_v2 }
 0x9b9   :  { %17141 = vmatprep.subr.bf16.mxu0 %v21436_v49 }
 0x9bb   :  { %17133 = vmatmul.mubr.bf16.vlgmr.msra.gmra.mrb[20].mxu0 %v26681_v55  ;;  %v21445_v55 = vld [vmem:[%s28988_s3 + $0x21a4] ss:$24 sps:$4 sm:$0xff]  }
 0x9bc   :  { %17142 = vmatpush1.bf16.msra.mxu0 %v21434_v30  ;;  %17173 = vmatprep.mubr.bf16.mxu0 %v26977_v31  ;;  %v21443_v31 = vld [vmem:[%s28988_s3 + $0x21a0] ss:$24 sps:$4 sm:$0xff]  }
 0x9bd   :  { %17143 = vmatprep.subr.bf16.mxu0 %v21439_v63 }
 0x9c0   :  { %17144 = vmatpush1.bf16.msra.mxu0 %v21437_v39 }
 0x9c1   :  { %17145 = vmatprep.subr.bf16.mxu0 %v21442_v56 }
 0x9c4   :  { %17146 = vmatpush1.bf16.msra.mxu0 %v21440_v51 }
 0x9c5   :  { %17147 = vmatprep.subr.bf16.mxu0 %v21445_v55 }
 0x9c8   :  { %17148 = vmatpush1.bf16.msra.mxu0 %v21443_v31 }
 0x9c9   :  { %17149 = vmatprep.subr.bf16.mxu0 %v21448_v34 }
 0x9cc   :  { %17150 = vmatpush1.bf16.msra.mxu0 %v21446_v1 }
 0x9cd   :  { %17151 = vmatprep.subr.bf16.mxu0 %v21451_v17 }
 0x9d0   :  { %17152 = vmatpush1.bf16.msra.mxu0 %v21449_v25 }
 0x9d1   :  { %17153 = vmatprep.subr.bf16.mxu0 %v21454_v14 }
 0x9d4   :  { %17154 = vmatpush1.bf16.msra.mxu0 %v21452_v40 }
 0x9d5   :  { %17155 = vmatprep.subr.bf16.mxu0 %v21457_v33 }
 0x9d8   :  { %17156 = vmatpush1.bf16.msra.mxu0 %v21455_v35 }
 0x9d9   :  { %17157 = vmatprep.subr.bf16.mxu0 %v21460_v36 }
 0x9db   :  { %v16683_v43 = vpop.f32.mrb[32].mxu1 }
 0x9dc   :  { %v19522_v4 = vadd.f32 %v16683_v43, %v9927_v38  ;;  %17158 = vmatpush1.bf16.msra.mxu0 %v21458_v24  ;;  %v16685_v23 = vpop.f32.mrb[33].mxu1 }
 0x9dd   :  { %v19523_v53 = vadd.f32 %v16685_v23, %v9931_v60  ;;  %v16687_v52 = vpop.f32.mrb[34].mxu1  ;;  %17159 = vmatprep.subr.bf16.mxu0 %v21463_v46 }
 0x9de   :  { %17184 = vst [vmem:[%s28991_s5 + $0x10] sm:$0xff] %v19522_v4  ;;  %v16688_v54 = vpop.f32.mrb[35].mxu1 }
 0x9df   :  { %17185 = vst [vmem:[%s28991_s5 + $0x18] sm:$0xff] %v19523_v53 }
 0x9e0   :  { %17160 = vmatpush1.bf16.msra.mxu0 %v21461_v58 }
 0x9e1   :  { %17161 = vmatprep.subr.bf16.mxu0 %v21466_v42 }
 0x9e4   :  { %17162 = vmatpush1.bf16.msra.mxu0 %v21464_v21 }
 0x9e5   :  { %17163 = vmatprep.subr.bf16.mxu0 %v21469_v50 }
 0x9e8   :  { %17164 = vmatpush1.bf16.msra.mxu0 %v21467_v9 }
 0x9e9   :  { %17165 = vmatprep.subr.bf16.mxu0 %v21472_v7 }
 0x9ec   :  { %17166 = vmatpush1.bf16.msra.mxu0 %v21470_v32 }
 0x9ed   :  { %17167 = vmatprep.subr.bf16.mxu0 %v21475_v62 }
 0x9f0   :  { %17168 = vmatpush1.bf16.msra.mxu0 %v21473_v37 }
 0x9f1   :  { %17169 = vmatprep.subr.bf16.mxu0 %v21478_v18 }
 0x9f4   :  { %17170 = vmatpush1.bf16.msra.mxu0 %v21476_v27 }
 0x9f5   :  { %17171 = vmatprep.subr.bf16.mxu0 %v21481_v15 }
 0x9f8   :  { %17172 = vmatpush1.bf16.msra.mxu0 %v21479_v59 }
 0x9fb   :  { %17174 = vmatmul.mubr.bf16.vlgmr.msra.gmra.mrb[20].mxu0 %v26982_v12 }
 0xace   :  { %v17175_v11 = vpop.f32.mrb[20].mxu0 }
 0xacf   :  { %v19524_v45 = vadd.f32 %v17175_v11, %v9935_v5  ;;  %v17177_v10 = vpop.f32.mrb[21].mxu0 }
 0xad0   :  { %v19525_v41 = vadd.f32 %v17177_v10, %v9939_v8  ;;  %v17179_v3 = vpop.f32.mrb[22].mxu0 }
 0xad1   :  { %17186 = vst [vmem:[%s28991_s5 + $0x20] sm:$0xff] %v19524_v45  ;;  %v17180_v6 = vpop.f32.mrb[23].mxu0 }
 0xad2   :  { %17187 = vst [vmem:[%s28991_s5 + $0x28] sm:$0xff] %v19525_v41 }

</bundles_post_ra>
